<compile_context>
chip_gen: v6e
topology: v6e:2x2x1
jax: 0.10.0
libtpu: 0.0.40
codegen_flags: <defaults>
</compile_context>

<pallas_src>
import functools

import jax
import jax.numpy as jnp
from jax.experimental import pallas as pl
from jax.experimental.pallas import tpu as pltpu

MXU_DTYPE = jnp.float32     # jnp.bfloat16 on v6e/v7x for 2x MXU throughput


# ---------------------------------------------------------------------------
# Fused RCAB kernel
# ---------------------------------------------------------------------------
def rcab_kernel(x_ref, w1_ref, shift1_ref, w2_ref, shift2_ref,
                cw1t_ref, cb1_ref, cw2_ref, cb2_ref,
                o_ref, xp1, xp2, *, H, W, C, K, NB):
    # x_ref          : (NB, H, W, C)           NB images per grid step (VMEM block)
    # w1_ref/w2_ref  : (K*K, C, C)              per-tap conv weights, BN scale folded
    # shift*_ref     : (1, C)                   beta + (bias - mean) * scale
    # cw1t_ref/cb1_ref: (Cr, C), (Cr, 1)        CA squeeze 1x1 conv (weight transposed)
    # cw2_ref/cb2_ref : (Cr, C), (1, C)         CA excite  1x1 conv
    # o_ref          : (NB, H, W, C)
    # xp1, xp2       : (NB, H+2p, W+2p, C) f32  zero-padded x / zero-padded h1
    pad = K // 2
    Hp, Wp = H + 2 * pad, W + 2 * pad
    M = H * W
    inv_hw = 1.0 / float(M)

    # ---- zero ONLY the halo; the interior is fully overwritten every step ----
    if pad:
        zrow = jnp.zeros((NB, pad, Wp, C), jnp.float32)
        zcol = jnp.zeros((NB, Hp, pad, C), jnp.float32)
        for xp in (xp1, xp2):
            xp[:, 0:pad, :, :] = zrow
            xp[:, pad + H:, :, :] = zrow
            xp[:, :, 0:pad, :] = zcol
            xp[:, :, pad + W:, :] = zcol

    # ---- stage the zero-padded input in VMEM (no jnp.pad pass through HBM) ----
    xp1[:, pad:pad + H, pad:pad + W, :] = x_ref[...].astype(jnp.float32)

    shift1 = shift1_ref[...]
    shift2 = shift2_ref[...]

    def conv_img(xp, n, w_ref, shift, relu):
        # 3x3 conv for image n as 9 per-tap (M, C) x (C, C) matmuls, f32 accumulation.
        acc = jnp.zeros((M, C), jnp.float32)
        for dy in range(K):
            for dx in range(K):
                tap = xp[n, dy:dy + H, dx:dx + W, :].reshape(M, C)
                acc = acc + jnp.dot(tap.astype(MXU_DTYPE), w_ref[dy * K + dx],
                                    preferred_element_type=jnp.float32)
        out = acc + shift
        return jnp.maximum(out, 0.0) if relu else out

    for n in range(NB):
        # conv1 + BN (scale folded) + ReLU -> directly into padded scratch 2
        h1 = conv_img(xp1, n, w1_ref, shift1, True)
        xp2[n, pad:pad + H, pad:pad + W, :] = h1.reshape(H, W, C)

        # conv2 + BN (scale folded)
        h2 = conv_img(xp2, n, w2_ref, shift2, False)                 # (M, C) f32

        # ---- CALayer on the VPU/XLU (no single-row MXU matmuls) ----
        y = jnp.sum(h2, axis=0, keepdims=True) * inv_hw              # (1, C)
        a = jnp.maximum(
            jnp.sum(y * cw1t_ref[...], axis=1, keepdims=True) + cb1_ref[...],
            0.0)                                                     # (Cr, 1)
        s = jax.nn.sigmoid(
            jnp.sum(a * cw2_ref[...], axis=0, keepdims=True) + cb2_ref[...])  # (1, C)

        # ---- scale + residual ----
        out = h2 * s + x_ref[n].reshape(M, C).astype(jnp.float32)
        o_ref[n] = out.reshape(H, W, C).astype(o_ref.dtype)


def _images_per_step(n):
    """Whole batch per step on 1-TC chips (v5e/v6e); one image per core on v7x."""
    try:
        kind = jax.devices()[0].device_kind.lower()
    except Exception:
        kind = ""
    if "v7" in kind and n >= 2:
        return 1
    return n


def rcab_forward(x, kp, *, kernel_size):
    N, H, W, C = x.shape
    K = kernel_size
    Cr = kp["ca_w1t"].shape[0]
    pad = K // 2
    NB = _images_per_step(N)

    kernel = functools.partial(rcab_kernel, H=H, W=W, C=C, K=K, NB=NB)
    return pl.pallas_call(
        kernel,
        out_shape=jax.ShapeDtypeStruct((N, H, W, C), x.dtype),
        grid=(N // NB,),
        in_specs=[
            pl.BlockSpec((NB, H, W, C), lambda g: (g, 0, 0, 0)),
            pl.BlockSpec((K * K, C, C), lambda g: (0, 0, 0)),
            pl.BlockSpec((1, C), lambda g: (0, 0)),
            pl.BlockSpec((K * K, C, C), lambda g: (0, 0, 0)),
            pl.BlockSpec((1, C), lambda g: (0, 0)),
            pl.BlockSpec((Cr, C), lambda g: (0, 0)),
            pl.BlockSpec((Cr, 1), lambda g: (0, 0)),
            pl.BlockSpec((Cr, C), lambda g: (0, 0)),
            pl.BlockSpec((1, C), lambda g: (0, 0)),
        ],
        out_specs=pl.BlockSpec((NB, H, W, C), lambda g: (g, 0, 0, 0)),
        scratch_shapes=[
            pltpu.VMEM((NB, H + 2 * pad, W + 2 * pad, C), jnp.float32),
            pltpu.VMEM((NB, H + 2 * pad, W + 2 * pad, C), jnp.float32),
        ],
        compiler_params=pltpu.CompilerParams(dimension_semantics=("parallel",)),
    )(x, kp["w1f"], kp["shift1"], kp["w2f"], kp["shift2"],
      kp["ca_w1t"], kp["ca_b1"], kp["ca_w2"], kp["ca_b2"])


# ---------------------------------------------------------------------------
# Pure-JAX reference (correctness check only) — uses the raw module parameters
# ---------------------------------------------------------------------------
def rcab_reference(x, p, eps=1e-5):
    def conv_bn(inp, w, b, gamma, beta, mean, var, relu):
        y = jax.lax.conv_general_dilated(
            inp, w, window_strides=(1, 1), padding="SAME",
            dimension_numbers=("NHWC", "HWIO", "NHWC")) + b
        y = gamma * (y - mean) / jnp.sqrt(var + eps) + beta
        return jnp.maximum(y, 0.0) if relu else y

    h1 = conv_bn(x, p["w1"], p["b1"], p["g1"], p["be1"], p["m1"], p["v1"], True)
    h2 = conv_bn(h1, p["w2"], p["b2"], p["g2"], p["be2"], p["m2"], p["v2"], False)
    y = jnp.mean(h2, axis=(1, 2), keepdims=True)                         # (N,1,1,C)
    hdn = jnp.maximum(jnp.einsum("nijc,cd->nijd", y, p["ca_w1"]) + p["ca_b1"], 0.0)
    s = jax.nn.sigmoid(jnp.einsum("nijd,dc->nijc", hdn, p["ca_w2"]) + p["ca_b2"])
    return h2 * s + x


# ---------------------------------------------------------------------------
# Parameter construction + one-time host-side folding (BN/bias into weights/shift)
# ---------------------------------------------------------------------------
def make_params(key, n_feat, kernel_size, reduction):
    C, K, Cr = n_feat, kernel_size, n_feat // reduction
    ks = jax.random.split(key, 12)

    w1 = jax.random.normal(ks[0], (K, K, C, C), jnp.float32) * 0.1
    b1 = jax.random.normal(ks[1], (C,), jnp.float32) * 0.1
    g1 = 1.0 + 0.1 * jax.random.normal(ks[2], (C,), jnp.float32)
    be1 = 0.1 * jax.random.normal(ks[3], (C,), jnp.float32)
    m1 = 0.1 * jax.random.normal(ks[4], (C,), jnp.float32)
    v1 = 1.0 + 0.1 * jax.random.uniform(ks[5], (C,), jnp.float32)

    w2 = jax.random.normal(ks[6], (K, K, C, C), jnp.float32) * 0.1
    b2 = jax.random.normal(ks[7], (C,), jnp.float32) * 0.1
    g2 = 1.0 + 0.1 * jax.random.normal(ks[8], (C,), jnp.float32)
    be2 = 0.1 * jax.random.normal(ks[9], (C,), jnp.float32)
    m2 = 0.1 * jax.random.normal(ks[10], (C,), jnp.float32)
    v2 = 1.0 + 0.1 * jax.random.uniform(ks[11], (C,), jnp.float32)

    kca = jax.random.split(jax.random.fold_in(key, 123), 4)
    ca_w1 = jax.random.normal(kca[0], (C, Cr), jnp.float32) * 0.2
    ca_b1 = jax.random.normal(kca[1], (Cr,), jnp.float32) * 0.1
    ca_w2 = jax.random.normal(kca[2], (Cr, C), jnp.float32) * 0.2
    ca_b2 = jax.random.normal(kca[3], (C,), jnp.float32) * 0.1

    return dict(w1=w1, b1=b1, g1=g1, be1=be1, m1=m1, v1=v1,
                w2=w2, b2=b2, g2=g2, be2=be2, m2=m2, v2=v2,
                ca_w1=ca_w1, ca_b1=ca_b1, ca_w2=ca_w2, ca_b2=ca_b2)


def fold_params(p, kernel_size, eps=1e-5):
    """One-time host-side prep: fold eval-mode BN scale into per-tap conv weights,
    pre-cast MXU operands, pre-transpose the CA squeeze weight."""
    K = kernel_size
    C = p["w1"].shape[-1]
    Cr = p["ca_w1"].shape[-1]

    def fold(w, b, gamma, beta, mean, var):
        scale = gamma / jnp.sqrt(var + eps)                      # (C,) out channels
        w_folded = (w * scale).reshape(K * K, C, C)              # (tap, ci, co)
        shift = beta + (b - mean) * scale
        return w_folded.astype(MXU_DTYPE), shift.reshape(1, C)

    w1f, shift1 = fold(p["w1"], p["b1"], p["g1"], p["be1"], p["m1"], p["v1"])
    w2f, shift2 = fold(p["w2"], p["b2"], p["g2"], p["be2"], p["m2"], p["v2"])
    return dict(w1f=w1f, shift1=shift1, w2f=w2f, shift2=shift2,
                ca_w1t=p["ca_w1"].T,                             # (Cr, C)
                ca_b1=p["ca_b1"].reshape(Cr, 1),
                ca_w2=p["ca_w2"],                                # (Cr, C)
                ca_b2=p["ca_b2"].reshape(1, C))


if __name__ == "__main__":
    N, H, W = 2, 16, 16
    n_feat, kernel_size, reduction = 16, 3, 4

    key = jax.random.PRNGKey(0)
    kx, kp = jax.random.split(key)
    x = jax.random.normal(kx, (N, H, W, n_feat), jnp.float32)
    params = make_params(kp, n_feat, kernel_size, reduction)
    kparams = fold_params(params, kernel_size)        # host-side, done once

    out = jax.block_until_ready(rcab_forward(x, kparams, kernel_size=kernel_size))
    ref = jax.block_until_ready(rcab_reference(x, params))

    assert out.shape == (N, H, W, n_feat)
    tol = 2e-4 if MXU_DTYPE == jnp.float32 else 2e-2
    if not jnp.allclose(out, ref, atol=tol, rtol=tol):
        err = float(jnp.max(jnp.abs(out - ref)))
        raise AssertionError(f"Pallas RCAB output does not match reference (max err {err})")

    print("KERNEL_OK")
</pallas_src>

<mosaic_0001>
module attributes {stable_mosaic.version = 11 : i64} {
  func.func @rcab_kernel(%arg0: i32, %arg1: memref<2x16x16x16xf32, #tpu.memory_space<vmem>>, %arg2: memref<9x16x16xf32, #tpu.memory_space<vmem>>, %arg3: memref<1x16xf32, #tpu.memory_space<vmem>>, %arg4: memref<9x16x16xf32, #tpu.memory_space<vmem>>, %arg5: memref<1x16xf32, #tpu.memory_space<vmem>>, %arg6: memref<4x16xf32, #tpu.memory_space<vmem>>, %arg7: memref<4x1xf32, #tpu.memory_space<vmem>>, %arg8: memref<4x16xf32, #tpu.memory_space<vmem>>, %arg9: memref<1x16xf32, #tpu.memory_space<vmem>>, %arg10: memref<2x16x16x16xf32, #tpu.memory_space<vmem>>, %arg11: memref<2x18x18x16xf32, #tpu.memory_space<vmem>>, %arg12: memref<2x18x18x16xf32, #tpu.memory_space<vmem>>) attributes {dimension_semantics = [#tpu.dimension_semantics<parallel>], iteration_bounds = array<i64: 1>, scalar_prefetch = 0 : i64, scratch_operands = 2 : i64, tpu.core_type = #tpu.core_type<tc>, window_params = [{transform_indices = @transform_0, window_bounds = array<i64: 2, 16, 16, 16>}, {pipeline_mode = #tpu.pipeline_mode<synchronous>, transform_indices = @transform_1, window_bounds = array<i64: 9, 16, 16>}, {pipeline_mode = #tpu.pipeline_mode<synchronous>, transform_indices = @transform_2, window_bounds = array<i64: 1, 16>}, {pipeline_mode = #tpu.pipeline_mode<synchronous>, transform_indices = @transform_3, window_bounds = array<i64: 9, 16, 16>}, {pipeline_mode = #tpu.pipeline_mode<synchronous>, transform_indices = @transform_4, window_bounds = array<i64: 1, 16>}, {pipeline_mode = #tpu.pipeline_mode<synchronous>, transform_indices = @transform_5, window_bounds = array<i64: 4, 16>}, {pipeline_mode = #tpu.pipeline_mode<synchronous>, transform_indices = @transform_6, window_bounds = array<i64: 4, 1>}, {pipeline_mode = #tpu.pipeline_mode<synchronous>, transform_indices = @transform_7, window_bounds = array<i64: 4, 16>}, {pipeline_mode = #tpu.pipeline_mode<synchronous>, transform_indices = @transform_8, window_bounds = array<i64: 1, 16>}, {transform_indices = @transform_9, window_bounds = array<i64: 2, 16, 16, 16>}]} {
    %cst = arith.constant 0.000000e+00 : f32
    %0 = vector.broadcast %cst : f32 to vector<2x1x18x16xf32>
    %cst_0 = arith.constant 0.000000e+00 : f32
    %1 = vector.broadcast %cst_0 : f32 to vector<2x18x1x16xf32>
    %c0 = arith.constant 0 : index
    %c0_1 = arith.constant 0 : index
    %c0_2 = arith.constant 0 : index
    %c0_3 = arith.constant 0 : index
    %2 = vector.load %arg11[%c0, %c0_1, %c0_2, %c0_3] : memref<2x18x18x16xf32, #tpu.memory_space<vmem>>, vector<2x1x18x16xf32>
    tpu.vector_store %arg11[%c0, %c0_1, %c0_2, %c0_3], %0 {strides = array<i32>} : memref<2x18x18x16xf32, #tpu.memory_space<vmem>>, vector<2x1x18x16xf32>,
    %c0_4 = arith.constant 0 : index
    %c17 = arith.constant 17 : index
    %c0_5 = arith.constant 0 : index
    %c0_6 = arith.constant 0 : index
    %3 = vector.load %arg11[%c0_4, %c17, %c0_5, %c0_6] : memref<2x18x18x16xf32, #tpu.memory_space<vmem>>, vector<2x1x18x16xf32>
    tpu.vector_store %arg11[%c0_4, %c17, %c0_5, %c0_6], %0 {strides = array<i32>} : memref<2x18x18x16xf32, #tpu.memory_space<vmem>>, vector<2x1x18x16xf32>,
    %c0_7 = arith.constant 0 : index
    %c0_8 = arith.constant 0 : index
    %c0_9 = arith.constant 0 : index
    %c0_10 = arith.constant 0 : index
    %4 = vector.load %arg11[%c0_7, %c0_8, %c0_9, %c0_10] : memref<2x18x18x16xf32, #tpu.memory_space<vmem>>, vector<2x18x1x16xf32>
    tpu.vector_store %arg11[%c0_7, %c0_8, %c0_9, %c0_10], %1 {strides = array<i32>} : memref<2x18x18x16xf32, #tpu.memory_space<vmem>>, vector<2x18x1x16xf32>,
    %c0_11 = arith.constant 0 : index
    %c0_12 = arith.constant 0 : index
    %c17_13 = arith.constant 17 : index
    %c0_14 = arith.constant 0 : index
    %5 = vector.load %arg11[%c0_11, %c0_12, %c17_13, %c0_14] : memref<2x18x18x16xf32, #tpu.memory_space<vmem>>, vector<2x18x1x16xf32>
    tpu.vector_store %arg11[%c0_11, %c0_12, %c17_13, %c0_14], %1 {strides = array<i32>} : memref<2x18x18x16xf32, #tpu.memory_space<vmem>>, vector<2x18x1x16xf32>,
    %c0_15 = arith.constant 0 : index
    %c0_16 = arith.constant 0 : index
    %c0_17 = arith.constant 0 : index
    %c0_18 = arith.constant 0 : index
    %6 = vector.load %arg12[%c0_15, %c0_16, %c0_17, %c0_18] : memref<2x18x18x16xf32, #tpu.memory_space<vmem>>, vector<2x1x18x16xf32>
    tpu.vector_store %arg12[%c0_15, %c0_16, %c0_17, %c0_18], %0 {strides = array<i32>} : memref<2x18x18x16xf32, #tpu.memory_space<vmem>>, vector<2x1x18x16xf32>,
    %c0_19 = arith.constant 0 : index
    %c17_20 = arith.constant 17 : index
    %c0_21 = arith.constant 0 : index
    %c0_22 = arith.constant 0 : index
    %7 = vector.load %arg12[%c0_19, %c17_20, %c0_21, %c0_22] : memref<2x18x18x16xf32, #tpu.memory_space<vmem>>, vector<2x1x18x16xf32>
    tpu.vector_store %arg12[%c0_19, %c17_20, %c0_21, %c0_22], %0 {strides = array<i32>} : memref<2x18x18x16xf32, #tpu.memory_space<vmem>>, vector<2x1x18x16xf32>,
    %c0_23 = arith.constant 0 : index
    %c0_24 = arith.constant 0 : index
    %c0_25 = arith.constant 0 : index
    %c0_26 = arith.constant 0 : index
    %8 = vector.load %arg12[%c0_23, %c0_24, %c0_25, %c0_26] : memref<2x18x18x16xf32, #tpu.memory_space<vmem>>, vector<2x18x1x16xf32>
    tpu.vector_store %arg12[%c0_23, %c0_24, %c0_25, %c0_26], %1 {strides = array<i32>} : memref<2x18x18x16xf32, #tpu.memory_space<vmem>>, vector<2x18x1x16xf32>,
    %c0_27 = arith.constant 0 : index
    %c0_28 = arith.constant 0 : index
    %c17_29 = arith.constant 17 : index
    %c0_30 = arith.constant 0 : index
    %9 = vector.load %arg12[%c0_27, %c0_28, %c17_29, %c0_30] : memref<2x18x18x16xf32, #tpu.memory_space<vmem>>, vector<2x18x1x16xf32>
    tpu.vector_store %arg12[%c0_27, %c0_28, %c17_29, %c0_30], %1 {strides = array<i32>} : memref<2x18x18x16xf32, #tpu.memory_space<vmem>>, vector<2x18x1x16xf32>,
    %c0_31 = arith.constant 0 : index
    %c0_32 = arith.constant 0 : index
    %c0_33 = arith.constant 0 : index
    %c0_34 = arith.constant 0 : index
    %10 = vector.load %arg1[%c0_31, %c0_32, %c0_33, %c0_34] : memref<2x16x16x16xf32, #tpu.memory_space<vmem>>, vector<2x16x16x16xf32>
    %c0_35 = arith.constant 0 : index
    %c1 = arith.constant 1 : index
    %c1_36 = arith.constant 1 : index
    %c0_37 = arith.constant 0 : index
    %11 = vector.load %arg11[%c0_35, %c1, %c1_36, %c0_37] : memref<2x18x18x16xf32, #tpu.memory_space<vmem>>, vector<2x16x16x16xf32>
    tpu.vector_store %arg11[%c0_35, %c1, %c1_36, %c0_37], %10 {strides = array<i32>} : memref<2x18x18x16xf32, #tpu.memory_space<vmem>>, vector<2x16x16x16xf32>,
    %c0_38 = arith.constant 0 : index
    %c0_39 = arith.constant 0 : index
    %12 = vector.load %arg3[%c0_38, %c0_39] : memref<1x16xf32, #tpu.memory_space<vmem>>, vector<1x16xf32>
    %c0_40 = arith.constant 0 : index
    %c0_41 = arith.constant 0 : index
    %13 = vector.load %arg5[%c0_40, %c0_41] : memref<1x16xf32, #tpu.memory_space<vmem>>, vector<1x16xf32>
    %cst_42 = arith.constant 0.000000e+00 : f32
    %14 = vector.broadcast %cst_42 : f32 to vector<256x16xf32>
    %c0_43 = arith.constant 0 : index
    %c0_44 = arith.constant 0 : index
    %c0_45 = arith.constant 0 : index
    %c0_46 = arith.constant 0 : index
    %15 = vector.load %arg11[%c0_43, %c0_44, %c0_45, %c0_46] : memref<2x18x18x16xf32, #tpu.memory_space<vmem>>, vector<1x16x16x16xf32>
    %16 = vector.shape_cast %15 : vector<1x16x16x16xf32> to vector<16x16x16xf32>
    %17 = vector.shape_cast %16 : vector<16x16x16xf32> to vector<256x16xf32>
    %c0_47 = arith.constant 0 : index
    %c0_48 = arith.constant 0 : index
    %c0_49 = arith.constant 0 : index
    %18 = vector.load %arg2[%c0_47, %c0_48, %c0_49] : memref<9x16x16xf32, #tpu.memory_space<vmem>>, vector<1x16x16xf32>
    %19 = vector.shape_cast %18 : vector<1x16x16xf32> to vector<16x16xf32>
    %cst_50 = arith.constant dense<0.000000e+00> : vector<256x16xf32>
    %20 = tpu.matmul %17, %19, %cst_50 {dimension_numbers = #tpu.dot_dimension_numbers<[1], [0], [0], [1], [0, 0, 1, 1], [], []>} : vector<256x16xf32>, vector<16x16xf32>, vector<256x16xf32> -> vector<256x16xf32>
    %21 = arith.addf %14, %20 : vector<256x16xf32>
    %c0_51 = arith.constant 0 : index
    %c0_52 = arith.constant 0 : index
    %c1_53 = arith.constant 1 : index
    %c0_54 = arith.constant 0 : index
    %22 = vector.load %arg11[%c0_51, %c0_52, %c1_53, %c0_54] : memref<2x18x18x16xf32, #tpu.memory_space<vmem>>, vector<1x16x16x16xf32>
    %23 = vector.shape_cast %22 : vector<1x16x16x16xf32> to vector<16x16x16xf32>
    %24 = vector.shape_cast %23 : vector<16x16x16xf32> to vector<256x16xf32>
    %c1_55 = arith.constant 1 : index
    %c0_56 = arith.constant 0 : index
    %c0_57 = arith.constant 0 : index
    %25 = vector.load %arg2[%c1_55, %c0_56, %c0_57] : memref<9x16x16xf32, #tpu.memory_space<vmem>>, vector<1x16x16xf32>
    %26 = vector.shape_cast %25 : vector<1x16x16xf32> to vector<16x16xf32>
    %cst_58 = arith.constant dense<0.000000e+00> : vector<256x16xf32>
    %27 = tpu.matmul %24, %26, %cst_58 {dimension_numbers = #tpu.dot_dimension_numbers<[1], [0], [0], [1], [0, 0, 1, 1], [], []>} : vector<256x16xf32>, vector<16x16xf32>, vector<256x16xf32> -> vector<256x16xf32>
    %28 = arith.addf %21, %27 : vector<256x16xf32>
    %c0_59 = arith.constant 0 : index
    %c0_60 = arith.constant 0 : index
    %c2 = arith.constant 2 : index
    %c0_61 = arith.constant 0 : index
    %29 = vector.load %arg11[%c0_59, %c0_60, %c2, %c0_61] : memref<2x18x18x16xf32, #tpu.memory_space<vmem>>, vector<1x16x16x16xf32>
    %30 = vector.shape_cast %29 : vector<1x16x16x16xf32> to vector<16x16x16xf32>
    %31 = vector.shape_cast %30 : vector<16x16x16xf32> to vector<256x16xf32>
    %c2_62 = arith.constant 2 : index
    %c0_63 = arith.constant 0 : index
    %c0_64 = arith.constant 0 : index
    %32 = vector.load %arg2[%c2_62, %c0_63, %c0_64] : memref<9x16x16xf32, #tpu.memory_space<vmem>>, vector<1x16x16xf32>
    %33 = vector.shape_cast %32 : vector<1x16x16xf32> to vector<16x16xf32>
    %cst_65 = arith.constant dense<0.000000e+00> : vector<256x16xf32>
    %34 = tpu.matmul %31, %33, %cst_65 {dimension_numbers = #tpu.dot_dimension_numbers<[1], [0], [0], [1], [0, 0, 1, 1], [], []>} : vector<256x16xf32>, vector<16x16xf32>, vector<256x16xf32> -> vector<256x16xf32>
    %35 = arith.addf %28, %34 : vector<256x16xf32>
    %c0_66 = arith.constant 0 : index
    %c1_67 = arith.constant 1 : index
    %c0_68 = arith.constant 0 : index
    %c0_69 = arith.constant 0 : index
    %36 = vector.load %arg11[%c0_66, %c1_67, %c0_68, %c0_69] : memref<2x18x18x16xf32, #tpu.memory_space<vmem>>, vector<1x16x16x16xf32>
    %37 = vector.shape_cast %36 : vector<1x16x16x16xf32> to vector<16x16x16xf32>
    %38 = vector.shape_cast %37 : vector<16x16x16xf32> to vector<256x16xf32>
    %c3 = arith.constant 3 : index
    %c0_70 = arith.constant 0 : index
    %c0_71 = arith.constant 0 : index
    %39 = vector.load %arg2[%c3, %c0_70, %c0_71] : memref<9x16x16xf32, #tpu.memory_space<vmem>>, vector<1x16x16xf32>
    %40 = vector.shape_cast %39 : vector<1x16x16xf32> to vector<16x16xf32>
    %cst_72 = arith.constant dense<0.000000e+00> : vector<256x16xf32>
    %41 = tpu.matmul %38, %40, %cst_72 {dimension_numbers = #tpu.dot_dimension_numbers<[1], [0], [0], [1], [0, 0, 1, 1], [], []>} : vector<256x16xf32>, vector<16x16xf32>, vector<256x16xf32> -> vector<256x16xf32>
    %42 = arith.addf %35, %41 : vector<256x16xf32>
    %c0_73 = arith.constant 0 : index
    %c1_74 = arith.constant 1 : index
    %c1_75 = arith.constant 1 : index
    %c0_76 = arith.constant 0 : index
    %43 = vector.load %arg11[%c0_73, %c1_74, %c1_75, %c0_76] : memref<2x18x18x16xf32, #tpu.memory_space<vmem>>, vector<1x16x16x16xf32>
    %44 = vector.shape_cast %43 : vector<1x16x16x16xf32> to vector<16x16x16xf32>
    %45 = vector.shape_cast %44 : vector<16x16x16xf32> to vector<256x16xf32>
    %c4 = arith.constant 4 : index
    %c0_77 = arith.constant 0 : index
    %c0_78 = arith.constant 0 : index
    %46 = vector.load %arg2[%c4, %c0_77, %c0_78] : memref<9x16x16xf32, #tpu.memory_space<vmem>>, vector<1x16x16xf32>
    %47 = vector.shape_cast %46 : vector<1x16x16xf32> to vector<16x16xf32>
    %cst_79 = arith.constant dense<0.000000e+00> : vector<256x16xf32>
    %48 = tpu.matmul %45, %47, %cst_79 {dimension_numbers = #tpu.dot_dimension_numbers<[1], [0], [0], [1], [0, 0, 1, 1], [], []>} : vector<256x16xf32>, vector<16x16xf32>, vector<256x16xf32> -> vector<256x16xf32>
    %49 = arith.addf %42, %48 : vector<256x16xf32>
    %c0_80 = arith.constant 0 : index
    %c1_81 = arith.constant 1 : index
    %c2_82 = arith.constant 2 : index
    %c0_83 = arith.constant 0 : index
    %50 = vector.load %arg11[%c0_80, %c1_81, %c2_82, %c0_83] : memref<2x18x18x16xf32, #tpu.memory_space<vmem>>, vector<1x16x16x16xf32>
    %51 = vector.shape_cast %50 : vector<1x16x16x16xf32> to vector<16x16x16xf32>
    %52 = vector.shape_cast %51 : vector<16x16x16xf32> to vector<256x16xf32>
    %c5 = arith.constant 5 : index
    %c0_84 = arith.constant 0 : index
    %c0_85 = arith.constant 0 : index
    %53 = vector.load %arg2[%c5, %c0_84, %c0_85] : memref<9x16x16xf32, #tpu.memory_space<vmem>>, vector<1x16x16xf32>
    %54 = vector.shape_cast %53 : vector<1x16x16xf32> to vector<16x16xf32>
    %cst_86 = arith.constant dense<0.000000e+00> : vector<256x16xf32>
    %55 = tpu.matmul %52, %54, %cst_86 {dimension_numbers = #tpu.dot_dimension_numbers<[1], [0], [0], [1], [0, 0, 1, 1], [], []>} : vector<256x16xf32>, vector<16x16xf32>, vector<256x16xf32> -> vector<256x16xf32>
    %56 = arith.addf %49, %55 : vector<256x16xf32>
    %c0_87 = arith.constant 0 : index
    %c2_88 = arith.constant 2 : index
    %c0_89 = arith.constant 0 : index
    %c0_90 = arith.constant 0 : index
    %57 = vector.load %arg11[%c0_87, %c2_88, %c0_89, %c0_90] : memref<2x18x18x16xf32, #tpu.memory_space<vmem>>, vector<1x16x16x16xf32>
    %58 = vector.shape_cast %57 : vector<1x16x16x16xf32> to vector<16x16x16xf32>
    %59 = vector.shape_cast %58 : vector<16x16x16xf32> to vector<256x16xf32>
    %c6 = arith.constant 6 : index
    %c0_91 = arith.constant 0 : index
    %c0_92 = arith.constant 0 : index
    %60 = vector.load %arg2[%c6, %c0_91, %c0_92] : memref<9x16x16xf32, #tpu.memory_space<vmem>>, vector<1x16x16xf32>
    %61 = vector.shape_cast %60 : vector<1x16x16xf32> to vector<16x16xf32>
    %cst_93 = arith.constant dense<0.000000e+00> : vector<256x16xf32>
    %62 = tpu.matmul %59, %61, %cst_93 {dimension_numbers = #tpu.dot_dimension_numbers<[1], [0], [0], [1], [0, 0, 1, 1], [], []>} : vector<256x16xf32>, vector<16x16xf32>, vector<256x16xf32> -> vector<256x16xf32>
    %63 = arith.addf %56, %62 : vector<256x16xf32>
    %c0_94 = arith.constant 0 : index
    %c2_95 = arith.constant 2 : index
    %c1_96 = arith.constant 1 : index
    %c0_97 = arith.constant 0 : index
    %64 = vector.load %arg11[%c0_94, %c2_95, %c1_96, %c0_97] : memref<2x18x18x16xf32, #tpu.memory_space<vmem>>, vector<1x16x16x16xf32>
    %65 = vector.shape_cast %64 : vector<1x16x16x16xf32> to vector<16x16x16xf32>
    %66 = vector.shape_cast %65 : vector<16x16x16xf32> to vector<256x16xf32>
    %c7 = arith.constant 7 : index
    %c0_98 = arith.constant 0 : index
    %c0_99 = arith.constant 0 : index
    %67 = vector.load %arg2[%c7, %c0_98, %c0_99] : memref<9x16x16xf32, #tpu.memory_space<vmem>>, vector<1x16x16xf32>
    %68 = vector.shape_cast %67 : vector<1x16x16xf32> to vector<16x16xf32>
    %cst_100 = arith.constant dense<0.000000e+00> : vector<256x16xf32>
    %69 = tpu.matmul %66, %68, %cst_100 {dimension_numbers = #tpu.dot_dimension_numbers<[1], [0], [0], [1], [0, 0, 1, 1], [], []>} : vector<256x16xf32>, vector<16x16xf32>, vector<256x16xf32> -> vector<256x16xf32>
    %70 = arith.addf %63, %69 : vector<256x16xf32>
    %c0_101 = arith.constant 0 : index
    %c2_102 = arith.constant 2 : index
    %c2_103 = arith.constant 2 : index
    %c0_104 = arith.constant 0 : index
    %71 = vector.load %arg11[%c0_101, %c2_102, %c2_103, %c0_104] : memref<2x18x18x16xf32, #tpu.memory_space<vmem>>, vector<1x16x16x16xf32>
    %72 = vector.shape_cast %71 : vector<1x16x16x16xf32> to vector<16x16x16xf32>
    %73 = vector.shape_cast %72 : vector<16x16x16xf32> to vector<256x16xf32>
    %c8 = arith.constant 8 : index
    %c0_105 = arith.constant 0 : index
    %c0_106 = arith.constant 0 : index
    %74 = vector.load %arg2[%c8, %c0_105, %c0_106] : memref<9x16x16xf32, #tpu.memory_space<vmem>>, vector<1x16x16xf32>
    %75 = vector.shape_cast %74 : vector<1x16x16xf32> to vector<16x16xf32>
    %cst_107 = arith.constant dense<0.000000e+00> : vector<256x16xf32>
    %76 = tpu.matmul %73, %75, %cst_107 {dimension_numbers = #tpu.dot_dimension_numbers<[1], [0], [0], [1], [0, 0, 1, 1], [], []>} : vector<256x16xf32>, vector<16x16xf32>, vector<256x16xf32> -> vector<256x16xf32>
    %77 = arith.addf %70, %76 : vector<256x16xf32>
    %78 = vector.broadcast %12 : vector<1x16xf32> to vector<256x16xf32>
    %79 = arith.addf %77, %78 : vector<256x16xf32>
    %cst_108 = arith.constant 0.000000e+00 : f32
    %80 = vector.broadcast %cst_108 : f32 to vector<256x16xf32>
    %81 = arith.maximumf %79, %80 : vector<256x16xf32>
    %82 = vector.shape_cast %81 : vector<256x16xf32> to vector<16x16x16xf32>
    %c0_109 = arith.constant 0 : index
    %c1_110 = arith.constant 1 : index
    %c1_111 = arith.constant 1 : index
    %c0_112 = arith.constant 0 : index
    %83 = vector.load %arg12[%c0_109, %c1_110, %c1_111, %c0_112] : memref<2x18x18x16xf32, #tpu.memory_space<vmem>>, vector<1x16x16x16xf32>
    %84 = vector.shape_cast %83 : vector<1x16x16x16xf32> to vector<16x16x16xf32>
    %85 = vector.shape_cast %82 : vector<16x16x16xf32> to vector<1x16x16x16xf32>
    tpu.vector_store %arg12[%c0_109, %c1_110, %c1_111, %c0_112], %85 {strides = array<i32>} : memref<2x18x18x16xf32, #tpu.memory_space<vmem>>, vector<1x16x16x16xf32>,
    %cst_113 = arith.constant 0.000000e+00 : f32
    %86 = vector.broadcast %cst_113 : f32 to vector<256x16xf32>
    %c0_114 = arith.constant 0 : index
    %c0_115 = arith.constant 0 : index
    %c0_116 = arith.constant 0 : index
    %c0_117 = arith.constant 0 : index
    %87 = vector.load %arg12[%c0_114, %c0_115, %c0_116, %c0_117] : memref<2x18x18x16xf32, #tpu.memory_space<vmem>>, vector<1x16x16x16xf32>
    %88 = vector.shape_cast %87 : vector<1x16x16x16xf32> to vector<16x16x16xf32>
    %89 = vector.shape_cast %88 : vector<16x16x16xf32> to vector<256x16xf32>
    %c0_118 = arith.constant 0 : index
    %c0_119 = arith.constant 0 : index
    %c0_120 = arith.constant 0 : index
    %90 = vector.load %arg4[%c0_118, %c0_119, %c0_120] : memref<9x16x16xf32, #tpu.memory_space<vmem>>, vector<1x16x16xf32>
    %91 = vector.shape_cast %90 : vector<1x16x16xf32> to vector<16x16xf32>
    %cst_121 = arith.constant dense<0.000000e+00> : vector<256x16xf32>
    %92 = tpu.matmul %89, %91, %cst_121 {dimension_numbers = #tpu.dot_dimension_numbers<[1], [0], [0], [1], [0, 0, 1, 1], [], []>} : vector<256x16xf32>, vector<16x16xf32>, vector<256x16xf32> -> vector<256x16xf32>
    %93 = arith.addf %86, %92 : vector<256x16xf32>
    %c0_122 = arith.constant 0 : index
    %c0_123 = arith.constant 0 : index
    %c1_124 = arith.constant 1 : index
    %c0_125 = arith.constant 0 : index
    %94 = vector.load %arg12[%c0_122, %c0_123, %c1_124, %c0_125] : memref<2x18x18x16xf32, #tpu.memory_space<vmem>>, vector<1x16x16x16xf32>
    %95 = vector.shape_cast %94 : vector<1x16x16x16xf32> to vector<16x16x16xf32>
    %96 = vector.shape_cast %95 : vector<16x16x16xf32> to vector<256x16xf32>
    %c1_126 = arith.constant 1 : index
    %c0_127 = arith.constant 0 : index
    %c0_128 = arith.constant 0 : index
    %97 = vector.load %arg4[%c1_126, %c0_127, %c0_128] : memref<9x16x16xf32, #tpu.memory_space<vmem>>, vector<1x16x16xf32>
    %98 = vector.shape_cast %97 : vector<1x16x16xf32> to vector<16x16xf32>
    %cst_129 = arith.constant dense<0.000000e+00> : vector<256x16xf32>
    %99 = tpu.matmul %96, %98, %cst_129 {dimension_numbers = #tpu.dot_dimension_numbers<[1], [0], [0], [1], [0, 0, 1, 1], [], []>} : vector<256x16xf32>, vector<16x16xf32>, vector<256x16xf32> -> vector<256x16xf32>
    %100 = arith.addf %93, %99 : vector<256x16xf32>
    %c0_130 = arith.constant 0 : index
    %c0_131 = arith.constant 0 : index
    %c2_132 = arith.constant 2 : index
    %c0_133 = arith.constant 0 : index
    %101 = vector.load %arg12[%c0_130, %c0_131, %c2_132, %c0_133] : memref<2x18x18x16xf32, #tpu.memory_space<vmem>>, vector<1x16x16x16xf32>
    %102 = vector.shape_cast %101 : vector<1x16x16x16xf32> to vector<16x16x16xf32>
    %103 = vector.shape_cast %102 : vector<16x16x16xf32> to vector<256x16xf32>
    %c2_134 = arith.constant 2 : index
    %c0_135 = arith.constant 0 : index
    %c0_136 = arith.constant 0 : index
    %104 = vector.load %arg4[%c2_134, %c0_135, %c0_136] : memref<9x16x16xf32, #tpu.memory_space<vmem>>, vector<1x16x16xf32>
    %105 = vector.shape_cast %104 : vector<1x16x16xf32> to vector<16x16xf32>
    %cst_137 = arith.constant dense<0.000000e+00> : vector<256x16xf32>
    %106 = tpu.matmul %103, %105, %cst_137 {dimension_numbers = #tpu.dot_dimension_numbers<[1], [0], [0], [1], [0, 0, 1, 1], [], []>} : vector<256x16xf32>, vector<16x16xf32>, vector<256x16xf32> -> vector<256x16xf32>
    %107 = arith.addf %100, %106 : vector<256x16xf32>
    %c0_138 = arith.constant 0 : index
    %c1_139 = arith.constant 1 : index
    %c0_140 = arith.constant 0 : index
    %c0_141 = arith.constant 0 : index
    %108 = vector.load %arg12[%c0_138, %c1_139, %c0_140, %c0_141] : memref<2x18x18x16xf32, #tpu.memory_space<vmem>>, vector<1x16x16x16xf32>
    %109 = vector.shape_cast %108 : vector<1x16x16x16xf32> to vector<16x16x16xf32>
    %110 = vector.shape_cast %109 : vector<16x16x16xf32> to vector<256x16xf32>
    %c3_142 = arith.constant 3 : index
    %c0_143 = arith.constant 0 : index
    %c0_144 = arith.constant 0 : index
    %111 = vector.load %arg4[%c3_142, %c0_143, %c0_144] : memref<9x16x16xf32, #tpu.memory_space<vmem>>, vector<1x16x16xf32>
    %112 = vector.shape_cast %111 : vector<1x16x16xf32> to vector<16x16xf32>
    %cst_145 = arith.constant dense<0.000000e+00> : vector<256x16xf32>
    %113 = tpu.matmul %110, %112, %cst_145 {dimension_numbers = #tpu.dot_dimension_numbers<[1], [0], [0], [1], [0, 0, 1, 1], [], []>} : vector<256x16xf32>, vector<16x16xf32>, vector<256x16xf32> -> vector<256x16xf32>
    %114 = arith.addf %107, %113 : vector<256x16xf32>
    %c0_146 = arith.constant 0 : index
    %c1_147 = arith.constant 1 : index
    %c1_148 = arith.constant 1 : index
    %c0_149 = arith.constant 0 : index
    %115 = vector.load %arg12[%c0_146, %c1_147, %c1_148, %c0_149] : memref<2x18x18x16xf32, #tpu.memory_space<vmem>>, vector<1x16x16x16xf32>
    %116 = vector.shape_cast %115 : vector<1x16x16x16xf32> to vector<16x16x16xf32>
    %117 = vector.shape_cast %116 : vector<16x16x16xf32> to vector<256x16xf32>
    %c4_150 = arith.constant 4 : index
    %c0_151 = arith.constant 0 : index
    %c0_152 = arith.constant 0 : index
    %118 = vector.load %arg4[%c4_150, %c0_151, %c0_152] : memref<9x16x16xf32, #tpu.memory_space<vmem>>, vector<1x16x16xf32>
    %119 = vector.shape_cast %118 : vector<1x16x16xf32> to vector<16x16xf32>
    %cst_153 = arith.constant dense<0.000000e+00> : vector<256x16xf32>
    %120 = tpu.matmul %117, %119, %cst_153 {dimension_numbers = #tpu.dot_dimension_numbers<[1], [0], [0], [1], [0, 0, 1, 1], [], []>} : vector<256x16xf32>, vector<16x16xf32>, vector<256x16xf32> -> vector<256x16xf32>
    %121 = arith.addf %114, %120 : vector<256x16xf32>
    %c0_154 = arith.constant 0 : index
    %c1_155 = arith.constant 1 : index
    %c2_156 = arith.constant 2 : index
    %c0_157 = arith.constant 0 : index
    %122 = vector.load %arg12[%c0_154, %c1_155, %c2_156, %c0_157] : memref<2x18x18x16xf32, #tpu.memory_space<vmem>>, vector<1x16x16x16xf32>
    %123 = vector.shape_cast %122 : vector<1x16x16x16xf32> to vector<16x16x16xf32>
    %124 = vector.shape_cast %123 : vector<16x16x16xf32> to vector<256x16xf32>
    %c5_158 = arith.constant 5 : index
    %c0_159 = arith.constant 0 : index
    %c0_160 = arith.constant 0 : index
    %125 = vector.load %arg4[%c5_158, %c0_159, %c0_160] : memref<9x16x16xf32, #tpu.memory_space<vmem>>, vector<1x16x16xf32>
    %126 = vector.shape_cast %125 : vector<1x16x16xf32> to vector<16x16xf32>
    %cst_161 = arith.constant dense<0.000000e+00> : vector<256x16xf32>
    %127 = tpu.matmul %124, %126, %cst_161 {dimension_numbers = #tpu.dot_dimension_numbers<[1], [0], [0], [1], [0, 0, 1, 1], [], []>} : vector<256x16xf32>, vector<16x16xf32>, vector<256x16xf32> -> vector<256x16xf32>
    %128 = arith.addf %121, %127 : vector<256x16xf32>
    %c0_162 = arith.constant 0 : index
    %c2_163 = arith.constant 2 : index
    %c0_164 = arith.constant 0 : index
    %c0_165 = arith.constant 0 : index
    %129 = vector.load %arg12[%c0_162, %c2_163, %c0_164, %c0_165] : memref<2x18x18x16xf32, #tpu.memory_space<vmem>>, vector<1x16x16x16xf32>
    %130 = vector.shape_cast %129 : vector<1x16x16x16xf32> to vector<16x16x16xf32>
    %131 = vector.shape_cast %130 : vector<16x16x16xf32> to vector<256x16xf32>
    %c6_166 = arith.constant 6 : index
    %c0_167 = arith.constant 0 : index
    %c0_168 = arith.constant 0 : index
    %132 = vector.load %arg4[%c6_166, %c0_167, %c0_168] : memref<9x16x16xf32, #tpu.memory_space<vmem>>, vector<1x16x16xf32>
    %133 = vector.shape_cast %132 : vector<1x16x16xf32> to vector<16x16xf32>
    %cst_169 = arith.constant dense<0.000000e+00> : vector<256x16xf32>
    %134 = tpu.matmul %131, %133, %cst_169 {dimension_numbers = #tpu.dot_dimension_numbers<[1], [0], [0], [1], [0, 0, 1, 1], [], []>} : vector<256x16xf32>, vector<16x16xf32>, vector<256x16xf32> -> vector<256x16xf32>
    %135 = arith.addf %128, %134 : vector<256x16xf32>
    %c0_170 = arith.constant 0 : index
    %c2_171 = arith.constant 2 : index
    %c1_172 = arith.constant 1 : index
    %c0_173 = arith.constant 0 : index
    %136 = vector.load %arg12[%c0_170, %c2_171, %c1_172, %c0_173] : memref<2x18x18x16xf32, #tpu.memory_space<vmem>>, vector<1x16x16x16xf32>
    %137 = vector.shape_cast %136 : vector<1x16x16x16xf32> to vector<16x16x16xf32>
    %138 = vector.shape_cast %137 : vector<16x16x16xf32> to vector<256x16xf32>
    %c7_174 = arith.constant 7 : index
    %c0_175 = arith.constant 0 : index
    %c0_176 = arith.constant 0 : index
    %139 = vector.load %arg4[%c7_174, %c0_175, %c0_176] : memref<9x16x16xf32, #tpu.memory_space<vmem>>, vector<1x16x16xf32>
    %140 = vector.shape_cast %139 : vector<1x16x16xf32> to vector<16x16xf32>
    %cst_177 = arith.constant dense<0.000000e+00> : vector<256x16xf32>
    %141 = tpu.matmul %138, %140, %cst_177 {dimension_numbers = #tpu.dot_dimension_numbers<[1], [0], [0], [1], [0, 0, 1, 1], [], []>} : vector<256x16xf32>, vector<16x16xf32>, vector<256x16xf32> -> vector<256x16xf32>
    %142 = arith.addf %135, %141 : vector<256x16xf32>
    %c0_178 = arith.constant 0 : index
    %c2_179 = arith.constant 2 : index
    %c2_180 = arith.constant 2 : index
    %c0_181 = arith.constant 0 : index
    %143 = vector.load %arg12[%c0_178, %c2_179, %c2_180, %c0_181] : memref<2x18x18x16xf32, #tpu.memory_space<vmem>>, vector<1x16x16x16xf32>
    %144 = vector.shape_cast %143 : vector<1x16x16x16xf32> to vector<16x16x16xf32>
    %145 = vector.shape_cast %144 : vector<16x16x16xf32> to vector<256x16xf32>
    %c8_182 = arith.constant 8 : index
    %c0_183 = arith.constant 0 : index
    %c0_184 = arith.constant 0 : index
    %146 = vector.load %arg4[%c8_182, %c0_183, %c0_184] : memref<9x16x16xf32, #tpu.memory_space<vmem>>, vector<1x16x16xf32>
    %147 = vector.shape_cast %146 : vector<1x16x16xf32> to vector<16x16xf32>
    %cst_185 = arith.constant dense<0.000000e+00> : vector<256x16xf32>
    %148 = tpu.matmul %145, %147, %cst_185 {dimension_numbers = #tpu.dot_dimension_numbers<[1], [0], [0], [1], [0, 0, 1, 1], [], []>} : vector<256x16xf32>, vector<16x16xf32>, vector<256x16xf32> -> vector<256x16xf32>
    %149 = arith.addf %142, %148 : vector<256x16xf32>
    %150 = vector.broadcast %13 : vector<1x16xf32> to vector<256x16xf32>
    %151 = arith.addf %149, %150 : vector<256x16xf32>
    %cst_186 = arith.constant dense<0.000000e+00> : vector<16xf32>
    %152 = vector.multi_reduction <add>, %151, %cst_186 [0] : vector<256x16xf32> to vector<16xf32>
    %153 = vector.shape_cast %152 : vector<16xf32> to vector<1x16xf32>
    %cst_187 = arith.constant 3.906250e-03 : f32
    %154 = vector.broadcast %cst_187 : f32 to vector<1x16xf32>
    %155 = arith.mulf %153, %154 : vector<1x16xf32>
    %c0_188 = arith.constant 0 : index
    %c0_189 = arith.constant 0 : index
    %156 = vector.load %arg6[%c0_188, %c0_189] : memref<4x16xf32, #tpu.memory_space<vmem>>, vector<4x16xf32>
    %157 = vector.broadcast %155 : vector<1x16xf32> to vector<4x16xf32>
    %158 = arith.mulf %157, %156 : vector<4x16xf32>
    %cst_190 = arith.constant dense<0.000000e+00> : vector<4xf32>
    %159 = vector.multi_reduction <add>, %158, %cst_190 [1] : vector<4x16xf32> to vector<4xf32>
    %160 = vector.shape_cast %159 : vector<4xf32> to vector<4x1xf32>
    %c0_191 = arith.constant 0 : index
    %c0_192 = arith.constant 0 : index
    %161 = vector.load %arg7[%c0_191, %c0_192] : memref<4x1xf32, #tpu.memory_space<vmem>>, vector<4x1xf32>
    %162 = arith.addf %160, %161 : vector<4x1xf32>
    %cst_193 = arith.constant 0.000000e+00 : f32
    %163 = vector.broadcast %cst_193 : f32 to vector<4x1xf32>
    %164 = arith.maximumf %162, %163 : vector<4x1xf32>
    %c0_194 = arith.constant 0 : index
    %c0_195 = arith.constant 0 : index
    %165 = vector.load %arg8[%c0_194, %c0_195] : memref<4x16xf32, #tpu.memory_space<vmem>>, vector<4x16xf32>
    %166 = vector.broadcast %164 : vector<4x1xf32> to vector<4x16xf32>
    %167 = arith.mulf %166, %165 : vector<4x16xf32>
    %cst_196 = arith.constant dense<0.000000e+00> : vector<16xf32>
    %168 = vector.multi_reduction <add>, %167, %cst_196 [0] : vector<4x16xf32> to vector<16xf32>
    %169 = vector.shape_cast %168 : vector<16xf32> to vector<1x16xf32>
    %c0_197 = arith.constant 0 : index
    %c0_198 = arith.constant 0 : index
    %170 = vector.load %arg9[%c0_197, %c0_198] : memref<1x16xf32, #tpu.memory_space<vmem>>, vector<1x16xf32>
    %171 = arith.addf %169, %170 : vector<1x16xf32>
    %172 = arith.negf %171 : vector<1x16xf32>
    %173 = math.exp %172 : vector<1x16xf32>
    %cst_199 = arith.constant 1.000000e+00 : f32
    %174 = vector.broadcast %cst_199 : f32 to vector<1x16xf32>
    %175 = arith.addf %174, %173 : vector<1x16xf32>
    %176 = arith.divf %174, %175 : vector<1x16xf32>
    %177 = vector.broadcast %176 : vector<1x16xf32> to vector<256x16xf32>
    %178 = arith.mulf %151, %177 : vector<256x16xf32>
    %c0_200 = arith.constant 0 : index
    %c0_201 = arith.constant 0 : index
    %c0_202 = arith.constant 0 : index
    %c0_203 = arith.constant 0 : index
    %179 = vector.load %arg1[%c0_200, %c0_201, %c0_202, %c0_203] : memref<2x16x16x16xf32, #tpu.memory_space<vmem>>, vector<1x16x16x16xf32>
    %180 = vector.shape_cast %179 : vector<1x16x16x16xf32> to vector<16x16x16xf32>
    %181 = vector.shape_cast %180 : vector<16x16x16xf32> to vector<256x16xf32>
    %182 = arith.addf %178, %181 : vector<256x16xf32>
    %183 = vector.shape_cast %182 : vector<256x16xf32> to vector<16x16x16xf32>
    %c0_204 = arith.constant 0 : index
    %c0_205 = arith.constant 0 : index
    %c0_206 = arith.constant 0 : index
    %c0_207 = arith.constant 0 : index
    %184 = vector.load %arg10[%c0_204, %c0_205, %c0_206, %c0_207] : memref<2x16x16x16xf32, #tpu.memory_space<vmem>>, vector<1x16x16x16xf32>
    %185 = vector.shape_cast %184 : vector<1x16x16x16xf32> to vector<16x16x16xf32>
    %186 = vector.shape_cast %183 : vector<16x16x16xf32> to vector<1x16x16x16xf32>
    tpu.vector_store %arg10[%c0_204, %c0_205, %c0_206, %c0_207], %186 {strides = array<i32>} : memref<2x16x16x16xf32, #tpu.memory_space<vmem>>, vector<1x16x16x16xf32>,
    %cst_208 = arith.constant 0.000000e+00 : f32
    %187 = vector.broadcast %cst_208 : f32 to vector<256x16xf32>
    %c1_209 = arith.constant 1 : index
    %c0_210 = arith.constant 0 : index
    %c0_211 = arith.constant 0 : index
    %c0_212 = arith.constant 0 : index
    %188 = vector.load %arg11[%c1_209, %c0_210, %c0_211, %c0_212] : memref<2x18x18x16xf32, #tpu.memory_space<vmem>>, vector<1x16x16x16xf32>
    %189 = vector.shape_cast %188 : vector<1x16x16x16xf32> to vector<16x16x16xf32>
    %190 = vector.shape_cast %189 : vector<16x16x16xf32> to vector<256x16xf32>
    %c0_213 = arith.constant 0 : index
    %c0_214 = arith.constant 0 : index
    %c0_215 = arith.constant 0 : index
    %191 = vector.load %arg2[%c0_213, %c0_214, %c0_215] : memref<9x16x16xf32, #tpu.memory_space<vmem>>, vector<1x16x16xf32>
    %192 = vector.shape_cast %191 : vector<1x16x16xf32> to vector<16x16xf32>
    %cst_216 = arith.constant dense<0.000000e+00> : vector<256x16xf32>
    %193 = tpu.matmul %190, %192, %cst_216 {dimension_numbers = #tpu.dot_dimension_numbers<[1], [0], [0], [1], [0, 0, 1, 1], [], []>} : vector<256x16xf32>, vector<16x16xf32>, vector<256x16xf32> -> vector<256x16xf32>
    %194 = arith.addf %187, %193 : vector<256x16xf32>
    %c1_217 = arith.constant 1 : index
    %c0_218 = arith.constant 0 : index
    %c1_219 = arith.constant 1 : index
    %c0_220 = arith.constant 0 : index
    %195 = vector.load %arg11[%c1_217, %c0_218, %c1_219, %c0_220] : memref<2x18x18x16xf32, #tpu.memory_space<vmem>>, vector<1x16x16x16xf32>
    %196 = vector.shape_cast %195 : vector<1x16x16x16xf32> to vector<16x16x16xf32>
    %197 = vector.shape_cast %196 : vector<16x16x16xf32> to vector<256x16xf32>
    %c1_221 = arith.constant 1 : index
    %c0_222 = arith.constant 0 : index
    %c0_223 = arith.constant 0 : index
    %198 = vector.load %arg2[%c1_221, %c0_222, %c0_223] : memref<9x16x16xf32, #tpu.memory_space<vmem>>, vector<1x16x16xf32>
    %199 = vector.shape_cast %198 : vector<1x16x16xf32> to vector<16x16xf32>
    %cst_224 = arith.constant dense<0.000000e+00> : vector<256x16xf32>
    %200 = tpu.matmul %197, %199, %cst_224 {dimension_numbers = #tpu.dot_dimension_numbers<[1], [0], [0], [1], [0, 0, 1, 1], [], []>} : vector<256x16xf32>, vector<16x16xf32>, vector<256x16xf32> -> vector<256x16xf32>
    %201 = arith.addf %194, %200 : vector<256x16xf32>
    %c1_225 = arith.constant 1 : index
    %c0_226 = arith.constant 0 : index
    %c2_227 = arith.constant 2 : index
    %c0_228 = arith.constant 0 : index
    %202 = vector.load %arg11[%c1_225, %c0_226, %c2_227, %c0_228] : memref<2x18x18x16xf32, #tpu.memory_space<vmem>>, vector<1x16x16x16xf32>
    %203 = vector.shape_cast %202 : vector<1x16x16x16xf32> to vector<16x16x16xf32>
    %204 = vector.shape_cast %203 : vector<16x16x16xf32> to vector<256x16xf32>
    %c2_229 = arith.constant 2 : index
    %c0_230 = arith.constant 0 : index
    %c0_231 = arith.constant 0 : index
    %205 = vector.load %arg2[%c2_229, %c0_230, %c0_231] : memref<9x16x16xf32, #tpu.memory_space<vmem>>, vector<1x16x16xf32>
    %206 = vector.shape_cast %205 : vector<1x16x16xf32> to vector<16x16xf32>
    %cst_232 = arith.constant dense<0.000000e+00> : vector<256x16xf32>
    %207 = tpu.matmul %204, %206, %cst_232 {dimension_numbers = #tpu.dot_dimension_numbers<[1], [0], [0], [1], [0, 0, 1, 1], [], []>} : vector<256x16xf32>, vector<16x16xf32>, vector<256x16xf32> -> vector<256x16xf32>
    %208 = arith.addf %201, %207 : vector<256x16xf32>
    %c1_233 = arith.constant 1 : index
    %c1_234 = arith.constant 1 : index
    %c0_235 = arith.constant 0 : index
    %c0_236 = arith.constant 0 : index
    %209 = vector.load %arg11[%c1_233, %c1_234, %c0_235, %c0_236] : memref<2x18x18x16xf32, #tpu.memory_space<vmem>>, vector<1x16x16x16xf32>
    %210 = vector.shape_cast %209 : vector<1x16x16x16xf32> to vector<16x16x16xf32>
    %211 = vector.shape_cast %210 : vector<16x16x16xf32> to vector<256x16xf32>
    %c3_237 = arith.constant 3 : index
    %c0_238 = arith.constant 0 : index
    %c0_239 = arith.constant 0 : index
    %212 = vector.load %arg2[%c3_237, %c0_238, %c0_239] : memref<9x16x16xf32, #tpu.memory_space<vmem>>, vector<1x16x16xf32>
    %213 = vector.shape_cast %212 : vector<1x16x16xf32> to vector<16x16xf32>
    %cst_240 = arith.constant dense<0.000000e+00> : vector<256x16xf32>
    %214 = tpu.matmul %211, %213, %cst_240 {dimension_numbers = #tpu.dot_dimension_numbers<[1], [0], [0], [1], [0, 0, 1, 1], [], []>} : vector<256x16xf32>, vector<16x16xf32>, vector<256x16xf32> -> vector<256x16xf32>
    %215 = arith.addf %208, %214 : vector<256x16xf32>
    %c1_241 = arith.constant 1 : index
    %c1_242 = arith.constant 1 : index
    %c1_243 = arith.constant 1 : index
    %c0_244 = arith.constant 0 : index
    %216 = vector.load %arg11[%c1_241, %c1_242, %c1_243, %c0_244] : memref<2x18x18x16xf32, #tpu.memory_space<vmem>>, vector<1x16x16x16xf32>
    %217 = vector.shape_cast %216 : vector<1x16x16x16xf32> to vector<16x16x16xf32>
    %218 = vector.shape_cast %217 : vector<16x16x16xf32> to vector<256x16xf32>
    %c4_245 = arith.constant 4 : index
    %c0_246 = arith.constant 0 : index
    %c0_247 = arith.constant 0 : index
    %219 = vector.load %arg2[%c4_245, %c0_246, %c0_247] : memref<9x16x16xf32, #tpu.memory_space<vmem>>, vector<1x16x16xf32>
    %220 = vector.shape_cast %219 : vector<1x16x16xf32> to vector<16x16xf32>
    %cst_248 = arith.constant dense<0.000000e+00> : vector<256x16xf32>
    %221 = tpu.matmul %218, %220, %cst_248 {dimension_numbers = #tpu.dot_dimension_numbers<[1], [0], [0], [1], [0, 0, 1, 1], [], []>} : vector<256x16xf32>, vector<16x16xf32>, vector<256x16xf32> -> vector<256x16xf32>
    %222 = arith.addf %215, %221 : vector<256x16xf32>
    %c1_249 = arith.constant 1 : index
    %c1_250 = arith.constant 1 : index
    %c2_251 = arith.constant 2 : index
    %c0_252 = arith.constant 0 : index
    %223 = vector.load %arg11[%c1_249, %c1_250, %c2_251, %c0_252] : memref<2x18x18x16xf32, #tpu.memory_space<vmem>>, vector<1x16x16x16xf32>
    %224 = vector.shape_cast %223 : vector<1x16x16x16xf32> to vector<16x16x16xf32>
    %225 = vector.shape_cast %224 : vector<16x16x16xf32> to vector<256x16xf32>
    %c5_253 = arith.constant 5 : index
    %c0_254 = arith.constant 0 : index
    %c0_255 = arith.constant 0 : index
    %226 = vector.load %arg2[%c5_253, %c0_254, %c0_255] : memref<9x16x16xf32, #tpu.memory_space<vmem>>, vector<1x16x16xf32>
    %227 = vector.shape_cast %226 : vector<1x16x16xf32> to vector<16x16xf32>
    %cst_256 = arith.constant dense<0.000000e+00> : vector<256x16xf32>
    %228 = tpu.matmul %225, %227, %cst_256 {dimension_numbers = #tpu.dot_dimension_numbers<[1], [0], [0], [1], [0, 0, 1, 1], [], []>} : vector<256x16xf32>, vector<16x16xf32>, vector<256x16xf32> -> vector<256x16xf32>
    %229 = arith.addf %222, %228 : vector<256x16xf32>
    %c1_257 = arith.constant 1 : index
    %c2_258 = arith.constant 2 : index
    %c0_259 = arith.constant 0 : index
    %c0_260 = arith.constant 0 : index
    %230 = vector.load %arg11[%c1_257, %c2_258, %c0_259, %c0_260] : memref<2x18x18x16xf32, #tpu.memory_space<vmem>>, vector<1x16x16x16xf32>
    %231 = vector.shape_cast %230 : vector<1x16x16x16xf32> to vector<16x16x16xf32>
    %232 = vector.shape_cast %231 : vector<16x16x16xf32> to vector<256x16xf32>
    %c6_261 = arith.constant 6 : index
    %c0_262 = arith.constant 0 : index
    %c0_263 = arith.constant 0 : index
    %233 = vector.load %arg2[%c6_261, %c0_262, %c0_263] : memref<9x16x16xf32, #tpu.memory_space<vmem>>, vector<1x16x16xf32>
    %234 = vector.shape_cast %233 : vector<1x16x16xf32> to vector<16x16xf32>
    %cst_264 = arith.constant dense<0.000000e+00> : vector<256x16xf32>
    %235 = tpu.matmul %232, %234, %cst_264 {dimension_numbers = #tpu.dot_dimension_numbers<[1], [0], [0], [1], [0, 0, 1, 1], [], []>} : vector<256x16xf32>, vector<16x16xf32>, vector<256x16xf32> -> vector<256x16xf32>
    %236 = arith.addf %229, %235 : vector<256x16xf32>
    %c1_265 = arith.constant 1 : index
    %c2_266 = arith.constant 2 : index
    %c1_267 = arith.constant 1 : index
    %c0_268 = arith.constant 0 : index
    %237 = vector.load %arg11[%c1_265, %c2_266, %c1_267, %c0_268] : memref<2x18x18x16xf32, #tpu.memory_space<vmem>>, vector<1x16x16x16xf32>
    %238 = vector.shape_cast %237 : vector<1x16x16x16xf32> to vector<16x16x16xf32>
    %239 = vector.shape_cast %238 : vector<16x16x16xf32> to vector<256x16xf32>
    %c7_269 = arith.constant 7 : index
    %c0_270 = arith.constant 0 : index
    %c0_271 = arith.constant 0 : index
    %240 = vector.load %arg2[%c7_269, %c0_270, %c0_271] : memref<9x16x16xf32, #tpu.memory_space<vmem>>, vector<1x16x16xf32>
    %241 = vector.shape_cast %240 : vector<1x16x16xf32> to vector<16x16xf32>
    %cst_272 = arith.constant dense<0.000000e+00> : vector<256x16xf32>
    %242 = tpu.matmul %239, %241, %cst_272 {dimension_numbers = #tpu.dot_dimension_numbers<[1], [0], [0], [1], [0, 0, 1, 1], [], []>} : vector<256x16xf32>, vector<16x16xf32>, vector<256x16xf32> -> vector<256x16xf32>
    %243 = arith.addf %236, %242 : vector<256x16xf32>
    %c1_273 = arith.constant 1 : index
    %c2_274 = arith.constant 2 : index
    %c2_275 = arith.constant 2 : index
    %c0_276 = arith.constant 0 : index
    %244 = vector.load %arg11[%c1_273, %c2_274, %c2_275, %c0_276] : memref<2x18x18x16xf32, #tpu.memory_space<vmem>>, vector<1x16x16x16xf32>
    %245 = vector.shape_cast %244 : vector<1x16x16x16xf32> to vector<16x16x16xf32>
    %246 = vector.shape_cast %245 : vector<16x16x16xf32> to vector<256x16xf32>
    %c8_277 = arith.constant 8 : index
    %c0_278 = arith.constant 0 : index
    %c0_279 = arith.constant 0 : index
    %247 = vector.load %arg2[%c8_277, %c0_278, %c0_279] : memref<9x16x16xf32, #tpu.memory_space<vmem>>, vector<1x16x16xf32>
    %248 = vector.shape_cast %247 : vector<1x16x16xf32> to vector<16x16xf32>
    %cst_280 = arith.constant dense<0.000000e+00> : vector<256x16xf32>
    %249 = tpu.matmul %246, %248, %cst_280 {dimension_numbers = #tpu.dot_dimension_numbers<[1], [0], [0], [1], [0, 0, 1, 1], [], []>} : vector<256x16xf32>, vector<16x16xf32>, vector<256x16xf32> -> vector<256x16xf32>
    %250 = arith.addf %243, %249 : vector<256x16xf32>
    %251 = vector.broadcast %12 : vector<1x16xf32> to vector<256x16xf32>
    %252 = arith.addf %250, %251 : vector<256x16xf32>
    %cst_281 = arith.constant 0.000000e+00 : f32
    %253 = vector.broadcast %cst_281 : f32 to vector<256x16xf32>
    %254 = arith.maximumf %252, %253 : vector<256x16xf32>
    %255 = vector.shape_cast %254 : vector<256x16xf32> to vector<16x16x16xf32>
    %c1_282 = arith.constant 1 : index
    %c1_283 = arith.constant 1 : index
    %c1_284 = arith.constant 1 : index
    %c0_285 = arith.constant 0 : index
    %256 = vector.load %arg12[%c1_282, %c1_283, %c1_284, %c0_285] : memref<2x18x18x16xf32, #tpu.memory_space<vmem>>, vector<1x16x16x16xf32>
    %257 = vector.shape_cast %256 : vector<1x16x16x16xf32> to vector<16x16x16xf32>
    %258 = vector.shape_cast %255 : vector<16x16x16xf32> to vector<1x16x16x16xf32>
    tpu.vector_store %arg12[%c1_282, %c1_283, %c1_284, %c0_285], %258 {strides = array<i32>} : memref<2x18x18x16xf32, #tpu.memory_space<vmem>>, vector<1x16x16x16xf32>,
    %cst_286 = arith.constant 0.000000e+00 : f32
    %259 = vector.broadcast %cst_286 : f32 to vector<256x16xf32>
    %c1_287 = arith.constant 1 : index
    %c0_288 = arith.constant 0 : index
    %c0_289 = arith.constant 0 : index
    %c0_290 = arith.constant 0 : index
    %260 = vector.load %arg12[%c1_287, %c0_288, %c0_289, %c0_290] : memref<2x18x18x16xf32, #tpu.memory_space<vmem>>, vector<1x16x16x16xf32>
    %261 = vector.shape_cast %260 : vector<1x16x16x16xf32> to vector<16x16x16xf32>
    %262 = vector.shape_cast %261 : vector<16x16x16xf32> to vector<256x16xf32>
    %c0_291 = arith.constant 0 : index
    %c0_292 = arith.constant 0 : index
    %c0_293 = arith.constant 0 : index
    %263 = vector.load %arg4[%c0_291, %c0_292, %c0_293] : memref<9x16x16xf32, #tpu.memory_space<vmem>>, vector<1x16x16xf32>
    %264 = vector.shape_cast %263 : vector<1x16x16xf32> to vector<16x16xf32>
    %cst_294 = arith.constant dense<0.000000e+00> : vector<256x16xf32>
    %265 = tpu.matmul %262, %264, %cst_294 {dimension_numbers = #tpu.dot_dimension_numbers<[1], [0], [0], [1], [0, 0, 1, 1], [], []>} : vector<256x16xf32>, vector<16x16xf32>, vector<256x16xf32> -> vector<256x16xf32>
    %266 = arith.addf %259, %265 : vector<256x16xf32>
    %c1_295 = arith.constant 1 : index
    %c0_296 = arith.constant 0 : index
    %c1_297 = arith.constant 1 : index
    %c0_298 = arith.constant 0 : index
    %267 = vector.load %arg12[%c1_295, %c0_296, %c1_297, %c0_298] : memref<2x18x18x16xf32, #tpu.memory_space<vmem>>, vector<1x16x16x16xf32>
    %268 = vector.shape_cast %267 : vector<1x16x16x16xf32> to vector<16x16x16xf32>
    %269 = vector.shape_cast %268 : vector<16x16x16xf32> to vector<256x16xf32>
    %c1_299 = arith.constant 1 : index
    %c0_300 = arith.constant 0 : index
    %c0_301 = arith.constant 0 : index
    %270 = vector.load %arg4[%c1_299, %c0_300, %c0_301] : memref<9x16x16xf32, #tpu.memory_space<vmem>>, vector<1x16x16xf32>
    %271 = vector.shape_cast %270 : vector<1x16x16xf32> to vector<16x16xf32>
    %cst_302 = arith.constant dense<0.000000e+00> : vector<256x16xf32>
    %272 = tpu.matmul %269, %271, %cst_302 {dimension_numbers = #tpu.dot_dimension_numbers<[1], [0], [0], [1], [0, 0, 1, 1], [], []>} : vector<256x16xf32>, vector<16x16xf32>, vector<256x16xf32> -> vector<256x16xf32>
    %273 = arith.addf %266, %272 : vector<256x16xf32>
    %c1_303 = arith.constant 1 : index
    %c0_304 = arith.constant 0 : index
    %c2_305 = arith.constant 2 : index
    %c0_306 = arith.constant 0 : index
    %274 = vector.load %arg12[%c1_303, %c0_304, %c2_305, %c0_306] : memref<2x18x18x16xf32, #tpu.memory_space<vmem>>, vector<1x16x16x16xf32>
    %275 = vector.shape_cast %274 : vector<1x16x16x16xf32> to vector<16x16x16xf32>
    %276 = vector.shape_cast %275 : vector<16x16x16xf32> to vector<256x16xf32>
    %c2_307 = arith.constant 2 : index
    %c0_308 = arith.constant 0 : index
    %c0_309 = arith.constant 0 : index
    %277 = vector.load %arg4[%c2_307, %c0_308, %c0_309] : memref<9x16x16xf32, #tpu.memory_space<vmem>>, vector<1x16x16xf32>
    %278 = vector.shape_cast %277 : vector<1x16x16xf32> to vector<16x16xf32>
    %cst_310 = arith.constant dense<0.000000e+00> : vector<256x16xf32>
    %279 = tpu.matmul %276, %278, %cst_310 {dimension_numbers = #tpu.dot_dimension_numbers<[1], [0], [0], [1], [0, 0, 1, 1], [], []>} : vector<256x16xf32>, vector<16x16xf32>, vector<256x16xf32> -> vector<256x16xf32>
    %280 = arith.addf %273, %279 : vector<256x16xf32>
    %c1_311 = arith.constant 1 : index
    %c1_312 = arith.constant 1 : index
    %c0_313 = arith.constant 0 : index
    %c0_314 = arith.constant 0 : index
    %281 = vector.load %arg12[%c1_311, %c1_312, %c0_313, %c0_314] : memref<2x18x18x16xf32, #tpu.memory_space<vmem>>, vector<1x16x16x16xf32>
    %282 = vector.shape_cast %281 : vector<1x16x16x16xf32> to vector<16x16x16xf32>
    %283 = vector.shape_cast %282 : vector<16x16x16xf32> to vector<256x16xf32>
    %c3_315 = arith.constant 3 : index
    %c0_316 = arith.constant 0 : index
    %c0_317 = arith.constant 0 : index
    %284 = vector.load %arg4[%c3_315, %c0_316, %c0_317] : memref<9x16x16xf32, #tpu.memory_space<vmem>>, vector<1x16x16xf32>
    %285 = vector.shape_cast %284 : vector<1x16x16xf32> to vector<16x16xf32>
    %cst_318 = arith.constant dense<0.000000e+00> : vector<256x16xf32>
    %286 = tpu.matmul %283, %285, %cst_318 {dimension_numbers = #tpu.dot_dimension_numbers<[1], [0], [0], [1], [0, 0, 1, 1], [], []>} : vector<256x16xf32>, vector<16x16xf32>, vector<256x16xf32> -> vector<256x16xf32>
    %287 = arith.addf %280, %286 : vector<256x16xf32>
    %c1_319 = arith.constant 1 : index
    %c1_320 = arith.constant 1 : index
    %c1_321 = arith.constant 1 : index
    %c0_322 = arith.constant 0 : index
    %288 = vector.load %arg12[%c1_319, %c1_320, %c1_321, %c0_322] : memref<2x18x18x16xf32, #tpu.memory_space<vmem>>, vector<1x16x16x16xf32>
    %289 = vector.shape_cast %288 : vector<1x16x16x16xf32> to vector<16x16x16xf32>
    %290 = vector.shape_cast %289 : vector<16x16x16xf32> to vector<256x16xf32>
    %c4_323 = arith.constant 4 : index
    %c0_324 = arith.constant 0 : index
    %c0_325 = arith.constant 0 : index
    %291 = vector.load %arg4[%c4_323, %c0_324, %c0_325] : memref<9x16x16xf32, #tpu.memory_space<vmem>>, vector<1x16x16xf32>
    %292 = vector.shape_cast %291 : vector<1x16x16xf32> to vector<16x16xf32>
    %cst_326 = arith.constant dense<0.000000e+00> : vector<256x16xf32>
    %293 = tpu.matmul %290, %292, %cst_326 {dimension_numbers = #tpu.dot_dimension_numbers<[1], [0], [0], [1], [0, 0, 1, 1], [], []>} : vector<256x16xf32>, vector<16x16xf32>, vector<256x16xf32> -> vector<256x16xf32>
    %294 = arith.addf %287, %293 : vector<256x16xf32>
    %c1_327 = arith.constant 1 : index
    %c1_328 = arith.constant 1 : index
    %c2_329 = arith.constant 2 : index
    %c0_330 = arith.constant 0 : index
    %295 = vector.load %arg12[%c1_327, %c1_328, %c2_329, %c0_330] : memref<2x18x18x16xf32, #tpu.memory_space<vmem>>, vector<1x16x16x16xf32>
    %296 = vector.shape_cast %295 : vector<1x16x16x16xf32> to vector<16x16x16xf32>
    %297 = vector.shape_cast %296 : vector<16x16x16xf32> to vector<256x16xf32>
    %c5_331 = arith.constant 5 : index
    %c0_332 = arith.constant 0 : index
    %c0_333 = arith.constant 0 : index
    %298 = vector.load %arg4[%c5_331, %c0_332, %c0_333] : memref<9x16x16xf32, #tpu.memory_space<vmem>>, vector<1x16x16xf32>
    %299 = vector.shape_cast %298 : vector<1x16x16xf32> to vector<16x16xf32>
    %cst_334 = arith.constant dense<0.000000e+00> : vector<256x16xf32>
    %300 = tpu.matmul %297, %299, %cst_334 {dimension_numbers = #tpu.dot_dimension_numbers<[1], [0], [0], [1], [0, 0, 1, 1], [], []>} : vector<256x16xf32>, vector<16x16xf32>, vector<256x16xf32> -> vector<256x16xf32>
    %301 = arith.addf %294, %300 : vector<256x16xf32>
    %c1_335 = arith.constant 1 : index
    %c2_336 = arith.constant 2 : index
    %c0_337 = arith.constant 0 : index
    %c0_338 = arith.constant 0 : index
    %302 = vector.load %arg12[%c1_335, %c2_336, %c0_337, %c0_338] : memref<2x18x18x16xf32, #tpu.memory_space<vmem>>, vector<1x16x16x16xf32>
    %303 = vector.shape_cast %302 : vector<1x16x16x16xf32> to vector<16x16x16xf32>
    %304 = vector.shape_cast %303 : vector<16x16x16xf32> to vector<256x16xf32>
    %c6_339 = arith.constant 6 : index
    %c0_340 = arith.constant 0 : index
    %c0_341 = arith.constant 0 : index
    %305 = vector.load %arg4[%c6_339, %c0_340, %c0_341] : memref<9x16x16xf32, #tpu.memory_space<vmem>>, vector<1x16x16xf32>
    %306 = vector.shape_cast %305 : vector<1x16x16xf32> to vector<16x16xf32>
    %cst_342 = arith.constant dense<0.000000e+00> : vector<256x16xf32>
    %307 = tpu.matmul %304, %306, %cst_342 {dimension_numbers = #tpu.dot_dimension_numbers<[1], [0], [0], [1], [0, 0, 1, 1], [], []>} : vector<256x16xf32>, vector<16x16xf32>, vector<256x16xf32> -> vector<256x16xf32>
    %308 = arith.addf %301, %307 : vector<256x16xf32>
    %c1_343 = arith.constant 1 : index
    %c2_344 = arith.constant 2 : index
    %c1_345 = arith.constant 1 : index
    %c0_346 = arith.constant 0 : index
    %309 = vector.load %arg12[%c1_343, %c2_344, %c1_345, %c0_346] : memref<2x18x18x16xf32, #tpu.memory_space<vmem>>, vector<1x16x16x16xf32>
    %310 = vector.shape_cast %309 : vector<1x16x16x16xf32> to vector<16x16x16xf32>
    %311 = vector.shape_cast %310 : vector<16x16x16xf32> to vector<256x16xf32>
    %c7_347 = arith.constant 7 : index
    %c0_348 = arith.constant 0 : index
    %c0_349 = arith.constant 0 : index
    %312 = vector.load %arg4[%c7_347, %c0_348, %c0_349] : memref<9x16x16xf32, #tpu.memory_space<vmem>>, vector<1x16x16xf32>
    %313 = vector.shape_cast %312 : vector<1x16x16xf32> to vector<16x16xf32>
    %cst_350 = arith.constant dense<0.000000e+00> : vector<256x16xf32>
    %314 = tpu.matmul %311, %313, %cst_350 {dimension_numbers = #tpu.dot_dimension_numbers<[1], [0], [0], [1], [0, 0, 1, 1], [], []>} : vector<256x16xf32>, vector<16x16xf32>, vector<256x16xf32> -> vector<256x16xf32>
    %315 = arith.addf %308, %314 : vector<256x16xf32>
    %c1_351 = arith.constant 1 : index
    %c2_352 = arith.constant 2 : index
    %c2_353 = arith.constant 2 : index
    %c0_354 = arith.constant 0 : index
    %316 = vector.load %arg12[%c1_351, %c2_352, %c2_353, %c0_354] : memref<2x18x18x16xf32, #tpu.memory_space<vmem>>, vector<1x16x16x16xf32>
    %317 = vector.shape_cast %316 : vector<1x16x16x16xf32> to vector<16x16x16xf32>
    %318 = vector.shape_cast %317 : vector<16x16x16xf32> to vector<256x16xf32>
    %c8_355 = arith.constant 8 : index
    %c0_356 = arith.constant 0 : index
    %c0_357 = arith.constant 0 : index
    %319 = vector.load %arg4[%c8_355, %c0_356, %c0_357] : memref<9x16x16xf32, #tpu.memory_space<vmem>>, vector<1x16x16xf32>
    %320 = vector.shape_cast %319 : vector<1x16x16xf32> to vector<16x16xf32>
    %cst_358 = arith.constant dense<0.000000e+00> : vector<256x16xf32>
    %321 = tpu.matmul %318, %320, %cst_358 {dimension_numbers = #tpu.dot_dimension_numbers<[1], [0], [0], [1], [0, 0, 1, 1], [], []>} : vector<256x16xf32>, vector<16x16xf32>, vector<256x16xf32> -> vector<256x16xf32>
    %322 = arith.addf %315, %321 : vector<256x16xf32>
    %323 = vector.broadcast %13 : vector<1x16xf32> to vector<256x16xf32>
    %324 = arith.addf %322, %323 : vector<256x16xf32>
    %cst_359 = arith.constant dense<0.000000e+00> : vector<16xf32>
    %325 = vector.multi_reduction <add>, %324, %cst_359 [0] : vector<256x16xf32> to vector<16xf32>
    %326 = vector.shape_cast %325 : vector<16xf32> to vector<1x16xf32>
    %cst_360 = arith.constant 3.906250e-03 : f32
    %327 = vector.broadcast %cst_360 : f32 to vector<1x16xf32>
    %328 = arith.mulf %326, %327 : vector<1x16xf32>
    %c0_361 = arith.constant 0 : index
    %c0_362 = arith.constant 0 : index
    %329 = vector.load %arg6[%c0_361, %c0_362] : memref<4x16xf32, #tpu.memory_space<vmem>>, vector<4x16xf32>
    %330 = vector.broadcast %328 : vector<1x16xf32> to vector<4x16xf32>
    %331 = arith.mulf %330, %329 : vector<4x16xf32>
    %cst_363 = arith.constant dense<0.000000e+00> : vector<4xf32>
    %332 = vector.multi_reduction <add>, %331, %cst_363 [1] : vector<4x16xf32> to vector<4xf32>
    %333 = vector.shape_cast %332 : vector<4xf32> to vector<4x1xf32>
    %c0_364 = arith.constant 0 : index
    %c0_365 = arith.constant 0 : index
    %334 = vector.load %arg7[%c0_364, %c0_365] : memref<4x1xf32, #tpu.memory_space<vmem>>, vector<4x1xf32>
    %335 = arith.addf %333, %334 : vector<4x1xf32>
    %cst_366 = arith.constant 0.000000e+00 : f32
    %336 = vector.broadcast %cst_366 : f32 to vector<4x1xf32>
    %337 = arith.maximumf %335, %336 : vector<4x1xf32>
    %c0_367 = arith.constant 0 : index
    %c0_368 = arith.constant 0 : index
    %338 = vector.load %arg8[%c0_367, %c0_368] : memref<4x16xf32, #tpu.memory_space<vmem>>, vector<4x16xf32>
    %339 = vector.broadcast %337 : vector<4x1xf32> to vector<4x16xf32>
    %340 = arith.mulf %339, %338 : vector<4x16xf32>
    %cst_369 = arith.constant dense<0.000000e+00> : vector<16xf32>
    %341 = vector.multi_reduction <add>, %340, %cst_369 [0] : vector<4x16xf32> to vector<16xf32>
    %342 = vector.shape_cast %341 : vector<16xf32> to vector<1x16xf32>
    %c0_370 = arith.constant 0 : index
    %c0_371 = arith.constant 0 : index
    %343 = vector.load %arg9[%c0_370, %c0_371] : memref<1x16xf32, #tpu.memory_space<vmem>>, vector<1x16xf32>
    %344 = arith.addf %342, %343 : vector<1x16xf32>
    %345 = arith.negf %344 : vector<1x16xf32>
    %346 = math.exp %345 : vector<1x16xf32>
    %cst_372 = arith.constant 1.000000e+00 : f32
    %347 = vector.broadcast %cst_372 : f32 to vector<1x16xf32>
    %348 = arith.addf %347, %346 : vector<1x16xf32>
    %349 = arith.divf %347, %348 : vector<1x16xf32>
    %350 = vector.broadcast %349 : vector<1x16xf32> to vector<256x16xf32>
    %351 = arith.mulf %324, %350 : vector<256x16xf32>
    %c1_373 = arith.constant 1 : index
    %c0_374 = arith.constant 0 : index
    %c0_375 = arith.constant 0 : index
    %c0_376 = arith.constant 0 : index
    %352 = vector.load %arg1[%c1_373, %c0_374, %c0_375, %c0_376] : memref<2x16x16x16xf32, #tpu.memory_space<vmem>>, vector<1x16x16x16xf32>
    %353 = vector.shape_cast %352 : vector<1x16x16x16xf32> to vector<16x16x16xf32>
    %354 = vector.shape_cast %353 : vector<16x16x16xf32> to vector<256x16xf32>
    %355 = arith.addf %351, %354 : vector<256x16xf32>
    %356 = vector.shape_cast %355 : vector<256x16xf32> to vector<16x16x16xf32>
    %c1_377 = arith.constant 1 : index
    %c0_378 = arith.constant 0 : index
    %c0_379 = arith.constant 0 : index
    %c0_380 = arith.constant 0 : index
    %357 = vector.load %arg10[%c1_377, %c0_378, %c0_379, %c0_380] : memref<2x16x16x16xf32, #tpu.memory_space<vmem>>, vector<1x16x16x16xf32>
    %358 = vector.shape_cast %357 : vector<1x16x16x16xf32> to vector<16x16x16xf32>
    %359 = vector.shape_cast %356 : vector<16x16x16xf32> to vector<1x16x16x16xf32>
    tpu.vector_store %arg10[%c1_377, %c0_378, %c0_379, %c0_380], %359 {strides = array<i32>} : memref<2x16x16x16xf32, #tpu.memory_space<vmem>>, vector<1x16x16x16xf32>,
    return
  }
  func.func @transform_0(%arg0: i32) -> (i32, i32, i32, i32) {
    %c0_i32 = arith.constant 0 : i32
    %c0_i32_0 = arith.constant 0 : i32
    %c0_i32_1 = arith.constant 0 : i32
    %c0_i32_2 = arith.constant 0 : i32
    return %arg0, %c0_i32, %c0_i32_0, %c0_i32_1 : i32, i32, i32, i32
  }
  func.func @transform_1(%arg0: i32) -> (i32, i32, i32) {
    %c0_i32 = arith.constant 0 : i32
    %c0_i32_0 = arith.constant 0 : i32
    %c0_i32_1 = arith.constant 0 : i32
    %c0_i32_2 = arith.constant 0 : i32
    return %c0_i32, %c0_i32_0, %c0_i32_1 : i32, i32, i32
  }
  func.func @transform_2(%arg0: i32) -> (i32, i32) {
    %c0_i32 = arith.constant 0 : i32
    %c0_i32_0 = arith.constant 0 : i32
    %c0_i32_1 = arith.constant 0 : i32
    return %c0_i32, %c0_i32_0 : i32, i32
  }
  func.func @transform_3(%arg0: i32) -> (i32, i32, i32) {
    %c0_i32 = arith.constant 0 : i32
    %c0_i32_0 = arith.constant 0 : i32
    %c0_i32_1 = arith.constant 0 : i32
    %c0_i32_2 = arith.constant 0 : i32
    return %c0_i32, %c0_i32_0, %c0_i32_1 : i32, i32, i32
  }
  func.func @transform_4(%arg0: i32) -> (i32, i32) {
    %c0_i32 = arith.constant 0 : i32
    %c0_i32_0 = arith.constant 0 : i32
    %c0_i32_1 = arith.constant 0 : i32
    return %c0_i32, %c0_i32_0 : i32, i32
  }
  func.func @transform_5(%arg0: i32) -> (i32, i32) {
    %c0_i32 = arith.constant 0 : i32
    %c0_i32_0 = arith.constant 0 : i32
    %c0_i32_1 = arith.constant 0 : i32
    return %c0_i32, %c0_i32_0 : i32, i32
  }
  func.func @transform_6(%arg0: i32) -> (i32, i32) {
    %c0_i32 = arith.constant 0 : i32
    %c0_i32_0 = arith.constant 0 : i32
    %c0_i32_1 = arith.constant 0 : i32
    return %c0_i32, %c0_i32_0 : i32, i32
  }
  func.func @transform_7(%arg0: i32) -> (i32, i32) {
    %c0_i32 = arith.constant 0 : i32
    %c0_i32_0 = arith.constant 0 : i32
    %c0_i32_1 = arith.constant 0 : i32
    return %c0_i32, %c0_i32_0 : i32, i32
  }
  func.func @transform_8(%arg0: i32) -> (i32, i32) {
    %c0_i32 = arith.constant 0 : i32
    %c0_i32_0 = arith.constant 0 : i32
    %c0_i32_1 = arith.constant 0 : i32
    return %c0_i32, %c0_i32_0 : i32, i32
  }
  func.func @transform_9(%arg0: i32) -> (i32, i32, i32, i32) {
    %c0_i32 = arith.constant 0 : i32
    %c0_i32_0 = arith.constant 0 : i32
    %c0_i32_1 = arith.constant 0 : i32
    %c0_i32_2 = arith.constant 0 : i32
    return %arg0, %c0_i32, %c0_i32_0, %c0_i32_1 : i32, i32, i32, i32
  }
}

</mosaic_0001>

<bundles_post_ra>
// kernel: tpu_custom_call.1
= control target key start
LH: loop header
LB: loop body
LE: loop exit
PB: predicated region body
PF: predicated region fallthrough
CT: control target
= control target key end

     0   :  { %14 = vsyncpa [#allocation5], 0  ;;  %s25380_s0 = inlined_call_operand.hbm [shape: f32[2,16,16,16], index: 0, kind: input, shape index: {}]   ;;  %s25381_s1 = inlined_call_operand.hbm [shape: f32[9,16,16], index: 1, kind: input, shape index: {}]   ;;  %s25382_s2 = inlined_call_operand.hbm [shape: f32[1,16], index: 2, kind: input, shape index: {}]   ;;  %s25383_s3 = inlined_call_operand.hbm [shape: f32[9,16,16], index: 3, kind: input, shape index: {}]   ;;  %s25384_s4 = inlined_call_operand.vmem [shape: f32[1,16], index: 4, kind: input, shape index: {}]   ;;  %s25385_s5 = inlined_call_operand.vmem [shape: f32[4,16], index: 5, kind: input, shape index: {}]   ;;  %s25386_s6 = inlined_call_operand.vmem [shape: f32[4,1], index: 6, kind: input, shape index: {}]   ;;  %s25387_s7 = inlined_call_operand.vmem [shape: f32[4,16], index: 7, kind: input, shape index: {}]   ;;  %s25388_s8 = inlined_call_operand.vmem [shape: f32[1,16], index: 8, kind: input, shape index: {}]   ;;  %s25389_s9 = inlined_call_operand.hbm [shape: f32[2,16,16,16], index: 9, kind: output, shape index: {}]  }
   0x1   :  { %15 = vsyncpa [#allocation8], 0 }
   0x2   :  { %16 = vsyncpa [#allocation11], 0 }
   0x3   :  { %17 = vsyncpa [#allocation6], 0  ;;  %s19248_s30 = smov [#allocation7]   ;;  %s19249_s11 = smov [#allocation4]  }
   0x4   :  { %s35_s10 = sshll.u32 %s19248_s30, 4  ;;  %s23_s12 = sshll.u32 %s19249_s11, 4  ;;  %s36_s10 = int_to_ptr.vmem [resolvable:$true] %s35_s10  ;;  %s24_s12 = int_to_ptr.vmem [resolvable:$true] %s23_s12 }
   0x5   :  { %s19148_s13 = scalar_lea.vmem %s36_s10, 2304  ;;  %p19153_p1 = scmp.lt.s32.totalorder %s36_s10, %s36_s10 }
   0x6   :  { %p19149_p0 = scmp.ne.s32.totalorder %s36_s10, %s19148_s13  ;;  %p19154_p2 = scmp.lt.s32.totalorder %s19148_s13, %s19148_s13 }
   0x8   :  { %p19155_p3 = por %p19154_p2, %p19153_p1 }
   0xa   :  { %p19156_p4 = pnand %p19155_p3, %p19149_p0 }
   0xc   :  { %19159 = shalt.err (!%p19156_p4)
}
   0xd   :  { %s19250_s14 = smov 128   ;;  %s19251_s15 = smov 8  }
   0xe   :  { %41 = dma.hbm_to_vmem [thread:$0]  %s25381_s1, 2304, %s36_s10, [#allocation8], %s19250_s14, %s19250_s14, %s19251_s15  }
   0xf   :  { %s19168_s18 = scalar_lea.vmem %s24_s12, 8192  ;;  %p19173_p6 = scmp.lt.s32.totalorder %s24_s12, %s24_s12 }
  0x10   :  { %p19169_p5 = scmp.ne.s32.totalorder %s24_s12, %s19168_s18  ;;  %p19174_p7 = scmp.lt.s32.totalorder %s19168_s18, %s19168_s18 }
  0x12   :  { %p19175_p8 = por %p19174_p7, %p19173_p6 }
  0x14   :  { %p19176_p9 = pnand %p19175_p8, %p19169_p5 }
  0x16   :  { %19179 = shalt.err (!%p19176_p9)
}
  0x17   :  { %29 = dma.hbm_to_vmem [thread:$0]  %s25380_s0, 8192, %s24_s12, [#allocation5], %s19250_s14, %s19250_s14, %s19251_s15  }
  0x18   :  { %s19252_s21 = smov [#allocation9]   ;;  %s19253_s23 = smov [#allocation10]  }
  0x19   :  { %s48_s22 = sshll.u32 %s19252_s21, 4  ;;  %s57_s24 = sshll.u32 %s19253_s23, 4  ;;  %s49_s22 = int_to_ptr.vmem [resolvable:$true] %s48_s22  ;;  %s58_s24 = int_to_ptr.vmem [resolvable:$true] %s57_s24 }
  0x1a   :  { %s19188_s1 = scalar_lea.vmem %s49_s22, 16  ;;  %s19192_s25 = scalar_lea.vmem %s49_s22, 32 }
  0x1b   :  { %p19189_p10 = scmp.ne.s32.totalorder %s49_s22, %s19188_s1  ;;  %p19193_p11 = scmp.lt.s32.totalorder %s49_s22, %s49_s22 }
  0x1c   :  { %p19194_p12 = scmp.lt.s32.totalorder %s19192_s25, %s19188_s1 }
  0x1e   :  { %p19195_p13 = por %p19194_p12, %p19193_p11 }
  0x20   :  { %p19196_p0 = pnand %p19195_p13, %p19189_p10 }
  0x22   :  { %19199 = shalt.err (!%p19196_p0)
}
  0x23   :  { %51 = dma.hbm_to_vmem [thread:$0]  %s25382_s2, 16, %s49_s22, [#allocation8]  }
  0x24   :  { %s19208_s28 = scalar_lea.vmem %s58_s24, 2304  ;;  %p19213_p2 = scmp.lt.s32.totalorder %s58_s24, %s58_s24 }
  0x25   :  { %p19209_p1 = scmp.ne.s32.totalorder %s58_s24, %s19208_s28  ;;  %p19214_p3 = scmp.lt.s32.totalorder %s19208_s28, %s19208_s28 }
  0x27   :  { %p19215_p4 = por %p19214_p3, %p19213_p2 }
  0x29   :  { %p19216_p5 = pnand %p19215_p4, %p19209_p1 }
  0x2b   :  { %19219 = shalt.err (!%p19216_p5)
}
  0x2c   :  { %63 = dma.hbm_to_vmem [thread:$0]  %s25383_s3, 2304, %s58_s24, [#allocation11], %s19250_s14, %s19250_s14, %s19251_s15  }
  0x2d   :  { %19240 = dma.done.wait [#allocation5], 8192  }
  0x2e   :  { %19241 = vsyncadd [#allocation5], 4294959104 }
  0x2f   :  { %19242 = dma.done.wait [#allocation8], 2320  }
  0x30   :  { %19243 = vsyncadd [#allocation8], 4294964976 }
  0x31   :  { %19244 = dma.done.wait [#allocation11], 2304  }
  0x32   :  { %19245 = vsyncadd [#allocation11], 4294964992  ;;  %vm86_vm0 = vcmask 130048   ;;  %vm101_vm1 = vcmask 122880   ;;  %vm89_vm2 = vcmask 123904   ;;  %v19254_v0 = vmov 0.0  }
  0x33   :  { %87 = vst.msk [vmem:[#allocation2] sm:$0xff] %vm86_vm0, %v19254_v0  ;;  %88 = vst.msk [vmem:[#allocation2 + $0x8] sm:$0xff] %vm86_vm0, %v19254_v0  ;;  %v458_v1 = vld [vmem:[#allocation7 + $0x18] sm:$0xff]  ;;  %v423_v2 = vld [vmem:[#allocation7 + $0x8] sm:$0xff]  ;;  %vm7459_vm3 = vcmask 125952  }
  0x34   :  { %91 = vst.msk [vmem:[#allocation2 + $0x1b0] sm:$0xff] %vm86_vm0, %v19254_v0  ;;  %92 = vst.msk [vmem:[#allocation2 + $0x1b8] sm:$0xff] %vm86_vm0, %v19254_v0  ;;  %v457_v3 = vld [vmem:[#allocation7 + $0x10] sm:$0xff]  ;;  %17225 = vmatprep.subr.mxu0 %v458_v1  ;;  %17277 = vmatprep.subr.mxu1 %v423_v2  ;;  %v422_v4 = vld [vmem:[#allocation7] sm:$0xff] }
  0x35   :  { %95 = vst.msk [vmem:[#allocation2 + $0x198] sm:$0xff] %vm86_vm0, %v19254_v0  ;;  %96 = vst.msk [vmem:[#allocation2 + $0x1a0] sm:$0xff] %vm86_vm0, %v19254_v0  ;;  %17226 = vmatpush3.msra.mxu0 %v458_v1  ;;  %17278 = vmatpush3.msra.mxu1 %v423_v2  ;;  %v1135_v9 = vld [vmem:[#allocation7 + $0x28] sm:$0xff]  ;;  %v259_v10 = vld [vmem:[#allocation4] sm:$0xff] }
  0x36   :  { %98 = vst.msk [vmem:[#allocation2 + $0x348] sm:$0xff] %vm86_vm0, %v19254_v0  ;;  %99 = vst.msk [vmem:[#allocation2 + $0x350] sm:$0xff] %vm86_vm0, %v19254_v0  ;;  %17227 = vmatprep.subr.mxu0 %v457_v3  ;;  %17279 = vmatprep.subr.mxu1 %v422_v4  ;;  %v260_v11 = vld [vmem:[#allocation4 + $0x8] sm:$0xff]  ;;  %v261_v12 = vld [vmem:[#allocation4 + $0x10] sm:$0xff] }
  0x37   :  { %174 = vst.msk [vmem:[#allocation3] sm:$0xff] %vm86_vm0, %v19254_v0  ;;  %175 = vst.msk [vmem:[#allocation3 + $0x8] sm:$0xff] %vm86_vm0, %v19254_v0  ;;  %17228 = vmatpush3.msra.mxu0 %v457_v3  ;;  %v262_v13 = vld [vmem:[#allocation4 + $0x18] sm:$0xff]  ;;  %v263_v14 = vld [vmem:[#allocation4 + $0x20] sm:$0xff]  ;;  %17280 = vmatpush3.msra.mxu1 %v422_v4 }
  0x38   :  { %177 = vst.msk [vmem:[#allocation3 + $0x1b0] sm:$0xff] %vm86_vm0, %v19254_v0  ;;  %178 = vst.msk [vmem:[#allocation3 + $0x1b8] sm:$0xff] %vm86_vm0, %v19254_v0  ;;  %v264_v15 = vld [vmem:[#allocation4 + $0x28] sm:$0xff]  ;;  %v265_v16 = vld [vmem:[#allocation4 + $0x30] sm:$0xff]  ;;  %17329 = vmatprep.subr.mxu0 %v1135_v9 }
  0x39   :  { %181 = vst.msk [vmem:[#allocation3 + $0x198] sm:$0xff] %vm86_vm0, %v19254_v0  ;;  %182 = vst.msk [vmem:[#allocation3 + $0x1a0] sm:$0xff] %vm86_vm0, %v19254_v0  ;;  %v266_v17 = vld [vmem:[#allocation4 + $0x38] sm:$0xff]  ;;  %v267_v18 = vld [vmem:[#allocation4 + $0x40] sm:$0xff] }
  0x3a   :  { %184 = vst.msk [vmem:[#allocation3 + $0x348] sm:$0xff] %vm86_vm0, %v19254_v0  ;;  %185 = vst.msk [vmem:[#allocation3 + $0x350] sm:$0xff] %vm86_vm0, %v19254_v0  ;;  %v424_v5 = vld [vmem:[#allocation2 + $0x1] sm:$0xff]  ;;  %v269_v20 = vld [vmem:[#allocation4 + $0x50] sm:$0xff] }
  0x3b   :  { %103 = vst.msk [vmem:[#allocation2 + $0x18] sm:$0x1] %vm101_vm1, %v19254_v0  ;;  %104 = vst.msk [vmem:[#allocation2 + $0x30] sm:$0x1] %vm101_vm1, %v19254_v0  ;;  %v391_v8 = vld [vmem:[#allocation2 + $0x8] sm:$0xff]  ;;  %17229 = vmatprep.mubr.msk.f32.mxu0 %vm86_vm0, %v424_v5  ;;  %v270_v21 = vld [vmem:[#allocation4 + $0x58] sm:$0xff] }
  0x3c   :  { %105 = vst.msk [vmem:[#allocation2 + $0x48] sm:$0x1] %vm101_vm1, %v19254_v0  ;;  %106 = vst.msk [vmem:[#allocation2 + $0x60] sm:$0x1] %vm101_vm1, %v19254_v0  ;;  %v268_v19 = vld [vmem:[#allocation4 + $0x48] sm:$0xff]  ;;  %v271_v22 = vld [vmem:[#allocation4 + $0x60] sm:$0xff] }
  0x3d   :  { %107 = vst.msk [vmem:[#allocation2 + $0x78] sm:$0x1] %vm101_vm1, %v19254_v0  ;;  %108 = vst.msk [vmem:[#allocation2 + $0x90] sm:$0x1] %vm101_vm1, %v19254_v0  ;;  %v272_v23 = vld [vmem:[#allocation4 + $0x68] sm:$0xff]  ;;  %v273_v24 = vld [vmem:[#allocation4 + $0x70] sm:$0xff] }
  0x3e   :  { %109 = vst.msk [vmem:[#allocation2 + $0xa8] sm:$0x1] %vm101_vm1, %v19254_v0  ;;  %110 = vst.msk [vmem:[#allocation2 + $0xc0] sm:$0x1] %vm101_vm1, %v19254_v0  ;;  %v1134_v25 = vld [vmem:[#allocation7 + $0x20] sm:$0xff]  ;;  %v274_v26 = vld [vmem:[#allocation4 + $0x78] sm:$0xff] }
  0x3f   :  { %111 = vst.msk [vmem:[#allocation2 + $0xd8] sm:$0x1] %vm101_vm1, %v19254_v0  ;;  %112 = vst.msk [vmem:[#allocation2 + $0xf0] sm:$0x1] %vm101_vm1, %v19254_v0  ;;  %v275_v27 = vld [vmem:[#allocation4 + $0x80] sm:$0xff]  ;;  %v276_v28 = vld [vmem:[#allocation4 + $0x88] sm:$0xff] }
  0x40   :  { %113 = vst.msk [vmem:[#allocation2 + $0x108] sm:$0x1] %vm101_vm1, %v19254_v0  ;;  %114 = vst.msk [vmem:[#allocation2 + $0x120] sm:$0x1] %vm101_vm1, %v19254_v0  ;;  %v277_v29 = vld [vmem:[#allocation4 + $0x90] sm:$0xff]  ;;  %v278_v30 = vld [vmem:[#allocation4 + $0x98] sm:$0xff] }
  0x41   :  { %115 = vst.msk [vmem:[#allocation2 + $0x138] sm:$0x1] %vm101_vm1, %v19254_v0  ;;  %116 = vst.msk [vmem:[#allocation2 + $0x150] sm:$0x1] %vm101_vm1, %v19254_v0  ;;  %v279_v31 = vld [vmem:[#allocation4 + $0xa0] sm:$0xff]  ;;  %v280_v32 = vld [vmem:[#allocation4 + $0xa8] sm:$0xff] }
  0x42   :  { %117 = vst.msk [vmem:[#allocation2 + $0x168] sm:$0x1] %vm101_vm1, %v19254_v0  ;;  %118 = vst.msk [vmem:[#allocation2 + $0x180] sm:$0x1] %vm101_vm1, %v19254_v0  ;;  %v281_v33 = vld [vmem:[#allocation4 + $0xb0] sm:$0xff]  ;;  %v282_v56 = vld [vmem:[#allocation4 + $0xb8] sm:$0xff] }
  0x43   :  { %121 = vst.msk [vmem:[#allocation2 + $0x1c8] sm:$0x1] %vm101_vm1, %v19254_v0  ;;  %122 = vst.msk [vmem:[#allocation2 + $0x1e0] sm:$0x1] %vm101_vm1, %v19254_v0  ;;  %v283_v57 = vld [vmem:[#allocation4 + $0xc0] sm:$0xff]  ;;  %v284_v58 = vld [vmem:[#allocation4 + $0xc8] sm:$0xff] }
  0x44   :  { %123 = vst.msk [vmem:[#allocation2 + $0x1f8] sm:$0x1] %vm101_vm1, %v19254_v0  ;;  %124 = vst.msk [vmem:[#allocation2 + $0x210] sm:$0x1] %vm101_vm1, %v19254_v0  ;;  %v285_v59 = vld [vmem:[#allocation4 + $0xd0] sm:$0xff]  ;;  %v286_v60 = vld [vmem:[#allocation4 + $0xd8] sm:$0xff] }
  0x45   :  { %125 = vst.msk [vmem:[#allocation2 + $0x228] sm:$0x1] %vm101_vm1, %v19254_v0  ;;  %126 = vst.msk [vmem:[#allocation2 + $0x240] sm:$0x1] %vm101_vm1, %v19254_v0  ;;  %v287_v61 = vld [vmem:[#allocation4 + $0xe0] sm:$0xff]  ;;  %v288_v62 = vld [vmem:[#allocation4 + $0xe8] sm:$0xff] }
  0x46   :  { %127 = vst.msk [vmem:[#allocation2 + $0x258] sm:$0x1] %vm101_vm1, %v19254_v0  ;;  %128 = vst.msk [vmem:[#allocation2 + $0x270] sm:$0x1] %vm101_vm1, %v19254_v0  ;;  %v1523_v63 = vld [vmem:[#allocation7 + $0x38] sm:$0xff]  ;;  %v1522_v5 = vld [vmem:[#allocation7 + $0x30] sm:$0xff] }
  0x47   :  { %129 = vst.msk [vmem:[#allocation2 + $0x288] sm:$0x1] %vm101_vm1, %v19254_v0  ;;  %130 = vst.msk [vmem:[#allocation2 + $0x2a0] sm:$0x1] %vm101_vm1, %v19254_v0  ;;  %17381 = vmatprep.subr.mxu1 %v1523_v63 }
  0x48   :  { %131 = vst.msk [vmem:[#allocation2 + $0x2b8] sm:$0x1] %vm101_vm1, %v19254_v0  ;;  %132 = vst.msk [vmem:[#allocation2 + $0x2d0] sm:$0x1] %vm101_vm1, %v19254_v0 }
  0x49   :  { %133 = vst.msk [vmem:[#allocation2 + $0x2e8] sm:$0x1] %vm101_vm1, %v19254_v0  ;;  %134 = vst.msk [vmem:[#allocation2 + $0x300] sm:$0x1] %vm101_vm1, %v19254_v0 }
  0x4a   :  { %135 = vst.msk [vmem:[#allocation2 + $0x318] sm:$0x1] %vm101_vm1, %v19254_v0  ;;  %136 = vst.msk [vmem:[#allocation2 + $0x330] sm:$0x1] %vm101_vm1, %v19254_v0 }
  0x4b   :  { %139 = vst.msk [vmem:[#allocation2 + $0x29] sm:$0x1] %vm101_vm1, %v19254_v0  ;;  %140 = vst.msk [vmem:[#allocation2 + $0x41] sm:$0x1] %vm101_vm1, %v19254_v0 }
  0x4c   :  { %141 = vst.msk [vmem:[#allocation2 + $0x59] sm:$0x1] %vm101_vm1, %v19254_v0  ;;  %142 = vst.msk [vmem:[#allocation2 + $0x71] sm:$0x1] %vm101_vm1, %v19254_v0 }
  0x4d   :  { %143 = vst.msk [vmem:[#allocation2 + $0x89] sm:$0x1] %vm101_vm1, %v19254_v0  ;;  %144 = vst.msk [vmem:[#allocation2 + $0xa1] sm:$0x1] %vm101_vm1, %v19254_v0 }
  0x4e   :  { %145 = vst.msk [vmem:[#allocation2 + $0xb9] sm:$0x1] %vm101_vm1, %v19254_v0  ;;  %146 = vst.msk [vmem:[#allocation2 + $0xd1] sm:$0x1] %vm101_vm1, %v19254_v0 }
  0x4f   :  { %147 = vst.msk [vmem:[#allocation2 + $0xe9] sm:$0x1] %vm101_vm1, %v19254_v0  ;;  %148 = vst.msk [vmem:[#allocation2 + $0x101] sm:$0x1] %vm101_vm1, %v19254_v0 }
  0x50   :  { %149 = vst.msk [vmem:[#allocation2 + $0x119] sm:$0x1] %vm101_vm1, %v19254_v0  ;;  %150 = vst.msk [vmem:[#allocation2 + $0x131] sm:$0x1] %vm101_vm1, %v19254_v0 }
  0x51   :  { %151 = vst.msk [vmem:[#allocation2 + $0x149] sm:$0x1] %vm101_vm1, %v19254_v0  ;;  %152 = vst.msk [vmem:[#allocation2 + $0x161] sm:$0x1] %vm101_vm1, %v19254_v0 }
  0x52   :  { %153 = vst.msk [vmem:[#allocation2 + $0x179] sm:$0x1] %vm101_vm1, %v19254_v0  ;;  %154 = vst.msk [vmem:[#allocation2 + $0x191] sm:$0x1] %vm101_vm1, %v19254_v0 }
  0x53   :  { %157 = vst.msk [vmem:[#allocation2 + $0x1d9] sm:$0x1] %vm101_vm1, %v19254_v0  ;;  %158 = vst.msk [vmem:[#allocation2 + $0x1f1] sm:$0x1] %vm101_vm1, %v19254_v0 }
  0x54   :  { %159 = vst.msk [vmem:[#allocation2 + $0x209] sm:$0x1] %vm101_vm1, %v19254_v0  ;;  %160 = vst.msk [vmem:[#allocation2 + $0x221] sm:$0x1] %vm101_vm1, %v19254_v0 }
  0x55   :  { %161 = vst.msk [vmem:[#allocation2 + $0x239] sm:$0x1] %vm101_vm1, %v19254_v0  ;;  %162 = vst.msk [vmem:[#allocation2 + $0x251] sm:$0x1] %vm101_vm1, %v19254_v0 }
  0x56   :  { %163 = vst.msk [vmem:[#allocation2 + $0x269] sm:$0x1] %vm101_vm1, %v19254_v0  ;;  %164 = vst.msk [vmem:[#allocation2 + $0x281] sm:$0x1] %vm101_vm1, %v19254_v0 }
  0x57   :  { %165 = vst.msk [vmem:[#allocation2 + $0x299] sm:$0x1] %vm101_vm1, %v19254_v0  ;;  %166 = vst.msk [vmem:[#allocation2 + $0x2b1] sm:$0x1] %vm101_vm1, %v19254_v0 }
  0x58   :  { %167 = vst.msk [vmem:[#allocation2 + $0x2c9] sm:$0x1] %vm101_vm1, %v19254_v0  ;;  %168 = vst.msk [vmem:[#allocation2 + $0x2e1] sm:$0x1] %vm101_vm1, %v19254_v0 }
  0x59   :  { %169 = vst.msk [vmem:[#allocation2 + $0x2f9] sm:$0x1] %vm101_vm1, %v19254_v0  ;;  %170 = vst.msk [vmem:[#allocation2 + $0x311] sm:$0x1] %vm101_vm1, %v19254_v0 }
  0x5a   :  { %171 = vst.msk [vmem:[#allocation2 + $0x329] sm:$0x1] %vm101_vm1, %v19254_v0  ;;  %172 = vst.msk [vmem:[#allocation2 + $0x341] sm:$0x1] %vm101_vm1, %v19254_v0 }
  0x5b   :  { %188 = vst.msk [vmem:[#allocation3 + $0x18] sm:$0x1] %vm101_vm1, %v19254_v0  ;;  %189 = vst.msk [vmem:[#allocation3 + $0x30] sm:$0x1] %vm101_vm1, %v19254_v0 }
  0x5c   :  { %190 = vst.msk [vmem:[#allocation3 + $0x48] sm:$0x1] %vm101_vm1, %v19254_v0  ;;  %191 = vst.msk [vmem:[#allocation3 + $0x60] sm:$0x1] %vm101_vm1, %v19254_v0 }
  0x5d   :  { %192 = vst.msk [vmem:[#allocation3 + $0x78] sm:$0x1] %vm101_vm1, %v19254_v0  ;;  %193 = vst.msk [vmem:[#allocation3 + $0x90] sm:$0x1] %vm101_vm1, %v19254_v0 }
  0x5e   :  { %194 = vst.msk [vmem:[#allocation3 + $0xa8] sm:$0x1] %vm101_vm1, %v19254_v0  ;;  %195 = vst.msk [vmem:[#allocation3 + $0xc0] sm:$0x1] %vm101_vm1, %v19254_v0 }
  0x5f   :  { %196 = vst.msk [vmem:[#allocation3 + $0xd8] sm:$0x1] %vm101_vm1, %v19254_v0  ;;  %197 = vst.msk [vmem:[#allocation3 + $0xf0] sm:$0x1] %vm101_vm1, %v19254_v0 }
  0x60   :  { %198 = vst.msk [vmem:[#allocation3 + $0x108] sm:$0x1] %vm101_vm1, %v19254_v0  ;;  %199 = vst.msk [vmem:[#allocation3 + $0x120] sm:$0x1] %vm101_vm1, %v19254_v0 }
  0x61   :  { %200 = vst.msk [vmem:[#allocation3 + $0x138] sm:$0x1] %vm101_vm1, %v19254_v0  ;;  %201 = vst.msk [vmem:[#allocation3 + $0x150] sm:$0x1] %vm101_vm1, %v19254_v0 }
  0x62   :  { %202 = vst.msk [vmem:[#allocation3 + $0x168] sm:$0x1] %vm101_vm1, %v19254_v0  ;;  %203 = vst.msk [vmem:[#allocation3 + $0x180] sm:$0x1] %vm101_vm1, %v19254_v0 }
  0x63   :  { %206 = vst.msk [vmem:[#allocation3 + $0x1c8] sm:$0x1] %vm101_vm1, %v19254_v0  ;;  %207 = vst.msk [vmem:[#allocation3 + $0x1e0] sm:$0x1] %vm101_vm1, %v19254_v0 }
  0x64   :  { %208 = vst.msk [vmem:[#allocation3 + $0x1f8] sm:$0x1] %vm101_vm1, %v19254_v0  ;;  %209 = vst.msk [vmem:[#allocation3 + $0x210] sm:$0x1] %vm101_vm1, %v19254_v0 }
  0x65   :  { %210 = vst.msk [vmem:[#allocation3 + $0x228] sm:$0x1] %vm101_vm1, %v19254_v0  ;;  %211 = vst.msk [vmem:[#allocation3 + $0x240] sm:$0x1] %vm101_vm1, %v19254_v0 }
  0x66   :  { %212 = vst.msk [vmem:[#allocation3 + $0x258] sm:$0x1] %vm101_vm1, %v19254_v0  ;;  %213 = vst.msk [vmem:[#allocation3 + $0x270] sm:$0x1] %vm101_vm1, %v19254_v0 }
  0x67   :  { %214 = vst.msk [vmem:[#allocation3 + $0x288] sm:$0x1] %vm101_vm1, %v19254_v0  ;;  %215 = vst.msk [vmem:[#allocation3 + $0x2a0] sm:$0x1] %vm101_vm1, %v19254_v0 }
  0x68   :  { %216 = vst.msk [vmem:[#allocation3 + $0x2b8] sm:$0x1] %vm101_vm1, %v19254_v0  ;;  %217 = vst.msk [vmem:[#allocation3 + $0x2d0] sm:$0x1] %vm101_vm1, %v19254_v0 }
  0x69   :  { %218 = vst.msk [vmem:[#allocation3 + $0x2e8] sm:$0x1] %vm101_vm1, %v19254_v0  ;;  %219 = vst.msk [vmem:[#allocation3 + $0x300] sm:$0x1] %vm101_vm1, %v19254_v0 }
  0x6a   :  { %220 = vst.msk [vmem:[#allocation3 + $0x318] sm:$0x1] %vm101_vm1, %v19254_v0  ;;  %221 = vst.msk [vmem:[#allocation3 + $0x330] sm:$0x1] %vm101_vm1, %v19254_v0 }
  0x6b   :  { %224 = vst.msk [vmem:[#allocation3 + $0x29] sm:$0x1] %vm101_vm1, %v19254_v0  ;;  %225 = vst.msk [vmem:[#allocation3 + $0x41] sm:$0x1] %vm101_vm1, %v19254_v0 }
  0x6c   :  { %226 = vst.msk [vmem:[#allocation3 + $0x59] sm:$0x1] %vm101_vm1, %v19254_v0  ;;  %227 = vst.msk [vmem:[#allocation3 + $0x71] sm:$0x1] %vm101_vm1, %v19254_v0 }
  0x6d   :  { %228 = vst.msk [vmem:[#allocation3 + $0x89] sm:$0x1] %vm101_vm1, %v19254_v0  ;;  %229 = vst.msk [vmem:[#allocation3 + $0xa1] sm:$0x1] %vm101_vm1, %v19254_v0 }
  0x6e   :  { %230 = vst.msk [vmem:[#allocation3 + $0xb9] sm:$0x1] %vm101_vm1, %v19254_v0  ;;  %231 = vst.msk [vmem:[#allocation3 + $0xd1] sm:$0x1] %vm101_vm1, %v19254_v0 }
  0x6f   :  { %232 = vst.msk [vmem:[#allocation3 + $0xe9] sm:$0x1] %vm101_vm1, %v19254_v0  ;;  %233 = vst.msk [vmem:[#allocation3 + $0x101] sm:$0x1] %vm101_vm1, %v19254_v0 }
  0x70   :  { %234 = vst.msk [vmem:[#allocation3 + $0x119] sm:$0x1] %vm101_vm1, %v19254_v0  ;;  %235 = vst.msk [vmem:[#allocation3 + $0x131] sm:$0x1] %vm101_vm1, %v19254_v0 }
  0x71   :  { %236 = vst.msk [vmem:[#allocation3 + $0x149] sm:$0x1] %vm101_vm1, %v19254_v0  ;;  %237 = vst.msk [vmem:[#allocation3 + $0x161] sm:$0x1] %vm101_vm1, %v19254_v0 }
  0x72   :  { %238 = vst.msk [vmem:[#allocation3 + $0x179] sm:$0x1] %vm101_vm1, %v19254_v0  ;;  %239 = vst.msk [vmem:[#allocation3 + $0x191] sm:$0x1] %vm101_vm1, %v19254_v0 }
  0x73   :  { %242 = vst.msk [vmem:[#allocation3 + $0x1d9] sm:$0x1] %vm101_vm1, %v19254_v0  ;;  %243 = vst.msk [vmem:[#allocation3 + $0x1f1] sm:$0x1] %vm101_vm1, %v19254_v0 }
  0x74   :  { %244 = vst.msk [vmem:[#allocation3 + $0x209] sm:$0x1] %vm101_vm1, %v19254_v0  ;;  %245 = vst.msk [vmem:[#allocation3 + $0x221] sm:$0x1] %vm101_vm1, %v19254_v0 }
  0x75   :  { %246 = vst.msk [vmem:[#allocation3 + $0x239] sm:$0x1] %vm101_vm1, %v19254_v0  ;;  %247 = vst.msk [vmem:[#allocation3 + $0x251] sm:$0x1] %vm101_vm1, %v19254_v0 }
  0x76   :  { %248 = vst.msk [vmem:[#allocation3 + $0x269] sm:$0x1] %vm101_vm1, %v19254_v0  ;;  %249 = vst.msk [vmem:[#allocation3 + $0x281] sm:$0x1] %vm101_vm1, %v19254_v0 }
  0x77   :  { %250 = vst.msk [vmem:[#allocation3 + $0x299] sm:$0x1] %vm101_vm1, %v19254_v0  ;;  %251 = vst.msk [vmem:[#allocation3 + $0x2b1] sm:$0x1] %vm101_vm1, %v19254_v0 }
  0x78   :  { %252 = vst.msk [vmem:[#allocation3 + $0x2c9] sm:$0x1] %vm101_vm1, %v19254_v0  ;;  %253 = vst.msk [vmem:[#allocation3 + $0x2e1] sm:$0x1] %vm101_vm1, %v19254_v0 }
  0x79   :  { %254 = vst.msk [vmem:[#allocation3 + $0x2f9] sm:$0x1] %vm101_vm1, %v19254_v0  ;;  %255 = vst.msk [vmem:[#allocation3 + $0x311] sm:$0x1] %vm101_vm1, %v19254_v0 }
  0x7a   :  { %256 = vst.msk [vmem:[#allocation3 + $0x329] sm:$0x1] %vm101_vm1, %v19254_v0  ;;  %257 = vst.msk [vmem:[#allocation3 + $0x341] sm:$0x1] %vm101_vm1, %v19254_v0 }
  0x7b   :  { %90 = vst.msk [vmem:[#allocation2 + $0x10] sm:$0x3] %vm89_vm2, %v19254_v0  ;;  %93 = vst.msk [vmem:[#allocation2 + $0x1c0] sm:$0x3] %vm89_vm2, %v19254_v0 }
  0x7c   :  { %97 = vst.msk [vmem:[#allocation2 + $0x1a8] sm:$0x3] %vm89_vm2, %v19254_v0  ;;  %100 = vst.msk [vmem:[#allocation2 + $0x358] sm:$0x3] %vm89_vm2, %v19254_v0 }
  0x7d   :  { %176 = vst.msk [vmem:[#allocation3 + $0x10] sm:$0x3] %vm89_vm2, %v19254_v0  ;;  %179 = vst.msk [vmem:[#allocation3 + $0x1c0] sm:$0x3] %vm89_vm2, %v19254_v0 }
  0x7e   :  { %183 = vst.msk [vmem:[#allocation3 + $0x1a8] sm:$0x3] %vm89_vm2, %v19254_v0  ;;  %186 = vst.msk [vmem:[#allocation3 + $0x358] sm:$0x3] %vm89_vm2, %v19254_v0 }
  0x7f   :  { %102 = vst.msk [vmem:[#allocation2] sm:$0x1] %vm101_vm1, %v19254_v0  ;;  %119 = vst.msk [vmem:[#allocation2 + $0x198] sm:$0x1] %vm101_vm1, %v19254_v0 }
  0x80   :  { %120 = vst.msk [vmem:[#allocation2 + $0x1b0] sm:$0x1] %vm101_vm1, %v19254_v0  ;;  %137 = vst.msk [vmem:[#allocation2 + $0x348] sm:$0x1] %vm101_vm1, %v19254_v0 }
  0x81   :  { %187 = vst.msk [vmem:[#allocation3] sm:$0x1] %vm101_vm1, %v19254_v0  ;;  %204 = vst.msk [vmem:[#allocation3 + $0x198] sm:$0x1] %vm101_vm1, %v19254_v0 }
  0x82   :  { %205 = vst.msk [vmem:[#allocation3 + $0x1b0] sm:$0x1] %vm101_vm1, %v19254_v0  ;;  %222 = vst.msk [vmem:[#allocation3 + $0x348] sm:$0x1] %vm101_vm1, %v19254_v0  ;;  %v425_v6 = vld [vmem:[#allocation2 + $0x9] sm:$0xff] }
  0x83   :  { %138 = vst.msk [vmem:[#allocation2 + $0x11] sm:$0x1] %vm101_vm1, %v19254_v0  ;;  %155 = vst.msk [vmem:[#allocation2 + $0x1a9] sm:$0x1] %vm101_vm1, %v19254_v0  ;;  %17230 = vmatmul.mubr.msk.f32.vlgmr.msra.gmra.mxu0 %vm86_vm0, %v425_v6 }
  0x84   :  { %156 = vst.msk [vmem:[#allocation2 + $0x1c1] sm:$0x1] %vm101_vm1, %v19254_v0  ;;  %173 = vst.msk [vmem:[#allocation2 + $0x359] sm:$0x1] %vm101_vm1, %v19254_v0  ;;  %17330 = vmatpush3.msra.mxu0 %v1135_v9 }
  0x85   :  { %223 = vst.msk [vmem:[#allocation3 + $0x11] sm:$0x1] %vm101_vm1, %v19254_v0  ;;  %240 = vst.msk [vmem:[#allocation3 + $0x1a9] sm:$0x1] %vm101_vm1, %v19254_v0  ;;  %17331 = vmatprep.subr.mxu0 %v1134_v25 }
  0x86   :  { %241 = vst.msk [vmem:[#allocation3 + $0x1c1] sm:$0x1] %vm101_vm1, %v19254_v0  ;;  %258 = vst.msk [vmem:[#allocation3 + $0x359] sm:$0x1] %vm101_vm1, %v19254_v0  ;;  %v390_v7 = vld [vmem:[#allocation2] sm:$0xff]  ;;  %17332 = vmatpush3.msra.mxu0 %v1134_v25  ;;  %v19782_v0 = vld [vmem:[#allocation7 + $0x48] sm:$0xff] }
  0x87   :  { %324 = vst.msk [vmem:[#allocation2 + $0x19] sm:$0xff] %vm86_vm0, %v259_v10  ;;  %325 = vst.msk [vmem:[#allocation2 + $0x21] sm:$0xff] %vm86_vm0, %v260_v11  ;;  %17281 = vmatprep.mubr.msk.f32.mxu1 %vm86_vm0, %v390_v7  ;;  %17433 = vmatprep.subr.mxu0 %v19782_v0 }
  0x88   :  { %326 = vst.msk [vmem:[#allocation2 + $0x31] sm:$0xff] %vm86_vm0, %v261_v12  ;;  %327 = vst.msk [vmem:[#allocation2 + $0x39] sm:$0xff] %vm86_vm0, %v262_v13  ;;  %17282 = vmatmul.mubr.msk.f32.vlgmr.msra.gmra.mxu1 %vm86_vm0, %v391_v8 }
  0x89   :  { %328 = vst.msk [vmem:[#allocation2 + $0x49] sm:$0xff] %vm86_vm0, %v263_v14  ;;  %329 = vst.msk [vmem:[#allocation2 + $0x51] sm:$0xff] %vm86_vm0, %v264_v15  ;;  %17382 = vmatpush3.msra.mxu1 %v1523_v63 }
  0x8a   :  { %330 = vst.msk [vmem:[#allocation2 + $0x61] sm:$0xff] %vm86_vm0, %v265_v16  ;;  %331 = vst.msk [vmem:[#allocation2 + $0x69] sm:$0xff] %vm86_vm0, %v266_v17  ;;  %17383 = vmatprep.subr.mxu1 %v1522_v5 }
  0x8b   :  { %332 = vst.msk [vmem:[#allocation2 + $0x79] sm:$0xff] %vm86_vm0, %v267_v18  ;;  %333 = vst.msk [vmem:[#allocation2 + $0x81] sm:$0xff] %vm86_vm0, %v268_v19  ;;  %17384 = vmatpush3.msra.mxu1 %v1522_v5  ;;  %v289_v18 = vld [vmem:[#allocation4 + $0xf0] sm:$0xff]  ;;  %v19849_v19 = vld [vmem:[#allocation7 + $0x58] sm:$0xff] }
  0x8c   :  { %334 = vst.msk [vmem:[#allocation2 + $0x91] sm:$0xff] %vm86_vm0, %v269_v20  ;;  %335 = vst.msk [vmem:[#allocation2 + $0x99] sm:$0xff] %vm86_vm0, %v270_v21  ;;  %17485 = vmatprep.subr.mxu1 %v19849_v19 }
  0x8d   :  { %336 = vst.msk [vmem:[#allocation2 + $0xa9] sm:$0xff] %vm86_vm0, %v271_v22  ;;  %337 = vst.msk [vmem:[#allocation2 + $0xb1] sm:$0xff] %vm86_vm0, %v272_v23  ;;  %v290_v22 = vld [vmem:[#allocation4 + $0xf8] sm:$0xff] }
  0x8e   :  { %338 = vst.msk [vmem:[#allocation2 + $0xc1] sm:$0xff] %vm86_vm0, %v273_v24  ;;  %339 = vst.msk [vmem:[#allocation2 + $0xc9] sm:$0xff] %vm86_vm0, %v274_v26  ;;  %v19688_v34 = vld [vmem:[#allocation2 + $0x19] sm:$0xff]  ;;  %v19692_v36 = vld [vmem:[#allocation2 + $0x21] sm:$0xff] }
  0x8f   :  { %340 = vst.msk [vmem:[#allocation2 + $0xd9] sm:$0xff] %vm86_vm0, %v275_v27  ;;  %341 = vst.msk [vmem:[#allocation2 + $0xe1] sm:$0xff] %vm86_vm0, %v276_v28  ;;  %v19690_v35 = vld [vmem:[#allocation2 + $0x18] sm:$0xff]  ;;  %17232 = vmatprep.mubr.msk.f32.mxu0 %vm86_vm0, %v19688_v34  ;;  %v19701_v37 = vld [vmem:[#allocation2 + $0x20] sm:$0xff] }
  0x90   :  { %342 = vst.msk [vmem:[#allocation2 + $0xf1] sm:$0xff] %vm86_vm0, %v277_v29  ;;  %343 = vst.msk [vmem:[#allocation2 + $0xf9] sm:$0xff] %vm86_vm0, %v278_v30  ;;  %17284 = vmatprep.mubr.msk.f32.mxu1 %vm86_vm0, %v19690_v35  ;;  %v19703_v38 = vld [vmem:[#allocation2 + $0x31] sm:$0xff]  ;;  %17233 = vmatmul.mubr.msk.f32.gmra.mxu0 %vm86_vm0, %v19692_v36  ;;  %v19715_v40 = vld [vmem:[#allocation2 + $0x39] sm:$0xff] }
  0x91   :  { %344 = vst.msk [vmem:[#allocation2 + $0x109] sm:$0xff] %vm86_vm0, %v279_v31  ;;  %345 = vst.msk [vmem:[#allocation2 + $0x111] sm:$0xff] %vm86_vm0, %v280_v32  ;;  %v19705_v39 = vld [vmem:[#allocation2 + $0x30] sm:$0xff]  ;;  %17285 = vmatmul.mubr.msk.f32.gmra.mxu1 %vm86_vm0, %v19701_v37  ;;  %17235 = vmatprep.mubr.msk.f32.mxu0 %vm86_vm0, %v19703_v38  ;;  %v19717_v41 = vld [vmem:[#allocation2 + $0x38] sm:$0xff] }
  0x92   :  { %346 = vst.msk [vmem:[#allocation2 + $0x121] sm:$0xff] %vm86_vm0, %v281_v33  ;;  %17287 = vmatprep.mubr.msk.f32.mxu1 %vm86_vm0, %v19705_v39  ;;  %25534 = vst [vmem:[#allocation17_spill] sm:$0xff] %v19717_v41  ;;  %v19719_v42 = vld [vmem:[#allocation2 + $0x49] sm:$0xff]  ;;  %v19731_v44 = vld [vmem:[#allocation2 + $0x51] sm:$0xff] }
  0x93   :  { %v19721_v43 = vld [vmem:[#allocation2 + $0x48] sm:$0xff]  ;;  %v19733_v45 = vld [vmem:[#allocation2 + $0x50] sm:$0xff]  ;;  %v19737_v47 = vld [vmem:[#allocation2 + $0x60] sm:$0xff]  ;;  %347 = vst.msk [vmem:[#allocation2 + $0x129] sm:$0xff] %vm86_vm0, %v282_v56 }
  0x94   :  { %25535 = vst [vmem:[#allocation18_spill] sm:$0xff] %v19721_v43  ;;  %17236 = vmatmul.mubr.msk.f32.gmra.mxu0 %vm86_vm0, %v19715_v40  ;;  %25536 = vst [vmem:[#allocation19_spill] sm:$0xff] %v19733_v45  ;;  %v19735_v46 = vld [vmem:[#allocation2 + $0x61] sm:$0xff]  ;;  %v19747_v48 = vld [vmem:[#allocation2 + $0x69] sm:$0xff] }
  0x95   :  { %17288 = vmatmul.mubr.msk.f32.gmra.mxu1 %vm86_vm0, %v19717_v41  ;;  %17238 = vmatprep.mubr.msk.f32.mxu0 %vm86_vm0, %v19719_v42  ;;  %25537 = vst [vmem:[#allocation20_spill] sm:$0xff] %v19737_v47  ;;  %v19749_v49 = vld [vmem:[#allocation2 + $0x68] sm:$0xff]  ;;  %v19751_v50 = vld [vmem:[#allocation2 + $0x79] sm:$0xff]  ;;  %v19763_v54 = vld [vmem:[#allocation2 + $0x91] sm:$0xff] }
  0x96   :  { %17290 = vmatprep.mubr.msk.f32.mxu1 %vm86_vm0, %v19721_v43  ;;  %25538 = vst [vmem:[#allocation21_spill] sm:$0xff] %v19749_v49  ;;  %v19753_v51 = vld [vmem:[#allocation2 + $0x78] sm:$0xff]  ;;  %v19759_v52 = vld [vmem:[#allocation2 + $0x81] sm:$0xff]  ;;  %v19769_v55 = vld [vmem:[#allocation2 + $0x90] sm:$0xff] }
  0x97   :  { %25539 = vst [vmem:[#allocation22_spill] sm:$0xff] %v19753_v51  ;;  %v19761_v53 = vld [vmem:[#allocation2 + $0x80] sm:$0xff]  ;;  %25541 = vst [vmem:[#allocation24_spill] sm:$0xff] %v19769_v55  ;;  %v19790_v2 = vld [vmem:[#allocation2 + $0x98] sm:$0xff] }
  0x98   :  { %17239 = vmatmul.mubr.msk.f32.gmra.mxu0 %vm86_vm0, %v19731_v44  ;;  %25540 = vst [vmem:[#allocation23_spill] sm:$0xff] %v19761_v53  ;;  %348 = vst.msk [vmem:[#allocation2 + $0x139] sm:$0xff] %vm86_vm0, %v283_v57  ;;  %v19788_v1 = vld [vmem:[#allocation2 + $0x99] sm:$0xff]  ;;  %v19792_v3 = vld [vmem:[#allocation2 + $0xa9] sm:$0xff] }
  0x99   :  { %17291 = vmatmul.mubr.msk.f32.gmra.mxu1 %vm86_vm0, %v19733_v45  ;;  %17241 = vmatprep.mubr.msk.f32.mxu0 %vm86_vm0, %v19735_v46  ;;  %349 = vst.msk [vmem:[#allocation2 + $0x141] sm:$0xff] %vm86_vm0, %v284_v58  ;;  %350 = vst.msk [vmem:[#allocation2 + $0x151] sm:$0xff] %vm86_vm0, %v285_v59  ;;  %v19794_v4 = vld [vmem:[#allocation2 + $0xa8] sm:$0xff]  ;;  %v19805_v6 = vld [vmem:[#allocation2 + $0xb1] sm:$0xff] }
  0x9a   :  { %17293 = vmatprep.mubr.msk.f32.mxu1 %vm86_vm0, %v19737_v47  ;;  %351 = vst.msk [vmem:[#allocation2 + $0x159] sm:$0xff] %vm86_vm0, %v286_v60  ;;  %352 = vst.msk [vmem:[#allocation2 + $0x169] sm:$0xff] %vm86_vm0, %v287_v61  ;;  %v19807_v7 = vld [vmem:[#allocation2 + $0xb0] sm:$0xff]  ;;  %v19809_v8 = vld [vmem:[#allocation2 + $0xc1] sm:$0xff] }
  0x9b   :  { %353 = vst.msk [vmem:[#allocation2 + $0x171] sm:$0xff] %vm86_vm0, %v288_v62  ;;  %25542 = vst [vmem:[#allocation25_spill] sm:$0xff] %v19790_v2  ;;  %v19811_v9 = vld [vmem:[#allocation2 + $0xc0] sm:$0xff]  ;;  %v19821_v10 = vld [vmem:[#allocation2 + $0xc9] sm:$0xff] }
  0x9c   :  { %17242 = vmatmul.mubr.msk.f32.gmra.mxu0 %vm86_vm0, %v19747_v48  ;;  %25543 = vst [vmem:[#allocation26_spill] sm:$0xff] %v19794_v4  ;;  %25544 = vst [vmem:[#allocation27_spill] sm:$0xff] %v19807_v7  ;;  %v19823_v11 = vld [vmem:[#allocation2 + $0xc8] sm:$0xff]  ;;  %v19825_v12 = vld [vmem:[#allocation2 + $0xd9] sm:$0xff] }
  0x9d   :  { %17294 = vmatmul.mubr.msk.f32.gmra.mxu1 %vm86_vm0, %v19749_v49  ;;  %17244 = vmatprep.mubr.msk.f32.mxu0 %vm86_vm0, %v19751_v50  ;;  %25545 = vst [vmem:[#allocation28_spill] sm:$0xff] %v19811_v9  ;;  %25546 = vst [vmem:[#allocation29_spill] sm:$0xff] %v19823_v11  ;;  %v19827_v13 = vld [vmem:[#allocation2 + $0xd8] sm:$0xff]  ;;  %v19837_v14 = vld [vmem:[#allocation2 + $0xe1] sm:$0xff] }
  0x9e   :  { %17296 = vmatprep.mubr.msk.f32.mxu1 %vm86_vm0, %v19753_v51  ;;  %25547 = vst [vmem:[#allocation30_spill] sm:$0xff] %v19827_v13  ;;  %v19839_v15 = vld [vmem:[#allocation2 + $0xe0] sm:$0xff]  ;;  %v19841_v16 = vld [vmem:[#allocation2 + $0xf1] sm:$0xff]  ;;  %354 = vst.msk [vmem:[#allocation2 + $0x181] sm:$0xff] %vm86_vm0, %v289_v18 }
  0x9f   :  { %25548 = vst [vmem:[#allocation31_spill] sm:$0xff] %v19839_v15  ;;  %v19843_v17 = vld [vmem:[#allocation2 + $0xf0] sm:$0xff]  ;;  %v19855_v20 = vld [vmem:[#allocation2 + $0xf9] sm:$0xff]  ;;  %v19862_v24 = vld [vmem:[#allocation2 + $0x108] sm:$0xff] }
  0xa0   :  { %17245 = vmatmul.mubr.msk.f32.gmra.mxu0 %vm86_vm0, %v19759_v52  ;;  %25549 = vst [vmem:[#allocation32_spill] sm:$0xff] %v19843_v17  ;;  %v19857_v21 = vld [vmem:[#allocation2 + $0xf8] sm:$0xff]  ;;  %v19860_v23 = vld [vmem:[#allocation2 + $0x109] sm:$0xff]  ;;  %25551 = vst [vmem:[#allocation34_spill] sm:$0xff] %v19862_v24 }
  0xa1   :  { %17297 = vmatmul.mubr.msk.f32.gmra.mxu1 %vm86_vm0, %v19761_v53  ;;  %17247 = vmatprep.mubr.msk.f32.mxu0 %vm86_vm0, %v19763_v54  ;;  %25550 = vst [vmem:[#allocation33_spill] sm:$0xff] %v19857_v21  ;;  %355 = vst.msk [vmem:[#allocation2 + $0x189] sm:$0xff] %vm86_vm0, %v290_v22  ;;  %v19874_v25 = vld [vmem:[#allocation2 + $0x111] sm:$0xff]  ;;  %v19878_v27 = vld [vmem:[#allocation2 + $0x121] sm:$0xff] }
  0xa2   :  { %17299 = vmatprep.mubr.msk.f32.mxu1 %vm86_vm0, %v19769_v55  ;;  %v19876_v26 = vld [vmem:[#allocation2 + $0x110] sm:$0xff]  ;;  %v19880_v28 = vld [vmem:[#allocation2 + $0x120] sm:$0xff]  ;;  %v19892_v30 = vld [vmem:[#allocation2 + $0x128] sm:$0xff] }
  0xa3   :  { %25552 = vst [vmem:[#allocation35_spill] sm:$0xff] %v19876_v26  ;;  %25553 = vst [vmem:[#allocation36_spill] sm:$0xff] %v19880_v28  ;;  %v19890_v29 = vld [vmem:[#allocation2 + $0x129] sm:$0xff]  ;;  %v19894_v31 = vld [vmem:[#allocation2 + $0x139] sm:$0xff] }
  0xa4   :  { %17248 = vmatmul.mubr.msk.f32.gmra.mxu0 %vm86_vm0, %v19788_v1  ;;  %25554 = vst [vmem:[#allocation37_spill] sm:$0xff] %v19892_v30  ;;  %v19896_v32 = vld [vmem:[#allocation2 + $0x138] sm:$0xff]  ;;  %v19906_v33 = vld [vmem:[#allocation2 + $0x141] sm:$0xff]  ;;  %v19912_v58 = vld [vmem:[#allocation2 + $0x150] sm:$0xff] }
  0xa5   :  { %17300 = vmatmul.mubr.msk.f32.gmra.mxu1 %vm86_vm0, %v19790_v2  ;;  %17250 = vmatprep.mubr.msk.f32.mxu0 %vm86_vm0, %v19792_v3  ;;  %25555 = vst [vmem:[#allocation38_spill] sm:$0xff] %v19896_v32  ;;  %v19908_v56 = vld [vmem:[#allocation2 + $0x140] sm:$0xff]  ;;  %v19910_v57 = vld [vmem:[#allocation2 + $0x151] sm:$0xff]  ;;  %25557 = vst [vmem:[#allocation40_spill] sm:$0xff] %v19912_v58 }
  0xa6   :  { %17302 = vmatprep.mubr.msk.f32.mxu1 %vm86_vm0, %v19794_v4  ;;  %25556 = vst [vmem:[#allocation39_spill] sm:$0xff] %v19908_v56  ;;  %v19922_v59 = vld [vmem:[#allocation2 + $0x159] sm:$0xff]  ;;  %v19926_v61 = vld [vmem:[#allocation2 + $0x169] sm:$0xff]  ;;  %v19938_v63 = vld [vmem:[#allocation2 + $0x171] sm:$0xff] }
  0xa7   :  { %25558 = vst [vmem:[#allocation41_spill] sm:$0xff] %v19922_v59  ;;  %v19924_v60 = vld [vmem:[#allocation2 + $0x158] sm:$0xff]  ;;  %25560 = vst [vmem:[#allocation43_spill] sm:$0xff] %v19926_v61  ;;  %v19928_v62 = vld [vmem:[#allocation2 + $0x168] sm:$0xff] }
  0xa8   :  { %17251 = vmatmul.mubr.msk.f32.gmra.mxu0 %vm86_vm0, %v19805_v6  ;;  %25559 = vst [vmem:[#allocation42_spill] sm:$0xff] %v19924_v60  ;;  %25561 = vst [vmem:[#allocation44_spill] sm:$0xff] %v19938_v63  ;;  %v19940_v5 = vld [vmem:[#allocation2 + $0x170] sm:$0xff]  ;;  %v1101_v18 = vld [vmem:[#allocation2 + $0x2] sm:$0xff] }
  0xa9   :  { %17303 = vmatmul.mubr.msk.f32.gmra.mxu1 %vm86_vm0, %v19807_v7  ;;  %17253 = vmatprep.mubr.msk.f32.mxu0 %vm86_vm0, %v19809_v8  ;;  %25562 = vst [vmem:[#allocation45_spill] sm:$0xff] %v19940_v5  ;;  %v1102_v22 = vld [vmem:[#allocation2 + $0xa] sm:$0xff] }
  0xaa   :  { %17305 = vmatprep.mubr.msk.f32.mxu1 %vm86_vm0, %v19811_v9 }
  0xac   :  { %17254 = vmatmul.mubr.msk.f32.gmra.mxu0 %vm86_vm0, %v19821_v10 }
  0xad   :  { %17306 = vmatmul.mubr.msk.f32.gmra.mxu1 %vm86_vm0, %v19823_v11  ;;  %17256 = vmatprep.mubr.msk.f32.mxu0 %vm86_vm0, %v19825_v12 }
  0xae   :  { %17308 = vmatprep.mubr.msk.f32.mxu1 %vm86_vm0, %v19827_v13 }
  0xb0   :  { %17257 = vmatmul.mubr.msk.f32.gmra.mxu0 %vm86_vm0, %v19837_v14 }
  0xb1   :  { %17309 = vmatmul.mubr.msk.f32.gmra.mxu1 %vm86_vm0, %v19839_v15  ;;  %17259 = vmatprep.mubr.msk.f32.mxu0 %vm86_vm0, %v19841_v16 }
  0xb2   :  { %17311 = vmatprep.mubr.msk.f32.mxu1 %vm86_vm0, %v19843_v17 }
  0xb4   :  { %17260 = vmatmul.mubr.msk.f32.gmra.mxu0 %vm86_vm0, %v19855_v20 }
  0xb5   :  { %17312 = vmatmul.mubr.msk.f32.gmra.mxu1 %vm86_vm0, %v19857_v21  ;;  %17262 = vmatprep.mubr.msk.f32.mxu0 %vm86_vm0, %v19860_v23 }
  0xb6   :  { %17314 = vmatprep.mubr.msk.f32.mxu1 %vm86_vm0, %v19862_v24 }
  0xb8   :  { %17263 = vmatmul.mubr.msk.f32.gmra.mxu0 %vm86_vm0, %v19874_v25 }
  0xb9   :  { %17315 = vmatmul.mubr.msk.f32.gmra.mxu1 %vm86_vm0, %v19876_v26  ;;  %17265 = vmatprep.mubr.msk.f32.mxu0 %vm86_vm0, %v19878_v27 }
  0xba   :  { %17317 = vmatprep.mubr.msk.f32.mxu1 %vm86_vm0, %v19880_v28 }
  0xbc   :  { %17266 = vmatmul.mubr.msk.f32.gmra.mxu0 %vm86_vm0, %v19890_v29 }
  0xbd   :  { %17318 = vmatmul.mubr.msk.f32.gmra.mxu1 %vm86_vm0, %v19892_v30  ;;  %17268 = vmatprep.mubr.msk.f32.mxu0 %vm86_vm0, %v19894_v31 }
  0xbe   :  { %17320 = vmatprep.mubr.msk.f32.mxu1 %vm86_vm0, %v19896_v32 }
  0xc0   :  { %17269 = vmatmul.mubr.msk.f32.gmra.mxu0 %vm86_vm0, %v19906_v33 }
  0xc1   :  { %17321 = vmatmul.mubr.msk.f32.gmra.mxu1 %vm86_vm0, %v19908_v56  ;;  %17271 = vmatprep.mubr.msk.f32.mxu0 %vm86_vm0, %v19910_v57 }
  0xc2   :  { %17323 = vmatprep.mubr.msk.f32.mxu1 %vm86_vm0, %v19912_v58 }
  0xc4   :  { %17272 = vmatmul.mubr.msk.f32.gmra.mxu0 %vm86_vm0, %v19922_v59  ;;  %v1910_v59 = vld [vmem:[#allocation7 + $0x40] sm:$0xff] }
  0xc5   :  { %17324 = vmatmul.mubr.msk.f32.gmra.mxu1 %vm86_vm0, %v19924_v60  ;;  %17274 = vmatprep.mubr.msk.f32.mxu0 %vm86_vm0, %v19926_v61  ;;  %v19949_v61 = vld [vmem:[#allocation2 + $0x1a] sm:$0xff] }
  0xc6   :  { %17326 = vmatprep.mubr.msk.f32.mxu1 %vm86_vm0, %v19928_v62 }
  0xc8   :  { %17275 = vmatmul.mubr.msk.f32.gmra.mxu0 %vm86_vm0, %v19938_v63  ;;  %v19957_v63 = vld [vmem:[#allocation2 + $0x22] sm:$0xff] }
  0xc9   :  { %17327 = vmatmul.mubr.msk.f32.gmra.mxu1 %vm86_vm0, %v19940_v5  ;;  %17333 = vmatprep.mubr.msk.f32.mxu0 %vm86_vm0, %v1101_v18  ;;  %v19961_v18 = vld [vmem:[#allocation2 + $0x32] sm:$0xff] }
  0xca   :  { %17385 = vmatprep.mubr.msk.f32.mxu1 %vm86_vm0, %v19690_v35  ;;  %v19964_v35 = vld [vmem:[#allocation7 + $0x68] sm:$0xff] }
  0xcc   :  { %17334 = vmatmul.mubr.msk.f32.vlgmr.msra.gmra.mxu0 %vm86_vm0, %v1102_v22  ;;  %v2298_v22 = vld [vmem:[#allocation7 + $0x50] sm:$0xff] }
  0xcd   :  { %17386 = vmatmul.mubr.msk.f32.vlgmr.msra.gmra.mxu1 %vm86_vm0, %v19701_v37  ;;  %17434 = vmatpush3.msra.mxu0 %v19782_v0  ;;  %v19972_v37 = vld [vmem:[#allocation2 + $0x3a] sm:$0xff]  ;;  %v19976_v0 = vld [vmem:[#allocation2 + $0x4a] sm:$0xff] }
  0xce   :  { %17336 = vmatprep.mubr.msk.f32.mxu0 %vm86_vm0, %v19949_v61  ;;  %17388 = vmatprep.mubr.msk.f32.mxu1 %vm86_vm0, %v19705_v39 }
  0xcf   :  { %17435 = vmatprep.subr.mxu0 %v1910_v59  ;;  %17486 = vmatpush3.msra.mxu1 %v19849_v19  ;;  %v19979_v19 = vld [vmem:[#allocation7 + $0x78] sm:$0xff] }
  0xd0   :  { %17436 = vmatpush3.msra.mxu0 %v1910_v59  ;;  %17487 = vmatprep.subr.mxu1 %v2298_v22  ;;  %v19987_v59 = vld [vmem:[#allocation2 + $0x52] sm:$0xff] }
  0xd1   :  { %17337 = vmatmul.mubr.msk.f32.gmra.mxu0 %vm86_vm0, %v19957_v63  ;;  %17389 = vmatmul.mubr.msk.f32.gmra.mxu1 %vm86_vm0, %v19717_v41  ;;  %v20126_v41 = vld [vmem:[#allocation2 + $0x180] sm:$0xff] }
  0xd2   :  { %17339 = vmatprep.mubr.msk.f32.mxu0 %vm86_vm0, %v19961_v18  ;;  %17391 = vmatprep.mubr.msk.f32.mxu1 %vm86_vm0, %v19721_v43  ;;  %v19991_v43 = vld [vmem:[#allocation2 + $0x62] sm:$0xff] }
  0xd3   :  { %17537 = vmatprep.subr.mxu0 %v19964_v35  ;;  %17488 = vmatpush3.msra.mxu1 %v2298_v22  ;;  %v20000_v22 = vld [vmem:[#allocation2 + $0x6a] sm:$0xff] }
  0xd4   :  { %17589 = vmatprep.subr.mxu1 %v19979_v19 }
  0xd5   :  { %17340 = vmatmul.mubr.msk.f32.gmra.mxu0 %vm86_vm0, %v19972_v37  ;;  %17392 = vmatmul.mubr.msk.f32.gmra.mxu1 %vm86_vm0, %v19733_v45  ;;  %v20004_v45 = vld [vmem:[#allocation2 + $0x7a] sm:$0xff] }
  0xd6   :  { %17342 = vmatprep.mubr.msk.f32.mxu0 %vm86_vm0, %v19976_v0  ;;  %17394 = vmatprep.mubr.msk.f32.mxu1 %vm86_vm0, %v19737_v47  ;;  %v20016_v47 = vld [vmem:[#allocation2 + $0x92] sm:$0xff] }
  0xd9   :  { %17343 = vmatmul.mubr.msk.f32.gmra.mxu0 %vm86_vm0, %v19987_v59  ;;  %17395 = vmatmul.mubr.msk.f32.gmra.mxu1 %vm86_vm0, %v19749_v49  ;;  %v20012_v49 = vld [vmem:[#allocation2 + $0x82] sm:$0xff] }
  0xda   :  { %17345 = vmatprep.mubr.msk.f32.mxu0 %vm86_vm0, %v19991_v43  ;;  %17397 = vmatprep.mubr.msk.f32.mxu1 %vm86_vm0, %v19753_v51  ;;  %v20028_v51 = vld [vmem:[#allocation2 + $0xaa] sm:$0xff] }
  0xdd   :  { %17346 = vmatmul.mubr.msk.f32.gmra.mxu0 %vm86_vm0, %v20000_v22  ;;  %17398 = vmatmul.mubr.msk.f32.gmra.mxu1 %vm86_vm0, %v19761_v53  ;;  %v20024_v53 = vld [vmem:[#allocation2 + $0x9a] sm:$0xff] }
  0xde   :  { %17348 = vmatprep.mubr.msk.f32.mxu0 %vm86_vm0, %v20004_v45  ;;  %17400 = vmatprep.mubr.msk.f32.mxu1 %vm86_vm0, %v19769_v55  ;;  %v20040_v55 = vld [vmem:[#allocation2 + $0xc2] sm:$0xff] }
  0xe1   :  { %17349 = vmatmul.mubr.msk.f32.gmra.mxu0 %vm86_vm0, %v20012_v49  ;;  %17401 = vmatmul.mubr.msk.f32.gmra.mxu1 %vm86_vm0, %v19790_v2  ;;  %v20036_v2 = vld [vmem:[#allocation2 + $0xb2] sm:$0xff] }
  0xe2   :  { %17351 = vmatprep.mubr.msk.f32.mxu0 %vm86_vm0, %v20016_v47  ;;  %17403 = vmatprep.mubr.msk.f32.mxu1 %vm86_vm0, %v19794_v4  ;;  %v20052_v4 = vld [vmem:[#allocation2 + $0xda] sm:$0xff] }
  0xe5   :  { %17352 = vmatmul.mubr.msk.f32.gmra.mxu0 %vm86_vm0, %v20024_v53  ;;  %17404 = vmatmul.mubr.msk.f32.gmra.mxu1 %vm86_vm0, %v19807_v7  ;;  %v20048_v7 = vld [vmem:[#allocation2 + $0xca] sm:$0xff] }
  0xe6   :  { %17354 = vmatprep.mubr.msk.f32.mxu0 %vm86_vm0, %v20028_v51  ;;  %17406 = vmatprep.mubr.msk.f32.mxu1 %vm86_vm0, %v19811_v9  ;;  %v20064_v9 = vld [vmem:[#allocation2 + $0xf2] sm:$0xff] }
  0xe9   :  { %17355 = vmatmul.mubr.msk.f32.gmra.mxu0 %vm86_vm0, %v20036_v2  ;;  %17407 = vmatmul.mubr.msk.f32.gmra.mxu1 %vm86_vm0, %v19823_v11  ;;  %v20060_v11 = vld [vmem:[#allocation2 + $0xe2] sm:$0xff] }
  0xea   :  { %17357 = vmatprep.mubr.msk.f32.mxu0 %vm86_vm0, %v20040_v55  ;;  %17409 = vmatprep.mubr.msk.f32.mxu1 %vm86_vm0, %v19827_v13  ;;  %v20076_v13 = vld [vmem:[#allocation2 + $0x10a] sm:$0xff] }
  0xed   :  { %17358 = vmatmul.mubr.msk.f32.gmra.mxu0 %vm86_vm0, %v20048_v7  ;;  %17410 = vmatmul.mubr.msk.f32.gmra.mxu1 %vm86_vm0, %v19839_v15  ;;  %v20072_v15 = vld [vmem:[#allocation2 + $0xfa] sm:$0xff] }
  0xee   :  { %17360 = vmatprep.mubr.msk.f32.mxu0 %vm86_vm0, %v20052_v4  ;;  %17412 = vmatprep.mubr.msk.f32.mxu1 %vm86_vm0, %v19843_v17  ;;  %v20088_v17 = vld [vmem:[#allocation2 + $0x122] sm:$0xff] }
  0xf1   :  { %17361 = vmatmul.mubr.msk.f32.gmra.mxu0 %vm86_vm0, %v20060_v11  ;;  %17413 = vmatmul.mubr.msk.f32.gmra.mxu1 %vm86_vm0, %v19857_v21  ;;  %v20084_v21 = vld [vmem:[#allocation2 + $0x112] sm:$0xff] }
  0xf2   :  { %17363 = vmatprep.mubr.msk.f32.mxu0 %vm86_vm0, %v20064_v9  ;;  %17415 = vmatprep.mubr.msk.f32.mxu1 %vm86_vm0, %v19862_v24  ;;  %v20100_v24 = vld [vmem:[#allocation2 + $0x13a] sm:$0xff] }
  0xf5   :  { %17364 = vmatmul.mubr.msk.f32.gmra.mxu0 %vm86_vm0, %v20072_v15  ;;  %17416 = vmatmul.mubr.msk.f32.gmra.mxu1 %vm86_vm0, %v19876_v26  ;;  %v20096_v26 = vld [vmem:[#allocation2 + $0x12a] sm:$0xff] }
  0xf6   :  { %17366 = vmatprep.mubr.msk.f32.mxu0 %vm86_vm0, %v20076_v13  ;;  %17418 = vmatprep.mubr.msk.f32.mxu1 %vm86_vm0, %v19880_v28  ;;  %v20112_v28 = vld [vmem:[#allocation2 + $0x152] sm:$0xff] }
  0xf9   :  { %17367 = vmatmul.mubr.msk.f32.gmra.mxu0 %vm86_vm0, %v20084_v21  ;;  %17419 = vmatmul.mubr.msk.f32.gmra.mxu1 %vm86_vm0, %v19892_v30  ;;  %v20108_v30 = vld [vmem:[#allocation2 + $0x142] sm:$0xff] }
  0xfa   :  { %17369 = vmatprep.mubr.msk.f32.mxu0 %vm86_vm0, %v20088_v17  ;;  %17421 = vmatprep.mubr.msk.f32.mxu1 %vm86_vm0, %v19896_v32  ;;  %v20124_v32 = vld [vmem:[#allocation2 + $0x16a] sm:$0xff] }
  0xfd   :  { %17370 = vmatmul.mubr.msk.f32.gmra.mxu0 %vm86_vm0, %v20096_v26  ;;  %17422 = vmatmul.mubr.msk.f32.gmra.mxu1 %vm86_vm0, %v19908_v56  ;;  %v20120_v56 = vld [vmem:[#allocation2 + $0x15a] sm:$0xff] }
  0xfe   :  { %17372 = vmatprep.mubr.msk.f32.mxu0 %vm86_vm0, %v20100_v24  ;;  %17424 = vmatprep.mubr.msk.f32.mxu1 %vm86_vm0, %v19912_v58  ;;  %v20138_v58 = vld [vmem:[#allocation2 + $0x188] sm:$0xff] }
 0x101   :  { %17373 = vmatmul.mubr.msk.f32.gmra.mxu0 %vm86_vm0, %v20108_v30  ;;  %17425 = vmatmul.mubr.msk.f32.gmra.mxu1 %vm86_vm0, %v19924_v60  ;;  %v20134_v60 = vld [vmem:[#allocation2 + $0x172] sm:$0xff] }
 0x102   :  { %17375 = vmatprep.mubr.msk.f32.mxu0 %vm86_vm0, %v20112_v28  ;;  %17427 = vmatprep.mubr.msk.f32.mxu1 %vm86_vm0, %v19928_v62 }
 0x105   :  { %17376 = vmatmul.mubr.msk.f32.gmra.mxu0 %vm86_vm0, %v20120_v56  ;;  %17428 = vmatmul.mubr.msk.f32.gmra.mxu1 %vm86_vm0, %v19940_v5  ;;  %v2687_v5 = vld [vmem:[#allocation7 + $0x60] sm:$0xff] }
 0x106   :  { %17378 = vmatprep.mubr.msk.f32.mxu0 %vm86_vm0, %v20124_v32  ;;  %17430 = vmatprep.mubr.msk.f32.mxu1 %vm86_vm0, %v20126_v41 }
 0x109   :  { %17379 = vmatmul.mubr.msk.f32.gmra.mxu0 %vm86_vm0, %v20134_v60  ;;  %17431 = vmatmul.mubr.msk.f32.gmra.mxu1 %vm86_vm0, %v20138_v58 }
 0x10a   :  { %17437 = vmatprep.mubr.msk.f32.mxu0 %vm86_vm0, %v19688_v34  ;;  %17489 = vmatprep.mubr.msk.f32.mxu1 %vm86_vm0, %v19949_v61  ;;  %v20158_v34 = vld [vmem:[#allocation7 + $0x88] sm:$0xff]  ;;  %v3075_v61 = vld [vmem:[#allocation7 + $0x70] sm:$0xff] }
 0x10d   :  { %17438 = vmatmul.mubr.msk.f32.vlgmr.msra.gmra.mxu0 %vm86_vm0, %v19692_v36  ;;  %17490 = vmatmul.mubr.msk.f32.vlgmr.msra.gmra.mxu1 %vm86_vm0, %v19957_v63  ;;  %v25563_v36 = vld [vmem:[#allocation41_spill] sm:$0xff] }
 0x10e   :  { %17538 = vmatpush3.msra.mxu0 %v19964_v35  ;;  %17440 = vmatprep.mubr.msk.f32.mxu0 %vm86_vm0, %v19703_v38  ;;  %v25570_v35 = vld [vmem:[#allocation21_spill] sm:$0xff] }
 0x10f   :  { %17492 = vmatprep.mubr.msk.f32.mxu1 %vm86_vm0, %v19961_v18  ;;  %17539 = vmatprep.subr.mxu0 %v2687_v5 }
 0x110   :  { %17540 = vmatpush3.msra.mxu0 %v2687_v5  ;;  %17590 = vmatpush3.msra.mxu1 %v19979_v19  ;;  %v25571_v19 = vld [vmem:[#allocation22_spill] sm:$0xff] }
 0x111   :  { %17441 = vmatmul.mubr.msk.f32.gmra.mxu0 %vm86_vm0, %v19715_v40  ;;  %17493 = vmatmul.mubr.msk.f32.gmra.mxu1 %vm86_vm0, %v19972_v37 }
 0x112   :  { %17443 = vmatprep.mubr.msk.f32.mxu0 %vm86_vm0, %v19719_v42  ;;  %17495 = vmatprep.mubr.msk.f32.mxu1 %vm86_vm0, %v19976_v0 }
 0x113   :  { %17641 = vmatprep.subr.mxu0 %v20158_v34  ;;  %17591 = vmatprep.subr.mxu1 %v3075_v61 }
 0x114   :  { %17592 = vmatpush3.msra.mxu1 %v3075_v61 }
 0x115   :  { %17444 = vmatmul.mubr.msk.f32.gmra.mxu0 %vm86_vm0, %v19731_v44  ;;  %17496 = vmatmul.mubr.msk.f32.gmra.mxu1 %vm86_vm0, %v19987_v59 }
 0x116   :  { %17446 = vmatprep.mubr.msk.f32.mxu0 %vm86_vm0, %v19735_v46  ;;  %17498 = vmatprep.mubr.msk.f32.mxu1 %vm86_vm0, %v19991_v43 }
 0x119   :  { %17447 = vmatmul.mubr.msk.f32.gmra.mxu0 %vm86_vm0, %v19747_v48  ;;  %17499 = vmatmul.mubr.msk.f32.gmra.mxu1 %vm86_vm0, %v20000_v22 }
 0x11a   :  { %17449 = vmatprep.mubr.msk.f32.mxu0 %vm86_vm0, %v19751_v50  ;;  %17501 = vmatprep.mubr.msk.f32.mxu1 %vm86_vm0, %v20004_v45 }
 0x11d   :  { %17450 = vmatmul.mubr.msk.f32.gmra.mxu0 %vm86_vm0, %v19759_v52  ;;  %17502 = vmatmul.mubr.msk.f32.gmra.mxu1 %vm86_vm0, %v20012_v49 }
 0x11e   :  { %17452 = vmatprep.mubr.msk.f32.mxu0 %vm86_vm0, %v19763_v54  ;;  %17504 = vmatprep.mubr.msk.f32.mxu1 %vm86_vm0, %v20016_v47 }
 0x121   :  { %17453 = vmatmul.mubr.msk.f32.gmra.mxu0 %vm86_vm0, %v19788_v1  ;;  %17505 = vmatmul.mubr.msk.f32.gmra.mxu1 %vm86_vm0, %v20024_v53  ;;  %v20265_v53 = vld [vmem:[#allocation2 + $0x181] sm:$0xff] }
 0x122   :  { %17455 = vmatprep.mubr.msk.f32.mxu0 %vm86_vm0, %v19792_v3  ;;  %17507 = vmatprep.mubr.msk.f32.mxu1 %vm86_vm0, %v20028_v51  ;;  %v25564_v51 = vld [vmem:[#allocation43_spill] sm:$0xff] }
 0x125   :  { %17456 = vmatmul.mubr.msk.f32.gmra.mxu0 %vm86_vm0, %v19805_v6  ;;  %17508 = vmatmul.mubr.msk.f32.gmra.mxu1 %vm86_vm0, %v20036_v2  ;;  %v25565_v2 = vld [vmem:[#allocation44_spill] sm:$0xff] }
 0x126   :  { %17458 = vmatprep.mubr.msk.f32.mxu0 %vm86_vm0, %v19809_v8  ;;  %17510 = vmatprep.mubr.msk.f32.mxu1 %vm86_vm0, %v20040_v55  ;;  %v20267_v55 = vld [vmem:[#allocation2 + $0x182] sm:$0xff] }
 0x129   :  { %17459 = vmatmul.mubr.msk.f32.gmra.mxu0 %vm86_vm0, %v19821_v10  ;;  %17511 = vmatmul.mubr.msk.f32.gmra.mxu1 %vm86_vm0, %v20048_v7  ;;  %v20279_v7 = vld [vmem:[#allocation2 + $0x18a] sm:$0xff] }
 0x12a   :  { %17461 = vmatprep.mubr.msk.f32.mxu0 %vm86_vm0, %v19825_v12  ;;  %17513 = vmatprep.mubr.msk.f32.mxu1 %vm86_vm0, %v20052_v4  ;;  %v20275_v4 = vld [vmem:[#allocation2 + $0x189] sm:$0xff] }
 0x12d   :  { %17462 = vmatmul.mubr.msk.f32.gmra.mxu0 %vm86_vm0, %v19837_v14  ;;  %17514 = vmatmul.mubr.msk.f32.gmra.mxu1 %vm86_vm0, %v20060_v11 }
 0x12e   :  { %17464 = vmatprep.mubr.msk.f32.mxu0 %vm86_vm0, %v19841_v16  ;;  %17516 = vmatprep.mubr.msk.f32.mxu1 %vm86_vm0, %v20064_v9 }
 0x131   :  { %17465 = vmatmul.mubr.msk.f32.gmra.mxu0 %vm86_vm0, %v19855_v20  ;;  %17517 = vmatmul.mubr.msk.f32.gmra.mxu1 %vm86_vm0, %v20072_v15 }
 0x132   :  { %17467 = vmatprep.mubr.msk.f32.mxu0 %vm86_vm0, %v19860_v23  ;;  %17519 = vmatprep.mubr.msk.f32.mxu1 %vm86_vm0, %v20076_v13 }
 0x135   :  { %17468 = vmatmul.mubr.msk.f32.gmra.mxu0 %vm86_vm0, %v19874_v25  ;;  %17520 = vmatmul.mubr.msk.f32.gmra.mxu1 %vm86_vm0, %v20084_v21  ;;  %v3463_v21 = vld [vmem:[#allocation7 + $0x80] sm:$0xff] }
 0x136   :  { %17470 = vmatprep.mubr.msk.f32.mxu0 %vm86_vm0, %v19878_v27  ;;  %17522 = vmatprep.mubr.msk.f32.mxu1 %vm86_vm0, %v20088_v17 }
 0x139   :  { %17471 = vmatmul.mubr.msk.f32.gmra.mxu0 %vm86_vm0, %v19890_v29  ;;  %17523 = vmatmul.mubr.msk.f32.gmra.mxu1 %vm86_vm0, %v20096_v26 }
 0x13a   :  { %17473 = vmatprep.mubr.msk.f32.mxu0 %vm86_vm0, %v19894_v31  ;;  %17525 = vmatprep.mubr.msk.f32.mxu1 %vm86_vm0, %v20100_v24  ;;  %v25566_v24 = vld [vmem:[#allocation17_spill] sm:$0xff] }
 0x13d   :  { %17474 = vmatmul.mubr.msk.f32.gmra.mxu0 %vm86_vm0, %v19906_v33  ;;  %17526 = vmatmul.mubr.msk.f32.gmra.mxu1 %vm86_vm0, %v20108_v30  ;;  %v25568_v30 = vld [vmem:[#allocation19_spill] sm:$0xff] }
 0x13e   :  { %17476 = vmatprep.mubr.msk.f32.mxu0 %vm86_vm0, %v19910_v57  ;;  %17528 = vmatprep.mubr.msk.f32.mxu1 %vm86_vm0, %v20112_v28  ;;  %v25567_v28 = vld [vmem:[#allocation18_spill] sm:$0xff] }
 0x141   :  { %17477 = vmatmul.mubr.msk.f32.gmra.mxu0 %vm86_vm0, %v25563_v36  ;;  %17529 = vmatmul.mubr.msk.f32.gmra.mxu1 %vm86_vm0, %v20120_v56 }
 0x142   :  { %17479 = vmatprep.mubr.msk.f32.mxu0 %vm86_vm0, %v25564_v51  ;;  %17531 = vmatprep.mubr.msk.f32.mxu1 %vm86_vm0, %v20124_v32 }
 0x143   :  { %v17231_v9 = vpop.f32.mrf.mxu0 }
 0x145   :  { %17480 = vmatmul.mubr.msk.f32.gmra.mxu0 %vm86_vm0, %v25565_v2  ;;  %17532 = vmatmul.mubr.msk.f32.gmra.mxu1 %vm86_vm0, %v20134_v60  ;;  %v621_v15 = vpop.f32.mrf.mxu0 }
 0x146   :  { %17482 = vmatprep.mubr.msk.f32.mxu0 %vm86_vm0, %v20265_v53  ;;  %17534 = vmatprep.mubr.msk.f32.mxu1 %vm86_vm0, %v20267_v55 }
 0x148   :  { %v17283_v11 = vpop.f32.mrf.mxu1 }
 0x149   :  { %17483 = vmatmul.mubr.msk.f32.gmra.mxu0 %vm86_vm0, %v20275_v4  ;;  %17535 = vmatmul.mubr.msk.f32.gmra.mxu1 %vm86_vm0, %v20279_v7  ;;  %v20289_v13 = vadd.f32 %v17283_v11, %v17231_v9 }
 0x14a   :  { %17541 = vmatprep.mubr.msk.f32.mxu0 %vm86_vm0, %v19705_v39  ;;  %17593 = vmatprep.mubr.msk.f32.mxu1 %vm86_vm0, %v19703_v38  ;;  %v942_v17 = vpop.f32.mrf.mxu1 }
 0x14b   :  { %v20293_v26 = vadd.f32 %v942_v17, %v621_v15  ;;  %v25572_v15 = vld [vmem:[#allocation23_spill] sm:$0xff]  ;;  %v25573_v17 = vld [vmem:[#allocation24_spill] sm:$0xff] }
 0x14d   :  { %17542 = vmatmul.mubr.msk.f32.vlgmr.msra.gmra.mxu0 %vm86_vm0, %v25566_v24  ;;  %17594 = vmatmul.mubr.msk.f32.vlgmr.msra.gmra.mxu1 %vm86_vm0, %v19715_v40  ;;  %v25569_v40 = vld [vmem:[#allocation20_spill] sm:$0xff] }
 0x14e   :  { %17642 = vmatpush3.msra.mxu0 %v20158_v34  ;;  %17544 = vmatprep.mubr.msk.f32.mxu0 %vm86_vm0, %v25567_v28 }
 0x14f   :  { %17596 = vmatprep.mubr.msk.f32.mxu1 %vm86_vm0, %v19719_v42  ;;  %17643 = vmatprep.subr.mxu0 %v3463_v21 }
 0x150   :  { %17644 = vmatpush3.msra.mxu0 %v3463_v21  ;;  %v17234_v38 = vpop.f32.mrf.mxu0 }
 0x151   :  { %v17286_v39 = vpop.f32.mrf.mxu1  ;;  %17545 = vmatmul.mubr.msk.f32.gmra.mxu0 %vm86_vm0, %v25568_v30  ;;  %17597 = vmatmul.mubr.msk.f32.gmra.mxu1 %vm86_vm0, %v19731_v44  ;;  %v25575_v30 = vld [vmem:[#allocation26_spill] sm:$0xff] }
 0x152   :  { %v20306_v32 = vadd.f32 %v17286_v39, %v17234_v38  ;;  %17547 = vmatprep.mubr.msk.f32.mxu0 %vm86_vm0, %v25569_v40  ;;  %17599 = vmatprep.mubr.msk.f32.mxu1 %vm86_vm0, %v19735_v46  ;;  %v631_v56 = vpop.f32.mrf.mxu0  ;;  %v25574_v39 = vld [vmem:[#allocation25_spill] sm:$0xff] }
 0x153   :  { %v952_v42 = vpop.f32.mrf.mxu1 }
 0x154   :  { %v20312_v60 = vadd.f32 %v952_v42, %v631_v56  ;;  %v17237_v63 = vpop.f32.mrf.mxu0 }
 0x155   :  { %v17289_v5 = vpop.f32.mrf.mxu1  ;;  %17548 = vmatmul.mubr.msk.f32.gmra.mxu0 %vm86_vm0, %v25570_v35  ;;  %17600 = vmatmul.mubr.msk.f32.gmra.mxu1 %vm86_vm0, %v19747_v48  ;;  %v25577_v35 = vld [vmem:[#allocation28_spill] sm:$0xff] }
 0x156   :  { %v20318_v44 = vadd.f32 %v17289_v5, %v17237_v63  ;;  %17550 = vmatprep.mubr.msk.f32.mxu0 %vm86_vm0, %v25571_v19  ;;  %17602 = vmatprep.mubr.msk.f32.mxu1 %vm86_vm0, %v19751_v50  ;;  %v641_v46 = vpop.f32.mrf.mxu0  ;;  %v25576_v5 = vld [vmem:[#allocation27_spill] sm:$0xff] }
 0x157   :  { %v962_v34 = vpop.f32.mrf.mxu1 }
 0x158   :  { %v20324_v61 = vadd.f32 %v962_v34, %v641_v46  ;;  %v17240_v9 = vpop.f32.mrf.mxu0 }
 0x159   :  { %v17292_v11 = vpop.f32.mrf.mxu1  ;;  %17551 = vmatmul.mubr.msk.f32.gmra.mxu0 %vm86_vm0, %v25572_v15  ;;  %17603 = vmatmul.mubr.msk.f32.gmra.mxu1 %vm86_vm0, %v19759_v52  ;;  %v25579_v15 = vld [vmem:[#allocation30_spill] sm:$0xff] }
 0x15a   :  { %v20330_v48 = vadd.f32 %v17292_v11, %v17240_v9  ;;  %17553 = vmatprep.mubr.msk.f32.mxu0 %vm86_vm0, %v25573_v17  ;;  %17605 = vmatprep.mubr.msk.f32.mxu1 %vm86_vm0, %v19763_v54  ;;  %v651_v50 = vpop.f32.mrf.mxu0  ;;  %v25578_v11 = vld [vmem:[#allocation29_spill] sm:$0xff] }
 0x15b   :  { %v972_v21 = vpop.f32.mrf.mxu1 }
 0x15c   :  { %v20336_v24 = vadd.f32 %v972_v21, %v651_v50  ;;  %v17243_v28 = vpop.f32.mrf.mxu0 }
 0x15d   :  { %v17295_v38 = vpop.f32.mrf.mxu1  ;;  %17554 = vmatmul.mubr.msk.f32.gmra.mxu0 %vm86_vm0, %v25574_v39  ;;  %17606 = vmatmul.mubr.msk.f32.gmra.mxu1 %vm86_vm0, %v19788_v1  ;;  %v25581_v39 = vld [vmem:[#allocation32_spill] sm:$0xff] }
 0x15e   :  { %v20342_v52 = vadd.f32 %v17295_v38, %v17243_v28  ;;  %17556 = vmatprep.mubr.msk.f32.mxu0 %vm86_vm0, %v25575_v30  ;;  %17608 = vmatprep.mubr.msk.f32.mxu1 %vm86_vm0, %v19792_v3  ;;  %v661_v54 = vpop.f32.mrf.mxu0  ;;  %v25580_v38 = vld [vmem:[#allocation31_spill] sm:$0xff] }
 0x15f   :  { %v982_v40 = vpop.f32.mrf.mxu1 }
 0x160   :  { %v20348_v56 = vadd.f32 %v982_v40, %v661_v54  ;;  %v17246_v42 = vpop.f32.mrf.mxu0 }
 0x161   :  { %v17298_v63 = vpop.f32.mrf.mxu1  ;;  %17557 = vmatmul.mubr.msk.f32.gmra.mxu0 %vm86_vm0, %v25576_v5  ;;  %17609 = vmatmul.mubr.msk.f32.gmra.mxu1 %vm86_vm0, %v19805_v6  ;;  %v25583_v5 = vld [vmem:[#allocation34_spill] sm:$0xff] }
 0x162   :  { %v20354_v1 = vadd.f32 %v17298_v63, %v17246_v42  ;;  %17559 = vmatprep.mubr.msk.f32.mxu0 %vm86_vm0, %v25577_v35  ;;  %17611 = vmatprep.mubr.msk.f32.mxu1 %vm86_vm0, %v19809_v8  ;;  %v671_v3 = vpop.f32.mrf.mxu0  ;;  %v25582_v63 = vld [vmem:[#allocation33_spill] sm:$0xff] }
 0x163   :  { %v992_v19 = vpop.f32.mrf.mxu1 }
 0x164   :  { %v20360_v46 = vadd.f32 %v992_v19, %v671_v3  ;;  %v17249_v34 = vpop.f32.mrf.mxu0 }
 0x165   :  { %v17301_v9 = vpop.f32.mrf.mxu1  ;;  %17560 = vmatmul.mubr.msk.f32.gmra.mxu0 %vm86_vm0, %v25578_v11  ;;  %17612 = vmatmul.mubr.msk.f32.gmra.mxu1 %vm86_vm0, %v19821_v10 }
 0x166   :  { %v20366_v6 = vadd.f32 %v17301_v9, %v17249_v34  ;;  %17562 = vmatprep.mubr.msk.f32.mxu0 %vm86_vm0, %v25579_v15  ;;  %17614 = vmatprep.mubr.msk.f32.mxu1 %vm86_vm0, %v19825_v12  ;;  %v681_v8 = vpop.f32.mrf.mxu0  ;;  %v25584_v34 = vld [vmem:[#allocation35_spill] sm:$0xff]  ;;  %v25585_v9 = vld [vmem:[#allocation36_spill] sm:$0xff] }
 0x167   :  { %v1002_v17 = vpop.f32.mrf.mxu1 }
 0x168   :  { %v20372_v50 = vadd.f32 %v1002_v17, %v681_v8  ;;  %v17252_v21 = vpop.f32.mrf.mxu0  ;;  %v25586_v17 = vld [vmem:[#allocation37_spill] sm:$0xff] }
 0x169   :  { %v17304_v28 = vpop.f32.mrf.mxu1  ;;  %17563 = vmatmul.mubr.msk.f32.gmra.mxu0 %vm86_vm0, %v25580_v38  ;;  %17615 = vmatmul.mubr.msk.f32.gmra.mxu1 %vm86_vm0, %v19837_v14 }
 0x16a   :  { %v20378_v10 = vadd.f32 %v17304_v28, %v17252_v21  ;;  %17565 = vmatprep.mubr.msk.f32.mxu0 %vm86_vm0, %v25581_v39  ;;  %17617 = vmatprep.mubr.msk.f32.mxu1 %vm86_vm0, %v19841_v16  ;;  %v691_v12 = vpop.f32.mrf.mxu0  ;;  %v25587_v21 = vld [vmem:[#allocation38_spill] sm:$0xff] }
 0x16b   :  { %v1012_v30 = vpop.f32.mrf.mxu1 }
 0x16c   :  { %v20384_v54 = vadd.f32 %v1012_v30, %v691_v12  ;;  %v17255_v40 = vpop.f32.mrf.mxu0  ;;  %v25588_v12 = vld [vmem:[#allocation39_spill] sm:$0xff]  ;;  %v25589_v30 = vld [vmem:[#allocation40_spill] sm:$0xff] }
 0x16d   :  { %v17307_v42 = vpop.f32.mrf.mxu1  ;;  %17566 = vmatmul.mubr.msk.f32.gmra.mxu0 %vm86_vm0, %v25582_v63  ;;  %17618 = vmatmul.mubr.msk.f32.gmra.mxu1 %vm86_vm0, %v19855_v20 }
 0x16e   :  { %v20390_v14 = vadd.f32 %v17307_v42, %v17255_v40  ;;  %17568 = vmatprep.mubr.msk.f32.mxu0 %vm86_vm0, %v25583_v5  ;;  %17620 = vmatprep.mubr.msk.f32.mxu1 %vm86_vm0, %v19860_v23  ;;  %v20396_v16 = vpop.f32.mrf.mxu0  ;;  %v25590_v5 = vld [vmem:[#allocation42_spill] sm:$0xff] }
 0x16f   :  { %v20398_v35 = vpop.f32.mrf.mxu1 }
 0x170   :  { %v17258_v3 = vpop.f32.mrf.mxu0 }
 0x171   :  { %v17310_v19 = vpop.f32.mrf.mxu1  ;;  %17569 = vmatmul.mubr.msk.f32.gmra.mxu0 %vm86_vm0, %v25584_v34  ;;  %17621 = vmatmul.mubr.msk.f32.gmra.mxu1 %vm86_vm0, %v19874_v25 }
 0x172   :  { %v20404_v20 = vadd.f32 %v17310_v19, %v17258_v3  ;;  %17571 = vmatprep.mubr.msk.f32.mxu0 %vm86_vm0, %v25585_v9  ;;  %17623 = vmatprep.mubr.msk.f32.mxu1 %vm86_vm0, %v19878_v27  ;;  %v20410_v23 = vpop.f32.mrf.mxu0  ;;  %v25591_v9 = vld [vmem:[#allocation45_spill] sm:$0xff] }
 0x173   :  { %v20412_v11 = vpop.f32.mrf.mxu1 }
 0x174   :  { %v17261_v15 = vpop.f32.mrf.mxu0 }
 0x175   :  { %v17313_v8 = vpop.f32.mrf.mxu1  ;;  %17572 = vmatmul.mubr.msk.f32.gmra.mxu0 %vm86_vm0, %v25586_v17  ;;  %17624 = vmatmul.mubr.msk.f32.gmra.mxu1 %vm86_vm0, %v19890_v29 }
 0x176   :  { %v20418_v25 = vadd.f32 %v17313_v8, %v17261_v15  ;;  %17574 = vmatprep.mubr.msk.f32.mxu0 %vm86_vm0, %v25587_v21  ;;  %17626 = vmatprep.mubr.msk.f32.mxu1 %vm86_vm0, %v19894_v31  ;;  %v20424_v27 = vpop.f32.mrf.mxu0  ;;  %v2684_v15 = vld [vmem:[#allocation2 + $0x198] sm:$0xff] }
 0x177   :  { %v20426_v28 = vpop.f32.mrf.mxu1  ;;  %v3072_v8 = vld [vmem:[#allocation2 + $0x199] sm:$0xff] }
 0x178   :  { %v17264_v38 = vpop.f32.mrf.mxu0 }
 0x179   :  { %v17316_v39 = vpop.f32.mrf.mxu1  ;;  %17575 = vmatmul.mubr.msk.f32.gmra.mxu0 %vm86_vm0, %v25588_v12  ;;  %17627 = vmatmul.mubr.msk.f32.gmra.mxu1 %vm86_vm0, %v19906_v33 }
 0x17a   :  { %v20432_v29 = vadd.f32 %v17316_v39, %v17264_v38  ;;  %17577 = vmatprep.mubr.msk.f32.mxu0 %vm86_vm0, %v25589_v30  ;;  %17629 = vmatprep.mubr.msk.f32.mxu1 %vm86_vm0, %v19910_v57  ;;  %v20438_v31 = vpop.f32.mrf.mxu0 }
 0x17b   :  { %v20440_v40 = vpop.f32.mrf.mxu1 }
 0x17c   :  { %v17267_v42 = vpop.f32.mrf.mxu0 }
 0x17d   :  { %v17319_v63 = vpop.f32.mrf.mxu1  ;;  %17578 = vmatmul.mubr.msk.f32.gmra.mxu0 %vm86_vm0, %v25590_v5  ;;  %17630 = vmatmul.mubr.msk.f32.gmra.mxu1 %vm86_vm0, %v25563_v36 }
 0x17e   :  { %v20446_v33 = vadd.f32 %v17319_v63, %v17267_v42  ;;  %17580 = vmatprep.mubr.msk.f32.mxu0 %vm86_vm0, %v19928_v62  ;;  %17632 = vmatprep.mubr.msk.f32.mxu1 %vm86_vm0, %v25564_v51  ;;  %v20452_v57 = vpop.f32.mrf.mxu0 }
 0x17f   :  { %v20454_v3 = vpop.f32.mrf.mxu1 }
 0x180   :  { %v17270_v19 = vpop.f32.mrf.mxu0 }
 0x181   :  { %v17322_v34 = vpop.f32.mrf.mxu1  ;;  %17581 = vmatmul.mubr.msk.f32.gmra.mxu0 %vm86_vm0, %v25591_v9  ;;  %17633 = vmatmul.mubr.msk.f32.gmra.mxu1 %vm86_vm0, %v25565_v2 }
 0x182   :  { %v20460_v36 = vadd.f32 %v17322_v34, %v17270_v19  ;;  %17583 = vmatprep.mubr.msk.f32.mxu0 %vm86_vm0, %v20126_v41  ;;  %17635 = vmatprep.mubr.msk.f32.mxu1 %vm86_vm0, %v20265_v53  ;;  %v20466_v62 = vpop.f32.mrf.mxu0  ;;  %v2685_v41 = vld [vmem:[#allocation2 + $0x1a0] sm:$0xff] }
 0x183   :  { %25592 = vst [vmem:[#allocation41_spill] sm:$0xff] %v20466_v62  ;;  %v20468_v51 = vpop.f32.mrf.mxu1  ;;  %v3073_v53 = vld [vmem:[#allocation2 + $0x1a1] sm:$0xff] }
 0x184   :  { %25593 = vst [vmem:[#allocation43_spill] sm:$0xff] %v20468_v51  ;;  %v17273_v17 = vpop.f32.mrf.mxu0 }
 0x185   :  { %v17325_v21 = vpop.f32.mrf.mxu1  ;;  %17584 = vmatmul.mubr.msk.f32.gmra.mxu0 %vm86_vm0, %v20138_v58  ;;  %17636 = vmatmul.mubr.msk.f32.gmra.mxu1 %vm86_vm0, %v20275_v4 }
 0x186   :  { %v20474_v2 = vadd.f32 %v17325_v21, %v17273_v17  ;;  %17586 = vmatprep.mubr.msk.f32.mxu0 %vm86_vm0, %v2684_v15  ;;  %17638 = vmatprep.mubr.msk.f32.mxu1 %vm86_vm0, %v3072_v8  ;;  %v20478_v38 = vpop.f32.mrf.mxu0 }
 0x187   :  { %25594 = vst [vmem:[#allocation44_spill] sm:$0xff] %v20478_v38  ;;  %v20480_v39 = vpop.f32.mrf.mxu1 }
 0x188   :  { %25595 = vst [vmem:[#allocation17_spill] sm:$0xff] %v20480_v39  ;;  %v17276_v12 = vpop.f32.mrf.mxu0 }
 0x189   :  { %v17328_v30 = vpop.f32.mrf.mxu1  ;;  %17587 = vmatmul.mubr.msk.f32.gmra.mxu0 %vm86_vm0, %v2685_v41  ;;  %17639 = vmatmul.mubr.msk.f32.gmra.mxu1 %vm86_vm0, %v3073_v53 }
 0x18a   :  { %v20484_v58 = vadd.f32 %v17328_v30, %v17276_v12  ;;  %17645 = vmatprep.mubr.msk.f32.mxu0 %vm86_vm0, %v19961_v18  ;;  %v20488_v4 = vpop.f32.mrf.mxu0 }
 0x18b   :  { %25596 = vst [vmem:[#allocation18_spill] sm:$0xff] %v20488_v4  ;;  %v20490_v42 = vpop.f32.mrf.mxu1 }
 0x18c   :  { %25597 = vst [vmem:[#allocation19_spill] sm:$0xff] %v20490_v42  ;;  %v17335_v63 = vpop.f32.mrf.mxu0 }
 0x18d   :  { %17646 = vmatmul.mubr.msk.f32.vlgmr.msra.gmra.mxu0 %vm86_vm0, %v19972_v37  ;;  %v17387_v5 = vpop.f32.mrf.mxu1  ;;  %v1458_v19 = vadd.f32 %v17335_v63, %v20289_v13 }
 0x18e   :  { %17648 = vmatprep.mubr.msk.f32.mxu0 %vm86_vm0, %v19976_v0  ;;  %v1298_v34 = vpop.f32.mrf.mxu0 }
 0x18f   :  { %v20497_v9 = vpop.f32.mrf.mxu1  ;;  %v20500_v15 = vadd.f32 %v1298_v34, %v20293_v26  ;;  %v20502_v18 = vadd.f32 %v17387_v5, %v1458_v19  ;;  %v3440_v34 = vld [vmem:[#allocation2 + $0xaa] sm:$0xff] }
 0x191   :  { %v17338_v8 = vpop.f32.mrf.mxu0  ;;  %17649 = vmatmul.mubr.msk.f32.gmra.mxu0 %vm86_vm0, %v19987_v59  ;;  %v17390_v17 = vpop.f32.mrf.mxu1 }
 0x192   :  { %v1460_v37 = vadd.f32 %v17338_v8, %v20306_v32  ;;  %17651 = vmatprep.mubr.msk.f32.mxu0 %vm86_vm0, %v19991_v43 }
 0x193   :  { %v1308_v13 = vpop.f32.mrf.mxu0  ;;  %v20509_v0 = vpop.f32.mrf.mxu1 }
 0x194   :  { %v20512_v21 = vadd.f32 %v1308_v13, %v20312_v60  ;;  %v20514_v26 = vadd.f32 %v17390_v17, %v1460_v37  ;;  %v3441_v37 = vld [vmem:[#allocation2 + $0xb2] sm:$0xff] }
 0x195   :  { %v17341_v41 = vpop.f32.mrf.mxu0  ;;  %17652 = vmatmul.mubr.msk.f32.gmra.mxu0 %vm86_vm0, %v20000_v22  ;;  %v17393_v53 = vpop.f32.mrf.mxu1 }
 0x196   :  { %v1462_v59 = vadd.f32 %v17341_v41, %v20318_v44  ;;  %17654 = vmatprep.mubr.msk.f32.mxu0 %vm86_vm0, %v20004_v45  ;;  %v3439_v44 = vld [vmem:[#allocation2 + $0x9a] sm:$0xff]  ;;  %v3989_v45 = vld [vmem:[#allocation10 + $0x18] sm:$0xff] }
 0x197   :  { %v1318_v32 = vpop.f32.mrf.mxu0  ;;  %v20521_v43 = vpop.f32.mrf.mxu1  ;;  %17693 = vmatprep.subr.mxu1 %v3989_v45 }
 0x198   :  { %v20524_v12 = vadd.f32 %v1318_v32, %v20324_v61  ;;  %v20526_v60 = vadd.f32 %v17393_v53, %v1462_v59  ;;  %17694 = vmatpush3.msra.mxu1 %v3989_v45  ;;  %v3444_v45 = vld [vmem:[#allocation2 + $0xda] sm:$0xff] }
 0x199   :  { %v17344_v30 = vpop.f32.mrf.mxu0  ;;  %17655 = vmatmul.mubr.msk.f32.gmra.mxu0 %vm86_vm0, %v20012_v49  ;;  %v17396_v63 = vpop.f32.mrf.mxu1  ;;  %v3954_v49 = vld [vmem:[#allocation10 + $0x8] sm:$0xff] }
 0x19a   :  { %v1464_v22 = vadd.f32 %v17344_v30, %v20330_v48  ;;  %17657 = vmatprep.mubr.msk.f32.mxu0 %vm86_vm0, %v20016_v47  ;;  %17745 = vmatprep.subr.mxu0 %v3954_v49 }
 0x19b   :  { %v1328_v5 = vpop.f32.mrf.mxu0  ;;  %v20533_v19 = vpop.f32.mrf.mxu1  ;;  %17746 = vmatpush3.msra.mxu0 %v3954_v49 }
 0x19c   :  { %v20536_v61 = vadd.f32 %v1328_v5, %v20336_v24  ;;  %v20538_v8 = vadd.f32 %v17396_v63, %v1464_v22  ;;  %v3442_v24 = vld [vmem:[#allocation2 + $0xc2] sm:$0xff] }
 0x19d   :  { %v17347_v17 = vpop.f32.mrf.mxu0  ;;  %17658 = vmatmul.mubr.msk.f32.gmra.mxu0 %vm86_vm0, %v3439_v44  ;;  %v17399_v48 = vpop.f32.mrf.mxu1 }
 0x19e   :  { %v1466_v47 = vadd.f32 %v17347_v17, %v20342_v52  ;;  %17660 = vmatprep.mubr.msk.f32.mxu0 %vm86_vm0, %v3440_v34  ;;  %v3443_v52 = vld [vmem:[#allocation2 + $0xca] sm:$0xff] }
 0x19f   :  { %v1338_v13 = vpop.f32.mrf.mxu0  ;;  %v20543_v41 = vpop.f32.mrf.mxu1 }
 0x1a0   :  { %v20546_v53 = vadd.f32 %v1338_v13, %v20348_v56  ;;  %v20548_v59 = vadd.f32 %v17399_v48, %v1466_v47 }
 0x1a1   :  { %v17350_v32 = vpop.f32.mrf.mxu0  ;;  %17661 = vmatmul.mubr.msk.f32.gmra.mxu0 %vm86_vm0, %v3441_v37  ;;  %v17402_v30 = vpop.f32.mrf.mxu1  ;;  %v3446_v37 = vld [vmem:[#allocation2 + $0xf2] sm:$0xff] }
 0x1a2   :  { %v1468_v63 = vadd.f32 %v17350_v32, %v20354_v1  ;;  %17663 = vmatprep.mubr.msk.f32.mxu0 %vm86_vm0, %v3442_v24  ;;  %v3445_v1 = vld [vmem:[#allocation2 + $0xe2] sm:$0xff] }
 0x1a3   :  { %v1348_v22 = vpop.f32.mrf.mxu0  ;;  %v20553_v44 = vpop.f32.mrf.mxu1 }
 0x1a4   :  { %v20556_v5 = vadd.f32 %v1348_v22, %v20360_v46  ;;  %v20558_v56 = vadd.f32 %v17402_v30, %v1468_v63  ;;  %v3448_v22 = vld [vmem:[#allocation2 + $0x10a] sm:$0xff] }
 0x1a5   :  { %v17353_v34 = vpop.f32.mrf.mxu0  ;;  %17664 = vmatmul.mubr.msk.f32.gmra.mxu0 %vm86_vm0, %v3443_v52  ;;  %v17405_v49 = vpop.f32.mrf.mxu1 }
 0x1a6   :  { %v1470_v17 = vadd.f32 %v17353_v34, %v20366_v6  ;;  %17666 = vmatprep.mubr.msk.f32.mxu0 %vm86_vm0, %v3444_v45  ;;  %v3447_v6 = vld [vmem:[#allocation2 + $0xfa] sm:$0xff] }
 0x1a7   :  { %v1358_v48 = vpop.f32.mrf.mxu0  ;;  %v20563_v47 = vpop.f32.mrf.mxu1 }
 0x1a8   :  { %25598 = vst [vmem:[#allocation20_spill] sm:$0xff] %v20563_v47  ;;  %v20566_v13 = vadd.f32 %v1358_v48, %v20372_v50  ;;  %v20568_v46 = vadd.f32 %v17405_v49, %v1470_v17  ;;  %v1023_v17 = vadd.f32 %v20398_v35, %v20396_v16 }
 0x1a9   :  { %v17356_v24 = vpop.f32.mrf.mxu0  ;;  %17667 = vmatmul.mubr.msk.f32.gmra.mxu0 %vm86_vm0, %v3445_v1  ;;  %v17408_v32 = vpop.f32.mrf.mxu1  ;;  %v3449_v1 = vld [vmem:[#allocation2 + $0x112] sm:$0xff] }
 0x1aa   :  { %25599 = vst [vmem:[#allocation21_spill] sm:$0xff] %v20566_v13  ;;  %v1472_v30 = vadd.f32 %v17356_v24, %v20378_v10  ;;  %17669 = vmatprep.mubr.msk.f32.mxu0 %vm86_vm0, %v3446_v37  ;;  %v3450_v24 = vld [vmem:[#allocation2 + $0x122] sm:$0xff] }
 0x1ab   :  { %v1368_v63 = vpop.f32.mrf.mxu0  ;;  %v20573_v52 = vpop.f32.mrf.mxu1 }
 0x1ac   :  { %25600 = vst [vmem:[#allocation22_spill] sm:$0xff] %v20573_v52  ;;  %v20576_v45 = vadd.f32 %v1368_v63, %v20384_v54  ;;  %v20578_v50 = vadd.f32 %v17408_v32, %v1472_v30 }
 0x1ad   :  { %v17359_v34 = vpop.f32.mrf.mxu0  ;;  %17670 = vmatmul.mubr.msk.f32.gmra.mxu0 %vm86_vm0, %v3447_v6  ;;  %v17411_v49 = vpop.f32.mrf.mxu1 }
 0x1ae   :  { %25601 = vst [vmem:[#allocation23_spill] sm:$0xff] %v20576_v45  ;;  %v1474_v10 = vadd.f32 %v17359_v34, %v20390_v14  ;;  %17672 = vmatprep.mubr.msk.f32.mxu0 %vm86_vm0, %v3448_v22  ;;  %v3451_v14 = vld [vmem:[#allocation2 + $0x12a] sm:$0xff]  ;;  %v3452_v22 = vld [vmem:[#allocation2 + $0x13a] sm:$0xff] }
 0x1af   :  { %v1378_v48 = vpop.f32.mrf.mxu0  ;;  %v20585_v37 = vpop.f32.mrf.mxu1 }
 0x1b0   :  { %25602 = vst [vmem:[#allocation24_spill] sm:$0xff] %v20585_v37  ;;  %v20587_v54 = vadd.f32 %v1378_v48, %v1023_v17  ;;  %v20589_v32 = vadd.f32 %v17411_v49, %v1474_v10 }
 0x1b1   :  { %v17362_v30 = vpop.f32.mrf.mxu0  ;;  %17673 = vmatmul.mubr.msk.f32.gmra.mxu0 %vm86_vm0, %v3449_v1  ;;  %v17414_v6 = vpop.f32.mrf.mxu1  ;;  %v3453_v1 = vld [vmem:[#allocation2 + $0x142] sm:$0xff] }
 0x1b2   :  { %25603 = vst [vmem:[#allocation25_spill] sm:$0xff] %v20587_v54  ;;  %v1476_v63 = vadd.f32 %v17362_v30, %v20404_v20  ;;  %17675 = vmatprep.mubr.msk.f32.mxu0 %vm86_vm0, %v3450_v24  ;;  %v3454_v24 = vld [vmem:[#allocation2 + $0x152] sm:$0xff] }
 0x1b3   :  { %v20594_v16 = vpop.f32.mrf.mxu0  ;;  %v20596_v35 = vpop.f32.mrf.mxu1 }
 0x1b4   :  { %25604 = vst [vmem:[#allocation26_spill] sm:$0xff] %v20594_v16  ;;  %25605 = vst [vmem:[#allocation27_spill] sm:$0xff] %v20596_v35  ;;  %v20598_v34 = vadd.f32 %v17414_v6, %v1476_v63 }
 0x1b5   :  { %v17365_v17 = vpop.f32.mrf.mxu0  ;;  %17676 = vmatmul.mubr.msk.f32.gmra.mxu0 %vm86_vm0, %v3451_v14  ;;  %v17417_v49 = vpop.f32.mrf.mxu1  ;;  %v3455_v14 = vld [vmem:[#allocation2 + $0x15a] sm:$0xff] }
 0x1b6   :  { %v1478_v10 = vadd.f32 %v17365_v17, %v20418_v25  ;;  %17678 = vmatprep.mubr.msk.f32.mxu0 %vm86_vm0, %v3452_v22  ;;  %v3988_v25 = vld [vmem:[#allocation10 + $0x10] sm:$0xff] }
 0x1b7   :  { %v20603_v20 = vpop.f32.mrf.mxu0  ;;  %v20605_v48 = vpop.f32.mrf.mxu1  ;;  %17695 = vmatprep.subr.mxu1 %v3988_v25 }
 0x1b8   :  { %25606 = vst [vmem:[#allocation28_spill] sm:$0xff] %v20603_v20  ;;  %25607 = vst [vmem:[#allocation29_spill] sm:$0xff] %v20605_v48  ;;  %v20607_v30 = vadd.f32 %v17417_v49, %v1478_v10  ;;  %v3456_v20 = vld [vmem:[#allocation2 + $0x16a] sm:$0xff]  ;;  %17696 = vmatpush3.msra.mxu1 %v3988_v25  ;;  %v3953_v49 = vld [vmem:[#allocation10] sm:$0xff] }
 0x1b9   :  { %v17368_v35 = vpop.f32.mrf.mxu0  ;;  %17679 = vmatmul.mubr.msk.f32.gmra.mxu0 %vm86_vm0, %v3453_v1  ;;  %v17420_v6 = vpop.f32.mrf.mxu1  ;;  %17747 = vmatprep.subr.mxu0 %v3953_v49  ;;  %v3460_v25 = vld [vmem:[#allocation2 + $0x19a] sm:$0xff] }
 0x1ba   :  { %v1480_v63 = vadd.f32 %v17368_v35, %v20432_v29  ;;  %17681 = vmatprep.mubr.msk.f32.mxu0 %vm86_vm0, %v3454_v24  ;;  %v3457_v35 = vld [vmem:[#allocation2 + $0x172] sm:$0xff]  ;;  %17748 = vmatpush3.msra.mxu0 %v3953_v49 }
 0x1bb   :  { %v20612_v17 = vpop.f32.mrf.mxu0  ;;  %v20614_v22 = vpop.f32.mrf.mxu1 }
 0x1bc   :  { %25608 = vst [vmem:[#allocation30_spill] sm:$0xff] %v20612_v17  ;;  %25609 = vst [vmem:[#allocation31_spill] sm:$0xff] %v20614_v22  ;;  %v20616_v48 = vadd.f32 %v17420_v6, %v1480_v63 }
 0x1bd   :  { %v17371_v10 = vpop.f32.mrf.mxu0  ;;  %17682 = vmatmul.mubr.msk.f32.gmra.mxu0 %vm86_vm0, %v3455_v14  ;;  %v17423_v1 = vpop.f32.mrf.mxu1 }
 0x1be   :  { %v1482_v29 = vadd.f32 %v17371_v10, %v20446_v33  ;;  %17684 = vmatprep.mubr.msk.f32.mxu0 %vm86_vm0, %v3456_v20 }
 0x1bf   :  { %v20621_v24 = vpop.f32.mrf.mxu0  ;;  %v20623_v22 = vpop.f32.mrf.mxu1 }
 0x1c0   :  { %25610 = vst [vmem:[#allocation32_spill] sm:$0xff] %v20621_v24  ;;  %25611 = vst [vmem:[#allocation33_spill] sm:$0xff] %v20623_v22  ;;  %v20625_v17 = vadd.f32 %v17423_v1, %v1482_v29  ;;  %v3955_v22 = vld [vmem:[#allocation3 + $0x1] sm:$0xff] }
 0x1c1   :  { %v17374_v6 = vpop.f32.mrf.mxu0  ;;  %17685 = vmatmul.mubr.msk.f32.gmra.mxu0 %vm86_vm0, %v3457_v35  ;;  %v17426_v63 = vpop.f32.mrf.mxu1  ;;  %v3921_v24 = vld [vmem:[#allocation3] sm:$0xff]  ;;  %17697 = vmatprep.mubr.msk.f32.mxu1 %vm86_vm0, %v3955_v22 }
 0x1c2   :  { %v1484_v14 = vadd.f32 %v17374_v6, %v20460_v36  ;;  %17687 = vmatprep.mubr.msk.f32.mxu0 %vm86_vm0, %v20267_v55  ;;  %v3461_v36 = vld [vmem:[#allocation2 + $0x1a2] sm:$0xff] }
 0x1c3   :  { %v20631_v33 = vpop.f32.mrf.mxu0  ;;  %v20633_v20 = vpop.f32.mrf.mxu1 }
 0x1c4   :  { %25612 = vst [vmem:[#allocation34_spill] sm:$0xff] %v20631_v33  ;;  %25613 = vst [vmem:[#allocation35_spill] sm:$0xff] %v20633_v20  ;;  %v20635_v49 = vadd.f32 %v17426_v63, %v1484_v14 }
 0x1c5   :  { %v17377_v10 = vpop.f32.mrf.mxu0  ;;  %17688 = vmatmul.mubr.msk.f32.gmra.mxu0 %vm86_vm0, %v20279_v7  ;;  %v17429_v1 = vpop.f32.mrf.mxu1 }
 0x1c6   :  { %v1486_v29 = vadd.f32 %v17377_v10, %v20474_v2  ;;  %17690 = vmatprep.mubr.msk.f32.mxu0 %vm86_vm0, %v3460_v25 }
 0x1c7   :  { %v20641_v35 = vpop.f32.mrf.mxu0  ;;  %v20643_v55 = vpop.f32.mrf.mxu1 }
 0x1c8   :  { %25614 = vst [vmem:[#allocation36_spill] sm:$0xff] %v20641_v35  ;;  %25615 = vst [vmem:[#allocation37_spill] sm:$0xff] %v20643_v55  ;;  %v20645_v6 = vadd.f32 %v17429_v1, %v1486_v29 }
 0x1c9   :  { %v17380_v20 = vpop.f32.mrf.mxu0  ;;  %17691 = vmatmul.mubr.msk.f32.gmra.mxu0 %vm86_vm0, %v3461_v36  ;;  %v17432_v63 = vpop.f32.mrf.mxu1 }
 0x1ca   :  { %v1488_v14 = vadd.f32 %v17380_v20, %v20484_v58  ;;  %17749 = vmatprep.mubr.msk.f32.mxu0 %vm86_vm0, %v3921_v24 }
 0x1cb   :  { %v20649_v33 = vpop.f32.mrf.mxu0  ;;  %v20651_v7 = vpop.f32.mrf.mxu1 }
 0x1cc   :  { %25616 = vst [vmem:[#allocation38_spill] sm:$0xff] %v20649_v33  ;;  %25617 = vst [vmem:[#allocation39_spill] sm:$0xff] %v20651_v7  ;;  %v20653_v2 = vadd.f32 %v17432_v63, %v1488_v14 }
 0x1cd   :  { %v17439_v25 = vpop.f32.mrf.mxu0  ;;  %v20655_v10 = vpop.f32.mrf.mxu1 }
 0x1ce   :  { %v20658_v35 = vadd.f32 %v17439_v25, %v20502_v18 }
 0x1cf   :  { %v20660_v1 = vpop.f32.mrf.mxu0  ;;  %v20662_v29 = vpop.f32.mrf.mxu1 }
 0x1d1   :  { %v17442_v36 = vpop.f32.mrf.mxu0  ;;  %v20664_v55 = vpop.f32.mrf.mxu1 }
 0x1d2   :  { %v20667_v58 = vadd.f32 %v17442_v36, %v20514_v26  ;;  %v3956_v26 = vld [vmem:[#allocation3 + $0x9] sm:$0xff] }
 0x1d3   :  { %v20669_v20 = vpop.f32.mrf.mxu0  ;;  %v20671_v63 = vpop.f32.mrf.mxu1  ;;  %v3922_v36 = vld [vmem:[#allocation3 + $0x8] sm:$0xff]  ;;  %17698 = vmatmul.mubr.msk.f32.vlgmr.msra.gmra.mxu1 %vm86_vm0, %v3956_v26  ;;  %v4666_v26 = vld [vmem:[#allocation10 + $0x28] sm:$0xff] }
 0x1d4   :  { %17750 = vmatmul.mubr.msk.f32.vlgmr.msra.gmra.mxu0 %vm86_vm0, %v3922_v36  ;;  %17797 = vmatprep.subr.mxu1 %v4666_v26 }
 0x1d5   :  { %v17445_v14 = vpop.f32.mrf.mxu0  ;;  %v20673_v7 = vpop.f32.mrf.mxu1  ;;  %17798 = vmatpush3.msra.mxu1 %v4666_v26 }
 0x1d6   :  { %v20676_v18 = vadd.f32 %v17445_v14, %v20526_v60 }
 0x1d7   :  { %v20678_v25 = vpop.f32.mrf.mxu0  ;;  %v20680_v33 = vpop.f32.mrf.mxu1 }
 0x1d9   :  { %v17448_v16 = vpop.f32.mrf.mxu0  ;;  %v20684_v37 = vpop.f32.mrf.mxu1 }
 0x1da   :  { %v20689_v60 = vadd.f32 %v17448_v16, %v20538_v8  ;;  %v5054_v16 = vld [vmem:[#allocation10 + $0x38] sm:$0xff] }
 0x1db   :  { %v20691_v14 = vpop.f32.mrf.mxu0  ;;  %v20693_v54 = vpop.f32.mrf.mxu1  ;;  %17849 = vmatprep.subr.mxu0 %v5054_v16 }
 0x1dc   :  { %17850 = vmatpush3.msra.mxu0 %v5054_v16 }
 0x1dd   :  { %v17451_v52 = vpop.f32.mrf.mxu0  ;;  %v20695_v22 = vpop.f32.mrf.mxu1 }
 0x1de   :  { %v20698_v24 = vadd.f32 %v17451_v52, %v20548_v59 }
 0x1df   :  { %v20700_v45 = vpop.f32.mrf.mxu0  ;;  %v20702_v42 = vpop.f32.mrf.mxu1 }
 0x1e0   :  { %25618 = vst [vmem:[#allocation40_spill] sm:$0xff] %v20702_v42 }
 0x1e1   :  { %v17454_v4 = vpop.f32.mrf.mxu0  ;;  %v20704_v36 = vpop.f32.mrf.mxu1 }
 0x1e2   :  { %25619 = vst [vmem:[#allocation42_spill] sm:$0xff] %v20704_v36  ;;  %v20707_v8 = vadd.f32 %v17454_v4, %v20558_v56 }
 0x1e3   :  { %v20709_v39 = vpop.f32.mrf.mxu0  ;;  %v20711_v38 = vpop.f32.mrf.mxu1 }
 0x1e4   :  { %25620 = vst [vmem:[#allocation45_spill] sm:$0xff] %v20707_v8  ;;  %25621 = vst [vmem:[#allocation46_spill] sm:$0xff] %v20709_v39 }
 0x1e5   :  { %25622 = vst [vmem:[#allocation47_spill] sm:$0xff] %v20711_v38  ;;  %v17457_v59 = vpop.f32.mrf.mxu0  ;;  %v20713_v52 = vpop.f32.mrf.mxu1 }
 0x1e6   :  { %25623 = vst [vmem:[#allocation48_spill] sm:$0xff] %v20713_v52  ;;  %v20716_v47 = vadd.f32 %v17457_v59, %v20568_v46 }
 0x1e7   :  { %v20718_v13 = vpop.f32.mrf.mxu0  ;;  %v20720_v36 = vpop.f32.mrf.mxu1 }
 0x1e8   :  { %25624 = vst [vmem:[#allocation49_spill] sm:$0xff] %v20716_v47  ;;  %25625 = vst [vmem:[#allocation50_spill] sm:$0xff] %v20718_v13 }
 0x1e9   :  { %25626 = vst [vmem:[#allocation51_spill] sm:$0xff] %v20720_v36  ;;  %v17460_v4 = vpop.f32.mrf.mxu0  ;;  %v20722_v56 = vpop.f32.mrf.mxu1 }
 0x1ea   :  { %25627 = vst [vmem:[#allocation52_spill] sm:$0xff] %v20722_v56  ;;  %v20725_v26 = vadd.f32 %v17460_v4, %v20578_v50 }
 0x1eb   :  { %v20727_v8 = vpop.f32.mrf.mxu0  ;;  %v20729_v38 = vpop.f32.mrf.mxu1 }
 0x1ec   :  { %25628 = vst [vmem:[#allocation53_spill] sm:$0xff] %v20725_v26  ;;  %25629 = vst [vmem:[#allocation54_spill] sm:$0xff] %v20727_v8 }
 0x1ed   :  { %25630 = vst [vmem:[#allocation55_spill] sm:$0xff] %v20729_v38  ;;  %v17463_v16 = vpop.f32.mrf.mxu0  ;;  %v20731_v51 = vpop.f32.mrf.mxu1 }
 0x1ee   :  { %25631 = vst [vmem:[#allocation56_spill] sm:$0xff] %v20731_v51  ;;  %v20734_v46 = vadd.f32 %v17463_v16, %v20589_v32 }
 0x1ef   :  { %v20736_v59 = vpop.f32.mrf.mxu0  ;;  %v20738_v52 = vpop.f32.mrf.mxu1 }
 0x1f0   :  { %25632 = vst [vmem:[#allocation57_spill] sm:$0xff] %v20734_v46  ;;  %25633 = vst [vmem:[#allocation58_spill] sm:$0xff] %v20736_v59 }
 0x1f1   :  { %25634 = vst [vmem:[#allocation59_spill] sm:$0xff] %v20738_v52  ;;  %v17466_v36 = vpop.f32.mrf.mxu0  ;;  %v20740_v47 = vpop.f32.mrf.mxu1 }
 0x1f2   :  { %25635 = vst [vmem:[#allocation60_spill] sm:$0xff] %v20740_v47  ;;  %v20743_v50 = vadd.f32 %v17466_v36, %v20598_v34 }
 0x1f3   :  { %v20745_v4 = vpop.f32.mrf.mxu0  ;;  %v20747_v56 = vpop.f32.mrf.mxu1 }
 0x1f4   :  { %25636 = vst [vmem:[#allocation61_spill] sm:$0xff] %v20743_v50  ;;  %25637 = vst [vmem:[#allocation62_spill] sm:$0xff] %v20745_v4 }
 0x1f5   :  { %25638 = vst [vmem:[#allocation63_spill] sm:$0xff] %v20747_v56  ;;  %v17469_v38 = vpop.f32.mrf.mxu0  ;;  %v20749_v26 = vpop.f32.mrf.mxu1 }
 0x1f6   :  { %25639 = vst [vmem:[#allocation64_spill] sm:$0xff] %v20749_v26  ;;  %v20752_v32 = vadd.f32 %v17469_v38, %v20607_v30 }
 0x1f7   :  { %v20754_v16 = vpop.f32.mrf.mxu0  ;;  %v20756_v51 = vpop.f32.mrf.mxu1 }
 0x1f8   :  { %25640 = vst [vmem:[#allocation65_spill] sm:$0xff] %v20752_v32  ;;  %25641 = vst [vmem:[#allocation66_spill] sm:$0xff] %v20754_v16 }
 0x1f9   :  { %25642 = vst [vmem:[#allocation67_spill] sm:$0xff] %v20756_v51  ;;  %v17472_v52 = vpop.f32.mrf.mxu0  ;;  %v20758_v46 = vpop.f32.mrf.mxu1  ;;  %v4665_v51 = vld [vmem:[#allocation10 + $0x20] sm:$0xff] }
 0x1fa   :  { %25643 = vst [vmem:[#allocation68_spill] sm:$0xff] %v20758_v46  ;;  %v20761_v34 = vadd.f32 %v17472_v52, %v20616_v48  ;;  %17799 = vmatprep.subr.mxu1 %v4665_v51  ;;  %v5053_v52 = vld [vmem:[#allocation10 + $0x30] sm:$0xff] }
 0x1fb   :  { %v20763_v36 = vpop.f32.mrf.mxu0  ;;  %v20765_v47 = vpop.f32.mrf.mxu1  ;;  %17800 = vmatpush3.msra.mxu1 %v4665_v51  ;;  %17851 = vmatprep.subr.mxu0 %v5053_v52 }
 0x1fc   :  { %25644 = vst [vmem:[#allocation69_spill] sm:$0xff] %v20761_v34  ;;  %25645 = vst [vmem:[#allocation70_spill] sm:$0xff] %v20763_v36  ;;  %17852 = vmatpush3.msra.mxu0 %v5053_v52  ;;  %v20828_v34 = vld [vmem:[#allocation10 + $0x58] sm:$0xff] }
 0x1fd   :  { %25646 = vst [vmem:[#allocation71_spill] sm:$0xff] %v20765_v47  ;;  %v17475_v56 = vpop.f32.mrf.mxu0  ;;  %v20767_v50 = vpop.f32.mrf.mxu1  ;;  %25665 = vst [vmem:[#allocation90_spill] sm:$0xff] %v20828_v34  ;;  %17953 = vmatprep.subr.mxu0 %v20828_v34 }
 0x1fe   :  { %25647 = vst [vmem:[#allocation72_spill] sm:$0xff] %v20767_v50  ;;  %v20770_v38 = vadd.f32 %v17475_v56, %v20625_v17 }
 0x1ff   :  { %v20772_v30 = vpop.f32.mrf.mxu0  ;;  %v20774_v26 = vpop.f32.mrf.mxu1 }
 0x200   :  { %25648 = vst [vmem:[#allocation73_spill] sm:$0xff] %v20770_v38  ;;  %25649 = vst [vmem:[#allocation74_spill] sm:$0xff] %v20772_v30 }
 0x201   :  { %25650 = vst [vmem:[#allocation75_spill] sm:$0xff] %v20774_v26  ;;  %v17478_v32 = vpop.f32.mrf.mxu0  ;;  %v20776_v46 = vpop.f32.mrf.mxu1 }
 0x202   :  { %25651 = vst [vmem:[#allocation76_spill] sm:$0xff] %v20776_v46  ;;  %v20779_v48 = vadd.f32 %v17478_v32, %v20635_v49 }
 0x203   :  { %v20781_v47 = vpop.f32.mrf.mxu0  ;;  %v20783_v50 = vpop.f32.mrf.mxu1 }
 0x204   :  { %25652 = vst [vmem:[#allocation77_spill] sm:$0xff] %v20779_v48  ;;  %25653 = vst [vmem:[#allocation78_spill] sm:$0xff] %v20781_v47 }
 0x205   :  { %25654 = vst [vmem:[#allocation79_spill] sm:$0xff] %v20783_v50  ;;  %v17481_v17 = vpop.f32.mrf.mxu0  ;;  %v20785_v56 = vpop.f32.mrf.mxu1 }
 0x206   :  { %25655 = vst [vmem:[#allocation80_spill] sm:$0xff] %v20785_v56  ;;  %v20788_v26 = vadd.f32 %v17481_v17, %v20645_v6 }
 0x207   :  { %v20790_v38 = vpop.f32.mrf.mxu0  ;;  %v20792_v46 = vpop.f32.mrf.mxu1 }
 0x208   :  { %25656 = vst [vmem:[#allocation81_spill] sm:$0xff] %v20788_v26  ;;  %25657 = vst [vmem:[#allocation82_spill] sm:$0xff] %v20790_v38 }
 0x209   :  { %25658 = vst [vmem:[#allocation83_spill] sm:$0xff] %v20792_v46  ;;  %v17484_v49 = vpop.f32.mrf.mxu0  ;;  %v20794_v32 = vpop.f32.mrf.mxu1 }
 0x20a   :  { %25659 = vst [vmem:[#allocation84_spill] sm:$0xff] %v20794_v32  ;;  %v20797_v51 = vadd.f32 %v17484_v49, %v20653_v2  ;;  %v20817_v49 = vld [vmem:[#allocation10 + $0x48] sm:$0xff] }
 0x20b   :  { %v20799_v48 = vpop.f32.mrf.mxu0  ;;  %v20801_v50 = vpop.f32.mrf.mxu1  ;;  %25663 = vst [vmem:[#allocation88_spill] sm:$0xff] %v20817_v49  ;;  %17901 = vmatprep.subr.mxu1 %v20817_v49 }
 0x20c   :  { %25660 = vst [vmem:[#allocation85_spill] sm:$0xff] %v20797_v51  ;;  %25661 = vst [vmem:[#allocation86_spill] sm:$0xff] %v20799_v48 }
 0x20d   :  { %25662 = vst [vmem:[#allocation87_spill] sm:$0xff] %v20801_v50  ;;  %v17543_v52 = vpop.f32.mrf.mxu0  ;;  %v20803_v47 = vpop.f32.mrf.mxu1 }
 0x20f   :  { %v2851_v56 = vpop.f32.mrf.mxu0  ;;  %v20805_v6 = vpop.f32.mrf.mxu1 }
 0x211   :  { %v17546_v17 = vpop.f32.mrf.mxu0  ;;  %v20809_v46 = vpop.f32.mrf.mxu1 }
 0x213   :  { %v20807_v26 = vpop.f32.mrf.mxu0  ;;  %v20813_v32 = vpop.f32.mrf.mxu1 }
 0x215   :  { %v20811_v38 = vpop.f32.mrf.mxu0  ;;  %v20822_v51 = vpop.f32.mrf.mxu1 }
 0x217   :  { %v20815_v2 = vpop.f32.mrf.mxu0  ;;  %v20831_v36 = vpop.f32.mrf.mxu1 }
 0x219   :  { %v20819_v50 = vpop.f32.mrf.mxu0  ;;  %v20837_v59 = vpop.f32.mrf.mxu1 }
 0x21a   :  { %25668 = vst [vmem:[#allocation93_spill] sm:$0xff] %v20837_v59 }
 0x21b   :  { %v20824_v48 = vpop.f32.mrf.mxu0  ;;  %v20843_v13 = vpop.f32.mrf.mxu1 }
 0x21c   :  { %25671 = vst [vmem:[#allocation96_spill] sm:$0xff] %v20843_v13 }
 0x21d   :  { %v20826_v30 = vpop.f32.mrf.mxu0  ;;  %v20849_v39 = vpop.f32.mrf.mxu1 }
 0x21e   :  { %25664 = vst [vmem:[#allocation89_spill] sm:$0xff] %v20826_v30  ;;  %25674 = vst [vmem:[#allocation99_spill] sm:$0xff] %v20849_v39 }
 0x21f   :  { %v20833_v16 = vpop.f32.mrf.mxu0 }
 0x220   :  { %25666 = vst [vmem:[#allocation91_spill] sm:$0xff] %v20833_v16  ;;  %v20855_v16 = vpop.f32.mrf.mxu1 }
 0x221   :  { %v20835_v4 = vpop.f32.mrf.mxu0  ;;  %25677 = vst [vmem:[#allocation102_spill] sm:$0xff] %v20855_v16 }
 0x222   :  { %25667 = vst [vmem:[#allocation92_spill] sm:$0xff] %v20835_v4 }
 0x223   :  { %v20839_v8 = vpop.f32.mrf.mxu0 }
 0x224   :  { %25669 = vst [vmem:[#allocation94_spill] sm:$0xff] %v20839_v8  ;;  %v20861_v8 = vpop.f32.mrf.mxu1 }
 0x225   :  { %v20841_v49 = vpop.f32.mrf.mxu0  ;;  %25680 = vst [vmem:[#allocation105_spill] sm:$0xff] %v20861_v8 }
 0x226   :  { %25670 = vst [vmem:[#allocation95_spill] sm:$0xff] %v20841_v49 }
 0x227   :  { %v20845_v62 = vpop.f32.mrf.mxu0 }
 0x228   :  { %25672 = vst [vmem:[#allocation97_spill] sm:$0xff] %v20845_v62  ;;  %v20867_v62 = vpop.f32.mrf.mxu1 }
 0x229   :  { %v20847_v30 = vpop.f32.mrf.mxu0 }
 0x22a   :  { %25673 = vst [vmem:[#allocation98_spill] sm:$0xff] %v20847_v30 }
 0x22b   :  { %v20851_v34 = vpop.f32.mrf.mxu0 }
 0x22c   :  { %25675 = vst [vmem:[#allocation100_spill] sm:$0xff] %v20851_v34  ;;  %v20873_v34 = vpop.f32.mrf.mxu1 }
 0x22d   :  { %v20853_v42 = vpop.f32.mrf.mxu0  ;;  %25685 = vst [vmem:[#allocation110_spill] sm:$0xff] %v20873_v34 }
 0x22e   :  { %25676 = vst [vmem:[#allocation101_spill] sm:$0xff] %v20853_v42 }
 0x22f   :  { %v20857_v4 = vpop.f32.mrf.mxu0 }
 0x230   :  { %25678 = vst [vmem:[#allocation103_spill] sm:$0xff] %v20857_v4  ;;  %v20879_v4 = vpop.f32.mrf.mxu1 }
 0x231   :  { %v20859_v59 = vpop.f32.mrf.mxu0 }
 0x232   :  { %25679 = vst [vmem:[#allocation104_spill] sm:$0xff] %v20859_v59 }
 0x233   :  { %v20863_v49 = vpop.f32.mrf.mxu0 }
 0x234   :  { %25681 = vst [vmem:[#allocation106_spill] sm:$0xff] %v20863_v49  ;;  %v20887_v49 = vpop.f32.mrf.mxu1 }
 0x235   :  { %v20865_v13 = vpop.f32.mrf.mxu0  ;;  %25690 = vst [vmem:[#allocation115_spill] sm:$0xff] %v20887_v49 }
 0x236   :  { %25682 = vst [vmem:[#allocation107_spill] sm:$0xff] %v20865_v13  ;;  %v1845_v13 = vadd.f32 %v20497_v9, %v20500_v15 }
 0x237   :  { %v20869_v30 = vpop.f32.mrf.mxu0 }
 0x238   :  { %25683 = vst [vmem:[#allocation108_spill] sm:$0xff] %v20869_v30 }
 0x239   :  { %v20871_v39 = vpop.f32.mrf.mxu0 }
 0x23a   :  { %25684 = vst [vmem:[#allocation109_spill] sm:$0xff] %v20871_v39  ;;  %v2233_v39 = vadd.f32 %v20660_v1, %v1845_v13  ;;  %v1849_v13 = vadd.f32 %v20521_v43, %v20524_v12  ;;  %v1851_v43 = vadd.f32 %v20533_v19, %v20536_v61  ;;  %v2626_v12 = vadd.f32 %v20673_v7, %v20676_v18 }
 0x23b   :  { %v20875_v42 = vpop.f32.mrf.mxu0 }
 0x23c   :  { %25686 = vst [vmem:[#allocation111_spill] sm:$0xff] %v20875_v42  ;;  %v2622_v42 = vadd.f32 %v20655_v10, %v20658_v35  ;;  %v2621_v9 = vadd.f32 %v20662_v29, %v2233_v39  ;;  %v2237_v35 = vadd.f32 %v20678_v25, %v1849_v13 }
 0x23d   :  { %v20877_v16 = vpop.f32.mrf.mxu0 }
 0x23e   :  { %25687 = vst [vmem:[#allocation112_spill] sm:$0xff] %v20877_v16  ;;  %v1847_v16 = vadd.f32 %v20509_v0, %v20512_v21  ;;  %v3011_v49 = vadd.f32 %v17543_v52, %v2622_v42  ;;  %v2624_v0 = vadd.f32 %v20664_v55, %v20667_v58  ;;  %v3010_v21 = vadd.f32 %v2851_v56, %v2621_v9 }
 0x23f   :  { %v20881_v59 = vpop.f32.mrf.mxu0  ;;  %v2625_v56 = vadd.f32 %v20680_v33, %v2237_v35  ;;  %v2628_v33 = vadd.f32 %v20684_v37, %v20689_v60 }
 0x240   :  { %25688 = vst [vmem:[#allocation113_spill] sm:$0xff] %v20881_v59  ;;  %v20898_v59 = vpop.f32.mrf.mxu1  ;;  %v2235_v15 = vadd.f32 %v20669_v20, %v1847_v16  ;;  %v3399_v29 = vadd.f32 %v20803_v47, %v3011_v49  ;;  %v3013_v42 = vadd.f32 %v17546_v17, %v2624_v0  ;;  %v20921_v20 = vld [vmem:[#allocation9] ss:$0 sm:$0xff]  ;;  %v3398_v58 = vadd.f32 %v20805_v6, %v3010_v21 }
 0x241   :  { %v20883_v8 = vpop.f32.mrf.mxu0  ;;  %v3015_v47 = vadd.f32 %v20811_v38, %v2626_v12  ;;  %v20934_v6 = vadd.f32 %v20412_v11, %v20410_v23  ;;  %v3017_v60 = vadd.f32 %v20819_v50, %v2628_v33 }
 0x242   :  { %25689 = vst [vmem:[#allocation114_spill] sm:$0xff] %v20883_v8  ;;  %v20911_v10 = vpop.f32.mrf.mxu1  ;;  %v2623_v39 = vadd.f32 %v20671_v63, %v2235_v15  ;;  %v2239_v63 = vadd.f32 %v20691_v14, %v1851_v43  ;;  %v3401_v61 = vadd.f32 %v20809_v46, %v3013_v42  ;;  %v3014_v14 = vadd.f32 %v20815_v2, %v2625_v56 }
 0x243   :  { %v20889_v30 = vpop.f32.mrf.mxu0  ;;  %v20945_v15 = vadd.f32 %v20426_v28, %v20424_v27  ;;  %v20957_v27 = vadd.f32 %v20440_v40, %v20438_v31  ;;  %v1855_v28 = vadd.f32 %v20553_v44, %v20556_v5  ;;  %v20969_v31 = vadd.f32 %v20454_v3, %v20452_v57  ;;  %v25692_v40 = vld [vmem:[#allocation40_spill] sm:$0xff]  ;;  %v25693_v5 = vld [vmem:[#allocation46_spill] sm:$0xff]  ;;  %v25697_v57 = vld [vmem:[#allocation43_spill] sm:$0xff] }
 0x244   :  { %v3012_v25 = vadd.f32 %v20807_v26, %v2623_v39  ;;  %v20928_v52 = vpop.f32.mrf.mxu1  ;;  %v1853_v26 = vadd.f32 %v20543_v41, %v20546_v53  ;;  %v2627_v23 = vadd.f32 %v20693_v54, %v2239_v63  ;;  %v3403_v41 = vadd.f32 %v20822_v51, %v3015_v47  ;;  %v25700_v63 = vld [vmem:[#allocation45_spill] sm:$0xff]  ;;  %v25701_v47 = vld [vmem:[#allocation42_spill] sm:$0xff] }
 0x245   :  { %v20892_v34 = vpop.f32.mrf.mxu0  ;;  %v3402_v54 = vadd.f32 %v20831_v36, %v3014_v14  ;;  %v2243_v39 = vadd.f32 %v25693_v5, %v1855_v28  ;;  %v25709_v28 = vld [vmem:[#allocation92_spill] sm:$0xff] }
 0x246   :  { %25691 = vst [vmem:[#allocation116_spill] sm:$0xff] %v20892_v34  ;;  %v3400_v17 = vadd.f32 %v20813_v32, %v3012_v25  ;;  %v2241_v11 = vadd.f32 %v20700_v45, %v1853_v26  ;;  %v20950_v53 = vpop.f32.mrf.mxu1  ;;  %v2630_v45 = vadd.f32 %v20695_v22, %v20698_v24  ;;  %v3016_v50 = vadd.f32 %v20824_v48, %v2627_v23  ;;  %v25694_v22 = vld [vmem:[#allocation89_spill] sm:$0xff]  ;;  %v25703_v26 = vld [vmem:[#allocation96_spill] sm:$0xff]  ;;  %v25706_v23 = vld [vmem:[#allocation47_spill] sm:$0xff] }
 0x247   :  { %v20900_v8 = vpop.f32.mrf.mxu0  ;;  %v25695_v48 = vld [vmem:[#allocation93_spill] sm:$0xff] }
 0x248   :  { %v2629_v44 = vadd.f32 %v25692_v40, %v2241_v11  ;;  %v3019_v24 = vadd.f32 %v25694_v22, %v2630_v45  ;;  %v20974_v36 = vpop.f32.mrf.mxu1  ;;  %v3405_v42 = vadd.f32 %v25695_v48, %v3017_v60  ;;  %v25698_v25 = vld [vmem:[#allocation21_spill] sm:$0xff]  ;;  %v3404_v33 = vadd.f32 %v25703_v26, %v3016_v50  ;;  %v25708_v60 = vld [vmem:[#allocation99_spill] sm:$0xff]  ;;  %v25715_v22 = vld [vmem:[#allocation48_spill] sm:$0xff] }
 0x249   :  { %v20906_v1 = vpop.f32.mrf.mxu0  ;;  %v2631_v11 = vadd.f32 %v25706_v23, %v2243_v39  ;;  %v25712_v40 = vld [vmem:[#allocation23_spill] sm:$0xff]  ;;  %v25714_v39 = vld [vmem:[#allocation49_spill] sm:$0xff] }
 0x24b   :  { %v20913_v34 = vpop.f32.mrf.mxu0 }
 0x24d   :  { %v17647_v55 = vpop.f32.mrf.mxu0 }
 0x24e   :  { %v3787_v16 = vadd.f32 %v17647_v55, %v3399_v29 }
 0x24f   :  { %v3627_v19 = vpop.f32.mrf.mxu0 }
 0x250   :  { %v3825_v7 = vadd.f32 %v20921_v20, %v3787_v16  ;;  %v3786_v18 = vadd.f32 %v3627_v19, %v3398_v58  ;;  %v25696_v58 = vld [vmem:[#allocation41_spill] sm:$0xff]  ;;  %v25699_v16 = vld [vmem:[#allocation20_spill] sm:$0xff]  ;;  %v2632_v19 = vadd.f32 %v25701_v47, %v25700_v63  ;;  %v25718_v47 = vld [vmem:[#allocation51_spill] sm:$0xff] }
 0x251   :  { %v17650_v38 = vpop.f32.mrf.mxu0  ;;  %v20981_v3 = vadd.f32 %v25697_v57, %v25696_v58  ;;  %v1857_v56 = vadd.f32 %v25699_v16, %v25698_v25  ;;  %v25717_v58 = vld [vmem:[#allocation94_spill] sm:$0xff] }
 0x252   :  { %v3857_v49 = vmax.f32 %v3825_v7, 0.0  ;;  %v3824_v46 = vadd.f32 %v20921_v20, %v3786_v18  ;;  %v3789_v9 = vadd.f32 %v17650_v38, %v3401_v61  ;;  %v25702_v61 = vld [vmem:[#allocation91_spill] sm:$0xff]  ;;  %v3021_v45 = vadd.f32 %v25709_v28, %v2632_v19  ;;  %v25726_v28 = vld [vmem:[#allocation52_spill] sm:$0xff] }
 0x253   :  { %v3637_v37 = vpop.f32.mrf.mxu0  ;;  %v3018_v7 = vadd.f32 %v25702_v61, %v2629_v44  ;;  %v25713_v44 = vld [vmem:[#allocation22_spill] sm:$0xff]  ;;  %v3020_v57 = vadd.f32 %v25717_v58, %v2631_v11  ;;  %v25722_v11 = vld [vmem:[#allocation25_spill] sm:$0xff] }
 0x254   :  { %3890 = vst.msk [vmem:[#allocation3 + $0x21] sm:$0xff] %vm86_vm0, %v3857_v49  ;;  %v3856_v32 = vmax.f32 %v3824_v46, 0.0  ;;  %v3827_v2 = vadd.f32 %v20921_v20, %v3789_v9  ;;  %v3788_v13 = vadd.f32 %v3637_v37, %v3400_v17  ;;  %v25704_v49 = vld [vmem:[#allocation44_spill] sm:$0xff]  ;;  %v25705_v46 = vld [vmem:[#allocation17_spill] sm:$0xff]  ;;  %v1859_v5 = vadd.f32 %v25713_v44, %v25712_v40  ;;  %v25719_v61 = vld [vmem:[#allocation54_spill] sm:$0xff] }
 0x255   :  { %v17653_v51 = vpop.f32.mrf.mxu0  ;;  %v20993_v9 = vadd.f32 %v25705_v46, %v25704_v49  ;;  %v3408_v44 = vadd.f32 %v20867_v62, %v3020_v57  ;;  %v25730_v58 = vld [vmem:[#allocation110_spill] sm:$0xff] }
 0x256   :  { %3889 = vst.msk [vmem:[#allocation3 + $0x19] sm:$0xff] %vm86_vm0, %v3856_v32  ;;  %v3859_v0 = vmax.f32 %v3827_v2, 0.0  ;;  %v3826_v21 = vadd.f32 %v20921_v20, %v3788_v13  ;;  %v3791_v35 = vadd.f32 %v17653_v51, %v3403_v41  ;;  %v25707_v41 = vld [vmem:[#allocation50_spill] sm:$0xff]  ;;  %v3407_v32 = vadd.f32 %v25708_v60, %v3019_v24  ;;  %v20998_v2 = vpop.f32.mrf.mxu1 }
 0x257   :  { %v3647_v29 = vpop.f32.mrf.mxu0  ;;  %v2245_v37 = vadd.f32 %v25707_v41, %v1857_v56  ;;  %v2634_v24 = vadd.f32 %v25715_v22, %v25714_v39  ;;  %v25723_v41 = vld [vmem:[#allocation24_spill] sm:$0xff]  ;;  %v25724_v60 = vld [vmem:[#allocation26_spill] sm:$0xff] }
 0x258   :  { %3892 = vst.msk [vmem:[#allocation3 + $0x39] sm:$0xff] %vm86_vm0, %v3859_v0  ;;  %v3858_v43 = vmax.f32 %v3826_v21, 0.0  ;;  %v3829_v12 = vadd.f32 %v20921_v20, %v3791_v35  ;;  %v3790_v55 = vadd.f32 %v3647_v29, %v3402_v54  ;;  %v25710_v0 = vld [vmem:[#allocation18_spill] sm:$0xff]  ;;  %v25711_v21 = vld [vmem:[#allocation19_spill] sm:$0xff] }
 0x259   :  { %v17656_v18 = vpop.f32.mrf.mxu0  ;;  %v21005_v35 = vadd.f32 %v25711_v21, %v25710_v0  ;;  %v25716_v29 = vld [vmem:[#allocation102_spill] sm:$0xff]  ;;  %v2633_v19 = vadd.f32 %v25718_v47, %v2245_v37  ;;  %v1861_v37 = vadd.f32 %v25723_v41, %v25722_v11 }
 0x25a   :  { %3891 = vst.msk [vmem:[#allocation3 + $0x31] sm:$0xff] %vm86_vm0, %v3858_v43  ;;  %v3861_v14 = vmax.f32 %v3829_v12, 0.0  ;;  %v3828_v38 = vadd.f32 %v20921_v20, %v3790_v55  ;;  %v3793_v17 = vadd.f32 %v17656_v18, %v3405_v42  ;;  %v3406_v48 = vadd.f32 %v25716_v29, %v3018_v7  ;;  %v25720_v18 = vld [vmem:[#allocation95_spill] sm:$0xff] }
 0x25b   :  { %v3657_v13 = vpop.f32.mrf.mxu0  ;;  %v21025_v63 = vld [vmem:[#allocation3 + $0x21] sm:$0xff]  ;;  %v2247_v7 = vadd.f32 %v25719_v61, %v1859_v5  ;;  %v3023_v26 = vadd.f32 %v25720_v18, %v2634_v24  ;;  %v25728_v24 = vld [vmem:[#allocation55_spill] sm:$0xff] }
 0x25c   :  { %3894 = vst.msk [vmem:[#allocation3 + $0x51] sm:$0xff] %vm86_vm0, %v3861_v14  ;;  %v3860_v54 = vmax.f32 %v3828_v38, 0.0  ;;  %v3831_v51 = vadd.f32 %v20921_v20, %v3793_v17  ;;  %v3792_v50 = vadd.f32 %v3657_v13, %v3404_v33  ;;  %v21030_v33 = vpop.f32.mrf.mxu1  ;;  %v25721_v38 = vld [vmem:[#allocation105_spill] sm:$0xff] }
 0x25d   :  { %v17659_v42 = vpop.f32.mrf.mxu0  ;;  %v21012_v43 = vld [vmem:[#allocation3 + $0x19] sm:$0xff]  ;;  %v3409_v17 = vadd.f32 %v25721_v38, %v3021_v45  ;;  %v25725_v13 = vld [vmem:[#allocation53_spill] sm:$0xff]  ;;  %v2635_v29 = vadd.f32 %v25728_v24, %v2247_v7  ;;  %v3411_v62 = vadd.f32 %v25730_v58, %v3023_v26 }
 0x25e   :  { %v21014_v12 = vld [vmem:[#allocation3 + $0x18] sm:$0xff]  ;;  %v21016_v55 = vld [vmem:[#allocation3 + $0x20] sm:$0xff]  ;;  %3893 = vst.msk [vmem:[#allocation3 + $0x49] sm:$0xff] %vm86_vm0, %v3860_v54  ;;  %v3863_v25 = vmax.f32 %v3831_v51, 0.0  ;;  %v3830_v16 = vadd.f32 %v20921_v20, %v3792_v50  ;;  %v3795_v56 = vadd.f32 %v17659_v42, %v3407_v32  ;;  %17700 = vmatprep.mubr.msk.f32.mxu1 %vm86_vm0, %v21012_v43  ;;  %v1475_v32 = vadd.f32 %v25724_v60, %v20934_v6  ;;  %v21064_v57 = vpop.f32.mrf.mxu1 }
 0x25f   :  { %17752 = vmatprep.mubr.msk.f32.mxu0 %vm86_vm0, %v21014_v12  ;;  %v3667_v14 = vpop.f32.mrf.mxu0  ;;  %17701 = vmatmul.mubr.msk.f32.gmra.mxu1 %vm86_vm0, %v21025_v63  ;;  %v2636_v54 = vadd.f32 %v25726_v28, %v25725_v13  ;;  %v25727_v51 = vld [vmem:[#allocation97_spill] sm:$0xff]  ;;  %v21059_v22 = vld [vmem:[#allocation3 + $0x39] sm:$0xff] }
 0x260   :  { %17753 = vmatmul.mubr.msk.f32.gmra.mxu0 %vm86_vm0, %v21016_v55  ;;  %3896 = vst.msk [vmem:[#allocation3 + $0x69] sm:$0xff] %vm86_vm0, %v3863_v25  ;;  %v3862_v49 = vmax.f32 %v3830_v16, 0.0  ;;  %v3833_v46 = vadd.f32 %v20921_v20, %v3795_v56  ;;  %v3794_v23 = vadd.f32 %v3667_v14, %v3406_v48  ;;  %v3022_v50 = vadd.f32 %v25727_v51, %v2633_v19  ;;  %v25729_v48 = vld [vmem:[#allocation58_spill] sm:$0xff]  ;;  %v25732_v7 = vld [vmem:[#allocation27_spill] sm:$0xff]  ;;  %v25733_v26 = vld [vmem:[#allocation28_spill] sm:$0xff] }
 0x261   :  { %v17662_v0 = vpop.f32.mrf.mxu0  ;;  %v21046_v21 = vld [vmem:[#allocation3 + $0x31] sm:$0xff]  ;;  %v2249_v42 = vadd.f32 %v25729_v48, %v1861_v37  ;;  %v1863_v18 = vadd.f32 %v25732_v7, %v1475_v32  ;;  %v1477_v14 = vadd.f32 %v25733_v26, %v20945_v15  ;;  %v25734_v38 = vld [vmem:[#allocation57_spill] sm:$0xff]  ;;  %v25736_v60 = vld [vmem:[#allocation100_spill] sm:$0xff] }
 0x262   :  { %v21048_v45 = vld [vmem:[#allocation3 + $0x30] sm:$0xff]  ;;  %v21050_v40 = vld [vmem:[#allocation3 + $0x38] sm:$0xff]  ;;  %3895 = vst.msk [vmem:[#allocation3 + $0x61] sm:$0xff] %vm86_vm0, %v3862_v49  ;;  %v3865_v5 = vmax.f32 %v3833_v46, 0.0  ;;  %v3832_v39 = vadd.f32 %v20921_v20, %v3794_v23  ;;  %v3797_v6 = vadd.f32 %v17662_v0, %v3409_v17  ;;  %17703 = vmatprep.mubr.msk.f32.mxu1 %vm86_vm0, %v21046_v21  ;;  %v3410_v46 = vadd.f32 %v20879_v4, %v3022_v50 }
 0x263   :  { %17755 = vmatprep.mubr.msk.f32.mxu0 %vm86_vm0, %v21048_v45  ;;  %v3677_v25 = vpop.f32.mrf.mxu0  ;;  %17704 = vmatmul.mubr.msk.f32.gmra.mxu1 %vm86_vm0, %v21059_v22  ;;  %v25731_v16 = vld [vmem:[#allocation98_spill] sm:$0xff]  ;;  %v25735_v17 = vld [vmem:[#allocation56_spill] sm:$0xff]  ;;  %v3024_v13 = vadd.f32 %v25736_v60, %v2635_v29  ;;  %v25740_v24 = vld [vmem:[#allocation115_spill] sm:$0xff] }
 0x264   :  { %17756 = vmatmul.mubr.msk.f32.gmra.mxu0 %vm86_vm0, %v21050_v40  ;;  %v3025_v56 = vadd.f32 %v25731_v16, %v2636_v54  ;;  %3898 = vst.msk [vmem:[#allocation3 + $0x81] sm:$0xff] %vm86_vm0, %v3865_v5  ;;  %v3864_v47 = vmax.f32 %v3832_v39, 0.0  ;;  %v3835_v19 = vadd.f32 %v20921_v20, %v3797_v6  ;;  %v3796_v61 = vadd.f32 %v3677_v25, %v3408_v44  ;;  %v21092_v4 = vld [vmem:[#allocation3 + $0x51] sm:$0xff]  ;;  %v25739_v44 = vld [vmem:[#allocation101_spill] sm:$0xff]  ;;  %v21097_v39 = vpop.f32.mrf.mxu1 }
 0x265   :  { %v2638_v49 = vadd.f32 %v25735_v17, %v25734_v38  ;;  %v17665_v23 = vpop.f32.mrf.mxu0  ;;  %v21079_v11 = vld [vmem:[#allocation3 + $0x49] sm:$0xff]  ;;  %v25737_v54 = vld [vmem:[#allocation59_spill] sm:$0xff] }
 0x266   :  { %v21081_v41 = vld [vmem:[#allocation3 + $0x48] sm:$0xff]  ;;  %v21083_v37 = vld [vmem:[#allocation3 + $0x50] sm:$0xff]  ;;  %3897 = vst.msk [vmem:[#allocation3 + $0x79] sm:$0xff] %vm86_vm0, %v3864_v47  ;;  %v3867_v32 = vmax.f32 %v3835_v19, 0.0  ;;  %v3834_v28 = vadd.f32 %v20921_v20, %v3796_v61  ;;  %v3799_v15 = vadd.f32 %v17665_v23, %v3411_v62  ;;  %17706 = vmatprep.mubr.msk.f32.mxu1 %vm86_vm0, %v21079_v11  ;;  %v2637_v51 = vadd.f32 %v25737_v54, %v2249_v42  ;;  %v25744_v61 = vld [vmem:[#allocation60_spill] sm:$0xff] }
 0x267   :  { %17758 = vmatprep.mubr.msk.f32.mxu0 %vm86_vm0, %v21081_v41  ;;  %v25738_v50 = vld [vmem:[#allocation62_spill] sm:$0xff]  ;;  %v3027_v5 = vadd.f32 %v25739_v44, %v2638_v49  ;;  %v3687_v6 = vpop.f32.mrf.mxu0  ;;  %17707 = vmatmul.mubr.msk.f32.gmra.mxu1 %vm86_vm0, %v21092_v4  ;;  %v3413_v29 = vadd.f32 %v25740_v24, %v3025_v56  ;;  %v25741_v62 = vld [vmem:[#allocation29_spill] sm:$0xff]  ;;  %v3412_v23 = vadd.f32 %v20898_v59, %v3024_v13  ;;  %v21130_v13 = vpop.f32.mrf.mxu1 }
 0x268   :  { %v2251_v0 = vadd.f32 %v25738_v50, %v1863_v18  ;;  %17759 = vmatmul.mubr.msk.f32.gmra.mxu0 %vm86_vm0, %v21083_v37  ;;  %3900 = vst.msk [vmem:[#allocation3 + $0x99] sm:$0xff] %vm86_vm0, %v3867_v32  ;;  %v3866_v48 = vmax.f32 %v3834_v28, 0.0  ;;  %v3837_v42 = vadd.f32 %v20921_v20, %v3799_v15  ;;  %v3798_v58 = vadd.f32 %v3687_v6, %v3410_v46  ;;  %v25742_v16 = vld [vmem:[#allocation30_spill] sm:$0xff]  ;;  %v25743_v19 = vld [vmem:[#allocation61_spill] sm:$0xff]  ;;  %v25745_v18 = vld [vmem:[#allocation103_spill] sm:$0xff] }
 0x269   :  { %v1865_v25 = vadd.f32 %v25741_v62, %v1477_v14  ;;  %v1479_v47 = vadd.f32 %v25742_v16, %v20957_v27  ;;  %v2640_v7 = vadd.f32 %v25744_v61, %v25743_v19  ;;  %v3026_v26 = vadd.f32 %v25745_v18, %v2637_v51  ;;  %v17668_v38 = vpop.f32.mrf.mxu0  ;;  %v21112_v17 = vld [vmem:[#allocation3 + $0x61] sm:$0xff]  ;;  %v21125_v60 = vld [vmem:[#allocation3 + $0x69] sm:$0xff]  ;;  %v25746_v32 = vld [vmem:[#allocation63_spill] sm:$0xff] }
 0x26a   :  { %v21114_v56 = vld [vmem:[#allocation3 + $0x60] sm:$0xff]  ;;  %v21116_v49 = vld [vmem:[#allocation3 + $0x68] sm:$0xff]  ;;  %3899 = vst.msk [vmem:[#allocation3 + $0x91] sm:$0xff] %vm86_vm0, %v3866_v48  ;;  %v3869_v14 = vmax.f32 %v3837_v42, 0.0  ;;  %v3836_v46 = vadd.f32 %v20921_v20, %v3798_v58  ;;  %v3801_v27 = vadd.f32 %v17668_v38, %v3413_v29  ;;  %17709 = vmatprep.mubr.msk.f32.mxu1 %vm86_vm0, %v21112_v17  ;;  %v2639_v28 = vadd.f32 %v25746_v32, %v2251_v0  ;;  %v25749_v29 = vld [vmem:[#allocation31_spill] sm:$0xff] }
 0x26b   :  { %17761 = vmatprep.mubr.msk.f32.mxu0 %vm86_vm0, %v21114_v56  ;;  %v25747_v15 = vld [vmem:[#allocation66_spill] sm:$0xff]  ;;  %v3415_v59 = vadd.f32 %v20911_v10, %v3027_v5  ;;  %v3697_v51 = vpop.f32.mrf.mxu0  ;;  %17710 = vmatmul.mubr.msk.f32.gmra.mxu1 %vm86_vm0, %v21125_v60  ;;  %v25748_v50 = vld [vmem:[#allocation104_spill] sm:$0xff]  ;;  %v1867_v48 = vadd.f32 %v25749_v29, %v1479_v47  ;;  %v25751_v42 = vld [vmem:[#allocation65_spill] sm:$0xff] }
 0x26c   :  { %v2253_v54 = vadd.f32 %v25747_v15, %v1865_v25  ;;  %17762 = vmatmul.mubr.msk.f32.gmra.mxu0 %vm86_vm0, %v21116_v49  ;;  %v3029_v44 = vadd.f32 %v25748_v50, %v2640_v7  ;;  %3902 = vst.msk [vmem:[#allocation3 + $0xb1] sm:$0xff] %vm86_vm0, %v3869_v14  ;;  %v3868_v6 = vmax.f32 %v3836_v46, 0.0  ;;  %v3839_v0 = vadd.f32 %v20921_v20, %v3801_v27  ;;  %v25750_v10 = vld [vmem:[#allocation32_spill] sm:$0xff]  ;;  %v25753_v18 = vld [vmem:[#allocation106_spill] sm:$0xff]  ;;  %v25756_v32 = vld [vmem:[#allocation107_spill] sm:$0xff]  ;;  %v21163_v15 = vpop.f32.mrf.mxu1 }
 0x26d   :  { %v3800_v24 = vadd.f32 %v3697_v51, %v3412_v23  ;;  %v1481_v5 = vadd.f32 %v25750_v10, %v20969_v31  ;;  %v25752_v58 = vld [vmem:[#allocation64_spill] sm:$0xff]  ;;  %v3414_v25 = vadd.f32 %v20928_v52, %v3026_v26  ;;  %v17671_v16 = vpop.f32.mrf.mxu0  ;;  %v3028_v38 = vadd.f32 %v25753_v18, %v2639_v28  ;;  %v25754_v26 = vld [vmem:[#allocation67_spill] sm:$0xff]  ;;  %v25755_v46 = vld [vmem:[#allocation70_spill] sm:$0xff] }
 0x26e   :  { %v2642_v62 = vadd.f32 %v25752_v58, %v25751_v42  ;;  %v21145_v19 = vld [vmem:[#allocation3 + $0x79] sm:$0xff]  ;;  %3901 = vst.msk [vmem:[#allocation3 + $0xa9] sm:$0xff] %vm86_vm0, %v3868_v6  ;;  %v3871_v47 = vmax.f32 %v3839_v0, 0.0  ;;  %v3803_v31 = vadd.f32 %v17671_v16, %v3415_v59  ;;  %v21158_v52 = vld [vmem:[#allocation3 + $0x81] sm:$0xff]  ;;  %v2641_v14 = vadd.f32 %v25754_v26, %v2253_v54  ;;  %v25758_v29 = vld [vmem:[#allocation34_spill] sm:$0xff] }
 0x26f   :  { %v21147_v61 = vld [vmem:[#allocation3 + $0x78] sm:$0xff]  ;;  %v21149_v7 = vld [vmem:[#allocation3 + $0x80] sm:$0xff]  ;;  %v3838_v23 = vadd.f32 %v20921_v20, %v3800_v24  ;;  %17712 = vmatprep.mubr.msk.f32.mxu1 %vm86_vm0, %v21145_v19  ;;  %v2255_v27 = vadd.f32 %v25755_v46, %v1867_v48  ;;  %v3707_v51 = vpop.f32.mrf.mxu0  ;;  %v3417_v59 = vadd.f32 %v20950_v53, %v3029_v44  ;;  %v1483_v48 = vadd.f32 %v25758_v29, %v20981_v3  ;;  %v25763_v46 = vld [vmem:[#allocation74_spill] sm:$0xff] }
 0x270   :  { %17764 = vmatprep.mubr.msk.f32.mxu0 %vm86_vm0, %v21147_v61  ;;  %v3031_v28 = vadd.f32 %v25756_v32, %v2642_v62  ;;  %17713 = vmatmul.mubr.msk.f32.gmra.mxu1 %vm86_vm0, %v21158_v52  ;;  %3904 = vst.msk [vmem:[#allocation3 + $0xc9] sm:$0xff] %vm86_vm0, %v3871_v47  ;;  %v3841_v54 = vadd.f32 %v20921_v20, %v3803_v31  ;;  %v25757_v0 = vld [vmem:[#allocation33_spill] sm:$0xff]  ;;  %v25760_v42 = vld [vmem:[#allocation68_spill] sm:$0xff]  ;;  %v25762_v31 = vld [vmem:[#allocation71_spill] sm:$0xff] }
 0x271   :  { %17765 = vmatmul.mubr.msk.f32.gmra.mxu0 %vm86_vm0, %v21149_v7  ;;  %v3870_v50 = vmax.f32 %v3838_v23, 0.0  ;;  %v3802_v6 = vadd.f32 %v3707_v51, %v3414_v25  ;;  %v1869_v24 = vadd.f32 %v25757_v0, %v1481_v5  ;;  %v25759_v10 = vld [vmem:[#allocation69_spill] sm:$0xff]  ;;  %v25761_v62 = vld [vmem:[#allocation108_spill] sm:$0xff]  ;;  %v17674_v18 = vpop.f32.mrf.mxu0  ;;  %v21178_v26 = vld [vmem:[#allocation3 + $0x91] sm:$0xff]  ;;  %v3416_v47 = vadd.f32 %v20974_v36, %v3028_v38  ;;  %v21196_v38 = vpop.f32.mrf.mxu1 }
 0x272   :  { %v2644_v58 = vadd.f32 %v25760_v42, %v25759_v10  ;;  %v3030_v16 = vadd.f32 %v25761_v62, %v2641_v14  ;;  %v21180_v53 = vld [vmem:[#allocation3 + $0x90] sm:$0xff]  ;;  %v21182_v44 = vld [vmem:[#allocation3 + $0x98] sm:$0xff]  ;;  %v3873_v5 = vmax.f32 %v3841_v54, 0.0  ;;  %v3805_v3 = vadd.f32 %v17674_v18, %v3417_v59  ;;  %17715 = vmatprep.mubr.msk.f32.mxu1 %vm86_vm0, %v21178_v26  ;;  %v25764_v59 = vld [vmem:[#allocation109_spill] sm:$0xff] }
 0x273   :  { %3903 = vst.msk [vmem:[#allocation3 + $0xc1] sm:$0xff] %vm86_vm0, %v3870_v50  ;;  %v3840_v25 = vadd.f32 %v20921_v20, %v3802_v6  ;;  %17767 = vmatprep.mubr.msk.f32.mxu0 %vm86_vm0, %v21180_v53  ;;  %v21191_v23 = vld [vmem:[#allocation3 + $0x99] sm:$0xff]  ;;  %v2643_v14 = vadd.f32 %v25762_v31, %v2255_v27  ;;  %v2257_v32 = vadd.f32 %v25763_v46, %v1869_v24  ;;  %v3717_v51 = vpop.f32.mrf.mxu0  ;;  %v25767_v29 = vld [vmem:[#allocation73_spill] sm:$0xff] }
 0x274   :  { %v3419_v36 = vadd.f32 %v20998_v2, %v3031_v28  ;;  %17716 = vmatmul.mubr.msk.f32.gmra.mxu1 %vm86_vm0, %v21191_v23  ;;  %v3033_v50 = vadd.f32 %v25764_v59, %v2644_v58  ;;  %3906 = vst.msk [vmem:[#allocation3 + $0xe1] sm:$0xff] %vm86_vm0, %v3873_v5  ;;  %v3843_v27 = vadd.f32 %v20921_v20, %v3805_v3  ;;  %v25765_v0 = vld [vmem:[#allocation35_spill] sm:$0xff]  ;;  %v25766_v2 = vld [vmem:[#allocation36_spill] sm:$0xff] }
 0x275   :  { %17768 = vmatmul.mubr.msk.f32.gmra.mxu0 %vm86_vm0, %v21182_v44  ;;  %v3872_v54 = vmax.f32 %v3840_v25, 0.0  ;;  %v3804_v6 = vadd.f32 %v3717_v51, %v3416_v47  ;;  %v1871_v24 = vadd.f32 %v25765_v0, %v1483_v48  ;;  %v1485_v28 = vadd.f32 %v25766_v2, %v20993_v9  ;;  %v25768_v10 = vld [vmem:[#allocation72_spill] sm:$0xff]  ;;  %v17677_v18 = vpop.f32.mrf.mxu0  ;;  %v21211_v31 = vld [vmem:[#allocation3 + $0xa9] sm:$0xff]  ;;  %v25772_v25 = vld [vmem:[#allocation111_spill] sm:$0xff]  ;;  %v21229_v2 = vpop.f32.mrf.mxu1 }
 0x276   :  { %v2646_v42 = vadd.f32 %v25768_v10, %v25767_v29  ;;  %v3418_v62 = vadd.f32 %v21030_v33, %v3030_v16  ;;  %25769 = vst [vmem:[#allocation40_spill] sm:$0xff] %v21211_v31  ;;  %v21213_v58 = vld [vmem:[#allocation3 + $0xa8] sm:$0xff]  ;;  %v21215_v5 = vld [vmem:[#allocation3 + $0xb0] sm:$0xff]  ;;  %v3032_v3 = vadd.f32 %v25772_v25, %v2643_v14  ;;  %v3875_v48 = vmax.f32 %v3843_v27, 0.0  ;;  %17718 = vmatprep.mubr.msk.f32.mxu1 %vm86_vm0, %v21211_v31  ;;  %v25776_v0 = vld [vmem:[#allocation112_spill] sm:$0xff] }
 0x277   :  { %25770 = vst [vmem:[#allocation46_spill] sm:$0xff] %v21213_v58  ;;  %25771 = vst [vmem:[#allocation89_spill] sm:$0xff] %v21215_v5  ;;  %v3842_v47 = vadd.f32 %v20921_v20, %v3804_v6  ;;  %v3807_v9 = vadd.f32 %v17677_v18, %v3419_v36  ;;  %17770 = vmatprep.mubr.msk.f32.mxu0 %vm86_vm0, %v21213_v58  ;;  %v21224_v33 = vld [vmem:[#allocation3 + $0xb1] sm:$0xff]  ;;  %v3421_v36 = vadd.f32 %v21064_v57, %v3033_v50  ;;  %v25779_v18 = vld [vmem:[#allocation77_spill] sm:$0xff] }
 0x278   :  { %3905 = vst.msk [vmem:[#allocation3 + $0xd9] sm:$0xff] %vm86_vm0, %v3872_v54  ;;  %25773 = vst [vmem:[#allocation93_spill] sm:$0xff] %v21224_v33  ;;  %v25774_v16 = vld [vmem:[#allocation75_spill] sm:$0xff]  ;;  %v25775_v51 = vld [vmem:[#allocation78_spill] sm:$0xff]  ;;  %v3035_v14 = vadd.f32 %v25776_v0, %v2646_v42  ;;  %v3727_v54 = vpop.f32.mrf.mxu0  ;;  %17719 = vmatmul.mubr.msk.f32.gmra.mxu1 %vm86_vm0, %v21224_v33 }
 0x279   :  { %v2645_v46 = vadd.f32 %v25774_v16, %v2257_v32  ;;  %v2259_v59 = vadd.f32 %v25775_v51, %v1871_v24  ;;  %17771 = vmatmul.mubr.msk.f32.gmra.mxu0 %vm86_vm0, %v21215_v5  ;;  %3908 = vst.msk [vmem:[#allocation3 + $0xf9] sm:$0xff] %vm86_vm0, %v3875_v48  ;;  %v3874_v27 = vmax.f32 %v3842_v47, 0.0  ;;  %v3845_v32 = vadd.f32 %v20921_v20, %v3807_v9  ;;  %v25777_v24 = vld [vmem:[#allocation37_spill] sm:$0xff]  ;;  %v25778_v10 = vld [vmem:[#allocation38_spill] sm:$0xff]  ;;  %v25780_v25 = vld [vmem:[#allocation76_spill] sm:$0xff] }
 0x27a   :  { %v3806_v6 = vadd.f32 %v3727_v54, %v3418_v62  ;;  %v1873_v29 = vadd.f32 %v25777_v24, %v1485_v28  ;;  %v1487_v42 = vadd.f32 %v25778_v10, %v21005_v35  ;;  %v2648_v16 = vadd.f32 %v25780_v25, %v25779_v18  ;;  %v25781_v51 = vld [vmem:[#allocation113_spill] sm:$0xff]  ;;  %v17680_v33 = vpop.f32.mrf.mxu0  ;;  %v25785_v9 = vld [vmem:[#allocation79_spill] sm:$0xff]  ;;  %v25786_v54 = vld [vmem:[#allocation82_spill] sm:$0xff] }
 0x27b   :  { %v3034_v0 = vadd.f32 %v25781_v51, %v2645_v46  ;;  %v21244_v31 = vld [vmem:[#allocation3 + $0xc1] sm:$0xff]  ;;  %v3420_v48 = vadd.f32 %v21097_v39, %v3032_v3  ;;  %3907 = vst.msk [vmem:[#allocation3 + $0xf1] sm:$0xff] %vm86_vm0, %v3874_v27  ;;  %v3877_v28 = vmax.f32 %v3845_v32, 0.0  ;;  %v3809_v35 = vadd.f32 %v17680_v33, %v3421_v36  ;;  %v21257_v47 = vld [vmem:[#allocation3 + $0xc9] sm:$0xff]  ;;  %v17637_v3 = vpop.f32.mrf.mxu1  ;;  %v25788_v10 = vld [vmem:[#allocation39_spill] sm:$0xff] }
 0x27c   :  { %v21246_v57 = vld [vmem:[#allocation3 + $0xc0] sm:$0xff]  ;;  %v21248_v50 = vld [vmem:[#allocation3 + $0xc8] sm:$0xff]  ;;  %v3844_v62 = vadd.f32 %v20921_v20, %v3806_v6  ;;  %17721 = vmatprep.mubr.msk.f32.mxu1 %vm86_vm0, %v21244_v31  ;;  %25784 = vst [vmem:[#allocation21_spill] sm:$0xff] %v21257_v47  ;;  %v2647_v46 = vadd.f32 %v25785_v9, %v2259_v59  ;;  %v2261_v24 = vadd.f32 %v25786_v54, %v1873_v29  ;;  %v3737_v27 = vpop.f32.mrf.mxu0 }
 0x27d   :  { %25782 = vst [vmem:[#allocation41_spill] sm:$0xff] %v21246_v57  ;;  %25783 = vst [vmem:[#allocation43_spill] sm:$0xff] %v21248_v50  ;;  %17773 = vmatprep.mubr.msk.f32.mxu0 %vm86_vm0, %v21246_v57  ;;  %v3423_v39 = vadd.f32 %v21130_v13, %v3035_v14  ;;  %17722 = vmatmul.mubr.msk.f32.gmra.mxu1 %vm86_vm0, %v21257_v47  ;;  %v25787_v33 = vld [vmem:[#allocation114_spill] sm:$0xff]  ;;  %v3847_v6 = vadd.f32 %v20921_v20, %v3809_v35  ;;  %v25789_v18 = vld [vmem:[#allocation81_spill] sm:$0xff] }
 0x27e   :  { %17774 = vmatmul.mubr.msk.f32.gmra.mxu0 %vm86_vm0, %v21248_v50  ;;  %v3037_v36 = vadd.f32 %v25787_v33, %v2648_v16  ;;  %3910 = vst.msk [vmem:[#allocation3 + $0x111] sm:$0xff] %vm86_vm0, %v3877_v28  ;;  %v3876_v32 = vmax.f32 %v3844_v62, 0.0  ;;  %v3808_v59 = vadd.f32 %v3737_v27, %v3420_v48  ;;  %v1875_v29 = vadd.f32 %v25788_v10, %v1487_v42  ;;  %v25790_v13 = vld [vmem:[#allocation80_spill] sm:$0xff]  ;;  %v17683_v51 = vpop.f32.mrf.mxu0  ;;  %v25794_v35 = vld [vmem:[#allocation86_spill] sm:$0xff]  ;;  %v25796_v10 = vld [vmem:[#allocation85_spill] sm:$0xff] }
 0x27f   :  { %v2650_v14 = vadd.f32 %v25790_v13, %v25789_v18  ;;  %v3422_v25 = vadd.f32 %v21163_v15, %v3034_v0  ;;  %v21273_v9 = vld [vmem:[#allocation3 + $0xd9] sm:$0xff]  ;;  %v3036_v16 = vadd.f32 %v20889_v30, %v2647_v46  ;;  %v3879_v28 = vmax.f32 %v3847_v6, 0.0  ;;  %v21286_v15 = vld [vmem:[#allocation3 + $0xe1] sm:$0xff]  ;;  %v3379_v46 = vpop.f32.mrf.mxu1 }
 0x280   :  { %v21275_v54 = vld [vmem:[#allocation3 + $0xd8] sm:$0xff]  ;;  %v21277_v47 = vld [vmem:[#allocation3 + $0xe0] sm:$0xff]  ;;  %3909 = vst.msk [vmem:[#allocation3 + $0x109] sm:$0xff] %vm86_vm0, %v3876_v32  ;;  %v3846_v48 = vadd.f32 %v20921_v20, %v3808_v59  ;;  %v3811_v42 = vadd.f32 %v17683_v51, %v3423_v39  ;;  %17724 = vmatprep.mubr.msk.f32.mxu1 %vm86_vm0, %v21273_v9  ;;  %v2263_v27 = vadd.f32 %v25794_v35, %v1875_v29  ;;  %v3747_v32 = vpop.f32.mrf.mxu0 }
 0x281   :  { %25791 = vst [vmem:[#allocation20_spill] sm:$0xff] %v21275_v54  ;;  %25792 = vst [vmem:[#allocation45_spill] sm:$0xff] %v21277_v47  ;;  %17776 = vmatprep.mubr.msk.f32.mxu0 %vm86_vm0, %v21275_v54  ;;  %v25793_v0 = vld [vmem:[#allocation83_spill] sm:$0xff]  ;;  %v25795_v33 = vld [vmem:[#allocation116_spill] sm:$0xff]  ;;  %17725 = vmatmul.mubr.msk.f32.gmra.mxu1 %vm86_vm0, %v21286_v15  ;;  %v3425_v39 = vadd.f32 %v21196_v38, %v3037_v36  ;;  %v3424_v38 = vadd.f32 %v21229_v2, %v3036_v16 }
 0x282   :  { %v2649_v62 = vadd.f32 %v25793_v0, %v2261_v24  ;;  %v3039_v30 = vadd.f32 %v25795_v33, %v2650_v14  ;;  %17777 = vmatmul.mubr.msk.f32.gmra.mxu0 %vm86_vm0, %v21277_v47  ;;  %3912 = vst.msk [vmem:[#allocation3 + $0x129] sm:$0xff] %vm86_vm0, %v3879_v28  ;;  %v3878_v6 = vmax.f32 %v3846_v48, 0.0  ;;  %v3849_v59 = vadd.f32 %v20921_v20, %v3811_v42  ;;  %v25797_v29 = vld [vmem:[#allocation84_spill] sm:$0xff]  ;;  %v17686_v14 = vpop.f32.mrf.mxu0  ;;  %v21301_v51 = vld [vmem:[#allocation3 + $0xf1] sm:$0xff]  ;;  %v17640_v33 = vpop.f32.mrf.mxu1 }
 0x283   :  { %v3810_v24 = vadd.f32 %v3747_v32, %v3422_v25  ;;  %v2652_v18 = vadd.f32 %v25797_v29, %v25796_v10  ;;  %v21303_v0 = vld [vmem:[#allocation3 + $0xf0] sm:$0xff]  ;;  %v21305_v35 = vld [vmem:[#allocation3 + $0xf8] sm:$0xff]  ;;  %v3813_v25 = vadd.f32 %v17686_v14, %v3425_v39  ;;  %17727 = vmatprep.mubr.msk.f32.mxu1 %vm86_vm0, %v21301_v51 }
 0x284   :  { %v3038_v13 = vadd.f32 %v20900_v8, %v2649_v62  ;;  %25798 = vst [vmem:[#allocation42_spill] sm:$0xff] %v21303_v0  ;;  %25799 = vst [vmem:[#allocation91_spill] sm:$0xff] %v21305_v35  ;;  %v3881_v36 = vmax.f32 %v3849_v59, 0.0  ;;  %17779 = vmatprep.mubr.msk.f32.mxu0 %vm86_vm0, %v21303_v0  ;;  %v21314_v8 = vld [vmem:[#allocation3 + $0xf9] sm:$0xff]  ;;  %v3427_v62 = vadd.f32 %v17637_v3, %v3039_v30  ;;  %v3757_v32 = vpop.f32.mrf.mxu0 }
 0x285   :  { %3911 = vst.msk [vmem:[#allocation3 + $0x121] sm:$0xff] %vm86_vm0, %v3878_v6  ;;  %v3848_v28 = vadd.f32 %v20921_v20, %v3810_v24  ;;  %v25800_v48 = vld [vmem:[#allocation87_spill] sm:$0xff]  ;;  %17728 = vmatmul.mubr.msk.f32.gmra.mxu1 %vm86_vm0, %v21314_v8  ;;  %v3041_v2 = vadd.f32 %v20906_v1, %v2652_v18  ;;  %v3851_v39 = vadd.f32 %v20921_v20, %v3813_v25 }
 0x286   :  { %v2651_v42 = vadd.f32 %v25800_v48, %v2263_v27  ;;  %17780 = vmatmul.mubr.msk.f32.gmra.mxu0 %vm86_vm0, %v21305_v35  ;;  %3914 = vst.msk [vmem:[#allocation3 + $0x141] sm:$0xff] %vm86_vm0, %v3881_v36  ;;  %v3812_v6 = vadd.f32 %v3757_v32, %v3424_v38  ;;  %v3426_v59 = vadd.f32 %v3379_v46, %v3038_v13  ;;  %v17689_v24 = vpop.f32.mrf.mxu0  ;;  %v21337_v46 = vld [vmem:[#allocation3 + $0x111] sm:$0xff]  ;;  %v3389_v13 = vpop.f32.mrf.mxu1 }
 0x287   :  { %v3880_v16 = vmax.f32 %v3848_v28, 0.0  ;;  %v21324_v27 = vld [vmem:[#allocation3 + $0x109] sm:$0xff]  ;;  %v3883_v29 = vmax.f32 %v3851_v39, 0.0  ;;  %v3815_v18 = vadd.f32 %v17689_v24, %v3427_v62 }
 0x288   :  { %v21326_v3 = vld [vmem:[#allocation3 + $0x108] sm:$0xff]  ;;  %v21328_v30 = vld [vmem:[#allocation3 + $0x110] sm:$0xff]  ;;  %v3040_v10 = vadd.f32 %v20913_v34, %v2651_v42  ;;  %v3850_v1 = vadd.f32 %v20921_v20, %v3812_v6  ;;  %17730 = vmatprep.mubr.msk.f32.mxu1 %vm86_vm0, %v21324_v27  ;;  %v3767_v14 = vpop.f32.mrf.mxu0  ;;  %v3429_v34 = vadd.f32 %v17640_v33, %v3041_v2 }
 0x289   :  { %25801 = vst [vmem:[#allocation96_spill] sm:$0xff] %v21326_v3  ;;  %25802 = vst [vmem:[#allocation44_spill] sm:$0xff] %v21328_v30  ;;  %17782 = vmatprep.mubr.msk.f32.mxu0 %vm86_vm0, %v21326_v3  ;;  %17731 = vmatmul.mubr.msk.f32.gmra.mxu1 %vm86_vm0, %v21337_v46  ;;  %v3853_v36 = vadd.f32 %v20921_v20, %v3815_v18  ;;  %v3814_v28 = vadd.f32 %v3767_v14, %v3426_v59  ;;  %v21357_v2 = vld [vmem:[#allocation3 + $0x129] sm:$0xff] }
 0x28a   :  { %3913 = vst.msk [vmem:[#allocation3 + $0x139] sm:$0xff] %vm86_vm0, %v3880_v16  ;;  %17783 = vmatmul.mubr.msk.f32.gmra.mxu0 %vm86_vm0, %v21328_v30  ;;  %3916 = vst.msk [vmem:[#allocation3 + $0x159] sm:$0xff] %vm86_vm0, %v3883_v29  ;;  %v3882_v38 = vmax.f32 %v3850_v1, 0.0  ;;  %v17692_v25 = vpop.f32.mrf.mxu0  ;;  %v3428_v32 = vadd.f32 %v3389_v13, %v3040_v10 }
 0x28b   :  { %v3885_v16 = vmax.f32 %v3853_v36, 0.0  ;;  %v3852_v39 = vadd.f32 %v20921_v20, %v3814_v28  ;;  %v3817_v33 = vadd.f32 %v17692_v25, %v3429_v34 }
 0x28c   :  { %v21345_v48 = vld [vmem:[#allocation3 + $0x121] sm:$0xff]  ;;  %3915 = vst.msk [vmem:[#allocation3 + $0x151] sm:$0xff] %vm86_vm0, %v3882_v38  ;;  %v3777_v6 = vpop.f32.mrf.mxu0 }
 0x28d   :  { %v21347_v42 = vld [vmem:[#allocation3 + $0x120] sm:$0xff]  ;;  %v21349_v62 = vld [vmem:[#allocation3 + $0x128] sm:$0xff]  ;;  %17733 = vmatprep.mubr.msk.f32.mxu1 %vm86_vm0, %v21345_v48  ;;  %3918 = vst.msk [vmem:[#allocation3 + $0x171] sm:$0xff] %vm86_vm0, %v3885_v16  ;;  %v3884_v59 = vmax.f32 %v3852_v39, 0.0  ;;  %v3855_v24 = vadd.f32 %v20921_v20, %v3817_v33  ;;  %v3816_v10 = vadd.f32 %v3777_v6, %v3428_v32 }
 0x28e   :  { %25803 = vst [vmem:[#allocation17_spill] sm:$0xff] %v21347_v42  ;;  %25804 = vst [vmem:[#allocation47_spill] sm:$0xff] %v21349_v62  ;;  %17785 = vmatprep.mubr.msk.f32.mxu0 %vm86_vm0, %v21347_v42  ;;  %17734 = vmatmul.mubr.msk.f32.gmra.mxu1 %vm86_vm0, %v21357_v2  ;;  %v21377_v34 = vld [vmem:[#allocation3 + $0x141] sm:$0xff] }
 0x28f   :  { %17786 = vmatmul.mubr.msk.f32.gmra.mxu0 %vm86_vm0, %v21349_v62  ;;  %3917 = vst.msk [vmem:[#allocation3 + $0x169] sm:$0xff] %vm86_vm0, %v3884_v59  ;;  %v3887_v13 = vmax.f32 %v3855_v24, 0.0  ;;  %v3854_v14 = vadd.f32 %v20921_v20, %v3816_v10  ;;  %v4632_v32 = vld [vmem:[#allocation3 + $0x2] sm:$0xff]  ;;  %v4633_v59 = vld [vmem:[#allocation3 + $0xa] sm:$0xff] }
 0x291   :  { %v21365_v29 = vld [vmem:[#allocation3 + $0x139] sm:$0xff]  ;;  %3920 = vst.msk [vmem:[#allocation3 + $0x189] sm:$0xff] %vm86_vm0, %v3887_v13  ;;  %v3886_v38 = vmax.f32 %v3854_v14, 0.0 }
 0x292   :  { %v21367_v1 = vld [vmem:[#allocation3 + $0x138] sm:$0xff]  ;;  %v21369_v18 = vld [vmem:[#allocation3 + $0x140] sm:$0xff]  ;;  %17736 = vmatprep.mubr.msk.f32.mxu1 %vm86_vm0, %v21365_v29 }
 0x293   :  { %25805 = vst [vmem:[#allocation50_spill] sm:$0xff] %v21367_v1  ;;  %25806 = vst [vmem:[#allocation99_spill] sm:$0xff] %v21369_v18  ;;  %17788 = vmatprep.mubr.msk.f32.mxu0 %vm86_vm0, %v21367_v1  ;;  %17737 = vmatmul.mubr.msk.f32.gmra.mxu1 %vm86_vm0, %v21377_v34  ;;  %v21384_v36 = vld [vmem:[#allocation3 + $0x151] sm:$0xff]  ;;  %v21395_v25 = vld [vmem:[#allocation3 + $0x159] sm:$0xff]  ;;  %v17699_v24 = vpop.f32.mrf.mxu1 }
 0x294   :  { %17789 = vmatmul.mubr.msk.f32.gmra.mxu0 %vm86_vm0, %v21369_v18  ;;  %v21386_v20 = vld [vmem:[#allocation3 + $0x150] sm:$0xff]  ;;  %v21388_v28 = vld [vmem:[#allocation3 + $0x158] sm:$0xff]  ;;  %3919 = vst.msk [vmem:[#allocation3 + $0x181] sm:$0xff] %vm86_vm0, %v3886_v38  ;;  %17739 = vmatprep.mubr.msk.f32.mxu1 %vm86_vm0, %v21384_v36  ;;  %v17751_v10 = vpop.f32.mrf.mxu0 }
 0x295   :  { %25807 = vst [vmem:[#allocation92_spill] sm:$0xff] %v21386_v20  ;;  %25808 = vst [vmem:[#allocation18_spill] sm:$0xff] %v21388_v28  ;;  %17791 = vmatprep.mubr.msk.f32.mxu0 %vm86_vm0, %v21386_v20  ;;  %v21411_v6 = vld [vmem:[#allocation3 + $0x171] sm:$0xff]  ;;  %v21420_v13 = vadd.f32 %v17751_v10, %v17699_v24  ;;  %v21425_v14 = vld [vmem:[#allocation3 + $0x1a] sm:$0xff] }
 0x296   :  { %v21401_v16 = vld [vmem:[#allocation3 + $0x169] sm:$0xff]  ;;  %25812 = vst [vmem:[#allocation49_spill] sm:$0xff] %v21411_v6  ;;  %v5441_v38 = vld [vmem:[#allocation10 + $0x40] sm:$0xff] }
 0x297   :  { %17740 = vmatmul.mubr.msk.f32.gmra.mxu1 %vm86_vm0, %v21395_v25  ;;  %25809 = vst [vmem:[#allocation19_spill] sm:$0xff] %v21401_v16  ;;  %v21403_v39 = vld [vmem:[#allocation3 + $0x168] sm:$0xff]  ;;  %v21405_v33 = vld [vmem:[#allocation3 + $0x170] sm:$0xff]  ;;  %25813 = vst [vmem:[#allocation48_spill] sm:$0xff] %v21420_v13 }
 0x298   :  { %17792 = vmatmul.mubr.msk.f32.gmra.mxu0 %vm86_vm0, %v21388_v28  ;;  %25810 = vst [vmem:[#allocation23_spill] sm:$0xff] %v21403_v39  ;;  %25811 = vst [vmem:[#allocation22_spill] sm:$0xff] %v21405_v33  ;;  %17742 = vmatprep.mubr.msk.f32.mxu1 %vm86_vm0, %v21401_v16  ;;  %v25814_v16 = vld [vmem:[#allocation88_spill] sm:$0xff]  ;;  %v21505_v24 = vld [vmem:[#allocation3 + $0xaa] sm:$0xff] }
 0x299   :  { %17794 = vmatprep.mubr.msk.f32.mxu0 %vm86_vm0, %v21403_v39  ;;  %v21511_v10 = vld [vmem:[#allocation3 + $0xb2] sm:$0xff]  ;;  %v21529_v13 = vld [vmem:[#allocation3 + $0xda] sm:$0xff] }
 0x29b   :  { %17743 = vmatmul.mubr.msk.f32.gmra.mxu1 %vm86_vm0, %v21411_v6  ;;  %v5829_v6 = vld [vmem:[#allocation10 + $0x50] sm:$0xff] }
 0x29c   :  { %17795 = vmatmul.mubr.msk.f32.gmra.mxu0 %vm86_vm0, %v21405_v33  ;;  %17801 = vmatprep.mubr.msk.f32.mxu1 %vm86_vm0, %v4632_v32  ;;  %v21433_v32 = vld [vmem:[#allocation3 + $0x22] sm:$0xff] }
 0x29d   :  { %17853 = vmatprep.mubr.msk.f32.mxu0 %vm86_vm0, %v21014_v12  ;;  %v25815_v12 = vld [vmem:[#allocation90_spill] sm:$0xff] }
 0x29f   :  { %17802 = vmatmul.mubr.msk.f32.vlgmr.msra.gmra.mxu1 %vm86_vm0, %v4633_v59  ;;  %v21443_v59 = vld [vmem:[#allocation10 + $0x78] sm:$0xff] }
 0x2a0   :  { %17854 = vmatmul.mubr.msk.f32.vlgmr.msra.gmra.mxu0 %vm86_vm0, %v21016_v55  ;;  %17902 = vmatpush3.msra.mxu1 %v25814_v16  ;;  %v21439_v55 = vld [vmem:[#allocation3 + $0x32] sm:$0xff]  ;;  %v21441_v16 = vld [vmem:[#allocation10 + $0x68] sm:$0xff] }
 0x2a1   :  { %17804 = vmatprep.mubr.msk.f32.mxu1 %vm86_vm0, %v21425_v14  ;;  %17856 = vmatprep.mubr.msk.f32.mxu0 %vm86_vm0, %v21048_v45  ;;  %v21449_v45 = vld [vmem:[#allocation3 + $0x3a] sm:$0xff] }
 0x2a2   :  { %17954 = vmatpush3.msra.mxu0 %v25815_v12  ;;  %17903 = vmatprep.subr.mxu1 %v5441_v38  ;;  %v21523_v12 = vld [vmem:[#allocation3 + $0xca] sm:$0xff] }
 0x2a3   :  { %17955 = vmatprep.subr.mxu0 %v5829_v6  ;;  %17805 = vmatmul.mubr.msk.f32.gmra.mxu1 %vm86_vm0, %v21433_v32 }
 0x2a4   :  { %17857 = vmatmul.mubr.msk.f32.gmra.mxu0 %vm86_vm0, %v21050_v40  ;;  %17807 = vmatprep.mubr.msk.f32.mxu1 %vm86_vm0, %v21439_v55  ;;  %v21457_v40 = vld [vmem:[#allocation3 + $0x4a] sm:$0xff] }
 0x2a5   :  { %17859 = vmatprep.mubr.msk.f32.mxu0 %vm86_vm0, %v21081_v41  ;;  %17904 = vmatpush3.msra.mxu1 %v5441_v38  ;;  %v21463_v41 = vld [vmem:[#allocation3 + $0x52] sm:$0xff]  ;;  %v21517_v38 = vld [vmem:[#allocation3 + $0xc2] sm:$0xff] }
 0x2a6   :  { %17956 = vmatpush3.msra.mxu0 %v5829_v6  ;;  %18005 = vmatprep.subr.mxu1 %v21441_v16  ;;  %v21469_v6 = vld [vmem:[#allocation3 + $0x62] sm:$0xff] }
 0x2a7   :  { %18057 = vmatprep.subr.mxu0 %v21443_v59  ;;  %17808 = vmatmul.mubr.msk.f32.gmra.mxu1 %vm86_vm0, %v21449_v45 }
 0x2a8   :  { %17860 = vmatmul.mubr.msk.f32.gmra.mxu0 %vm86_vm0, %v21083_v37  ;;  %17810 = vmatprep.mubr.msk.f32.mxu1 %vm86_vm0, %v21457_v40  ;;  %v21475_v37 = vld [vmem:[#allocation3 + $0x6a] sm:$0xff] }
 0x2a9   :  { %17862 = vmatprep.mubr.msk.f32.mxu0 %vm86_vm0, %v21114_v56  ;;  %v21481_v56 = vld [vmem:[#allocation3 + $0x7a] sm:$0xff] }
 0x2ab   :  { %17811 = vmatmul.mubr.msk.f32.gmra.mxu1 %vm86_vm0, %v21463_v41 }
 0x2ac   :  { %17863 = vmatmul.mubr.msk.f32.gmra.mxu0 %vm86_vm0, %v21116_v49  ;;  %17813 = vmatprep.mubr.msk.f32.mxu1 %vm86_vm0, %v21469_v6  ;;  %v21487_v49 = vld [vmem:[#allocation3 + $0x82] sm:$0xff] }
 0x2ad   :  { %17865 = vmatprep.mubr.msk.f32.mxu0 %vm86_vm0, %v21147_v61  ;;  %v21493_v61 = vld [vmem:[#allocation3 + $0x92] sm:$0xff] }
 0x2af   :  { %17814 = vmatmul.mubr.msk.f32.gmra.mxu1 %vm86_vm0, %v21475_v37 }
 0x2b0   :  { %17866 = vmatmul.mubr.msk.f32.gmra.mxu0 %vm86_vm0, %v21149_v7  ;;  %17816 = vmatprep.mubr.msk.f32.mxu1 %vm86_vm0, %v21481_v56  ;;  %v21499_v7 = vld [vmem:[#allocation3 + $0x9a] sm:$0xff] }
 0x2b1   :  { %17868 = vmatprep.mubr.msk.f32.mxu0 %vm86_vm0, %v21180_v53 }
 0x2b3   :  { %17817 = vmatmul.mubr.msk.f32.gmra.mxu1 %vm86_vm0, %v21487_v49 }
 0x2b4   :  { %17869 = vmatmul.mubr.msk.f32.gmra.mxu0 %vm86_vm0, %v21182_v44  ;;  %17819 = vmatprep.mubr.msk.f32.mxu1 %vm86_vm0, %v21493_v61 }
 0x2b5   :  { %17871 = vmatprep.mubr.msk.f32.mxu0 %vm86_vm0, %v21213_v58  ;;  %v6218_v58 = vld [vmem:[#allocation10 + $0x60] sm:$0xff] }
 0x2b7   :  { %17820 = vmatmul.mubr.msk.f32.gmra.mxu1 %vm86_vm0, %v21499_v7 }
 0x2b8   :  { %17872 = vmatmul.mubr.msk.f32.gmra.mxu0 %vm86_vm0, %v21215_v5  ;;  %17822 = vmatprep.mubr.msk.f32.mxu1 %vm86_vm0, %v21505_v24  ;;  %v291_v5 = vld [vmem:[#allocation4 + $0x100] sm:$0xff] }
 0x2b9   :  { %17874 = vmatprep.mubr.msk.f32.mxu0 %vm86_vm0, %v21246_v57  ;;  %v21603_v57 = vld [vmem:[#allocation3 + $0x180] sm:$0xff]  ;;  %356 = vst.msk [vmem:[#allocation2 + $0x1c9] sm:$0xff] %vm86_vm0, %v291_v5  ;;  %v294_v5 = vld [vmem:[#allocation4 + $0x118] sm:$0xff] }
 0x2ba   :  { %25816 = vst [vmem:[#allocation102_spill] sm:$0xff] %v21603_v57  ;;  %359 = vst.msk [vmem:[#allocation2 + $0x1e9] sm:$0xff] %vm86_vm0, %v294_v5  ;;  %v19120_v5 = vld [vmem:[#allocation3 + $0x48] sm:$0xff] }
 0x2bb   :  { %17823 = vmatmul.mubr.msk.f32.gmra.mxu1 %vm86_vm0, %v21511_v10 }
 0x2bc   :  { %17875 = vmatmul.mubr.msk.f32.gmra.mxu0 %vm86_vm0, %v21248_v50  ;;  %17825 = vmatprep.mubr.msk.f32.mxu1 %vm86_vm0, %v21517_v38  ;;  %v21535_v50 = vld [vmem:[#allocation3 + $0xe2] sm:$0xff] }
 0x2bd   :  { %17877 = vmatprep.mubr.msk.f32.mxu0 %vm86_vm0, %v21275_v54  ;;  %v21541_v54 = vld [vmem:[#allocation3 + $0xf2] sm:$0xff] }
 0x2bf   :  { %17826 = vmatmul.mubr.msk.f32.gmra.mxu1 %vm86_vm0, %v21523_v12 }
 0x2c0   :  { %17878 = vmatmul.mubr.msk.f32.gmra.mxu0 %vm86_vm0, %v21277_v47  ;;  %17828 = vmatprep.mubr.msk.f32.mxu1 %vm86_vm0, %v21529_v13  ;;  %v21547_v47 = vld [vmem:[#allocation3 + $0xfa] sm:$0xff] }
 0x2c1   :  { %17880 = vmatprep.mubr.msk.f32.mxu0 %vm86_vm0, %v21303_v0  ;;  %v21553_v0 = vld [vmem:[#allocation3 + $0x10a] sm:$0xff] }
 0x2c3   :  { %17829 = vmatmul.mubr.msk.f32.gmra.mxu1 %vm86_vm0, %v21535_v50 }
 0x2c4   :  { %17881 = vmatmul.mubr.msk.f32.gmra.mxu0 %vm86_vm0, %v21305_v35  ;;  %17831 = vmatprep.mubr.msk.f32.mxu1 %vm86_vm0, %v21541_v54  ;;  %v21559_v35 = vld [vmem:[#allocation3 + $0x112] sm:$0xff] }
 0x2c5   :  { %17883 = vmatprep.mubr.msk.f32.mxu0 %vm86_vm0, %v21326_v3  ;;  %v21565_v3 = vld [vmem:[#allocation3 + $0x122] sm:$0xff] }
 0x2c7   :  { %17832 = vmatmul.mubr.msk.f32.gmra.mxu1 %vm86_vm0, %v21547_v47 }
 0x2c8   :  { %17884 = vmatmul.mubr.msk.f32.gmra.mxu0 %vm86_vm0, %v21328_v30  ;;  %17834 = vmatprep.mubr.msk.f32.mxu1 %vm86_vm0, %v21553_v0  ;;  %v21571_v30 = vld [vmem:[#allocation3 + $0x12a] sm:$0xff] }
 0x2c9   :  { %17886 = vmatprep.mubr.msk.f32.mxu0 %vm86_vm0, %v21347_v42  ;;  %v21577_v42 = vld [vmem:[#allocation3 + $0x13a] sm:$0xff] }
 0x2cb   :  { %17835 = vmatmul.mubr.msk.f32.gmra.mxu1 %vm86_vm0, %v21559_v35 }
 0x2cc   :  { %17887 = vmatmul.mubr.msk.f32.gmra.mxu0 %vm86_vm0, %v21349_v62  ;;  %17837 = vmatprep.mubr.msk.f32.mxu1 %vm86_vm0, %v21565_v3  ;;  %v21583_v62 = vld [vmem:[#allocation3 + $0x142] sm:$0xff] }
 0x2cd   :  { %17889 = vmatprep.mubr.msk.f32.mxu0 %vm86_vm0, %v21367_v1  ;;  %v21589_v1 = vld [vmem:[#allocation3 + $0x152] sm:$0xff] }
 0x2cf   :  { %17838 = vmatmul.mubr.msk.f32.gmra.mxu1 %vm86_vm0, %v21571_v30 }
 0x2d0   :  { %17890 = vmatmul.mubr.msk.f32.gmra.mxu0 %vm86_vm0, %v21369_v18  ;;  %17840 = vmatprep.mubr.msk.f32.mxu1 %vm86_vm0, %v21577_v42  ;;  %v21595_v18 = vld [vmem:[#allocation3 + $0x15a] sm:$0xff] }
 0x2d1   :  { %17892 = vmatprep.mubr.msk.f32.mxu0 %vm86_vm0, %v21386_v20  ;;  %v21601_v20 = vld [vmem:[#allocation3 + $0x16a] sm:$0xff] }
 0x2d3   :  { %17841 = vmatmul.mubr.msk.f32.gmra.mxu1 %vm86_vm0, %v21583_v62 }
 0x2d4   :  { %17893 = vmatmul.mubr.msk.f32.gmra.mxu0 %vm86_vm0, %v21388_v28  ;;  %17843 = vmatprep.mubr.msk.f32.mxu1 %vm86_vm0, %v21589_v1  ;;  %v21609_v28 = vld [vmem:[#allocation3 + $0x172] sm:$0xff] }
 0x2d5   :  { %17895 = vmatprep.mubr.msk.f32.mxu0 %vm86_vm0, %v21403_v39  ;;  %v21611_v39 = vld [vmem:[#allocation3 + $0x188] sm:$0xff] }
 0x2d6   :  { %25817 = vst [vmem:[#allocation94_spill] sm:$0xff] %v21611_v39 }
 0x2d7   :  { %17844 = vmatmul.mubr.msk.f32.gmra.mxu1 %vm86_vm0, %v21595_v18 }
 0x2d8   :  { %17896 = vmatmul.mubr.msk.f32.gmra.mxu0 %vm86_vm0, %v21405_v33  ;;  %17846 = vmatprep.mubr.msk.f32.mxu1 %vm86_vm0, %v21601_v20  ;;  %v292_v33 = vld [vmem:[#allocation4 + $0x108] sm:$0xff] }
 0x2d9   :  { %17898 = vmatprep.mubr.msk.f32.mxu0 %vm86_vm0, %v21603_v57  ;;  %357 = vst.msk [vmem:[#allocation2 + $0x1d1] sm:$0xff] %vm86_vm0, %v292_v33  ;;  %v293_v57 = vld [vmem:[#allocation4 + $0x110] sm:$0xff] }
 0x2da   :  { %358 = vst.msk [vmem:[#allocation2 + $0x1e1] sm:$0xff] %vm86_vm0, %v293_v57  ;;  %v21641_v57 = vld [vmem:[#allocation7 + $0x18] sm:$0xff]  ;;  %v305_v33 = vld [vmem:[#allocation4 + $0x170] sm:$0xff] }
 0x2db   :  { %17847 = vmatmul.mubr.msk.f32.gmra.mxu1 %vm86_vm0, %v21609_v28  ;;  %370 = vst.msk [vmem:[#allocation2 + $0x271] sm:$0xff] %vm86_vm0, %v305_v33 }
 0x2dc   :  { %17899 = vmatmul.mubr.msk.f32.gmra.mxu0 %vm86_vm0, %v21611_v39  ;;  %17905 = vmatprep.mubr.msk.f32.mxu1 %vm86_vm0, %v21012_v43  ;;  %v6606_v39 = vld [vmem:[#allocation10 + $0x70] sm:$0xff] }
 0x2dd   :  { %17957 = vmatprep.mubr.msk.f32.mxu0 %vm86_vm0, %v21425_v14  ;;  %v295_v43 = vld [vmem:[#allocation4 + $0x120] sm:$0xff] }
 0x2de   :  { %360 = vst.msk [vmem:[#allocation2 + $0x1f9] sm:$0xff] %vm86_vm0, %v295_v43  ;;  %v25819_v14 = vld [vmem:[#allocation93_spill] sm:$0xff]  ;;  %v21791_v43 = vpop.f32.mrf.mxu1 }
 0x2df   :  { %17906 = vmatmul.mubr.msk.f32.vlgmr.msra.gmra.mxu1 %vm86_vm0, %v21025_v63  ;;  %v21639_v63 = vld [vmem:[#allocation10 + $0x88] sm:$0xff] }
 0x2e0   :  { %17958 = vmatmul.mubr.msk.f32.vlgmr.msra.gmra.mxu0 %vm86_vm0, %v21433_v32  ;;  %18006 = vmatpush3.msra.mxu1 %v21441_v16  ;;  %v306_v32 = vld [vmem:[#allocation4 + $0x178] sm:$0xff]  ;;  %v307_v16 = vld [vmem:[#allocation4 + $0x180] sm:$0xff] }
 0x2e1   :  { %17908 = vmatprep.mubr.msk.f32.mxu1 %vm86_vm0, %v21046_v21  ;;  %17960 = vmatprep.mubr.msk.f32.mxu0 %vm86_vm0, %v21439_v55  ;;  %v296_v21 = vld [vmem:[#allocation4 + $0x128] sm:$0xff]  ;;  %371 = vst.msk [vmem:[#allocation2 + $0x279] sm:$0xff] %vm86_vm0, %v306_v32  ;;  %372 = vst.msk [vmem:[#allocation2 + $0x289] sm:$0xff] %vm86_vm0, %v307_v16 }
 0x2e2   :  { %18058 = vmatpush3.msra.mxu0 %v21443_v59  ;;  %18007 = vmatprep.subr.mxu1 %v6218_v58  ;;  %361 = vst.msk [vmem:[#allocation2 + $0x201] sm:$0xff] %vm86_vm0, %v296_v21  ;;  %v25820_v59 = vld [vmem:[#allocation21_spill] sm:$0xff]  ;;  %v21793_v21 = vpop.f32.mrf.mxu0 }
 0x2e3   :  { %18059 = vmatprep.subr.mxu0 %v6606_v39  ;;  %17909 = vmatmul.mubr.msk.f32.gmra.mxu1 %vm86_vm0, %v21059_v22  ;;  %v297_v22 = vld [vmem:[#allocation4 + $0x130] sm:$0xff] }
 0x2e4   :  { %17961 = vmatmul.mubr.msk.f32.gmra.mxu0 %vm86_vm0, %v21449_v45  ;;  %17911 = vmatprep.mubr.msk.f32.mxu1 %vm86_vm0, %v21079_v11  ;;  %362 = vst.msk [vmem:[#allocation2 + $0x211] sm:$0xff] %vm86_vm0, %v297_v22  ;;  %v298_v11 = vld [vmem:[#allocation4 + $0x138] sm:$0xff]  ;;  %v19121_v22 = vld [vmem:[#allocation3 + $0x49] sm:$0xff] }
 0x2e5   :  { %17963 = vmatprep.mubr.msk.f32.mxu0 %vm86_vm0, %v21457_v40  ;;  %18008 = vmatpush3.msra.mxu1 %v6218_v58  ;;  %363 = vst.msk [vmem:[#allocation2 + $0x219] sm:$0xff] %vm86_vm0, %v298_v11  ;;  %v299_v58 = vld [vmem:[#allocation4 + $0x140] sm:$0xff] }
 0x2e6   :  { %18060 = vmatpush3.msra.mxu0 %v6606_v39  ;;  %18109 = vmatprep.subr.mxu1 %v21639_v63  ;;  %364 = vst.msk [vmem:[#allocation2 + $0x229] sm:$0xff] %vm86_vm0, %v299_v58  ;;  %v25818_v39 = vld [vmem:[#allocation40_spill] sm:$0xff] }
 0x2e7   :  { %18161 = vmatprep.subr.mxu0 %v21641_v57  ;;  %17912 = vmatmul.mubr.msk.f32.gmra.mxu1 %vm86_vm0, %v21092_v4  ;;  %v300_v4 = vld [vmem:[#allocation4 + $0x148] sm:$0xff] }
 0x2e8   :  { %17964 = vmatmul.mubr.msk.f32.gmra.mxu0 %vm86_vm0, %v21463_v41  ;;  %17914 = vmatprep.mubr.msk.f32.mxu1 %vm86_vm0, %v21112_v17  ;;  %365 = vst.msk [vmem:[#allocation2 + $0x231] sm:$0xff] %vm86_vm0, %v300_v4  ;;  %v301_v17 = vld [vmem:[#allocation4 + $0x150] sm:$0xff]  ;;  %v308_v41 = vld [vmem:[#allocation4 + $0x188] sm:$0xff] }
 0x2e9   :  { %17966 = vmatprep.mubr.msk.f32.mxu0 %vm86_vm0, %v21469_v6  ;;  %366 = vst.msk [vmem:[#allocation2 + $0x241] sm:$0xff] %vm86_vm0, %v301_v17  ;;  %373 = vst.msk [vmem:[#allocation2 + $0x291] sm:$0xff] %vm86_vm0, %v308_v41  ;;  %v309_v6 = vld [vmem:[#allocation4 + $0x190] sm:$0xff]  ;;  %v21799_v17 = vld [vmem:[#allocation7 + $0x8] sm:$0xff] }
 0x2ea   :  { %374 = vst.msk [vmem:[#allocation2 + $0x2a1] sm:$0xff] %vm86_vm0, %v309_v6  ;;  %v19122_v4 = vld [vmem:[#allocation3 + $0x50] sm:$0xff] }
 0x2eb   :  { %17915 = vmatmul.mubr.msk.f32.gmra.mxu1 %vm86_vm0, %v21125_v60  ;;  %v302_v60 = vld [vmem:[#allocation4 + $0x158] sm:$0xff] }
 0x2ec   :  { %17967 = vmatmul.mubr.msk.f32.gmra.mxu0 %vm86_vm0, %v21475_v37  ;;  %17917 = vmatprep.mubr.msk.f32.mxu1 %vm86_vm0, %v21145_v19  ;;  %367 = vst.msk [vmem:[#allocation2 + $0x249] sm:$0xff] %vm86_vm0, %v302_v60  ;;  %v303_v19 = vld [vmem:[#allocation4 + $0x160] sm:$0xff]  ;;  %v310_v37 = vld [vmem:[#allocation4 + $0x198] sm:$0xff]  ;;  %v21801_v60 = vld [vmem:[#allocation7 + $0x28] sm:$0xff] }
 0x2ed   :  { %17969 = vmatprep.mubr.msk.f32.mxu0 %vm86_vm0, %v21481_v56  ;;  %368 = vst.msk [vmem:[#allocation2 + $0x259] sm:$0xff] %vm86_vm0, %v303_v19  ;;  %375 = vst.msk [vmem:[#allocation2 + $0x2a9] sm:$0xff] %vm86_vm0, %v310_v37  ;;  %v25821_v56 = vld [vmem:[#allocation19_spill] sm:$0xff]  ;;  %v19126_v37 = vld [vmem:[#allocation3 + $0x68] sm:$0xff] }
 0x2ef   :  { %17918 = vmatmul.mubr.msk.f32.gmra.mxu1 %vm86_vm0, %v21158_v52  ;;  %v304_v52 = vld [vmem:[#allocation4 + $0x168] sm:$0xff] }
 0x2f0   :  { %17970 = vmatmul.mubr.msk.f32.gmra.mxu0 %vm86_vm0, %v21487_v49  ;;  %17920 = vmatprep.mubr.msk.f32.mxu1 %vm86_vm0, %v21178_v26  ;;  %369 = vst.msk [vmem:[#allocation2 + $0x261] sm:$0xff] %vm86_vm0, %v304_v52  ;;  %v21775_v49 = vld [vmem:[#allocation3 + $0x181] sm:$0xff] }
 0x2f1   :  { %17972 = vmatprep.mubr.msk.f32.mxu0 %vm86_vm0, %v21493_v61  ;;  %v21780_v61 = vld [vmem:[#allocation3 + $0x189] sm:$0xff]  ;;  %v19124_v52 = vld [vmem:[#allocation3 + $0x60] sm:$0xff] }
 0x2f3   :  { %17921 = vmatmul.mubr.msk.f32.gmra.mxu1 %vm86_vm0, %v21191_v23 }
 0x2f4   :  { %17973 = vmatmul.mubr.msk.f32.gmra.mxu0 %vm86_vm0, %v21499_v7  ;;  %17923 = vmatprep.mubr.msk.f32.mxu1 %vm86_vm0, %v25818_v39  ;;  %v5827_v7 = vld [vmem:[#allocation3 + $0x18a] sm:$0xff] }
 0x2f5   :  { %17975 = vmatprep.mubr.msk.f32.mxu0 %vm86_vm0, %v21505_v24  ;;  %v19118_v24 = vld [vmem:[#allocation3 + $0x38] sm:$0xff] }
 0x2f7   :  { %17924 = vmatmul.mubr.msk.f32.gmra.mxu1 %vm86_vm0, %v25819_v14 }
 0x2f8   :  { %17976 = vmatmul.mubr.msk.f32.gmra.mxu0 %vm86_vm0, %v21511_v10  ;;  %17926 = vmatprep.mubr.msk.f32.mxu1 %vm86_vm0, %v21244_v31  ;;  %v19119_v10 = vld [vmem:[#allocation3 + $0x39] sm:$0xff] }
 0x2f9   :  { %17978 = vmatprep.mubr.msk.f32.mxu0 %vm86_vm0, %v21517_v38  ;;  %v6994_v38 = vld [vmem:[#allocation10 + $0x80] sm:$0xff] }
 0x2fb   :  { %17927 = vmatmul.mubr.msk.f32.gmra.mxu1 %vm86_vm0, %v25820_v59 }
 0x2fc   :  { %17979 = vmatmul.mubr.msk.f32.gmra.mxu0 %vm86_vm0, %v21523_v12  ;;  %17929 = vmatprep.mubr.msk.f32.mxu1 %vm86_vm0, %v21273_v9  ;;  %v7687_v12 = vld [vmem:[#allocation7 + $0x10] sm:$0xff] }
 0x2fd   :  { %17981 = vmatprep.mubr.msk.f32.mxu0 %vm86_vm0, %v21529_v13  ;;  %v311_v13 = vld [vmem:[#allocation4 + $0x1a0] sm:$0xff] }
 0x2fe   :  { %376 = vst.msk [vmem:[#allocation2 + $0x2b9] sm:$0xff] %vm86_vm0, %v311_v13  ;;  %v19127_v13 = vld [vmem:[#allocation3 + $0x69] sm:$0xff] }
 0x2ff   :  { %17930 = vmatmul.mubr.msk.f32.gmra.mxu1 %vm86_vm0, %v21286_v15 }
 0x300   :  { %17982 = vmatmul.mubr.msk.f32.gmra.mxu0 %vm86_vm0, %v21535_v50  ;;  %17932 = vmatprep.mubr.msk.f32.mxu1 %vm86_vm0, %v21301_v51  ;;  %v312_v50 = vld [vmem:[#allocation4 + $0x1a8] sm:$0xff] }
 0x301   :  { %17984 = vmatprep.mubr.msk.f32.mxu0 %vm86_vm0, %v21541_v54  ;;  %377 = vst.msk [vmem:[#allocation2 + $0x2c1] sm:$0xff] %vm86_vm0, %v312_v50  ;;  %v313_v54 = vld [vmem:[#allocation4 + $0x1b0] sm:$0xff] }
 0x302   :  { %378 = vst.msk [vmem:[#allocation2 + $0x2d1] sm:$0xff] %vm86_vm0, %v313_v54  ;;  %v19128_v54 = vld [vmem:[#allocation3 + $0x78] sm:$0xff] }
 0x303   :  { %17933 = vmatmul.mubr.msk.f32.gmra.mxu1 %vm86_vm0, %v21314_v8 }
 0x304   :  { %17985 = vmatmul.mubr.msk.f32.gmra.mxu0 %vm86_vm0, %v21547_v47  ;;  %17935 = vmatprep.mubr.msk.f32.mxu1 %vm86_vm0, %v21324_v27  ;;  %v314_v47 = vld [vmem:[#allocation4 + $0x1b8] sm:$0xff] }
 0x305   :  { %17987 = vmatprep.mubr.msk.f32.mxu0 %vm86_vm0, %v21553_v0  ;;  %379 = vst.msk [vmem:[#allocation2 + $0x2d9] sm:$0xff] %vm86_vm0, %v314_v47  ;;  %v315_v0 = vld [vmem:[#allocation4 + $0x1c0] sm:$0xff] }
 0x306   :  { %380 = vst.msk [vmem:[#allocation2 + $0x2e9] sm:$0xff] %vm86_vm0, %v315_v0  ;;  %v19129_v47 = vld [vmem:[#allocation3 + $0x79] sm:$0xff] }
 0x307   :  { %17936 = vmatmul.mubr.msk.f32.gmra.mxu1 %vm86_vm0, %v21337_v46 }
 0x308   :  { %17988 = vmatmul.mubr.msk.f32.gmra.mxu0 %vm86_vm0, %v21559_v35  ;;  %17938 = vmatprep.mubr.msk.f32.mxu1 %vm86_vm0, %v21345_v48  ;;  %v316_v35 = vld [vmem:[#allocation4 + $0x1c8] sm:$0xff] }
 0x309   :  { %17990 = vmatprep.mubr.msk.f32.mxu0 %vm86_vm0, %v21565_v3  ;;  %381 = vst.msk [vmem:[#allocation2 + $0x2f1] sm:$0xff] %vm86_vm0, %v316_v35  ;;  %v317_v3 = vld [vmem:[#allocation4 + $0x1d0] sm:$0xff] }
 0x30a   :  { %382 = vst.msk [vmem:[#allocation2 + $0x301] sm:$0xff] %vm86_vm0, %v317_v3 }
 0x30b   :  { %17939 = vmatmul.mubr.msk.f32.gmra.mxu1 %vm86_vm0, %v21357_v2 }
 0x30c   :  { %17991 = vmatmul.mubr.msk.f32.gmra.mxu0 %vm86_vm0, %v21571_v30  ;;  %17941 = vmatprep.mubr.msk.f32.mxu1 %vm86_vm0, %v21365_v29  ;;  %v318_v30 = vld [vmem:[#allocation4 + $0x1d8] sm:$0xff] }
 0x30d   :  { %17993 = vmatprep.mubr.msk.f32.mxu0 %vm86_vm0, %v21577_v42  ;;  %383 = vst.msk [vmem:[#allocation2 + $0x309] sm:$0xff] %vm86_vm0, %v318_v30  ;;  %v319_v42 = vld [vmem:[#allocation4 + $0x1e0] sm:$0xff] }
 0x30e   :  { %384 = vst.msk [vmem:[#allocation2 + $0x319] sm:$0xff] %vm86_vm0, %v319_v42 }
 0x30f   :  { %17942 = vmatmul.mubr.msk.f32.gmra.mxu1 %vm86_vm0, %v21377_v34 }
 0x310   :  { %17994 = vmatmul.mubr.msk.f32.gmra.mxu0 %vm86_vm0, %v21583_v62  ;;  %17944 = vmatprep.mubr.msk.f32.mxu1 %vm86_vm0, %v21384_v36  ;;  %v320_v62 = vld [vmem:[#allocation4 + $0x1e8] sm:$0xff] }
 0x311   :  { %17996 = vmatprep.mubr.msk.f32.mxu0 %vm86_vm0, %v21589_v1  ;;  %385 = vst.msk [vmem:[#allocation2 + $0x321] sm:$0xff] %vm86_vm0, %v320_v62  ;;  %v25822_v1 = vld [vmem:[#allocation49_spill] sm:$0xff] }
 0x312   :  { %v19130_v62 = vld [vmem:[#allocation3 + $0x80] sm:$0xff] }
 0x313   :  { %17945 = vmatmul.mubr.msk.f32.gmra.mxu1 %vm86_vm0, %v21395_v25 }
 0x314   :  { %17997 = vmatmul.mubr.msk.f32.gmra.mxu0 %vm86_vm0, %v21595_v18  ;;  %17947 = vmatprep.mubr.msk.f32.mxu1 %vm86_vm0, %v25821_v56  ;;  %v5826_v18 = vld [vmem:[#allocation3 + $0x182] sm:$0xff] }
 0x315   :  { %17999 = vmatprep.mubr.msk.f32.mxu0 %vm86_vm0, %v21601_v20  ;;  %v19116_v20 = vld [vmem:[#allocation3 + $0x30] sm:$0xff] }
 0x317   :  { %17948 = vmatmul.mubr.msk.f32.gmra.mxu1 %vm86_vm0, %v25822_v1 }
 0x318   :  { %18000 = vmatmul.mubr.msk.f32.gmra.mxu0 %vm86_vm0, %v21609_v28  ;;  %17950 = vmatprep.mubr.msk.f32.mxu1 %vm86_vm0, %v21775_v49  ;;  %v19117_v28 = vld [vmem:[#allocation3 + $0x31] sm:$0xff] }
 0x319   :  { %18002 = vmatprep.mubr.msk.f32.mxu0 %vm86_vm0, %v5826_v18  ;;  %v19131_v18 = vld [vmem:[#allocation3 + $0x81] sm:$0xff] }
 0x31b   :  { %17951 = vmatmul.mubr.msk.f32.gmra.mxu1 %vm86_vm0, %v21780_v61 }
 0x31c   :  { %18003 = vmatmul.mubr.msk.f32.gmra.mxu0 %vm86_vm0, %v5827_v7  ;;  %18009 = vmatprep.mubr.msk.f32.mxu1 %vm86_vm0, %v19116_v20 }
 0x31d   :  { %18061 = vmatprep.mubr.msk.f32.mxu0 %vm86_vm0, %v19117_v28 }
 0x31f   :  { %18010 = vmatmul.mubr.msk.f32.vlgmr.msra.gmra.mxu1 %vm86_vm0, %v19118_v24  ;;  %v17702_v11 = vpop.f32.mrf.mxu1 }
 0x320   :  { %18062 = vmatmul.mubr.msk.f32.vlgmr.msra.gmra.mxu0 %vm86_vm0, %v19119_v10  ;;  %18110 = vmatpush3.msra.mxu1 %v21639_v63  ;;  %v17754_v58 = vpop.f32.mrf.mxu0  ;;  %v19123_v63 = vld [vmem:[#allocation3 + $0x51] sm:$0xff] }
 0x321   :  { %18012 = vmatprep.mubr.msk.f32.mxu1 %vm86_vm0, %v19120_v5  ;;  %18064 = vmatprep.mubr.msk.f32.mxu0 %vm86_vm0, %v19121_v22  ;;  %v21803_v19 = vadd.f32 %v17754_v58, %v17702_v11  ;;  %v4162_v33 = vpop.f32.mrf.mxu1  ;;  %v25823_v5 = vld [vmem:[#allocation46_spill] sm:$0xff] }
 0x322   :  { %18162 = vmatpush3.msra.mxu0 %v21641_v57  ;;  %18111 = vmatprep.subr.mxu1 %v6994_v38  ;;  %v19125_v57 = vld [vmem:[#allocation3 + $0x61] sm:$0xff]  ;;  %v4483_v32 = vpop.f32.mrf.mxu0 }
 0x323   :  { %18163 = vmatprep.subr.mxu0 %v7687_v12  ;;  %18013 = vmatmul.mubr.msk.f32.gmra.mxu1 %vm86_vm0, %v19122_v4  ;;  %v21807_v16 = vadd.f32 %v4483_v32, %v4162_v33  ;;  %v17705_v41 = vpop.f32.mrf.mxu1  ;;  %v25824_v4 = vld [vmem:[#allocation89_spill] sm:$0xff]  ;;  %v25826_v32 = vld [vmem:[#allocation43_spill] sm:$0xff] }
 0x324   :  { %18065 = vmatmul.mubr.msk.f32.gmra.mxu0 %vm86_vm0, %v19123_v63  ;;  %18015 = vmatprep.mubr.msk.f32.mxu1 %vm86_vm0, %v19124_v52  ;;  %v17757_v6 = vpop.f32.mrf.mxu0 }
 0x325   :  { %18067 = vmatprep.mubr.msk.f32.mxu0 %vm86_vm0, %v19125_v57  ;;  %18112 = vmatpush3.msra.mxu1 %v6994_v38  ;;  %v21813_v50 = vadd.f32 %v17757_v6, %v17705_v41  ;;  %v4172_v0 = vpop.f32.mrf.mxu1  ;;  %v25827_v41 = vld [vmem:[#allocation20_spill] sm:$0xff] }
 0x326   :  { %18164 = vmatpush3.msra.mxu0 %v7687_v12  ;;  %18213 = vmatprep.subr.mxu1 %v21799_v17  ;;  %v4493_v35 = vpop.f32.mrf.mxu0 }
 0x327   :  { %18265 = vmatprep.subr.mxu0 %v21801_v60  ;;  %18016 = vmatmul.mubr.msk.f32.gmra.mxu1 %vm86_vm0, %v19126_v37  ;;  %v21817_v3 = vadd.f32 %v4493_v35, %v4172_v0  ;;  %v17708_v30 = vpop.f32.mrf.mxu1  ;;  %v25829_v0 = vld [vmem:[#allocation42_spill] sm:$0xff] }
 0x328   :  { %18068 = vmatmul.mubr.msk.f32.gmra.mxu0 %vm86_vm0, %v19127_v13  ;;  %18018 = vmatprep.mubr.msk.f32.mxu1 %vm86_vm0, %v19128_v54  ;;  %v17760_v42 = vpop.f32.mrf.mxu0 }
 0x329   :  { %18070 = vmatprep.mubr.msk.f32.mxu0 %vm86_vm0, %v19129_v47  ;;  %v21821_v7 = vadd.f32 %v17760_v42, %v17708_v30  ;;  %v4182_v20 = vpop.f32.mrf.mxu1  ;;  %v25828_v47 = vld [vmem:[#allocation45_spill] sm:$0xff] }
 0x32a   :  { %v4503_v28 = vpop.f32.mrf.mxu0 }
 0x32b   :  { %18019 = vmatmul.mubr.msk.f32.gmra.mxu1 %vm86_vm0, %v19130_v62  ;;  %v21827_v24 = vadd.f32 %v4503_v28, %v4182_v20  ;;  %v17711_v10 = vpop.f32.mrf.mxu1  ;;  %v25831_v20 = vld [vmem:[#allocation96_spill] sm:$0xff] }
 0x32c   :  { %18071 = vmatmul.mubr.msk.f32.gmra.mxu0 %vm86_vm0, %v19131_v18  ;;  %18021 = vmatprep.mubr.msk.f32.mxu1 %vm86_vm0, %v21180_v53  ;;  %v17763_v38 = vpop.f32.mrf.mxu0  ;;  %v25830_v18 = vld [vmem:[#allocation91_spill] sm:$0xff] }
 0x32d   :  { %18073 = vmatprep.mubr.msk.f32.mxu0 %vm86_vm0, %v21178_v26  ;;  %v21833_v12 = vadd.f32 %v17763_v38, %v17711_v10  ;;  %v4192_v26 = vpop.f32.mrf.mxu1 }
 0x32e   :  { %v4513_v53 = vpop.f32.mrf.mxu0 }
 0x32f   :  { %18022 = vmatmul.mubr.msk.f32.gmra.mxu1 %vm86_vm0, %v21182_v44  ;;  %v21839_v22 = vadd.f32 %v4513_v53, %v4192_v26  ;;  %v25832_v26 = vld [vmem:[#allocation44_spill] sm:$0xff]  ;;  %v25833_v53 = vld [vmem:[#allocation17_spill] sm:$0xff] }
 0x330   :  { %18074 = vmatmul.mubr.msk.f32.gmra.mxu0 %vm86_vm0, %v21191_v23  ;;  %18024 = vmatprep.mubr.msk.f32.mxu1 %vm86_vm0, %v25823_v5  ;;  %v17714_v11 = vpop.f32.mrf.mxu1  ;;  %v25825_v23 = vld [vmem:[#allocation41_spill] sm:$0xff] }
 0x331   :  { %18076 = vmatprep.mubr.msk.f32.mxu0 %vm86_vm0, %v25818_v39  ;;  %v17766_v58 = vpop.f32.mrf.mxu0 }
 0x332   :  { %v21845_v44 = vadd.f32 %v17766_v58, %v17714_v11  ;;  %v4202_v39 = vpop.f32.mrf.mxu1 }
 0x333   :  { %18025 = vmatmul.mubr.msk.f32.gmra.mxu1 %vm86_vm0, %v25824_v4  ;;  %v4523_v63 = vpop.f32.mrf.mxu0 }
 0x334   :  { %18077 = vmatmul.mubr.msk.f32.gmra.mxu0 %vm86_vm0, %v25819_v14  ;;  %18027 = vmatprep.mubr.msk.f32.mxu1 %vm86_vm0, %v25825_v23  ;;  %v21851_v52 = vadd.f32 %v4523_v63, %v4202_v39  ;;  %v17717_v57 = vpop.f32.mrf.mxu1  ;;  %v25834_v39 = vld [vmem:[#allocation47_spill] sm:$0xff]  ;;  %v25835_v63 = vld [vmem:[#allocation50_spill] sm:$0xff] }
 0x335   :  { %18079 = vmatprep.mubr.msk.f32.mxu0 %vm86_vm0, %v21244_v31  ;;  %v17769_v33 = vpop.f32.mrf.mxu0 }
 0x336   :  { %v21857_v14 = vadd.f32 %v17769_v33, %v17717_v57  ;;  %v4212_v31 = vpop.f32.mrf.mxu1 }
 0x337   :  { %18028 = vmatmul.mubr.msk.f32.gmra.mxu1 %vm86_vm0, %v25826_v32  ;;  %v4533_v6 = vpop.f32.mrf.mxu0 }
 0x338   :  { %18080 = vmatmul.mubr.msk.f32.gmra.mxu0 %vm86_vm0, %v25820_v59  ;;  %18030 = vmatprep.mubr.msk.f32.mxu1 %vm86_vm0, %v25827_v41  ;;  %v21863_v37 = vadd.f32 %v4533_v6, %v4212_v31  ;;  %v17720_v13 = vpop.f32.mrf.mxu1  ;;  %v25836_v31 = vld [vmem:[#allocation99_spill] sm:$0xff]  ;;  %v25837_v6 = vld [vmem:[#allocation92_spill] sm:$0xff] }
 0x339   :  { %18082 = vmatprep.mubr.msk.f32.mxu0 %vm86_vm0, %v21273_v9  ;;  %v17772_v54 = vpop.f32.mrf.mxu0 }
 0x33a   :  { %v21869_v59 = vadd.f32 %v17772_v54, %v17720_v13  ;;  %v4222_v9 = vpop.f32.mrf.mxu1 }
 0x33b   :  { %18031 = vmatmul.mubr.msk.f32.gmra.mxu1 %vm86_vm0, %v25828_v47  ;;  %v4543_v35 = vpop.f32.mrf.mxu0 }
 0x33c   :  { %18083 = vmatmul.mubr.msk.f32.gmra.mxu0 %vm86_vm0, %v21286_v15  ;;  %18033 = vmatprep.mubr.msk.f32.mxu1 %vm86_vm0, %v25829_v0  ;;  %v21875_v30 = vadd.f32 %v4543_v35, %v4222_v9  ;;  %v25838_v9 = vld [vmem:[#allocation18_spill] sm:$0xff]  ;;  %v25839_v35 = vld [vmem:[#allocation23_spill] sm:$0xff] }
 0x33d   :  { %18085 = vmatprep.mubr.msk.f32.mxu0 %vm86_vm0, %v21301_v51  ;;  %v17723_v42 = vpop.f32.mrf.mxu1 }
 0x33e   :  { %v17775_v62 = vpop.f32.mrf.mxu0 }
 0x33f   :  { %18034 = vmatmul.mubr.msk.f32.gmra.mxu1 %vm86_vm0, %v25830_v18  ;;  %v21881_v15 = vadd.f32 %v17775_v62, %v17723_v42  ;;  %v4232_v51 = vpop.f32.mrf.mxu1 }
 0x340   :  { %18086 = vmatmul.mubr.msk.f32.gmra.mxu0 %vm86_vm0, %v21314_v8  ;;  %18036 = vmatprep.mubr.msk.f32.mxu1 %vm86_vm0, %v25831_v20  ;;  %v4553_v28 = vpop.f32.mrf.mxu0 }
 0x341   :  { %18088 = vmatprep.mubr.msk.f32.mxu0 %vm86_vm0, %v21324_v27  ;;  %v21887_v10 = vadd.f32 %v4553_v28, %v4232_v51  ;;  %v17726_v38 = vpop.f32.mrf.mxu1  ;;  %v25840_v51 = vld [vmem:[#allocation22_spill] sm:$0xff] }
 0x342   :  { %v17778_v5 = vpop.f32.mrf.mxu0  ;;  %v25841_v28 = vld [vmem:[#allocation102_spill] sm:$0xff] }
 0x343   :  { %18037 = vmatmul.mubr.msk.f32.gmra.mxu1 %vm86_vm0, %v25832_v26  ;;  %v21893_v8 = vadd.f32 %v17778_v5, %v17726_v38  ;;  %v4242_v27 = vpop.f32.mrf.mxu1  ;;  %v6215_v5 = vld [vmem:[#allocation3 + $0x198] sm:$0xff] }
 0x344   :  { %18089 = vmatmul.mubr.msk.f32.gmra.mxu0 %vm86_vm0, %v21337_v46  ;;  %18039 = vmatprep.mubr.msk.f32.mxu1 %vm86_vm0, %v25833_v53  ;;  %v4563_v11 = vpop.f32.mrf.mxu0  ;;  %v6603_v26 = vld [vmem:[#allocation3 + $0x199] sm:$0xff] }
 0x345   :  { %18091 = vmatprep.mubr.msk.f32.mxu0 %vm86_vm0, %v21345_v48  ;;  %v21899_v58 = vadd.f32 %v4563_v11, %v4242_v27  ;;  %v17729_v4 = vpop.f32.mrf.mxu1 }
 0x346   :  { %v17781_v23 = vpop.f32.mrf.mxu0 }
 0x347   :  { %18040 = vmatmul.mubr.msk.f32.gmra.mxu1 %vm86_vm0, %v25834_v39  ;;  %v21905_v46 = vadd.f32 %v17781_v23, %v17729_v4  ;;  %v4252_v48 = vpop.f32.mrf.mxu1  ;;  %v25842_v4 = vld [vmem:[#allocation94_spill] sm:$0xff]  ;;  %v6604_v23 = vld [vmem:[#allocation3 + $0x1a1] sm:$0xff] }
 0x348   :  { %18092 = vmatmul.mubr.msk.f32.gmra.mxu0 %vm86_vm0, %v21357_v2  ;;  %18042 = vmatprep.mubr.msk.f32.mxu1 %vm86_vm0, %v25835_v63  ;;  %v4573_v57 = vpop.f32.mrf.mxu0 }
 0x349   :  { %18094 = vmatprep.mubr.msk.f32.mxu0 %vm86_vm0, %v21365_v29  ;;  %v21911_v33 = vadd.f32 %v4573_v57, %v4252_v48  ;;  %v17732_v32 = vpop.f32.mrf.mxu1  ;;  %v7655_v48 = vld [vmem:[#allocation2 + $0x1b1] sm:$0xff] }
 0x34a   :  { %v17784_v41 = vpop.f32.mrf.mxu0 }
 0x34b   :  { %18043 = vmatmul.mubr.msk.f32.gmra.mxu1 %vm86_vm0, %v25836_v31  ;;  %v21917_v2 = vadd.f32 %v17784_v41, %v17732_v32  ;;  %v4262_v29 = vpop.f32.mrf.mxu1  ;;  %v7656_v31 = vld [vmem:[#allocation2 + $0x1b9] sm:$0xff] }
 0x34c   :  { %18095 = vmatmul.mubr.msk.f32.gmra.mxu0 %vm86_vm0, %v21377_v34  ;;  %18045 = vmatprep.mubr.msk.f32.mxu1 %vm86_vm0, %v25837_v6  ;;  %v4583_v13 = vpop.f32.mrf.mxu0 }
 0x34d   :  { %18097 = vmatprep.mubr.msk.f32.mxu0 %vm86_vm0, %v21384_v36  ;;  %v21923_v54 = vadd.f32 %v4583_v13, %v4262_v29 }
 0x34e   :  { %v17735_v47 = vpop.f32.mrf.mxu1 }
 0x34f   :  { %v17787_v0 = vpop.f32.mrf.mxu0  ;;  %18046 = vmatmul.mubr.msk.f32.gmra.mxu1 %vm86_vm0, %v25838_v9 }
 0x350   :  { %18098 = vmatmul.mubr.msk.f32.gmra.mxu0 %vm86_vm0, %v21395_v25  ;;  %v21929_v34 = vadd.f32 %v17787_v0, %v17735_v47  ;;  %18048 = vmatprep.mubr.msk.f32.mxu1 %vm86_vm0, %v25839_v35  ;;  %v4272_v36 = vpop.f32.mrf.mxu1  ;;  %v7657_v47 = vld [vmem:[#allocation2 + $0x1c9] sm:$0xff]  ;;  %v7653_v35 = vld [vmem:[#allocation7] sm:$0xff] }
 0x351   :  { %18100 = vmatprep.mubr.msk.f32.mxu0 %vm86_vm0, %v25821_v56  ;;  %v4593_v42 = vpop.f32.mrf.mxu0 }
 0x352   :  { %v21935_v62 = vadd.f32 %v4593_v42, %v4272_v36  ;;  %v8363_v36 = vld [vmem:[#allocation7 + $0x20] sm:$0xff] }
 0x353   :  { %v17738_v18 = vpop.f32.mrf.mxu1  ;;  %18049 = vmatmul.mubr.msk.f32.gmra.mxu1 %vm86_vm0, %v25840_v51  ;;  %v25843_v42 = vld [vmem:[#allocation48_spill] sm:$0xff] }
 0x354   :  { %v17790_v20 = vpop.f32.mrf.mxu0  ;;  %18101 = vmatmul.mubr.msk.f32.gmra.mxu0 %vm86_vm0, %v25822_v1  ;;  %18051 = vmatprep.mubr.msk.f32.mxu1 %vm86_vm0, %v25841_v28 }
 0x355   :  { %v21941_v25 = vadd.f32 %v17790_v20, %v17738_v18  ;;  %18103 = vmatprep.mubr.msk.f32.mxu0 %vm86_vm0, %v21775_v49  ;;  %v4282_v56 = vpop.f32.mrf.mxu1  ;;  %v6216_v49 = vld [vmem:[#allocation3 + $0x1a0] sm:$0xff]  ;;  %v7658_v20 = vld [vmem:[#allocation2 + $0x1d1] sm:$0xff] }
 0x356   :  { %v4603_v38 = vpop.f32.mrf.mxu0 }
 0x357   :  { %v21947_v53 = vadd.f32 %v4603_v38, %v4282_v56  ;;  %v17741_v27 = vpop.f32.mrf.mxu1  ;;  %18052 = vmatmul.mubr.msk.f32.gmra.mxu1 %vm86_vm0, %v25842_v4 }
 0x358   :  { %v17793_v11 = vpop.f32.mrf.mxu0  ;;  %18104 = vmatmul.mubr.msk.f32.gmra.mxu0 %vm86_vm0, %v21780_v61  ;;  %18054 = vmatprep.mubr.msk.f32.mxu1 %vm86_vm0, %v6215_v5  ;;  %v6964_v5 = vld [vmem:[#allocation3 + $0x52] sm:$0xff] }
 0x359   :  { %v21953_v1 = vadd.f32 %v17793_v11, %v17741_v27  ;;  %18106 = vmatprep.mubr.msk.f32.mxu0 %vm86_vm0, %v6603_v26  ;;  %v4292_v39 = vpop.f32.mrf.mxu1  ;;  %v21985_v26 = vld [vmem:[#allocation7 + $0x48] sm:$0xff] }
 0x35a   :  { %v4613_v63 = vpop.f32.mrf.mxu0  ;;  %v7660_v11 = vld [vmem:[#allocation2 + $0x1e9] sm:$0xff] }
 0x35b   :  { %v21957_v57 = vadd.f32 %v4613_v63, %v4292_v39  ;;  %v17744_v32 = vpop.f32.mrf.mxu1  ;;  %18055 = vmatmul.mubr.msk.f32.gmra.mxu1 %vm86_vm0, %v6216_v49 }
 0x35c   :  { %v17796_v41 = vpop.f32.mrf.mxu0  ;;  %18107 = vmatmul.mubr.msk.f32.gmra.mxu0 %vm86_vm0, %v6604_v23  ;;  %18113 = vmatprep.mubr.msk.f32.mxu1 %vm86_vm0, %v21439_v55  ;;  %v4474_v55 = vadd.f32 %v21793_v21, %v21791_v43  ;;  %v7661_v23 = vld [vmem:[#allocation2 + $0x1f9] sm:$0xff] }
 0x35d   :  { %v21961_v61 = vadd.f32 %v17796_v41, %v17744_v32  ;;  %18165 = vmatprep.mubr.msk.f32.mxu0 %vm86_vm0, %v7655_v48  ;;  %v4302_v6 = vpop.f32.mrf.mxu1  ;;  %v6966_v48 = vld [vmem:[#allocation3 + $0x6a] sm:$0xff]  ;;  %v6967_v41 = vld [vmem:[#allocation3 + $0x7a] sm:$0xff] }
 0x35e   :  { %v4623_v29 = vpop.f32.mrf.mxu0 }
 0x35f   :  { %v21966_v13 = vadd.f32 %v4623_v29, %v4302_v6  ;;  %v17803_v0 = vpop.f32.mrf.mxu1  ;;  %18114 = vmatmul.mubr.msk.f32.vlgmr.msra.gmra.mxu1 %vm86_vm0, %v21449_v45  ;;  %v7659_v45 = vld [vmem:[#allocation2 + $0x1e1] sm:$0xff] }
 0x360   :  { %v17855_v9 = vpop.f32.mrf.mxu0  ;;  %18166 = vmatmul.mubr.msk.f32.vlgmr.msra.gmra.mxu0 %vm86_vm0, %v7656_v31  ;;  %v4989_v18 = vadd.f32 %v17803_v0, %v25843_v42  ;;  %18214 = vmatpush3.msra.mxu1 %v21799_v17  ;;  %v21983_v17 = vld [vmem:[#allocation7 + $0x38] sm:$0xff] }
 0x361   :  { %18116 = vmatprep.mubr.msk.f32.mxu1 %vm86_vm0, %v21457_v40  ;;  %v4829_v51 = vpop.f32.mrf.mxu1  ;;  %18266 = vmatpush3.msra.mxu0 %v21801_v60  ;;  %v6965_v40 = vld [vmem:[#allocation3 + $0x62] sm:$0xff]  ;;  %v7663_v0 = vld [vmem:[#allocation2 + $0x211] sm:$0xff] }
 0x362   :  { %v5217_v28 = vpop.f32.mrf.mxu0  ;;  %18168 = vmatprep.mubr.msk.f32.mxu0 %vm86_vm0, %v7657_v47  ;;  %v21979_v56 = vadd.f32 %v17855_v9, %v4989_v18  ;;  %v4988_v38 = vadd.f32 %v4829_v51, %v4474_v55  ;;  %18215 = vmatprep.subr.mxu1 %v7653_v35  ;;  %v7664_v51 = vld [vmem:[#allocation2 + $0x219] sm:$0xff] }
 0x363   :  { %18267 = vmatprep.subr.mxu0 %v8363_v36  ;;  %v17806_v43 = vpop.f32.mrf.mxu1  ;;  %18117 = vmatmul.mubr.msk.f32.gmra.mxu1 %vm86_vm0, %v6964_v5 }
 0x364   :  { %v17858_v21 = vpop.f32.mrf.mxu0  ;;  %18169 = vmatmul.mubr.msk.f32.gmra.mxu0 %vm86_vm0, %v7658_v20  ;;  %v21987_v60 = vadd.f32 %v5217_v28, %v4988_v38  ;;  %v4991_v27 = vadd.f32 %v17806_v43, %v21803_v19  ;;  %18119 = vmatprep.mubr.msk.f32.mxu1 %vm86_vm0, %v6965_v40  ;;  %v6970_v43 = vld [vmem:[#allocation3 + $0x9a] sm:$0xff] }
 0x365   :  { %18171 = vmatprep.mubr.msk.f32.mxu0 %vm86_vm0, %v7659_v45  ;;  %v4839_v4 = vpop.f32.mrf.mxu1  ;;  %18216 = vmatpush3.msra.mxu1 %v7653_v35 }
 0x366   :  { %v5227_v49 = vpop.f32.mrf.mxu0  ;;  %18268 = vmatpush3.msra.mxu0 %v8363_v36  ;;  %v21992_v39 = vadd.f32 %v17858_v21, %v4991_v27  ;;  %v4990_v63 = vadd.f32 %v4839_v4, %v21807_v16  ;;  %18317 = vmatprep.subr.mxu1 %v21983_v17  ;;  %v7662_v16 = vld [vmem:[#allocation2 + $0x201] sm:$0xff]  ;;  %v7666_v4 = vld [vmem:[#allocation2 + $0x231] sm:$0xff] }
 0x367   :  { %18369 = vmatprep.subr.mxu0 %v21985_v26  ;;  %v17809_v19 = vpop.f32.mrf.mxu1  ;;  %18120 = vmatmul.mubr.msk.f32.gmra.mxu1 %vm86_vm0, %v6966_v48  ;;  %v6968_v36 = vld [vmem:[#allocation3 + $0x82] sm:$0xff] }
 0x368   :  { %v17861_v32 = vpop.f32.mrf.mxu0  ;;  %18172 = vmatmul.mubr.msk.f32.gmra.mxu0 %vm86_vm0, %v7660_v11  ;;  %v21999_v31 = vadd.f32 %v5227_v49, %v4990_v63  ;;  %v4993_v6 = vadd.f32 %v17809_v19, %v21813_v50  ;;  %18122 = vmatprep.mubr.msk.f32.mxu1 %vm86_vm0, %v6967_v41  ;;  %v6969_v50 = vld [vmem:[#allocation3 + $0x92] sm:$0xff] }
 0x369   :  { %18174 = vmatprep.mubr.msk.f32.mxu0 %vm86_vm0, %v7661_v23  ;;  %v4849_v29 = vpop.f32.mrf.mxu1  ;;  %v6972_v19 = vld [vmem:[#allocation3 + $0xb2] sm:$0xff] }
 0x36a   :  { %v5237_v47 = vpop.f32.mrf.mxu0  ;;  %v22004_v9 = vadd.f32 %v17861_v32, %v4993_v6  ;;  %v4992_v35 = vadd.f32 %v4849_v29, %v21817_v3  ;;  %v7665_v3 = vld [vmem:[#allocation2 + $0x229] sm:$0xff] }
 0x36b   :  { %v17812_v55 = vpop.f32.mrf.mxu1  ;;  %18123 = vmatmul.mubr.msk.f32.gmra.mxu1 %vm86_vm0, %v6968_v36  ;;  %v7668_v29 = vld [vmem:[#allocation2 + $0x249] sm:$0xff] }
 0x36c   :  { %v17864_v42 = vpop.f32.mrf.mxu0  ;;  %18175 = vmatmul.mubr.msk.f32.gmra.mxu0 %vm86_vm0, %v7662_v16  ;;  %v22009_v18 = vadd.f32 %v5237_v47, %v4992_v35  ;;  %v4995_v20 = vadd.f32 %v17812_v55, %v21821_v7  ;;  %18125 = vmatprep.mubr.msk.f32.mxu1 %vm86_vm0, %v6969_v50  ;;  %v6971_v7 = vld [vmem:[#allocation3 + $0xaa] sm:$0xff] }
 0x36d   :  { %18177 = vmatprep.mubr.msk.f32.mxu0 %vm86_vm0, %v7663_v0  ;;  %v4859_v28 = vpop.f32.mrf.mxu1  ;;  %v6974_v55 = vld [vmem:[#allocation3 + $0xca] sm:$0xff] }
 0x36e   :  { %v5247_v45 = vpop.f32.mrf.mxu0  ;;  %v22014_v38 = vadd.f32 %v17864_v42, %v4995_v20  ;;  %v4994_v5 = vadd.f32 %v4859_v28, %v21827_v24  ;;  %v7667_v24 = vld [vmem:[#allocation2 + $0x241] sm:$0xff] }
 0x36f   :  { %v17815_v21 = vpop.f32.mrf.mxu1  ;;  %18126 = vmatmul.mubr.msk.f32.gmra.mxu1 %vm86_vm0, %v6970_v43  ;;  %v7670_v28 = vld [vmem:[#allocation2 + $0x261] sm:$0xff] }
 0x370   :  { %v17867_v40 = vpop.f32.mrf.mxu0  ;;  %18178 = vmatmul.mubr.msk.f32.gmra.mxu0 %vm86_vm0, %v7664_v51  ;;  %v22019_v27 = vadd.f32 %v5247_v45, %v4994_v5  ;;  %v4997_v11 = vadd.f32 %v17815_v21, %v21833_v12  ;;  %18128 = vmatprep.mubr.msk.f32.mxu1 %vm86_vm0, %v6971_v7  ;;  %v6973_v12 = vld [vmem:[#allocation3 + $0xc2] sm:$0xff] }
 0x371   :  { %18180 = vmatprep.mubr.msk.f32.mxu0 %vm86_vm0, %v7665_v3  ;;  %v4869_v49 = vpop.f32.mrf.mxu1  ;;  %v6976_v21 = vld [vmem:[#allocation3 + $0xe2] sm:$0xff] }
 0x372   :  { %v5257_v23 = vpop.f32.mrf.mxu0  ;;  %v22024_v63 = vadd.f32 %v17867_v40, %v4997_v11  ;;  %v4996_v48 = vadd.f32 %v4869_v49, %v21839_v22  ;;  %v7669_v22 = vld [vmem:[#allocation2 + $0x259] sm:$0xff] }
 0x373   :  { %v17818_v32 = vpop.f32.mrf.mxu1  ;;  %18129 = vmatmul.mubr.msk.f32.gmra.mxu1 %vm86_vm0, %v6972_v19  ;;  %v7672_v49 = vld [vmem:[#allocation2 + $0x279] sm:$0xff] }
 0x374   :  { %v17870_v41 = vpop.f32.mrf.mxu0  ;;  %18181 = vmatmul.mubr.msk.f32.gmra.mxu0 %vm86_vm0, %v7666_v4  ;;  %v22029_v6 = vadd.f32 %v5257_v23, %v4996_v48  ;;  %v4999_v16 = vadd.f32 %v17818_v32, %v21845_v44  ;;  %18131 = vmatprep.mubr.msk.f32.mxu1 %vm86_vm0, %v6973_v12  ;;  %v6975_v44 = vld [vmem:[#allocation3 + $0xda] sm:$0xff] }
 0x375   :  { %18183 = vmatprep.mubr.msk.f32.mxu0 %vm86_vm0, %v7667_v24  ;;  %v4879_v47 = vpop.f32.mrf.mxu1  ;;  %v6978_v32 = vld [vmem:[#allocation3 + $0xfa] sm:$0xff] }
 0x376   :  { %v5267_v0 = vpop.f32.mrf.mxu0  ;;  %v22034_v35 = vadd.f32 %v17870_v41, %v4999_v16  ;;  %v4998_v36 = vadd.f32 %v4879_v47, %v21851_v52  ;;  %v7671_v52 = vld [vmem:[#allocation2 + $0x271] sm:$0xff] }
 0x377   :  { %v17821_v42 = vpop.f32.mrf.mxu1  ;;  %18132 = vmatmul.mubr.msk.f32.gmra.mxu1 %vm86_vm0, %v6974_v55  ;;  %v7674_v47 = vld [vmem:[#allocation2 + $0x291] sm:$0xff] }
 0x378   :  { %v17873_v50 = vpop.f32.mrf.mxu0  ;;  %18184 = vmatmul.mubr.msk.f32.gmra.mxu0 %vm86_vm0, %v7668_v29  ;;  %v22039_v20 = vadd.f32 %v5267_v0, %v4998_v36  ;;  %v5001_v51 = vadd.f32 %v17821_v42, %v21857_v14  ;;  %18134 = vmatprep.mubr.msk.f32.mxu1 %vm86_vm0, %v6975_v44  ;;  %v6977_v14 = vld [vmem:[#allocation3 + $0xf2] sm:$0xff] }
 0x379   :  { %18186 = vmatprep.mubr.msk.f32.mxu0 %vm86_vm0, %v7669_v22  ;;  %v4889_v45 = vpop.f32.mrf.mxu1  ;;  %v6980_v42 = vld [vmem:[#allocation3 + $0x112] sm:$0xff] }
 0x37a   :  { %v5277_v3 = vpop.f32.mrf.mxu0  ;;  %v22044_v5 = vadd.f32 %v17873_v50, %v5001_v51  ;;  %v5000_v43 = vadd.f32 %v4889_v45, %v21863_v37  ;;  %v7673_v37 = vld [vmem:[#allocation2 + $0x289] sm:$0xff] }
 0x37b   :  { %v17824_v40 = vpop.f32.mrf.mxu1  ;;  %18135 = vmatmul.mubr.msk.f32.gmra.mxu1 %vm86_vm0, %v6976_v21  ;;  %v7676_v45 = vld [vmem:[#allocation2 + $0x2a9] sm:$0xff] }
 0x37c   :  { %v17876_v7 = vpop.f32.mrf.mxu0  ;;  %18187 = vmatmul.mubr.msk.f32.gmra.mxu0 %vm86_vm0, %v7670_v28  ;;  %v22049_v11 = vadd.f32 %v5277_v3, %v5000_v43  ;;  %v5003_v4 = vadd.f32 %v17824_v40, %v21869_v59  ;;  %18137 = vmatprep.mubr.msk.f32.mxu1 %vm86_vm0, %v6977_v14  ;;  %v6979_v59 = vld [vmem:[#allocation3 + $0x10a] sm:$0xff] }
 0x37d   :  { %18189 = vmatprep.mubr.msk.f32.mxu0 %vm86_vm0, %v7671_v52  ;;  %v4899_v23 = vpop.f32.mrf.mxu1  ;;  %v6982_v40 = vld [vmem:[#allocation3 + $0x12a] sm:$0xff] }
 0x37e   :  { %v5287_v24 = vpop.f32.mrf.mxu0  ;;  %v22054_v48 = vadd.f32 %v17876_v7, %v5003_v4  ;;  %v5002_v19 = vadd.f32 %v4899_v23, %v21875_v30  ;;  %v7675_v30 = vld [vmem:[#allocation2 + $0x2a1] sm:$0xff] }
 0x37f   :  { %v17827_v41 = vpop.f32.mrf.mxu1  ;;  %18138 = vmatmul.mubr.msk.f32.gmra.mxu1 %vm86_vm0, %v6978_v32  ;;  %v7678_v23 = vld [vmem:[#allocation2 + $0x2c1] sm:$0xff] }
 0x380   :  { %v17879_v12 = vpop.f32.mrf.mxu0  ;;  %18190 = vmatmul.mubr.msk.f32.gmra.mxu0 %vm86_vm0, %v7672_v49  ;;  %v22059_v16 = vadd.f32 %v5287_v24, %v5002_v19  ;;  %v5005_v29 = vadd.f32 %v17827_v41, %v21881_v15  ;;  %18140 = vmatprep.mubr.msk.f32.mxu1 %vm86_vm0, %v6979_v59  ;;  %v6981_v15 = vld [vmem:[#allocation3 + $0x122] sm:$0xff] }
 0x381   :  { %18192 = vmatprep.mubr.msk.f32.mxu0 %vm86_vm0, %v7673_v37  ;;  %v4909_v0 = vpop.f32.mrf.mxu1  ;;  %v6984_v41 = vld [vmem:[#allocation3 + $0x142] sm:$0xff] }
 0x382   :  { %v5297_v22 = vpop.f32.mrf.mxu0  ;;  %v22064_v36 = vadd.f32 %v17879_v12, %v5005_v29  ;;  %v5004_v55 = vadd.f32 %v4909_v0, %v21887_v10  ;;  %v7677_v10 = vld [vmem:[#allocation2 + $0x2b9] sm:$0xff] }
 0x383   :  { %v17830_v50 = vpop.f32.mrf.mxu1  ;;  %18141 = vmatmul.mubr.msk.f32.gmra.mxu1 %vm86_vm0, %v6980_v42  ;;  %v7680_v0 = vld [vmem:[#allocation2 + $0x2d9] sm:$0xff] }
 0x384   :  { %v17882_v44 = vpop.f32.mrf.mxu0  ;;  %18193 = vmatmul.mubr.msk.f32.gmra.mxu0 %vm86_vm0, %v7674_v47  ;;  %v22069_v51 = vadd.f32 %v5297_v22, %v5004_v55  ;;  %v5007_v28 = vadd.f32 %v17830_v50, %v21893_v8  ;;  %18143 = vmatprep.mubr.msk.f32.mxu1 %vm86_vm0, %v6981_v15  ;;  %v6983_v8 = vld [vmem:[#allocation3 + $0x13a] sm:$0xff] }
 0x385   :  { %18195 = vmatprep.mubr.msk.f32.mxu0 %vm86_vm0, %v7675_v30  ;;  %v4919_v3 = vpop.f32.mrf.mxu1  ;;  %v6986_v50 = vld [vmem:[#allocation3 + $0x15a] sm:$0xff] }
 0x386   :  { %v5307_v52 = vpop.f32.mrf.mxu0  ;;  %v22074_v43 = vadd.f32 %v17882_v44, %v5007_v28  ;;  %v5006_v21 = vadd.f32 %v4919_v3, %v21899_v58  ;;  %v7679_v58 = vld [vmem:[#allocation2 + $0x2d1] sm:$0xff] }
 0x387   :  { %v17833_v7 = vpop.f32.mrf.mxu1  ;;  %18144 = vmatmul.mubr.msk.f32.gmra.mxu1 %vm86_vm0, %v6982_v40  ;;  %v7682_v3 = vld [vmem:[#allocation2 + $0x2f1] sm:$0xff] }
 0x388   :  { %v17885_v14 = vpop.f32.mrf.mxu0  ;;  %18196 = vmatmul.mubr.msk.f32.gmra.mxu0 %vm86_vm0, %v7676_v45  ;;  %v22079_v4 = vadd.f32 %v5307_v52, %v5006_v21  ;;  %v5009_v49 = vadd.f32 %v17833_v7, %v21905_v46  ;;  %18146 = vmatprep.mubr.msk.f32.mxu1 %vm86_vm0, %v6983_v8  ;;  %v6985_v46 = vld [vmem:[#allocation3 + $0x152] sm:$0xff] }
 0x389   :  { %18198 = vmatprep.mubr.msk.f32.mxu0 %vm86_vm0, %v7677_v10  ;;  %v4929_v24 = vpop.f32.mrf.mxu1  ;;  %v6988_v7 = vld [vmem:[#allocation3 + $0x172] sm:$0xff] }
 0x38a   :  { %v5317_v37 = vpop.f32.mrf.mxu0  ;;  %v22084_v19 = vadd.f32 %v17885_v14, %v5009_v49  ;;  %v5008_v32 = vadd.f32 %v4929_v24, %v21911_v33  ;;  %v7681_v33 = vld [vmem:[#allocation2 + $0x2e9] sm:$0xff] }
 0x38b   :  { %v17836_v12 = vpop.f32.mrf.mxu1  ;;  %18147 = vmatmul.mubr.msk.f32.gmra.mxu1 %vm86_vm0, %v6984_v41  ;;  %v321_v14 = vld [vmem:[#allocation4 + $0x1f0] sm:$0xff]  ;;  %v6991_v41 = vld [vmem:[#allocation3 + $0x19a] sm:$0xff] }
 0x38c   :  { %v17888_v59 = vpop.f32.mrf.mxu0  ;;  %18199 = vmatmul.mubr.msk.f32.gmra.mxu0 %vm86_vm0, %v7678_v23  ;;  %v22089_v29 = vadd.f32 %v5317_v37, %v5008_v32  ;;  %v5011_v47 = vadd.f32 %v17836_v12, %v21917_v2  ;;  %18149 = vmatprep.mubr.msk.f32.mxu1 %vm86_vm0, %v6985_v46  ;;  %v6987_v2 = vld [vmem:[#allocation3 + $0x16a] sm:$0xff]  ;;  %386 = vst.msk [vmem:[#allocation2 + $0x331] sm:$0xff] %vm86_vm0, %v321_v14  ;;  %v322_v23 = vld [vmem:[#allocation4 + $0x1f8] sm:$0xff] }
 0x38d   :  { %18201 = vmatprep.mubr.msk.f32.mxu0 %vm86_vm0, %v7679_v58  ;;  %v4939_v22 = vpop.f32.mrf.mxu1  ;;  %387 = vst.msk [vmem:[#allocation2 + $0x339] sm:$0xff] %vm86_vm0, %v322_v23  ;;  %v7685_v12 = vld [vmem:[#allocation2 + $0x319] sm:$0xff] }
 0x38e   :  { %v5327_v30 = vpop.f32.mrf.mxu0  ;;  %v22094_v55 = vadd.f32 %v17888_v59, %v5011_v47  ;;  %v5010_v42 = vadd.f32 %v4939_v22, %v21923_v54  ;;  %v7683_v54 = vld [vmem:[#allocation2 + $0x301] sm:$0xff]  ;;  %v6990_v47 = vld [vmem:[#allocation3 + $0x18a] sm:$0xff] }
 0x38f   :  { %v17839_v44 = vpop.f32.mrf.mxu1  ;;  %18150 = vmatmul.mubr.msk.f32.gmra.mxu1 %vm86_vm0, %v6986_v50 }
 0x390   :  { %v17891_v15 = vpop.f32.mrf.mxu0  ;;  %18202 = vmatmul.mubr.msk.f32.gmra.mxu0 %vm86_vm0, %v7680_v0  ;;  %v22099_v28 = vadd.f32 %v5327_v30, %v5010_v42  ;;  %v5013_v45 = vadd.f32 %v17839_v44, %v21929_v34  ;;  %18152 = vmatprep.mubr.msk.f32.mxu1 %vm86_vm0, %v6987_v2  ;;  %v6989_v34 = vld [vmem:[#allocation3 + $0x182] sm:$0xff] }
 0x391   :  { %18204 = vmatprep.mubr.msk.f32.mxu0 %vm86_vm0, %v7681_v33  ;;  %v4949_v52 = vpop.f32.mrf.mxu1  ;;  %v6992_v33 = vld [vmem:[#allocation3 + $0x1a2] sm:$0xff] }
 0x392   :  { %v5337_v10 = vpop.f32.mrf.mxu0  ;;  %v22104_v21 = vadd.f32 %v17891_v15, %v5013_v45  ;;  %v5012_v40 = vadd.f32 %v4949_v52, %v21935_v62  ;;  %v7684_v62 = vld [vmem:[#allocation2 + $0x309] sm:$0xff]  ;;  %v7686_v42 = vld [vmem:[#allocation2 + $0x321] sm:$0xff]  ;;  %v8331_v15 = vld [vmem:[#allocation2 + $0x1b2] sm:$0xff] }
 0x393   :  { %v17842_v8 = vpop.f32.mrf.mxu1  ;;  %18153 = vmatmul.mubr.msk.f32.gmra.mxu1 %vm86_vm0, %v6988_v7 }
 0x394   :  { %v17894_v49 = vpop.f32.mrf.mxu0  ;;  %18205 = vmatmul.mubr.msk.f32.gmra.mxu0 %vm86_vm0, %v7682_v3  ;;  %v22110_v24 = vadd.f32 %v5337_v10, %v5012_v40  ;;  %v5015_v37 = vadd.f32 %v17842_v8, %v21941_v25  ;;  %18155 = vmatprep.mubr.msk.f32.mxu1 %vm86_vm0, %v6989_v34  ;;  %v8332_v40 = vld [vmem:[#allocation2 + $0x1ba] sm:$0xff]  ;;  %v8333_v34 = vld [vmem:[#allocation2 + $0x1ca] sm:$0xff] }
 0x395   :  { %18207 = vmatprep.mubr.msk.f32.mxu0 %vm86_vm0, %v7683_v54  ;;  %v4959_v58 = vpop.f32.mrf.mxu1  ;;  %v7622_v54 = vld [vmem:[#allocation2 + $0x1b8] sm:$0xff] }
 0x396   :  { %v5347_v32 = vpop.f32.mrf.mxu0  ;;  %v22116_v59 = vadd.f32 %v17894_v49, %v5015_v37  ;;  %v5014_v46 = vadd.f32 %v4959_v58, %v21947_v53  ;;  %v7621_v53 = vld [vmem:[#allocation2 + $0x1b0] sm:$0xff]  ;;  %v22139_v49 = vld [vmem:[#allocation2 + $0x1c8] sm:$0xff] }
 0x397   :  { %v17845_v0 = vpop.f32.mrf.mxu1  ;;  %18156 = vmatmul.mubr.msk.f32.gmra.mxu1 %vm86_vm0, %v6990_v47  ;;  %v22153_v47 = vld [vmem:[#allocation2 + $0x1e0] sm:$0xff] }
 0x398   :  { %v17897_v22 = vpop.f32.mrf.mxu0  ;;  %18208 = vmatmul.mubr.msk.f32.gmra.mxu0 %vm86_vm0, %v7684_v62  ;;  %v22121_v25 = vadd.f32 %v5347_v32, %v5014_v46  ;;  %v5017_v30 = vadd.f32 %v17845_v0, %v21953_v1  ;;  %18158 = vmatprep.mubr.msk.f32.mxu1 %vm86_vm0, %v6991_v41  ;;  %v9138_v62 = vld [vmem:[#allocation7 + $0x40] sm:$0xff]  ;;  %v8334_v41 = vld [vmem:[#allocation2 + $0x1d2] sm:$0xff] }
 0x399   :  { %18210 = vmatprep.mubr.msk.f32.mxu0 %vm86_vm0, %v7685_v12  ;;  %v4969_v50 = vpop.f32.mrf.mxu1  ;;  %v8335_v0 = vld [vmem:[#allocation2 + $0x1e2] sm:$0xff] }
 0x39a   :  { %v5357_v44 = vpop.f32.mrf.mxu0  ;;  %v22126_v2 = vadd.f32 %v17897_v22, %v5017_v30  ;;  %v5016_v45 = vadd.f32 %v4969_v50, %v21957_v57  ;;  %v22161_v30 = vld [vmem:[#allocation7 + $0x58] sm:$0xff] }
 0x39b   :  { %v17848_v3 = vpop.f32.mrf.mxu1  ;;  %18159 = vmatmul.mubr.msk.f32.gmra.mxu1 %vm86_vm0, %v6992_v33  ;;  %v22163_v33 = vld [vmem:[#allocation7 + $0x68] sm:$0xff] }
 0x39c   :  { %v17900_v52 = vpop.f32.mrf.mxu0  ;;  %18211 = vmatmul.mubr.msk.f32.gmra.mxu0 %vm86_vm0, %v7686_v42  ;;  %v22131_v1 = vadd.f32 %v5357_v44, %v5016_v45  ;;  %v5019_v10 = vadd.f32 %v17848_v3, %v21961_v61  ;;  %18217 = vmatprep.mubr.msk.f32.mxu1 %vm86_vm0, %v7621_v53  ;;  %v8751_v61 = vld [vmem:[#allocation7 + $0x30] sm:$0xff]  ;;  %v22173_v45 = vld [vmem:[#allocation2 + $0x1f8] sm:$0xff] }
 0x39d   :  { %18269 = vmatprep.mubr.msk.f32.mxu0 %vm86_vm0, %v8331_v15  ;;  %v4979_v7 = vpop.f32.mrf.mxu1  ;;  %v8336_v44 = vld [vmem:[#allocation2 + $0x1ea] sm:$0xff]  ;;  %v8337_v3 = vld [vmem:[#allocation2 + $0x1fa] sm:$0xff] }
 0x39e   :  { %v5367_v14 = vpop.f32.mrf.mxu0  ;;  %v22136_v8 = vadd.f32 %v17900_v52, %v5019_v10  ;;  %v5018_v57 = vadd.f32 %v4979_v7, %v21966_v13  ;;  %v22148_v13 = vld [vmem:[#allocation2 + $0x1d0] sm:$0xff] }
 0x39f   :  { %v17907_v23 = vpop.f32.mrf.mxu1  ;;  %18218 = vmatmul.mubr.msk.f32.vlgmr.msra.gmra.mxu1 %vm86_vm0, %v7622_v54 }
 0x3a0   :  { %v17959_v37 = vpop.f32.mrf.mxu0  ;;  %18270 = vmatmul.mubr.msk.f32.vlgmr.msra.gmra.mxu0 %vm86_vm0, %v8332_v40  ;;  %v22143_v58 = vadd.f32 %v5367_v14, %v5018_v57  ;;  %v5765_v32 = vadd.f32 %v17907_v23, %v21979_v56  ;;  %18318 = vmatpush3.msra.mxu1 %v21983_v17  ;;  %v8338_v14 = vld [vmem:[#allocation2 + $0x202] sm:$0xff]  ;;  %v22191_v23 = vld [vmem:[#allocation2 + $0x210] sm:$0xff] }
 0x3a1   :  { %18370 = vmatpush3.msra.mxu0 %v21985_v26  ;;  %v5605_v12 = vpop.f32.mrf.mxu1  ;;  %18220 = vmatprep.mubr.msk.f32.mxu1 %vm86_vm0, %v22139_v49 }
 0x3a2   :  { %v5993_v46 = vpop.f32.mrf.mxu0  ;;  %18272 = vmatprep.mubr.msk.f32.mxu0 %vm86_vm0, %v8333_v34  ;;  %v22155_v22 = vadd.f32 %v17959_v37, %v5765_v32  ;;  %v5764_v56 = vadd.f32 %v5605_v12, %v21987_v60  ;;  %18319 = vmatprep.subr.mxu1 %v8751_v61  ;;  %v22171_v60 = vld [vmem:[#allocation2 + $0x1e8] sm:$0xff]  ;;  %v8339_v37 = vld [vmem:[#allocation2 + $0x212] sm:$0xff] }
 0x3a3   :  { %18371 = vmatprep.subr.mxu0 %v9138_v62  ;;  %v17910_v17 = vpop.f32.mrf.mxu1  ;;  %18221 = vmatmul.mubr.msk.f32.gmra.mxu1 %vm86_vm0, %v22148_v13 }
 0x3a4   :  { %v17962_v26 = vpop.f32.mrf.mxu0  ;;  %18273 = vmatmul.mubr.msk.f32.gmra.mxu0 %vm86_vm0, %v8334_v41  ;;  %v22165_v42 = vadd.f32 %v5993_v46, %v5764_v56  ;;  %v5767_v50 = vadd.f32 %v17910_v17, %v21992_v39  ;;  %18223 = vmatprep.mubr.msk.f32.mxu1 %vm86_vm0, %v22153_v47  ;;  %v22205_v46 = vld [vmem:[#allocation2 + $0x218] sm:$0xff]  ;;  %v22207_v17 = vld [vmem:[#allocation2 + $0x228] sm:$0xff] }
 0x3a5   :  { %18275 = vmatprep.mubr.msk.f32.mxu0 %vm86_vm0, %v8335_v0  ;;  %v5615_v53 = vpop.f32.mrf.mxu1  ;;  %18320 = vmatpush3.msra.mxu1 %v8751_v61  ;;  %v8340_v0 = vld [vmem:[#allocation2 + $0x21a] sm:$0xff] }
 0x3a6   :  { %25844 = vst [vmem:[#allocation51_spill] sm:$0xff] %v22165_v42  ;;  %v6003_v15 = vpop.f32.mrf.mxu0  ;;  %18372 = vmatpush3.msra.mxu0 %v9138_v62  ;;  %v22175_v52 = vadd.f32 %v17962_v26, %v5767_v50  ;;  %v5766_v10 = vadd.f32 %v5615_v53, %v21999_v31  ;;  %18421 = vmatprep.subr.mxu1 %v22161_v30  ;;  %v22189_v31 = vld [vmem:[#allocation2 + $0x200] sm:$0xff]  ;;  %v8341_v26 = vld [vmem:[#allocation2 + $0x22a] sm:$0xff] }
 0x3a7   :  { %18473 = vmatprep.subr.mxu0 %v22163_v33  ;;  %v17913_v39 = vpop.f32.mrf.mxu1  ;;  %18224 = vmatmul.mubr.msk.f32.gmra.mxu1 %vm86_vm0, %v22171_v60 }
 0x3a8   :  { %v17965_v54 = vpop.f32.mrf.mxu0  ;;  %18276 = vmatmul.mubr.msk.f32.gmra.mxu0 %vm86_vm0, %v8336_v44  ;;  %v22183_v40 = vadd.f32 %v6003_v15, %v5766_v10  ;;  %v5769_v7 = vadd.f32 %v17913_v39, %v22004_v9  ;;  %18226 = vmatprep.mubr.msk.f32.mxu1 %vm86_vm0, %v22173_v45  ;;  %v22221_v10 = vld [vmem:[#allocation2 + $0x230] sm:$0xff] }
 0x3a9   :  { %18278 = vmatprep.mubr.msk.f32.mxu0 %vm86_vm0, %v8337_v3  ;;  %v5625_v57 = vpop.f32.mrf.mxu1  ;;  %v8342_v39 = vld [vmem:[#allocation2 + $0x232] sm:$0xff] }
 0x3aa   :  { %25845 = vst [vmem:[#allocation54_spill] sm:$0xff] %v22183_v40  ;;  %v6013_v34 = vpop.f32.mrf.mxu0  ;;  %v22193_v61 = vadd.f32 %v17965_v54, %v5769_v7  ;;  %v5768_v62 = vadd.f32 %v5625_v57, %v22009_v18  ;;  %v22223_v7 = vld [vmem:[#allocation2 + $0x240] sm:$0xff] }
 0x3ab   :  { %v17916_v32 = vpop.f32.mrf.mxu1  ;;  %18227 = vmatmul.mubr.msk.f32.gmra.mxu1 %vm86_vm0, %v22189_v31 }
 0x3ac   :  { %v17968_v41 = vpop.f32.mrf.mxu0  ;;  %18279 = vmatmul.mubr.msk.f32.gmra.mxu0 %vm86_vm0, %v8338_v14  ;;  %v22199_v9 = vadd.f32 %v6013_v34, %v5768_v62  ;;  %v5771_v12 = vadd.f32 %v17916_v32, %v22014_v38  ;;  %18229 = vmatprep.mubr.msk.f32.mxu1 %vm86_vm0, %v22191_v23  ;;  %v8343_v14 = vld [vmem:[#allocation2 + $0x242] sm:$0xff] }
 0x3ad   :  { %18281 = vmatprep.mubr.msk.f32.mxu0 %vm86_vm0, %v8339_v37  ;;  %v5635_v18 = vpop.f32.mrf.mxu1 }
 0x3ae   :  { %25846 = vst [vmem:[#allocation95_spill] sm:$0xff] %v22199_v9  ;;  %v6023_v56 = vpop.f32.mrf.mxu0  ;;  %v22209_v50 = vadd.f32 %v17968_v41, %v5771_v12  ;;  %v5770_v44 = vadd.f32 %v5635_v18, %v22019_v27  ;;  %v22237_v41 = vld [vmem:[#allocation2 + $0x248] sm:$0xff]  ;;  %v22239_v18 = vld [vmem:[#allocation2 + $0x258] sm:$0xff] }
 0x3af   :  { %v17919_v53 = vpop.f32.mrf.mxu1  ;;  %18230 = vmatmul.mubr.msk.f32.gmra.mxu1 %vm86_vm0, %v22205_v46  ;;  %v8344_v12 = vld [vmem:[#allocation2 + $0x24a] sm:$0xff] }
 0x3b0   :  { %v17971_v15 = vpop.f32.mrf.mxu0  ;;  %18282 = vmatmul.mubr.msk.f32.gmra.mxu0 %vm86_vm0, %v8340_v0  ;;  %v22215_v38 = vadd.f32 %v6023_v56, %v5770_v44  ;;  %v5773_v3 = vadd.f32 %v17919_v53, %v22024_v63  ;;  %18232 = vmatprep.mubr.msk.f32.mxu1 %vm86_vm0, %v22207_v17  ;;  %v8345_v56 = vld [vmem:[#allocation2 + $0x25a] sm:$0xff] }
 0x3b1   :  { %18284 = vmatprep.mubr.msk.f32.mxu0 %vm86_vm0, %v8341_v26  ;;  %v5645_v27 = vpop.f32.mrf.mxu1 }
 0x3b2   :  { %25847 = vst [vmem:[#allocation105_spill] sm:$0xff] %v22215_v38  ;;  %v6033_v54 = vpop.f32.mrf.mxu0  ;;  %v22225_v57 = vadd.f32 %v17971_v15, %v5773_v3  ;;  %v5772_v34 = vadd.f32 %v5645_v27, %v22029_v6  ;;  %v8346_v27 = vld [vmem:[#allocation2 + $0x262] sm:$0xff] }
 0x3b3   :  { %v17922_v37 = vpop.f32.mrf.mxu1  ;;  %18233 = vmatmul.mubr.msk.f32.gmra.mxu1 %vm86_vm0, %v22221_v10 }
 0x3b4   :  { %v17974_v62 = vpop.f32.mrf.mxu0  ;;  %18285 = vmatmul.mubr.msk.f32.gmra.mxu0 %vm86_vm0, %v8342_v39  ;;  %v22231_v63 = vadd.f32 %v6033_v54, %v5772_v34  ;;  %v5775_v32 = vadd.f32 %v17922_v37, %v22034_v35  ;;  %18235 = vmatprep.mubr.msk.f32.mxu1 %vm86_vm0, %v22223_v7  ;;  %v22253_v39 = vld [vmem:[#allocation2 + $0x260] sm:$0xff]  ;;  %v8347_v34 = vld [vmem:[#allocation2 + $0x272] sm:$0xff] }
 0x3b5   :  { %18287 = vmatprep.mubr.msk.f32.mxu0 %vm86_vm0, %v8343_v14  ;;  %v5655_v6 = vpop.f32.mrf.mxu1  ;;  %v22255_v14 = vld [vmem:[#allocation2 + $0x270] sm:$0xff] }
 0x3b6   :  { %25848 = vst [vmem:[#allocation25_spill] sm:$0xff] %v22231_v63  ;;  %v6043_v0 = vpop.f32.mrf.mxu0  ;;  %v22241_v26 = vadd.f32 %v17974_v62, %v5775_v32  ;;  %v5774_v44 = vadd.f32 %v5655_v6, %v22039_v20 }
 0x3b7   :  { %v17925_v53 = vpop.f32.mrf.mxu1  ;;  %18236 = vmatmul.mubr.msk.f32.gmra.mxu1 %vm86_vm0, %v22237_v41 }
 0x3b8   :  { %v17977_v15 = vpop.f32.mrf.mxu0  ;;  %18288 = vmatmul.mubr.msk.f32.gmra.mxu0 %vm86_vm0, %v8344_v12  ;;  %v22247_v35 = vadd.f32 %v6043_v0, %v5774_v44  ;;  %v5777_v3 = vadd.f32 %v17925_v53, %v22044_v5  ;;  %18238 = vmatprep.mubr.msk.f32.mxu1 %vm86_vm0, %v22239_v18  ;;  %v22269_v0 = vld [vmem:[#allocation2 + $0x278] sm:$0xff]  ;;  %v22271_v53 = vld [vmem:[#allocation2 + $0x288] sm:$0xff] }
 0x3b9   :  { %18290 = vmatprep.mubr.msk.f32.mxu0 %vm86_vm0, %v8345_v56  ;;  %v5665_v20 = vpop.f32.mrf.mxu1  ;;  %v8348_v56 = vld [vmem:[#allocation2 + $0x27a] sm:$0xff] }
 0x3ba   :  { %25849 = vst [vmem:[#allocation24_spill] sm:$0xff] %v22247_v35  ;;  %v6053_v54 = vpop.f32.mrf.mxu0  ;;  %v22257_v37 = vadd.f32 %v17977_v15, %v5777_v3  ;;  %v5776_v62 = vadd.f32 %v5665_v20, %v22049_v11  ;;  %v8349_v15 = vld [vmem:[#allocation2 + $0x28a] sm:$0xff] }
 0x3bb   :  { %v17928_v32 = vpop.f32.mrf.mxu1  ;;  %18239 = vmatmul.mubr.msk.f32.gmra.mxu1 %vm86_vm0, %v22253_v39 }
 0x3bc   :  { %v17980_v12 = vpop.f32.mrf.mxu0  ;;  %18291 = vmatmul.mubr.msk.f32.gmra.mxu0 %vm86_vm0, %v8346_v27  ;;  %v22263_v5 = vadd.f32 %v6053_v54, %v5776_v62  ;;  %v5779_v6 = vadd.f32 %v17928_v32, %v22054_v48  ;;  %18241 = vmatprep.mubr.msk.f32.mxu1 %vm86_vm0, %v22255_v14  ;;  %v22285_v62 = vld [vmem:[#allocation2 + $0x290] sm:$0xff] }
 0x3bd   :  { %18293 = vmatprep.mubr.msk.f32.mxu0 %vm86_vm0, %v8347_v34  ;;  %v5675_v11 = vpop.f32.mrf.mxu1  ;;  %v8350_v32 = vld [vmem:[#allocation2 + $0x292] sm:$0xff] }
 0x3be   :  { %25850 = vst [vmem:[#allocation26_spill] sm:$0xff] %v22263_v5  ;;  %v6063_v44 = vpop.f32.mrf.mxu0  ;;  %v22273_v3 = vadd.f32 %v17980_v12, %v5779_v6  ;;  %v5778_v27 = vadd.f32 %v5675_v11, %v22059_v16  ;;  %v22287_v6 = vld [vmem:[#allocation2 + $0x2a0] sm:$0xff] }
 0x3bf   :  { %v17931_v20 = vpop.f32.mrf.mxu1  ;;  %18242 = vmatmul.mubr.msk.f32.gmra.mxu1 %vm86_vm0, %v22269_v0  ;;  %v8351_v11 = vld [vmem:[#allocation2 + $0x2a2] sm:$0xff] }
 0x3c0   :  { %v17983_v54 = vpop.f32.mrf.mxu0  ;;  %18294 = vmatmul.mubr.msk.f32.gmra.mxu0 %vm86_vm0, %v8348_v56  ;;  %v22279_v48 = vadd.f32 %v6063_v44, %v5778_v27  ;;  %v5781_v34 = vadd.f32 %v17931_v20, %v22064_v36  ;;  %18244 = vmatprep.mubr.msk.f32.mxu1 %vm86_vm0, %v22271_v53  ;;  %v22301_v20 = vld [vmem:[#allocation2 + $0x2a8] sm:$0xff] }
 0x3c1   :  { %18296 = vmatprep.mubr.msk.f32.mxu0 %vm86_vm0, %v8349_v15  ;;  %v5685_v16 = vpop.f32.mrf.mxu1 }
 0x3c2   :  { %25851 = vst [vmem:[#allocation53_spill] sm:$0xff] %v22279_v48  ;;  %v6073_v12 = vpop.f32.mrf.mxu0  ;;  %v22289_v5 = vadd.f32 %v17983_v54, %v5781_v34  ;;  %v5780_v56 = vadd.f32 %v5685_v16, %v22069_v51  ;;  %v8352_v54 = vld [vmem:[#allocation2 + $0x2aa] sm:$0xff]  ;;  %v22303_v16 = vld [vmem:[#allocation2 + $0x2b8] sm:$0xff] }
 0x3c3   :  { %v17934_v44 = vpop.f32.mrf.mxu1  ;;  %18245 = vmatmul.mubr.msk.f32.gmra.mxu1 %vm86_vm0, %v22285_v62  ;;  %v8353_v48 = vld [vmem:[#allocation2 + $0x2ba] sm:$0xff] }
 0x3c4   :  { %v17986_v27 = vpop.f32.mrf.mxu0  ;;  %18297 = vmatmul.mubr.msk.f32.gmra.mxu0 %vm86_vm0, %v8350_v32  ;;  %v22295_v36 = vadd.f32 %v6073_v12, %v5780_v56  ;;  %v5783_v15 = vadd.f32 %v17934_v44, %v22074_v43  ;;  %18247 = vmatprep.mubr.msk.f32.mxu1 %vm86_vm0, %v22287_v6  ;;  %v22317_v44 = vld [vmem:[#allocation2 + $0x2c0] sm:$0xff] }
 0x3c5   :  { %18299 = vmatprep.mubr.msk.f32.mxu0 %vm86_vm0, %v8351_v11  ;;  %v5695_v51 = vpop.f32.mrf.mxu1 }
 0x3c6   :  { %25852 = vst [vmem:[#allocation52_spill] sm:$0xff] %v22295_v36  ;;  %v6083_v34 = vpop.f32.mrf.mxu0  ;;  %v22305_v35 = vadd.f32 %v17986_v27, %v5783_v15  ;;  %v5782_v32 = vadd.f32 %v5695_v51, %v22079_v4  ;;  %v8354_v27 = vld [vmem:[#allocation2 + $0x2c2] sm:$0xff]  ;;  %v22319_v51 = vld [vmem:[#allocation2 + $0x2d0] sm:$0xff] }
 0x3c7   :  { %v17937_v12 = vpop.f32.mrf.mxu1  ;;  %18248 = vmatmul.mubr.msk.f32.gmra.mxu1 %vm86_vm0, %v22301_v20  ;;  %v8355_v36 = vld [vmem:[#allocation2 + $0x2d2] sm:$0xff] }
 0x3c8   :  { %v17989_v56 = vpop.f32.mrf.mxu0  ;;  %18300 = vmatmul.mubr.msk.f32.gmra.mxu0 %vm86_vm0, %v8352_v54  ;;  %v22311_v43 = vadd.f32 %v6083_v34, %v5782_v32  ;;  %v5785_v11 = vadd.f32 %v17937_v12, %v22084_v19  ;;  %18250 = vmatprep.mubr.msk.f32.mxu1 %vm86_vm0, %v22303_v16  ;;  %v22333_v12 = vld [vmem:[#allocation2 + $0x2d8] sm:$0xff] }
 0x3c9   :  { %18302 = vmatprep.mubr.msk.f32.mxu0 %vm86_vm0, %v8353_v48  ;;  %v5705_v4 = vpop.f32.mrf.mxu1 }
 0x3ca   :  { %25853 = vst [vmem:[#allocation97_spill] sm:$0xff] %v22311_v43  ;;  %v6093_v15 = vpop.f32.mrf.mxu0  ;;  %v22321_v63 = vadd.f32 %v17989_v56, %v5785_v11  ;;  %v5784_v54 = vadd.f32 %v5705_v4, %v22089_v29  ;;  %v8356_v56 = vld [vmem:[#allocation2 + $0x2da] sm:$0xff]  ;;  %v22335_v4 = vld [vmem:[#allocation2 + $0x2e8] sm:$0xff] }
 0x3cb   :  { %v17940_v34 = vpop.f32.mrf.mxu1  ;;  %18251 = vmatmul.mubr.msk.f32.gmra.mxu1 %vm86_vm0, %v22317_v44  ;;  %v8357_v43 = vld [vmem:[#allocation2 + $0x2ea] sm:$0xff] }
 0x3cc   :  { %v17992_v32 = vpop.f32.mrf.mxu0  ;;  %18303 = vmatmul.mubr.msk.f32.gmra.mxu0 %vm86_vm0, %v8354_v27  ;;  %v22327_v19 = vadd.f32 %v6093_v15, %v5784_v54  ;;  %v5787_v48 = vadd.f32 %v17940_v34, %v22094_v55  ;;  %18253 = vmatprep.mubr.msk.f32.mxu1 %vm86_vm0, %v22319_v51  ;;  %v22349_v34 = vld [vmem:[#allocation2 + $0x2f0] sm:$0xff] }
 0x3cd   :  { %18305 = vmatprep.mubr.msk.f32.mxu0 %vm86_vm0, %v8355_v36  ;;  %v5715_v29 = vpop.f32.mrf.mxu1 }
 0x3ce   :  { %25854 = vst [vmem:[#allocation55_spill] sm:$0xff] %v22327_v19  ;;  %v6103_v11 = vpop.f32.mrf.mxu0  ;;  %v22337_v38 = vadd.f32 %v17992_v32, %v5787_v48  ;;  %v5786_v27 = vadd.f32 %v5715_v29, %v22099_v28  ;;  %v8358_v32 = vld [vmem:[#allocation2 + $0x2f2] sm:$0xff]  ;;  %v22351_v29 = vld [vmem:[#allocation2 + $0x300] sm:$0xff] }
 0x3cf   :  { %v17943_v15 = vpop.f32.mrf.mxu1  ;;  %18254 = vmatmul.mubr.msk.f32.gmra.mxu1 %vm86_vm0, %v22333_v12  ;;  %v8359_v19 = vld [vmem:[#allocation2 + $0x302] sm:$0xff] }
 0x3d0   :  { %v17995_v54 = vpop.f32.mrf.mxu0  ;;  %18306 = vmatmul.mubr.msk.f32.gmra.mxu0 %vm86_vm0, %v8356_v56  ;;  %v22343_v55 = vadd.f32 %v6103_v11, %v5786_v27  ;;  %v5789_v36 = vadd.f32 %v17943_v15, %v22104_v21  ;;  %18256 = vmatprep.mubr.msk.f32.mxu1 %vm86_vm0, %v22335_v4  ;;  %v22365_v15 = vld [vmem:[#allocation2 + $0x308] sm:$0xff] }
 0x3d1   :  { %18308 = vmatprep.mubr.msk.f32.mxu0 %vm86_vm0, %v8357_v43  ;;  %v5725_v28 = vpop.f32.mrf.mxu1 }
 0x3d2   :  { %25855 = vst [vmem:[#allocation58_spill] sm:$0xff] %v22343_v55  ;;  %v6113_v48 = vpop.f32.mrf.mxu0  ;;  %v22353_v9 = vadd.f32 %v17995_v54, %v5789_v36  ;;  %v5788_v56 = vadd.f32 %v5725_v28, %v22110_v24  ;;  %v8360_v54 = vld [vmem:[#allocation2 + $0x30a] sm:$0xff]  ;;  %v22367_v28 = vld [vmem:[#allocation2 + $0x318] sm:$0xff] }
 0x3d3   :  { %v17946_v11 = vpop.f32.mrf.mxu1  ;;  %18257 = vmatmul.mubr.msk.f32.gmra.mxu1 %vm86_vm0, %v22349_v34  ;;  %v8361_v55 = vld [vmem:[#allocation2 + $0x31a] sm:$0xff] }
 0x3d4   :  { %v17998_v27 = vpop.f32.mrf.mxu0  ;;  %18309 = vmatmul.mubr.msk.f32.gmra.mxu0 %vm86_vm0, %v8358_v32  ;;  %v22359_v21 = vadd.f32 %v6113_v48, %v5788_v56  ;;  %v5791_v43 = vadd.f32 %v17946_v11, %v22116_v59  ;;  %18259 = vmatprep.mubr.msk.f32.mxu1 %vm86_vm0, %v22351_v29  ;;  %v22381_v11 = vld [vmem:[#allocation2 + $0x320] sm:$0xff] }
 0x3d5   :  { %18311 = vmatprep.mubr.msk.f32.mxu0 %vm86_vm0, %v8359_v19  ;;  %v5735_v24 = vpop.f32.mrf.mxu1 }
 0x3d6   :  { %25856 = vst [vmem:[#allocation110_spill] sm:$0xff] %v22359_v21  ;;  %v6123_v36 = vpop.f32.mrf.mxu0  ;;  %v22369_v40 = vadd.f32 %v17998_v27, %v5791_v43  ;;  %v5790_v32 = vadd.f32 %v5735_v24, %v22121_v25  ;;  %v8362_v27 = vld [vmem:[#allocation2 + $0x322] sm:$0xff] }
 0x3d7   :  { %v17949_v48 = vpop.f32.mrf.mxu1  ;;  %18260 = vmatmul.mubr.msk.f32.gmra.mxu1 %vm86_vm0, %v22365_v15  ;;  %v9106_v24 = vld [vmem:[#allocation2 + $0x1c9] sm:$0xff] }
 0x3d8   :  { %v18001_v56 = vpop.f32.mrf.mxu0  ;;  %18312 = vmatmul.mubr.msk.f32.gmra.mxu0 %vm86_vm0, %v8360_v54  ;;  %v22375_v59 = vadd.f32 %v6123_v36, %v5790_v32  ;;  %v5793_v19 = vadd.f32 %v17949_v48, %v22126_v2  ;;  %18262 = vmatprep.mubr.msk.f32.mxu1 %vm86_vm0, %v22367_v28  ;;  %v9107_v32 = vld [vmem:[#allocation2 + $0x1d1] sm:$0xff] }
 0x3d9   :  { %18314 = vmatprep.mubr.msk.f32.mxu0 %vm86_vm0, %v8361_v55  ;;  %v5745_v25 = vpop.f32.mrf.mxu1 }
 0x3da   :  { %25857 = vst [vmem:[#allocation98_spill] sm:$0xff] %v22375_v59  ;;  %v6133_v43 = vpop.f32.mrf.mxu0  ;;  %v22383_v21 = vadd.f32 %v18001_v56, %v5793_v19  ;;  %v5792_v42 = vadd.f32 %v5745_v25, %v22131_v1  ;;  %v9108_v25 = vld [vmem:[#allocation2 + $0x1e1] sm:$0xff] }
 0x3db   :  { %v17952_v54 = vpop.f32.mrf.mxu1  ;;  %18263 = vmatmul.mubr.msk.f32.gmra.mxu1 %vm86_vm0, %v22381_v11 }
 0x3dc   :  { %25858 = vst [vmem:[#allocation27_spill] sm:$0xff] %v22383_v21  ;;  %v18004_v36 = vpop.f32.mrf.mxu0  ;;  %18315 = vmatmul.mubr.msk.f32.gmra.mxu0 %vm86_vm0, %v8362_v27  ;;  %v22389_v2 = vadd.f32 %v6133_v43, %v5792_v42  ;;  %v5795_v55 = vadd.f32 %v17952_v54, %v22136_v8  ;;  %18321 = vmatprep.mubr.msk.f32.mxu1 %vm86_vm0, %v22139_v49  ;;  %v9525_v8 = vld [vmem:[#allocation7 + $0x50] sm:$0xff]  ;;  %v9913_v42 = vld [vmem:[#allocation7 + $0x60] sm:$0xff] }
 0x3dd   :  { %18373 = vmatprep.mubr.msk.f32.mxu0 %vm86_vm0, %v9106_v24  ;;  %v5755_v48 = vpop.f32.mrf.mxu1  ;;  %v9109_v43 = vld [vmem:[#allocation2 + $0x1e9] sm:$0xff] }
 0x3de   :  { %v6143_v56 = vpop.f32.mrf.mxu0  ;;  %v22395_v1 = vadd.f32 %v18004_v36, %v5795_v55  ;;  %v5794_v19 = vadd.f32 %v5755_v48, %v22143_v58  ;;  %v9112_v48 = vld [vmem:[#allocation2 + $0x211] sm:$0xff] }
 0x3df   :  { %v18011_v59 = vpop.f32.mrf.mxu1  ;;  %18322 = vmatmul.mubr.msk.f32.vlgmr.msra.gmra.mxu1 %vm86_vm0, %v22148_v13  ;;  %v9110_v13 = vld [vmem:[#allocation2 + $0x1f9] sm:$0xff] }
 0x3e0   :  { %v18063_v21 = vpop.f32.mrf.mxu0  ;;  %18374 = vmatmul.mubr.msk.f32.vlgmr.msra.gmra.mxu0 %vm86_vm0, %v9107_v32  ;;  %v22401_v49 = vadd.f32 %v6143_v56, %v5794_v19  ;;  %v6542_v27 = vadd.f32 %v18011_v59, %v22155_v22  ;;  %18422 = vmatpush3.msra.mxu1 %v22161_v30  ;;  %v22418_v30 = vld [vmem:[#allocation7 + $0x78] sm:$0xff] }
 0x3e1   :  { %18474 = vmatpush3.msra.mxu0 %v22163_v33  ;;  %v22406_v58 = vpop.f32.mrf.mxu1  ;;  %18324 = vmatprep.mubr.msk.f32.mxu1 %vm86_vm0, %v22153_v47  ;;  %v22420_v33 = vld [vmem:[#allocation7 + $0x88] sm:$0xff] }
 0x3e2   :  { %25859 = vst [vmem:[#allocation28_spill] sm:$0xff] %v22401_v49  ;;  %v22408_v24 = vpop.f32.mrf.mxu0  ;;  %18376 = vmatprep.mubr.msk.f32.mxu0 %vm86_vm0, %v9108_v25  ;;  %v22413_v54 = vadd.f32 %v18063_v21, %v6542_v27  ;;  %18423 = vmatprep.subr.mxu1 %v9525_v8  ;;  %v9111_v21 = vld [vmem:[#allocation2 + $0x201] sm:$0xff]  ;;  %v9113_v25 = vld [vmem:[#allocation2 + $0x219] sm:$0xff]  ;;  %v9114_v27 = vld [vmem:[#allocation2 + $0x229] sm:$0xff] }
 0x3e3   :  { %18475 = vmatprep.subr.mxu0 %v9913_v42  ;;  %v18014_v22 = vpop.f32.mrf.mxu1  ;;  %18325 = vmatmul.mubr.msk.f32.gmra.mxu1 %vm86_vm0, %v22171_v60  ;;  %v25865_v49 = vld [vmem:[#allocation54_spill] sm:$0xff] }
 0x3e4   :  { %v18066_v59 = vpop.f32.mrf.mxu0  ;;  %18377 = vmatmul.mubr.msk.f32.gmra.mxu0 %vm86_vm0, %v9109_v43  ;;  %v6544_v36 = vadd.f32 %v18014_v22, %v22175_v52  ;;  %18327 = vmatprep.mubr.msk.f32.mxu1 %vm86_vm0, %v22173_v45 }
 0x3e5   :  { %18379 = vmatprep.mubr.msk.f32.mxu0 %vm86_vm0, %v9110_v13  ;;  %v22426_v55 = vpop.f32.mrf.mxu1  ;;  %18424 = vmatpush3.msra.mxu1 %v9525_v8 }
 0x3e6   :  { %v22428_v32 = vpop.f32.mrf.mxu0  ;;  %18476 = vmatpush3.msra.mxu0 %v9913_v42  ;;  %v22430_v56 = vadd.f32 %v18066_v59, %v6544_v36  ;;  %18525 = vmatprep.subr.mxu1 %v22418_v30  ;;  %v9116_v36 = vld [vmem:[#allocation2 + $0x241] sm:$0xff] }
 0x3e7   :  { %18577 = vmatprep.subr.mxu0 %v22420_v33  ;;  %v18017_v52 = vpop.f32.mrf.mxu1  ;;  %18328 = vmatmul.mubr.msk.f32.gmra.mxu1 %vm86_vm0, %v22189_v31 }
 0x3e8   :  { %v18069_v19 = vpop.f32.mrf.mxu0  ;;  %18380 = vmatmul.mubr.msk.f32.gmra.mxu0 %vm86_vm0, %v9111_v21  ;;  %v6546_v45 = vadd.f32 %v18017_v52, %v22193_v61  ;;  %18330 = vmatprep.mubr.msk.f32.mxu1 %vm86_vm0, %v22191_v23  ;;  %v9115_v23 = vld [vmem:[#allocation2 + $0x231] sm:$0xff] }
 0x3e9   :  { %18382 = vmatprep.mubr.msk.f32.mxu0 %vm86_vm0, %v9112_v48  ;;  %v22441_v8 = vpop.f32.mrf.mxu1 }
 0x3ea   :  { %v22443_v42 = vpop.f32.mrf.mxu0  ;;  %v22445_v43 = vadd.f32 %v18069_v19, %v6546_v45  ;;  %v9118_v45 = vld [vmem:[#allocation2 + $0x259] sm:$0xff] }
 0x3eb   :  { %v18020_v13 = vpop.f32.mrf.mxu1  ;;  %18331 = vmatmul.mubr.msk.f32.gmra.mxu1 %vm86_vm0, %v22205_v46 }
 0x3ec   :  { %v18072_v22 = vpop.f32.mrf.mxu0  ;;  %18383 = vmatmul.mubr.msk.f32.gmra.mxu0 %vm86_vm0, %v9113_v25  ;;  %v6548_v31 = vadd.f32 %v18020_v13, %v22209_v50  ;;  %18333 = vmatprep.mubr.msk.f32.mxu1 %vm86_vm0, %v22207_v17  ;;  %v9117_v17 = vld [vmem:[#allocation2 + $0x249] sm:$0xff] }
 0x3ed   :  { %18385 = vmatprep.mubr.msk.f32.mxu0 %vm86_vm0, %v9114_v27  ;;  %v22454_v61 = vpop.f32.mrf.mxu1 }
 0x3ee   :  { %v22456_v59 = vpop.f32.mrf.mxu0  ;;  %v22458_v21 = vadd.f32 %v18072_v22, %v6548_v31  ;;  %v9120_v31 = vld [vmem:[#allocation2 + $0x271] sm:$0xff] }
 0x3ef   :  { %v18023_v48 = vpop.f32.mrf.mxu1  ;;  %18334 = vmatmul.mubr.msk.f32.gmra.mxu1 %vm86_vm0, %v22221_v10 }
 0x3f0   :  { %v18075_v52 = vpop.f32.mrf.mxu0  ;;  %18386 = vmatmul.mubr.msk.f32.gmra.mxu0 %vm86_vm0, %v9115_v23  ;;  %v6550_v46 = vadd.f32 %v18023_v48, %v22225_v57  ;;  %18336 = vmatprep.mubr.msk.f32.mxu1 %vm86_vm0, %v22223_v7  ;;  %v9119_v7 = vld [vmem:[#allocation2 + $0x261] sm:$0xff] }
 0x3f1   :  { %18388 = vmatprep.mubr.msk.f32.mxu0 %vm86_vm0, %v9116_v36  ;;  %v22467_v50 = vpop.f32.mrf.mxu1 }
 0x3f2   :  { %v22469_v19 = vpop.f32.mrf.mxu0  ;;  %v22471_v25 = vadd.f32 %v18075_v52, %v6550_v46  ;;  %v9122_v46 = vld [vmem:[#allocation2 + $0x289] sm:$0xff] }
 0x3f3   :  { %v18026_v27 = vpop.f32.mrf.mxu1  ;;  %18337 = vmatmul.mubr.msk.f32.gmra.mxu1 %vm86_vm0, %v22237_v41 }
 0x3f4   :  { %v18078_v13 = vpop.f32.mrf.mxu0  ;;  %18389 = vmatmul.mubr.msk.f32.gmra.mxu0 %vm86_vm0, %v9117_v17  ;;  %v6552_v10 = vadd.f32 %v18026_v27, %v22241_v26  ;;  %18339 = vmatprep.mubr.msk.f32.mxu1 %vm86_vm0, %v22239_v18  ;;  %v9121_v18 = vld [vmem:[#allocation2 + $0x279] sm:$0xff] }
 0x3f5   :  { %18391 = vmatprep.mubr.msk.f32.mxu0 %vm86_vm0, %v9118_v45  ;;  %v22480_v57 = vpop.f32.mrf.mxu1 }
 0x3f6   :  { %v22482_v22 = vpop.f32.mrf.mxu0  ;;  %v22484_v23 = vadd.f32 %v18078_v13, %v6552_v10  ;;  %v9124_v10 = vld [vmem:[#allocation2 + $0x2a1] sm:$0xff] }
 0x3f7   :  { %v18029_v36 = vpop.f32.mrf.mxu1  ;;  %18340 = vmatmul.mubr.msk.f32.gmra.mxu1 %vm86_vm0, %v22253_v39 }
 0x3f8   :  { %v18081_v48 = vpop.f32.mrf.mxu0  ;;  %18392 = vmatmul.mubr.msk.f32.gmra.mxu0 %vm86_vm0, %v9119_v7  ;;  %v6554_v41 = vadd.f32 %v18029_v36, %v22257_v37  ;;  %18342 = vmatprep.mubr.msk.f32.mxu1 %vm86_vm0, %v22255_v14  ;;  %v9123_v14 = vld [vmem:[#allocation2 + $0x291] sm:$0xff] }
 0x3f9   :  { %18394 = vmatprep.mubr.msk.f32.mxu0 %vm86_vm0, %v9120_v31  ;;  %v22493_v26 = vpop.f32.mrf.mxu1 }
 0x3fa   :  { %v22495_v52 = vpop.f32.mrf.mxu0  ;;  %v22497_v17 = vadd.f32 %v18081_v48, %v6554_v41  ;;  %v9126_v41 = vld [vmem:[#allocation2 + $0x2b9] sm:$0xff] }
 0x3fb   :  { %v18032_v45 = vpop.f32.mrf.mxu1  ;;  %18343 = vmatmul.mubr.msk.f32.gmra.mxu1 %vm86_vm0, %v22269_v0 }
 0x3fc   :  { %v18084_v27 = vpop.f32.mrf.mxu0  ;;  %18395 = vmatmul.mubr.msk.f32.gmra.mxu0 %vm86_vm0, %v9121_v18  ;;  %v6556_v39 = vadd.f32 %v18032_v45, %v22273_v3  ;;  %18345 = vmatprep.mubr.msk.f32.mxu1 %vm86_vm0, %v22271_v53  ;;  %v9125_v53 = vld [vmem:[#allocation2 + $0x2a9] sm:$0xff] }
 0x3fd   :  { %18397 = vmatprep.mubr.msk.f32.mxu0 %vm86_vm0, %v9122_v46  ;;  %v22506_v37 = vpop.f32.mrf.mxu1 }
 0x3fe   :  { %v22508_v13 = vpop.f32.mrf.mxu0  ;;  %v22510_v7 = vadd.f32 %v18084_v27, %v6556_v39  ;;  %v9128_v39 = vld [vmem:[#allocation2 + $0x2d1] sm:$0xff] }
 0x3ff   :  { %v18035_v31 = vpop.f32.mrf.mxu1  ;;  %18346 = vmatmul.mubr.msk.f32.gmra.mxu1 %vm86_vm0, %v22285_v62  ;;  %v9127_v62 = vld [vmem:[#allocation2 + $0x2c1] sm:$0xff] }
 0x400   :  { %v18087_v36 = vpop.f32.mrf.mxu0  ;;  %18398 = vmatmul.mubr.msk.f32.gmra.mxu0 %vm86_vm0, %v9123_v14  ;;  %v6558_v0 = vadd.f32 %v18035_v31, %v22289_v5  ;;  %18348 = vmatprep.mubr.msk.f32.mxu1 %vm86_vm0, %v22287_v6 }
 0x401   :  { %18400 = vmatprep.mubr.msk.f32.mxu0 %vm86_vm0, %v9124_v10  ;;  %v22519_v3 = vpop.f32.mrf.mxu1 }
 0x402   :  { %v22521_v48 = vpop.f32.mrf.mxu0  ;;  %v22523_v18 = vadd.f32 %v18087_v36, %v6558_v0  ;;  %v9130_v0 = vld [vmem:[#allocation2 + $0x2e9] sm:$0xff] }
 0x403   :  { %v18038_v46 = vpop.f32.mrf.mxu1  ;;  %18349 = vmatmul.mubr.msk.f32.gmra.mxu1 %vm86_vm0, %v22301_v20  ;;  %v9129_v20 = vld [vmem:[#allocation2 + $0x2d9] sm:$0xff] }
 0x404   :  { %v18090_v45 = vpop.f32.mrf.mxu0  ;;  %18401 = vmatmul.mubr.msk.f32.gmra.mxu0 %vm86_vm0, %v9125_v53  ;;  %v6560_v5 = vadd.f32 %v18038_v46, %v22305_v35  ;;  %18351 = vmatprep.mubr.msk.f32.mxu1 %vm86_vm0, %v22303_v16 }
 0x405   :  { %18403 = vmatprep.mubr.msk.f32.mxu0 %vm86_vm0, %v9126_v41  ;;  %v22532_v6 = vpop.f32.mrf.mxu1 }
 0x406   :  { %v22534_v27 = vpop.f32.mrf.mxu0  ;;  %v22536_v14 = vadd.f32 %v18090_v45, %v6560_v5  ;;  %v9132_v5 = vld [vmem:[#allocation2 + $0x301] sm:$0xff] }
 0x407   :  { %v18041_v10 = vpop.f32.mrf.mxu1  ;;  %18352 = vmatmul.mubr.msk.f32.gmra.mxu1 %vm86_vm0, %v22317_v44  ;;  %v9131_v44 = vld [vmem:[#allocation2 + $0x2f1] sm:$0xff] }
 0x408   :  { %v18093_v31 = vpop.f32.mrf.mxu0  ;;  %18404 = vmatmul.mubr.msk.f32.gmra.mxu0 %vm86_vm0, %v9127_v62  ;;  %v6562_v35 = vadd.f32 %v18041_v10, %v22321_v63  ;;  %18354 = vmatprep.mubr.msk.f32.mxu1 %vm86_vm0, %v22319_v51 }
 0x409   :  { %18406 = vmatprep.mubr.msk.f32.mxu0 %vm86_vm0, %v9128_v39  ;;  %v22545_v16 = vpop.f32.mrf.mxu1 }
 0x40a   :  { %v22547_v36 = vpop.f32.mrf.mxu0  ;;  %v22549_v53 = vadd.f32 %v18093_v31, %v6562_v35  ;;  %v9134_v35 = vld [vmem:[#allocation2 + $0x319] sm:$0xff] }
 0x40b   :  { %v18044_v41 = vpop.f32.mrf.mxu1  ;;  %18355 = vmatmul.mubr.msk.f32.gmra.mxu1 %vm86_vm0, %v22333_v12  ;;  %v9133_v12 = vld [vmem:[#allocation2 + $0x309] sm:$0xff] }
 0x40c   :  { %v18096_v46 = vpop.f32.mrf.mxu0  ;;  %18407 = vmatmul.mubr.msk.f32.gmra.mxu0 %vm86_vm0, %v9129_v20  ;;  %v6564_v63 = vadd.f32 %v18044_v41, %v22337_v38  ;;  %18357 = vmatprep.mubr.msk.f32.mxu1 %vm86_vm0, %v22335_v4 }
 0x40d   :  { %18409 = vmatprep.mubr.msk.f32.mxu0 %vm86_vm0, %v9130_v0  ;;  %v22558_v51 = vpop.f32.mrf.mxu1 }
 0x40e   :  { %v22560_v45 = vpop.f32.mrf.mxu0  ;;  %v22562_v62 = vadd.f32 %v18096_v46, %v6564_v63  ;;  %v22588_v63 = vld [vmem:[#allocation2 + $0x330] sm:$0xff] }
 0x40f   :  { %v18047_v39 = vpop.f32.mrf.mxu1  ;;  %18358 = vmatmul.mubr.msk.f32.gmra.mxu1 %vm86_vm0, %v22349_v34  ;;  %v9135_v34 = vld [vmem:[#allocation2 + $0x321] sm:$0xff] }
 0x410   :  { %v18099_v10 = vpop.f32.mrf.mxu0  ;;  %18410 = vmatmul.mubr.msk.f32.gmra.mxu0 %vm86_vm0, %v9131_v44  ;;  %v6566_v38 = vadd.f32 %v18047_v39, %v22353_v9  ;;  %18360 = vmatprep.mubr.msk.f32.mxu1 %vm86_vm0, %v22351_v29  ;;  %v9136_v44 = vld [vmem:[#allocation2 + $0x331] sm:$0xff] }
 0x411   :  { %18412 = vmatprep.mubr.msk.f32.mxu0 %vm86_vm0, %v9132_v5  ;;  %v22571_v4 = vpop.f32.mrf.mxu1 }
 0x412   :  { %v22573_v31 = vpop.f32.mrf.mxu0  ;;  %v22575_v20 = vadd.f32 %v18099_v10, %v6566_v38  ;;  %v22599_v10 = vld [vmem:[#allocation2 + $0x338] sm:$0xff] }
 0x413   :  { %v18050_v0 = vpop.f32.mrf.mxu1  ;;  %18361 = vmatmul.mubr.msk.f32.gmra.mxu1 %vm86_vm0, %v22365_v15  ;;  %25861 = vst [vmem:[#allocation57_spill] sm:$0xff] %v22599_v10  ;;  %v9137_v38 = vld [vmem:[#allocation2 + $0x339] sm:$0xff] }
 0x414   :  { %v18102_v41 = vpop.f32.mrf.mxu0  ;;  %18413 = vmatmul.mubr.msk.f32.gmra.mxu0 %vm86_vm0, %v9133_v12  ;;  %v6568_v9 = vadd.f32 %v18050_v0, %v22369_v40  ;;  %18363 = vmatprep.mubr.msk.f32.mxu1 %vm86_vm0, %v22367_v28  ;;  %v25860_v40 = vld [vmem:[#allocation27_spill] sm:$0xff]  ;;  %v9493_v0 = vld [vmem:[#allocation2 + $0x1ca] sm:$0xff] }
 0x415   :  { %18415 = vmatprep.mubr.msk.f32.mxu0 %vm86_vm0, %v9134_v35  ;;  %v22584_v29 = vpop.f32.mrf.mxu1 }
 0x416   :  { %v22586_v46 = vpop.f32.mrf.mxu0  ;;  %v22590_v5 = vadd.f32 %v18102_v41, %v6568_v9 }
 0x417   :  { %v18053_v15 = vpop.f32.mrf.mxu1  ;;  %18364 = vmatmul.mubr.msk.f32.gmra.mxu1 %vm86_vm0, %v22381_v11 }
 0x418   :  { %v18105_v39 = vpop.f32.mrf.mxu0  ;;  %18416 = vmatmul.mubr.msk.f32.gmra.mxu0 %vm86_vm0, %v9135_v34  ;;  %v6570_v28 = vadd.f32 %v18053_v15, %v25860_v40  ;;  %18366 = vmatprep.mubr.msk.f32.mxu1 %vm86_vm0, %v22588_v63  ;;  %v25863_v34 = vld [vmem:[#allocation51_spill] sm:$0xff] }
 0x419   :  { %18418 = vmatprep.mubr.msk.f32.mxu0 %vm86_vm0, %v9136_v44  ;;  %v22601_v12 = vpop.f32.mrf.mxu1  ;;  %v6541_v44 = vadd.f32 %v22406_v58, %v25863_v34  ;;  %v9494_v40 = vld [vmem:[#allocation2 + $0x1d2] sm:$0xff]  ;;  %v6543_v58 = vadd.f32 %v22426_v55, %v25865_v49  ;;  %v9884_v49 = vld [vmem:[#allocation2 + $0x200] sm:$0xff] }
 0x41a   :  { %v22603_v35 = vpop.f32.mrf.mxu0  ;;  %v22605_v41 = vadd.f32 %v18105_v39, %v6570_v28  ;;  %v22640_v55 = vld [vmem:[%s25384_s4] ss:$0 sm:$0xff] }
 0x41b   :  { %v18056_v11 = vpop.f32.mrf.mxu1  ;;  %18367 = vmatmul.mubr.msk.f32.gmra.mxu1 %vm86_vm0, %v22599_v10  ;;  %v22622_v10 = vld [vmem:[#allocation2 + $0x1e2] sm:$0xff] }
 0x41c   :  { %25862 = vst [vmem:[#allocation56_spill] sm:$0xff] %v22605_v41  ;;  %v18108_v9 = vpop.f32.mrf.mxu0  ;;  %18419 = vmatmul.mubr.msk.f32.gmra.mxu0 %vm86_vm0, %v9137_v38  ;;  %v6572_v15 = vadd.f32 %v18056_v11, %v22395_v1  ;;  %18425 = vmatprep.mubr.msk.f32.mxu1 %vm86_vm0, %v9493_v0  ;;  %v9883_v38 = vld [vmem:[#allocation2 + $0x1f8] sm:$0xff]  ;;  %v10687_v0 = vld [vmem:[#allocation7 + $0x80] sm:$0xff]  ;;  %v6929_v11 = vadd.f32 %v22408_v24, %v6541_v44 }
 0x41d   :  { %18477 = vmatprep.mubr.msk.f32.mxu0 %vm86_vm0, %v22153_v47  ;;  %v22616_v39 = vpop.f32.mrf.mxu1  ;;  %v10300_v47 = vld [vmem:[#allocation7 + $0x70] sm:$0xff]  ;;  %v22647_v24 = vld [vmem:[#allocation2 + $0x1fa] sm:$0xff] }
 0x41e   :  { %v22618_v28 = vpop.f32.mrf.mxu0  ;;  %v22620_v41 = vadd.f32 %v18108_v9, %v6572_v15  ;;  %v22635_v15 = vld [vmem:[#allocation2 + $0x1ea] sm:$0xff]  ;;  %25868 = vst [vmem:[#allocation101_spill] sm:$0xff] %v22647_v24  ;;  %v25869_v44 = vld [vmem:[#allocation95_spill] sm:$0xff] }
 0x41f   :  { %v18115_v34 = vpop.f32.mrf.mxu1  ;;  %18426 = vmatmul.mubr.msk.f32.vlgmr.msra.gmra.mxu1 %vm86_vm0, %v9494_v40 }
 0x420   :  { %25864 = vst [vmem:[#allocation100_spill] sm:$0xff] %v22620_v41  ;;  %v22626_v1 = vpop.f32.mrf.mxu0  ;;  %18478 = vmatmul.mubr.msk.f32.vlgmr.msra.gmra.mxu0 %vm86_vm0, %v22171_v60  ;;  %v7318_v9 = vadd.f32 %v18115_v34, %v22413_v54  ;;  %18526 = vmatpush3.msra.mxu1 %v22418_v30  ;;  %v9885_v54 = vld [vmem:[#allocation2 + $0x210] sm:$0xff]  ;;  %v6545_v34 = vadd.f32 %v22441_v8, %v25869_v44  ;;  %v9886_v8 = vld [vmem:[#allocation2 + $0x218] sm:$0xff] }
 0x421   :  { %25866 = vst [vmem:[#allocation59_spill] sm:$0xff] %v22626_v1  ;;  %18578 = vmatpush3.msra.mxu0 %v22420_v33  ;;  %v7158_v40 = vpop.f32.mrf.mxu1  ;;  %18428 = vmatprep.mubr.msk.f32.mxu1 %vm86_vm0, %v22622_v10  ;;  %v6931_v33 = vadd.f32 %v22428_v32, %v6543_v58  ;;  %v22667_v32 = vld [vmem:[#allocation2 + $0x202] sm:$0xff] }
 0x422   :  { %v22642_v60 = vpop.f32.mrf.mxu0  ;;  %18480 = vmatprep.mubr.msk.f32.mxu0 %vm86_vm0, %v9883_v38  ;;  %v7317_v30 = vadd.f32 %v7158_v40, %v6929_v11  ;;  %18527 = vmatprep.subr.mxu1 %v10300_v47  ;;  %v22658_v38 = vadd.f32 %v22640_v55, %v7318_v9  ;;  %v9887_v9 = vld [vmem:[#allocation2 + $0x228] sm:$0xff] }
 0x423   :  { %25867 = vst [vmem:[#allocation62_spill] sm:$0xff] %v22642_v60  ;;  %18579 = vmatprep.subr.mxu0 %v10687_v0  ;;  %v18118_v1 = vpop.f32.mrf.mxu1  ;;  %18429 = vmatmul.mubr.msk.f32.gmra.mxu1 %vm86_vm0, %v22635_v15 }
 0x424   :  { %v22652_v41 = vpop.f32.mrf.mxu0  ;;  %18481 = vmatmul.mubr.msk.f32.gmra.mxu0 %vm86_vm0, %v9884_v49  ;;  %25871 = vst [vmem:[#allocation29_spill] sm:$0xff] %v22658_v38  ;;  %v22661_v11 = vadd.f32 %v22640_v55, %v7317_v30  ;;  %v7320_v40 = vadd.f32 %v18118_v1, %v22430_v56  ;;  %18431 = vmatprep.mubr.msk.f32.mxu1 %vm86_vm0, %v22647_v24  ;;  %v22671_v49 = vld [vmem:[#allocation2 + $0x212] sm:$0xff] }
 0x425   :  { %25870 = vst [vmem:[#allocation115_spill] sm:$0xff] %v22652_v41  ;;  %18483 = vmatprep.mubr.msk.f32.mxu0 %vm86_vm0, %v9885_v54  ;;  %v7168_v58 = vpop.f32.mrf.mxu1  ;;  %25874 = vst [vmem:[#allocation60_spill] sm:$0xff] %v22671_v49  ;;  %18528 = vmatpush3.msra.mxu1 %v10300_v47  ;;  %v6933_v1 = vadd.f32 %v22443_v42, %v6545_v34  ;;  %v25875_v41 = vld [vmem:[#allocation105_spill] sm:$0xff]  ;;  %v7388_v47 = vsel %vm86_vm0, %v22658_v38, 0.0  ;;  %v22699_v38 = vld [vmem:[#allocation2 + $0x22a] sm:$0xff] }
 0x426   :  { %25872 = vst [vmem:[#allocation30_spill] sm:$0xff] %v22661_v11  ;;  %v22669_v44 = vpop.f32.mrf.mxu0  ;;  %18580 = vmatpush3.msra.mxu0 %v10687_v0  ;;  %v7387_v30 = vsel %vm86_vm0, %v22661_v11, 0.0  ;;  %v7319_v56 = vadd.f32 %v7168_v58, %v6931_v33  ;;  %v6547_v54 = vadd.f32 %v22454_v61, %v25875_v41  ;;  %v22686_v0 = vadd.f32 %v22640_v55, %v7320_v40  ;;  %v22695_v61 = vld [vmem:[#allocation2 + $0x21a] sm:$0xff]  ;;  %v9888_v41 = vld [vmem:[#allocation2 + $0x230] sm:$0xff] }
 0x427   :  { %25873 = vst [vmem:[#allocation61_spill] sm:$0xff] %v22669_v44  ;;  %v18121_v60 = vpop.f32.mrf.mxu1  ;;  %18432 = vmatmul.mubr.msk.f32.gmra.mxu1 %vm86_vm0, %v22667_v32  ;;  %v7389_v34 = vadd.f32 %v7388_v47, %v7387_v30  ;;  %v9889_v40 = vld [vmem:[#allocation2 + $0x240] sm:$0xff] }
 0x428   :  { %v22678_v24 = vpop.f32.mrf.mxu0  ;;  %18484 = vmatmul.mubr.msk.f32.gmra.mxu0 %vm86_vm0, %v9886_v8  ;;  %25877 = vst [vmem:[#allocation63_spill] sm:$0xff] %v22686_v0  ;;  %v22689_v33 = vadd.f32 %v22640_v55, %v7319_v56  ;;  %v7322_v42 = vadd.f32 %v18121_v60, %v22445_v43  ;;  %18434 = vmatprep.mubr.msk.f32.mxu1 %vm86_vm0, %v22671_v49  ;;  %v25879_v60 = vld [vmem:[#allocation25_spill] sm:$0xff]  ;;  %v7392_v30 = vsel %vm86_vm0, %v22686_v0, 0.0 }
 0x429   :  { %25876 = vst [vmem:[#allocation103_spill] sm:$0xff] %v22678_v24  ;;  %18486 = vmatprep.mubr.msk.f32.mxu0 %vm86_vm0, %v9887_v9  ;;  %v7178_v8 = vpop.f32.mrf.mxu1  ;;  %v6935_v43 = vadd.f32 %v22456_v59, %v6547_v54  ;;  %v6549_v24 = vadd.f32 %v22467_v50, %v25879_v60  ;;  %v9890_v54 = vld [vmem:[#allocation2 + $0x248] sm:$0xff] }
 0x42a   :  { %25878 = vst [vmem:[#allocation66_spill] sm:$0xff] %v22689_v33  ;;  %v22697_v58 = vpop.f32.mrf.mxu0  ;;  %v7390_v56 = vsel %vm86_vm0, %v22689_v33, 0.0  ;;  %v7321_v11 = vadd.f32 %v7178_v8, %v6933_v1  ;;  %v22714_v47 = vadd.f32 %v22640_v55, %v7322_v42  ;;  %v22723_v1 = vld [vmem:[#allocation2 + $0x232] sm:$0xff] }
 0x42b   :  { %v7391_v9 = vadd.f32 %v7390_v56, %v7389_v34  ;;  %v18124_v44 = vpop.f32.mrf.mxu1  ;;  %18435 = vmatmul.mubr.msk.f32.gmra.mxu1 %vm86_vm0, %v22695_v61  ;;  %v22727_v56 = vld [vmem:[#allocation2 + $0x242] sm:$0xff]  ;;  %v9891_v42 = vld [vmem:[#allocation2 + $0x258] sm:$0xff] }
 0x42c   :  { %v22706_v49 = vpop.f32.mrf.mxu0  ;;  %18487 = vmatmul.mubr.msk.f32.gmra.mxu0 %vm86_vm0, %v9888_v41  ;;  %25881 = vst [vmem:[#allocation31_spill] sm:$0xff] %v22714_v47  ;;  %v22717_v59 = vadd.f32 %v22640_v55, %v7321_v11  ;;  %v7324_v50 = vadd.f32 %v18124_v44, %v22458_v21  ;;  %18437 = vmatprep.mubr.msk.f32.mxu1 %vm86_vm0, %v22699_v38  ;;  %v25883_v44 = vld [vmem:[#allocation24_spill] sm:$0xff] }
 0x42d   :  { %25880 = vst [vmem:[#allocation104_spill] sm:$0xff] %v22706_v49  ;;  %18489 = vmatprep.mubr.msk.f32.mxu0 %vm86_vm0, %v9889_v40  ;;  %v7393_v41 = vadd.f32 %v7392_v30, %v7391_v9  ;;  %v7188_v34 = vpop.f32.mrf.mxu1  ;;  %v6937_v21 = vadd.f32 %v22469_v19, %v6549_v24  ;;  %v6551_v0 = vadd.f32 %v22480_v57, %v25883_v44  ;;  %v7396_v9 = vsel %vm86_vm0, %v22714_v47, 0.0  ;;  %v22751_v24 = vld [vmem:[#allocation2 + $0x24a] sm:$0xff] }
 0x42e   :  { %25882 = vst [vmem:[#allocation32_spill] sm:$0xff] %v22717_v59  ;;  %v22725_v8 = vpop.f32.mrf.mxu0  ;;  %v7394_v11 = vsel %vm86_vm0, %v22717_v59, 0.0  ;;  %v7323_v60 = vadd.f32 %v7188_v34, %v6935_v43  ;;  %v22742_v30 = vadd.f32 %v22640_v55, %v7324_v50  ;;  %v9892_v43 = vld [vmem:[#allocation2 + $0x260] sm:$0xff]  ;;  %v9893_v50 = vld [vmem:[#allocation2 + $0x270] sm:$0xff] }
 0x42f   :  { %v7395_v40 = vadd.f32 %v7394_v11, %v7393_v41  ;;  %v18127_v33 = vpop.f32.mrf.mxu1  ;;  %18438 = vmatmul.mubr.msk.f32.gmra.mxu1 %vm86_vm0, %v22723_v1  ;;  %v22755_v11 = vld [vmem:[#allocation2 + $0x25a] sm:$0xff] }
 0x430   :  { %v22734_v49 = vpop.f32.mrf.mxu0  ;;  %18490 = vmatmul.mubr.msk.f32.gmra.mxu0 %vm86_vm0, %v9890_v54  ;;  %25885 = vst [vmem:[#allocation64_spill] sm:$0xff] %v22742_v30  ;;  %v22745_v19 = vadd.f32 %v22640_v55, %v7323_v60  ;;  %v7326_v57 = vadd.f32 %v18127_v33, %v22471_v25  ;;  %18440 = vmatprep.mubr.msk.f32.mxu1 %vm86_vm0, %v22727_v56  ;;  %v25887_v33 = vld [vmem:[#allocation26_spill] sm:$0xff] }
 0x431   :  { %25884 = vst [vmem:[#allocation65_spill] sm:$0xff] %v22734_v49  ;;  %18492 = vmatprep.mubr.msk.f32.mxu0 %vm86_vm0, %v9891_v42  ;;  %v7397_v54 = vadd.f32 %v7396_v9, %v7395_v40  ;;  %v7198_v41 = vpop.f32.mrf.mxu1  ;;  %v6939_v25 = vadd.f32 %v22482_v22, %v6551_v0  ;;  %v6553_v47 = vadd.f32 %v22493_v26, %v25887_v33  ;;  %v7400_v40 = vsel %vm86_vm0, %v22742_v30, 0.0  ;;  %v22779_v0 = vld [vmem:[#allocation2 + $0x262] sm:$0xff] }
 0x432   :  { %25886 = vst [vmem:[#allocation106_spill] sm:$0xff] %v22745_v19  ;;  %v22753_v34 = vpop.f32.mrf.mxu0  ;;  %v7398_v60 = vsel %vm86_vm0, %v22745_v19, 0.0  ;;  %v7325_v44 = vadd.f32 %v7198_v41, %v6937_v21  ;;  %v22770_v9 = vadd.f32 %v22640_v55, %v7326_v57  ;;  %v9894_v21 = vld [vmem:[#allocation2 + $0x278] sm:$0xff]  ;;  %v9895_v57 = vld [vmem:[#allocation2 + $0x288] sm:$0xff] }
 0x433   :  { %v7399_v42 = vadd.f32 %v7398_v60, %v7397_v54  ;;  %v18130_v59 = vpop.f32.mrf.mxu1  ;;  %18441 = vmatmul.mubr.msk.f32.gmra.mxu1 %vm86_vm0, %v22751_v24  ;;  %v22783_v60 = vld [vmem:[#allocation2 + $0x272] sm:$0xff] }
 0x434   :  { %v22762_v49 = vpop.f32.mrf.mxu0  ;;  %18493 = vmatmul.mubr.msk.f32.gmra.mxu0 %vm86_vm0, %v9892_v43  ;;  %25889 = vst [vmem:[#allocation70_spill] sm:$0xff] %v22770_v9  ;;  %v22773_v22 = vadd.f32 %v22640_v55, %v7325_v44  ;;  %v7328_v26 = vadd.f32 %v18130_v59, %v22484_v23  ;;  %18443 = vmatprep.mubr.msk.f32.mxu1 %vm86_vm0, %v22755_v11  ;;  %v25891_v59 = vld [vmem:[#allocation53_spill] sm:$0xff] }
 0x435   :  { %25888 = vst [vmem:[#allocation67_spill] sm:$0xff] %v22762_v49  ;;  %18495 = vmatprep.mubr.msk.f32.mxu0 %vm86_vm0, %v9893_v50  ;;  %v7401_v43 = vadd.f32 %v7400_v40, %v7399_v42  ;;  %v7208_v54 = vpop.f32.mrf.mxu1  ;;  %v6941_v23 = vadd.f32 %v22495_v52, %v6553_v47  ;;  %v6555_v30 = vadd.f32 %v22506_v37, %v25891_v59  ;;  %v7404_v42 = vsel %vm86_vm0, %v22770_v9, 0.0  ;;  %v22807_v47 = vld [vmem:[#allocation2 + $0x27a] sm:$0xff] }
 0x436   :  { %25890 = vst [vmem:[#allocation107_spill] sm:$0xff] %v22773_v22  ;;  %v22781_v41 = vpop.f32.mrf.mxu0  ;;  %v7402_v44 = vsel %vm86_vm0, %v22773_v22, 0.0  ;;  %v7327_v33 = vadd.f32 %v7208_v54, %v6939_v25  ;;  %v22798_v40 = vadd.f32 %v22640_v55, %v7328_v26  ;;  %v9896_v25 = vld [vmem:[#allocation2 + $0x290] sm:$0xff]  ;;  %v9897_v26 = vld [vmem:[#allocation2 + $0x2a0] sm:$0xff] }
 0x437   :  { %v7403_v50 = vadd.f32 %v7402_v44, %v7401_v43  ;;  %v18133_v19 = vpop.f32.mrf.mxu1  ;;  %18444 = vmatmul.mubr.msk.f32.gmra.mxu1 %vm86_vm0, %v22779_v0  ;;  %v22811_v44 = vld [vmem:[#allocation2 + $0x28a] sm:$0xff] }
 0x438   :  { %v22790_v49 = vpop.f32.mrf.mxu0  ;;  %18496 = vmatmul.mubr.msk.f32.gmra.mxu0 %vm86_vm0, %v9894_v21  ;;  %25893 = vst [vmem:[#allocation34_spill] sm:$0xff] %v22798_v40  ;;  %v22801_v52 = vadd.f32 %v22640_v55, %v7327_v33  ;;  %v7330_v37 = vadd.f32 %v18133_v19, %v22497_v17  ;;  %18446 = vmatprep.mubr.msk.f32.mxu1 %vm86_vm0, %v22783_v60  ;;  %v25895_v19 = vld [vmem:[#allocation52_spill] sm:$0xff] }
 0x439   :  { %25892 = vst [vmem:[#allocation33_spill] sm:$0xff] %v22790_v49  ;;  %18498 = vmatprep.mubr.msk.f32.mxu0 %vm86_vm0, %v9895_v57  ;;  %v7405_v21 = vadd.f32 %v7404_v42, %v7403_v50  ;;  %v7218_v43 = vpop.f32.mrf.mxu1  ;;  %v6943_v17 = vadd.f32 %v22508_v13, %v6555_v30  ;;  %v6557_v9 = vadd.f32 %v22519_v3, %v25895_v19  ;;  %v7408_v50 = vsel %vm86_vm0, %v22798_v40, 0.0  ;;  %v22835_v30 = vld [vmem:[#allocation2 + $0x292] sm:$0xff] }
 0x43a   :  { %25894 = vst [vmem:[#allocation69_spill] sm:$0xff] %v22801_v52  ;;  %v22809_v54 = vpop.f32.mrf.mxu0  ;;  %v7406_v33 = vsel %vm86_vm0, %v22801_v52, 0.0  ;;  %v7329_v59 = vadd.f32 %v7218_v43, %v6941_v23  ;;  %v22826_v42 = vadd.f32 %v22640_v55, %v7330_v37  ;;  %v9898_v23 = vld [vmem:[#allocation2 + $0x2a8] sm:$0xff]  ;;  %v9899_v37 = vld [vmem:[#allocation2 + $0x2b8] sm:$0xff] }
 0x43b   :  { %v7407_v57 = vadd.f32 %v7406_v33, %v7405_v21  ;;  %v18136_v22 = vpop.f32.mrf.mxu1  ;;  %18447 = vmatmul.mubr.msk.f32.gmra.mxu1 %vm86_vm0, %v22807_v47  ;;  %v22839_v33 = vld [vmem:[#allocation2 + $0x2a2] sm:$0xff] }
 0x43c   :  { %v22818_v49 = vpop.f32.mrf.mxu0  ;;  %18499 = vmatmul.mubr.msk.f32.gmra.mxu0 %vm86_vm0, %v9896_v25  ;;  %25897 = vst [vmem:[#allocation108_spill] sm:$0xff] %v22826_v42  ;;  %v22829_v13 = vadd.f32 %v22640_v55, %v7329_v59  ;;  %v7332_v3 = vadd.f32 %v18136_v22, %v22510_v7  ;;  %18449 = vmatprep.mubr.msk.f32.mxu1 %vm86_vm0, %v22811_v44  ;;  %v25899_v22 = vld [vmem:[#allocation97_spill] sm:$0xff] }
 0x43d   :  { %25896 = vst [vmem:[#allocation68_spill] sm:$0xff] %v22818_v49  ;;  %18501 = vmatprep.mubr.msk.f32.mxu0 %vm86_vm0, %v9897_v26  ;;  %v7409_v25 = vadd.f32 %v7408_v50, %v7407_v57  ;;  %v7228_v21 = vpop.f32.mrf.mxu1  ;;  %v6945_v7 = vadd.f32 %v22521_v48, %v6557_v9  ;;  %v6559_v40 = vadd.f32 %v22532_v6, %v25899_v22  ;;  %v7412_v57 = vsel %vm86_vm0, %v22826_v42, 0.0  ;;  %v22863_v9 = vld [vmem:[#allocation2 + $0x2aa] sm:$0xff] }
 0x43e   :  { %25898 = vst [vmem:[#allocation71_spill] sm:$0xff] %v22829_v13  ;;  %v22837_v43 = vpop.f32.mrf.mxu0  ;;  %v7410_v59 = vsel %vm86_vm0, %v22829_v13, 0.0  ;;  %v7331_v19 = vadd.f32 %v7228_v21, %v6943_v17  ;;  %v22854_v50 = vadd.f32 %v22640_v55, %v7332_v3  ;;  %v9900_v17 = vld [vmem:[#allocation2 + $0x2c0] sm:$0xff]  ;;  %v9901_v3 = vld [vmem:[#allocation2 + $0x2d0] sm:$0xff] }
 0x43f   :  { %v7411_v26 = vadd.f32 %v7410_v59, %v7409_v25  ;;  %v18139_v52 = vpop.f32.mrf.mxu1  ;;  %18450 = vmatmul.mubr.msk.f32.gmra.mxu1 %vm86_vm0, %v22835_v30  ;;  %v22867_v59 = vld [vmem:[#allocation2 + $0x2ba] sm:$0xff] }
 0x440   :  { %v22846_v49 = vpop.f32.mrf.mxu0  ;;  %18502 = vmatmul.mubr.msk.f32.gmra.mxu0 %vm86_vm0, %v9898_v23  ;;  %25901 = vst [vmem:[#allocation109_spill] sm:$0xff] %v22854_v50  ;;  %v22857_v48 = vadd.f32 %v22640_v55, %v7331_v19  ;;  %v7334_v6 = vadd.f32 %v18139_v52, %v22523_v18  ;;  %18452 = vmatprep.mubr.msk.f32.mxu1 %vm86_vm0, %v22839_v33  ;;  %v25903_v52 = vld [vmem:[#allocation55_spill] sm:$0xff] }
 0x441   :  { %25900 = vst [vmem:[#allocation74_spill] sm:$0xff] %v22846_v49  ;;  %18504 = vmatprep.mubr.msk.f32.mxu0 %vm86_vm0, %v9899_v37  ;;  %v7413_v23 = vadd.f32 %v7412_v57, %v7411_v26  ;;  %v7238_v25 = vpop.f32.mrf.mxu1  ;;  %v6947_v18 = vadd.f32 %v22534_v27, %v6559_v40  ;;  %v6561_v42 = vadd.f32 %v22545_v16, %v25903_v52  ;;  %v7416_v26 = vsel %vm86_vm0, %v22854_v50, 0.0  ;;  %v22891_v40 = vld [vmem:[#allocation2 + $0x2c2] sm:$0xff] }
 0x442   :  { %25902 = vst [vmem:[#allocation35_spill] sm:$0xff] %v22857_v48  ;;  %v22865_v21 = vpop.f32.mrf.mxu0  ;;  %v7414_v19 = vsel %vm86_vm0, %v22857_v48, 0.0  ;;  %v7333_v22 = vadd.f32 %v7238_v25, %v6945_v7  ;;  %v22882_v57 = vadd.f32 %v22640_v55, %v7334_v6  ;;  %v9902_v7 = vld [vmem:[#allocation2 + $0x2d8] sm:$0xff]  ;;  %v9903_v6 = vld [vmem:[#allocation2 + $0x2e8] sm:$0xff] }
 0x443   :  { %v7415_v37 = vadd.f32 %v7414_v19, %v7413_v23  ;;  %v18142_v13 = vpop.f32.mrf.mxu1  ;;  %18453 = vmatmul.mubr.msk.f32.gmra.mxu1 %vm86_vm0, %v22863_v9  ;;  %v22895_v19 = vld [vmem:[#allocation2 + $0x2d2] sm:$0xff] }
 0x444   :  { %v22874_v49 = vpop.f32.mrf.mxu0  ;;  %18505 = vmatmul.mubr.msk.f32.gmra.mxu0 %vm86_vm0, %v9900_v17  ;;  %25905 = vst [vmem:[#allocation73_spill] sm:$0xff] %v22882_v57  ;;  %v22885_v27 = vadd.f32 %v22640_v55, %v7333_v22  ;;  %v7336_v16 = vadd.f32 %v18142_v13, %v22536_v14  ;;  %18455 = vmatprep.mubr.msk.f32.mxu1 %vm86_vm0, %v22867_v59  ;;  %v25908_v13 = vld [vmem:[#allocation58_spill] sm:$0xff] }
 0x445   :  { %25904 = vst [vmem:[#allocation36_spill] sm:$0xff] %v22874_v49  ;;  %18507 = vmatprep.mubr.msk.f32.mxu0 %vm86_vm0, %v9901_v3  ;;  %v7417_v17 = vadd.f32 %v7416_v26, %v7415_v37  ;;  %v7248_v23 = vpop.f32.mrf.mxu1  ;;  %v6949_v14 = vadd.f32 %v22547_v36, %v6561_v42  ;;  %v6563_v50 = vadd.f32 %v22558_v51, %v25908_v13  ;;  %v7420_v37 = vsel %vm86_vm0, %v22882_v57, 0.0  ;;  %v22919_v42 = vld [vmem:[#allocation2 + $0x2da] sm:$0xff] }
 0x446   :  { %25906 = vst [vmem:[#allocation72_spill] sm:$0xff] %v22885_v27  ;;  %v22893_v25 = vpop.f32.mrf.mxu0  ;;  %v7418_v22 = vsel %vm86_vm0, %v22885_v27, 0.0  ;;  %v7335_v52 = vadd.f32 %v7248_v23, %v6947_v18  ;;  %v22910_v26 = vadd.f32 %v22640_v55, %v7336_v16  ;;  %v9904_v18 = vld [vmem:[#allocation2 + $0x2f0] sm:$0xff]  ;;  %v9905_v16 = vld [vmem:[#allocation2 + $0x300] sm:$0xff] }
 0x447   :  { %25907 = vst [vmem:[#allocation111_spill] sm:$0xff] %v22893_v25  ;;  %v7419_v3 = vadd.f32 %v7418_v22, %v7417_v17  ;;  %v18145_v48 = vpop.f32.mrf.mxu1  ;;  %18456 = vmatmul.mubr.msk.f32.gmra.mxu1 %vm86_vm0, %v22891_v40  ;;  %v22923_v22 = vld [vmem:[#allocation2 + $0x2ea] sm:$0xff] }
 0x448   :  { %v22902_v49 = vpop.f32.mrf.mxu0  ;;  %18508 = vmatmul.mubr.msk.f32.gmra.mxu0 %vm86_vm0, %v9902_v7  ;;  %25909 = vst [vmem:[#allocation75_spill] sm:$0xff] %v22910_v26  ;;  %v22913_v36 = vadd.f32 %v22640_v55, %v7335_v52  ;;  %v7338_v51 = vadd.f32 %v18145_v48, %v22549_v53  ;;  %18458 = vmatprep.mubr.msk.f32.mxu1 %vm86_vm0, %v22895_v19  ;;  %v25912_v48 = vld [vmem:[#allocation110_spill] sm:$0xff] }
 0x449   :  { %18510 = vmatprep.mubr.msk.f32.mxu0 %vm86_vm0, %v9903_v6  ;;  %v7421_v7 = vadd.f32 %v7420_v37, %v7419_v3  ;;  %v7258_v17 = vpop.f32.mrf.mxu1  ;;  %v6951_v53 = vadd.f32 %v22560_v45, %v6563_v50  ;;  %v6565_v57 = vadd.f32 %v22571_v4, %v25912_v48  ;;  %v7424_v3 = vsel %vm86_vm0, %v22910_v26, 0.0  ;;  %v22947_v50 = vld [vmem:[#allocation2 + $0x2f2] sm:$0xff] }
 0x44a   :  { %25910 = vst [vmem:[#allocation78_spill] sm:$0xff] %v22913_v36  ;;  %v22921_v23 = vpop.f32.mrf.mxu0  ;;  %v7422_v52 = vsel %vm86_vm0, %v22913_v36, 0.0  ;;  %v7337_v13 = vadd.f32 %v7258_v17, %v6949_v14  ;;  %v22938_v37 = vadd.f32 %v22640_v55, %v7338_v51  ;;  %v9906_v14 = vld [vmem:[#allocation2 + $0x308] sm:$0xff]  ;;  %v9907_v51 = vld [vmem:[#allocation2 + $0x318] sm:$0xff] }
 0x44b   :  { %25911 = vst [vmem:[#allocation112_spill] sm:$0xff] %v22921_v23  ;;  %v7423_v6 = vadd.f32 %v7422_v52, %v7421_v7  ;;  %v18148_v27 = vpop.f32.mrf.mxu1  ;;  %18459 = vmatmul.mubr.msk.f32.gmra.mxu1 %vm86_vm0, %v22919_v42  ;;  %v22951_v52 = vld [vmem:[#allocation2 + $0x302] sm:$0xff] }
 0x44c   :  { %v22930_v25 = vpop.f32.mrf.mxu0  ;;  %18511 = vmatmul.mubr.msk.f32.gmra.mxu0 %vm86_vm0, %v9904_v18  ;;  %25913 = vst [vmem:[#allocation37_spill] sm:$0xff] %v22938_v37  ;;  %v22941_v45 = vadd.f32 %v22640_v55, %v7337_v13  ;;  %v7340_v4 = vadd.f32 %v18148_v27, %v22562_v62  ;;  %18461 = vmatprep.mubr.msk.f32.mxu1 %vm86_vm0, %v22923_v22  ;;  %v25915_v27 = vld [vmem:[#allocation98_spill] sm:$0xff] }
 0x44d   :  { %18513 = vmatprep.mubr.msk.f32.mxu0 %vm86_vm0, %v9905_v16  ;;  %v7425_v18 = vadd.f32 %v7424_v3, %v7423_v6  ;;  %v7268_v7 = vpop.f32.mrf.mxu1  ;;  %v6953_v62 = vadd.f32 %v22573_v31, %v6565_v57  ;;  %v6567_v26 = vadd.f32 %v22584_v29, %v25915_v27  ;;  %v7428_v6 = vsel %vm86_vm0, %v22938_v37, 0.0  ;;  %v22975_v57 = vld [vmem:[#allocation2 + $0x30a] sm:$0xff] }
 0x44e   :  { %25914 = vst [vmem:[#allocation38_spill] sm:$0xff] %v22941_v45  ;;  %v22949_v17 = vpop.f32.mrf.mxu0  ;;  %v7426_v13 = vsel %vm86_vm0, %v22941_v45, 0.0  ;;  %v7339_v48 = vadd.f32 %v7268_v7, %v6951_v53  ;;  %v22966_v3 = vadd.f32 %v22640_v55, %v7340_v4  ;;  %v9908_v53 = vld [vmem:[#allocation2 + $0x320] sm:$0xff] }
 0x44f   :  { %v7427_v16 = vadd.f32 %v7426_v13, %v7425_v18  ;;  %v18151_v36 = vpop.f32.mrf.mxu1  ;;  %18462 = vmatmul.mubr.msk.f32.gmra.mxu1 %vm86_vm0, %v22947_v50  ;;  %v22979_v13 = vld [vmem:[#allocation2 + $0x31a] sm:$0xff] }
 0x450   :  { %v22958_v23 = vpop.f32.mrf.mxu0  ;;  %18514 = vmatmul.mubr.msk.f32.gmra.mxu0 %vm86_vm0, %v9906_v14  ;;  %25916 = vst [vmem:[#allocation77_spill] sm:$0xff] %v22966_v3  ;;  %v22969_v31 = vadd.f32 %v22640_v55, %v7339_v48  ;;  %v7342_v29 = vadd.f32 %v18151_v36, %v22575_v20  ;;  %18464 = vmatprep.mubr.msk.f32.mxu1 %vm86_vm0, %v22951_v52 }
 0x451   :  { %18516 = vmatprep.mubr.msk.f32.mxu0 %vm86_vm0, %v9907_v51  ;;  %v7429_v14 = vadd.f32 %v7428_v6, %v7427_v16  ;;  %v7278_v18 = vpop.f32.mrf.mxu1  ;;  %v6955_v20 = vadd.f32 %v22586_v46, %v6567_v26  ;;  %v6569_v36 = vadd.f32 %v22601_v12, %v22389_v2  ;;  %v7432_v16 = vsel %vm86_vm0, %v22966_v3, 0.0  ;;  %v23004_v12 = vld [vmem:[#allocation2 + $0x322] sm:$0xff] }
 0x452   :  { %25917 = vst [vmem:[#allocation76_spill] sm:$0xff] %v22969_v31  ;;  %v22977_v7 = vpop.f32.mrf.mxu0  ;;  %v7430_v4 = vsel %vm86_vm0, %v22969_v31, 0.0  ;;  %v7341_v48 = vadd.f32 %v7278_v18, %v6953_v62  ;;  %v22994_v6 = vadd.f32 %v22640_v55, %v7342_v29  ;;  %v9911_v29 = vld [vmem:[#allocation2 + $0x348] sm:$0xff] }
 0x453   :  { %25918 = vst [vmem:[#allocation113_spill] sm:$0xff] %v22977_v7  ;;  %v7431_v27 = vadd.f32 %v7430_v4, %v7429_v14  ;;  %v18154_v51 = vpop.f32.mrf.mxu1  ;;  %18465 = vmatmul.mubr.msk.f32.gmra.mxu1 %vm86_vm0, %v22975_v57  ;;  %v23008_v14 = vld [vmem:[#allocation2 + $0x332] sm:$0xff] }
 0x454   :  { %v22986_v37 = vpop.f32.mrf.mxu0  ;;  %18517 = vmatmul.mubr.msk.f32.gmra.mxu0 %vm86_vm0, %v9908_v53  ;;  %25919 = vst [vmem:[#allocation79_spill] sm:$0xff] %v22994_v6  ;;  %v22997_v46 = vadd.f32 %v22640_v55, %v7341_v48  ;;  %v7344_v2 = vadd.f32 %v18154_v51, %v22590_v5  ;;  %18467 = vmatprep.mubr.msk.f32.mxu1 %vm86_vm0, %v22979_v13  ;;  %v25922_v48 = vld [vmem:[#allocation28_spill] sm:$0xff] }
 0x455   :  { %18519 = vmatprep.mubr.msk.f32.mxu0 %vm86_vm0, %v22588_v63  ;;  %v7433_v26 = vadd.f32 %v7432_v16, %v7431_v27  ;;  %v7288_v62 = vpop.f32.mrf.mxu1  ;;  %v6957_v5 = vadd.f32 %v22603_v35, %v6569_v36  ;;  %v6571_v51 = vadd.f32 %v22616_v39, %v25922_v48  ;;  %v25923_v27 = vld [vmem:[#allocation57_spill] sm:$0xff]  ;;  %v7436_v16 = vsel %vm86_vm0, %v22994_v6, 0.0  ;;  %v25926_v39 = vld [vmem:[#allocation56_spill] sm:$0xff] }
 0x456   :  { %25920 = vst [vmem:[#allocation82_spill] sm:$0xff] %v22997_v46  ;;  %v23006_v53 = vpop.f32.mrf.mxu0  ;;  %v7434_v18 = vsel %vm86_vm0, %v22997_v46, 0.0  ;;  %v7343_v4 = vadd.f32 %v7288_v62, %v6955_v20  ;;  %v23024_v20 = vadd.f32 %v22640_v55, %v7344_v2  ;;  %v9912_v62 = vld [vmem:[#allocation2 + $0x350] sm:$0xff]  ;;  %v10268_v6 = vld [vmem:[#allocation2 + $0x1e1] sm:$0xff] }
 0x457   :  { %25921 = vst [vmem:[#allocation114_spill] sm:$0xff] %v23006_v53  ;;  %v7435_v3 = vadd.f32 %v7434_v18, %v7433_v26  ;;  %v18157_v63 = vpop.f32.mrf.mxu1  ;;  %18468 = vmatmul.mubr.msk.f32.gmra.mxu1 %vm86_vm0, %v23004_v12  ;;  %v23033_v26 = vld [vmem:[#allocation2 + $0x33a] sm:$0xff]  ;;  %v6959_v46 = vadd.f32 %v22618_v28, %v6571_v51  ;;  %v10269_v51 = vld [vmem:[#allocation2 + $0x1e9] sm:$0xff] }
 0x458   :  { %v23015_v31 = vpop.f32.mrf.mxu0  ;;  %18520 = vmatmul.mubr.msk.f32.gmra.mxu0 %vm86_vm0, %v25923_v27  ;;  %25924 = vst [vmem:[#allocation39_spill] sm:$0xff] %v23024_v20  ;;  %v23027_v35 = vadd.f32 %v22640_v55, %v7343_v4  ;;  %v7346_v36 = vadd.f32 %v18157_v63, %v25926_v39  ;;  %18470 = vmatprep.mubr.msk.f32.mxu1 %vm86_vm0, %v23008_v14 }
 0x459   :  { %18522 = vmatprep.mubr.msk.f32.mxu0 %vm86_vm0, %v9911_v29  ;;  %v7437_v18 = vadd.f32 %v7436_v16, %v7435_v3  ;;  %v7298_v48 = vpop.f32.mrf.mxu1  ;;  %v7440_v3 = vsel %vm86_vm0, %v23024_v20, 0.0 }
 0x45a   :  { %25925 = vst [vmem:[#allocation81_spill] sm:$0xff] %v23027_v35  ;;  %v23035_v27 = vpop.f32.mrf.mxu0  ;;  %v7438_v2 = vsel %vm86_vm0, %v23027_v35, 0.0  ;;  %v7345_v4 = vadd.f32 %v7298_v48, %v6957_v5  ;;  %v23048_v29 = vadd.f32 %v22640_v55, %v7346_v36  ;;  %v25930_v5 = vld [vmem:[#allocation100_spill] sm:$0xff] }
 0x45b   :  { %25927 = vst [vmem:[#allocation80_spill] sm:$0xff] %v23035_v27  ;;  %v7439_v63 = vadd.f32 %v7438_v2, %v7437_v18  ;;  %v18160_v39 = vpop.f32.mrf.mxu1  ;;  %18471 = vmatmul.mubr.msk.f32.gmra.mxu1 %vm86_vm0, %v23033_v26  ;;  %v10270_v2 = vld [vmem:[#allocation2 + $0x1f9] sm:$0xff] }
 0x45c   :  { %v23040_v45 = vpop.f32.mrf.mxu0  ;;  %18523 = vmatmul.mubr.msk.f32.gmra.mxu0 %vm86_vm0, %v9912_v62  ;;  %25928 = vst [vmem:[#allocation83_spill] sm:$0xff] %v23048_v29  ;;  %v23051_v16 = vadd.f32 %v22640_v55, %v7345_v4  ;;  %v7348_v28 = vadd.f32 %v18160_v39, %v25930_v5  ;;  %18529 = vmatprep.mubr.msk.f32.mxu1 %vm86_vm0, %v10268_v6  ;;  %v25934_v39 = vld [vmem:[#allocation59_spill] sm:$0xff]  ;;  %v10271_v5 = vld [vmem:[#allocation2 + $0x201] sm:$0xff] }
 0x45d   :  { %18581 = vmatprep.mubr.msk.f32.mxu0 %vm86_vm0, %v22622_v10  ;;  %v7441_v18 = vadd.f32 %v7440_v3, %v7439_v63  ;;  %v7308_v48 = vpop.f32.mrf.mxu1  ;;  %v7444_v10 = vsel %vm86_vm0, %v23048_v29, 0.0  ;;  %v25936_v29 = vld [vmem:[#allocation62_spill] sm:$0xff] }
 0x45e   :  { %25929 = vst [vmem:[#allocation86_spill] sm:$0xff] %v23051_v16  ;;  %v23057_v62 = vpop.f32.mrf.mxu0  ;;  %v7442_v36 = vsel %vm86_vm0, %v23051_v16, 0.0  ;;  %v7347_v20 = vadd.f32 %v7308_v48, %v6959_v46  ;;  %v23067_v6 = vadd.f32 %v22640_v55, %v7348_v28  ;;  %v25935_v46 = vld [vmem:[#allocation101_spill] sm:$0xff]  ;;  %v10272_v48 = vld [vmem:[#allocation2 + $0x211] sm:$0xff] }
 0x45f   :  { %25931 = vst [vmem:[#allocation116_spill] sm:$0xff] %v23057_v62  ;;  %v7443_v35 = vadd.f32 %v7442_v36, %v7441_v18  ;;  %v18219_v4 = vpop.f32.mrf.mxu1  ;;  %18530 = vmatmul.mubr.msk.f32.vlgmr.msra.gmra.mxu1 %vm86_vm0, %v10269_v51 }
 0x460   :  { %v18271_v27 = vpop.f32.mrf.mxu0  ;;  %18582 = vmatmul.mubr.msk.f32.vlgmr.msra.gmra.mxu0 %vm86_vm0, %v22635_v15  ;;  %25932 = vst [vmem:[#allocation85_spill] sm:$0xff] %v23067_v6  ;;  %v23070_v63 = vadd.f32 %v22640_v55, %v7347_v20  ;;  %v8178_v3 = vadd.f32 %v18219_v4, %v25934_v39  ;;  %18532 = vmatprep.mubr.msk.f32.mxu1 %vm86_vm0, %v10270_v2 }
 0x461   :  { %18584 = vmatprep.mubr.msk.f32.mxu0 %vm86_vm0, %v25935_v46  ;;  %v7445_v51 = vadd.f32 %v7444_v10, %v7443_v35  ;;  %v8172_v18 = vpop.f32.mrf.mxu1  ;;  %v7448_v35 = vsel %vm86_vm0, %v23067_v6, 0.0  ;;  %v25937_v10 = vld [vmem:[#allocation115_spill] sm:$0xff] }
 0x462   :  { %25933 = vst [vmem:[#allocation84_spill] sm:$0xff] %v23070_v63  ;;  %v8527_v15 = vpop.f32.mrf.mxu0  ;;  %v7446_v36 = vsel %vm86_vm0, %v23070_v63, 0.0  ;;  %v23078_v28 = vadd.f32 %v18271_v27, %v8178_v3  ;;  %v8173_v55 = vadd.f32 %v8172_v18, %v25936_v29  ;;  %v25938_v27 = vld [vmem:[#allocation60_spill] sm:$0xff] }
 0x463   :  { %v7447_v20 = vadd.f32 %v7446_v36, %v7445_v51  ;;  %v18222_v16 = vpop.f32.mrf.mxu1  ;;  %18533 = vmatmul.mubr.msk.f32.gmra.mxu1 %vm86_vm0, %v10271_v5  ;;  %v10273_v29 = vld [vmem:[#allocation2 + $0x219] sm:$0xff]  ;;  %v10274_v5 = vld [vmem:[#allocation2 + $0x229] sm:$0xff] }
 0x464   :  { %v18274_v4 = vpop.f32.mrf.mxu0  ;;  %18585 = vmatmul.mubr.msk.f32.gmra.mxu0 %vm86_vm0, %v22667_v32  ;;  %v23086_v2 = vadd.f32 %v8527_v15, %v8173_v55  ;;  %v8188_v39 = vadd.f32 %v18222_v16, %v25937_v10  ;;  %18535 = vmatprep.mubr.msk.f32.mxu1 %vm86_vm0, %v10272_v48  ;;  %v25939_v32 = vld [vmem:[#allocation61_spill] sm:$0xff]  ;;  %v25940_v48 = vld [vmem:[#allocation103_spill] sm:$0xff] }
 0x465   :  { %18587 = vmatprep.mubr.msk.f32.mxu0 %vm86_vm0, %v25938_v27  ;;  %v7449_v3 = vadd.f32 %v7448_v35, %v7447_v20  ;;  %v8182_v46 = vpop.f32.mrf.mxu1  ;;  %v10275_v20 = vld [vmem:[#allocation2 + $0x231] sm:$0xff]  ;;  %v10276_v10 = vld [vmem:[#allocation2 + $0x241] sm:$0xff] }
 0x466   :  { %v8537_v51 = vpop.f32.mrf.mxu0  ;;  %v23092_v18 = vadd.f32 %v18274_v4, %v8188_v39  ;;  %v8183_v36 = vadd.f32 %v8182_v46, %v25939_v32  ;;  %v10278_v32 = vld [vmem:[#allocation2 + $0x259] sm:$0xff] }
 0x467   :  { %v18225_v63 = vpop.f32.mrf.mxu1  ;;  %18536 = vmatmul.mubr.msk.f32.gmra.mxu1 %vm86_vm0, %v10273_v29  ;;  %v7450_v16 = vrot.slane %v7449_v3, 4 }
 0x468   :  { %v18277_v6 = vpop.f32.mrf.mxu0  ;;  %18588 = vmatmul.mubr.msk.f32.gmra.mxu0 %vm86_vm0, %v22695_v61  ;;  %v23098_v15 = vadd.f32 %v8537_v51, %v8183_v36  ;;  %v8198_v55 = vadd.f32 %v18225_v63, %v25940_v48  ;;  %18538 = vmatprep.mubr.msk.f32.mxu1 %vm86_vm0, %v10274_v5 }
 0x469   :  { %18590 = vmatprep.mubr.msk.f32.mxu0 %vm86_vm0, %v22699_v38  ;;  %v8192_v4 = vpop.f32.mrf.mxu1  ;;  %v7451_v39 = vadd.f32 %v7450_v16, %v7449_v3  ;;  %v25941_v38 = vld [vmem:[#allocation104_spill] sm:$0xff] }
 0x46a   :  { %v8547_v35 = vpop.f32.mrf.mxu0  ;;  %v23104_v27 = vadd.f32 %v18277_v6, %v8198_v55  ;;  %v8193_v29 = vadd.f32 %v8192_v4, %v22697_v58  ;;  %v10277_v6 = vld [vmem:[#allocation2 + $0x249] sm:$0xff] }
 0x46b   :  { %v18228_v61 = vpop.f32.mrf.mxu1  ;;  %18539 = vmatmul.mubr.msk.f32.gmra.mxu1 %vm86_vm0, %v10275_v20  ;;  %v7452_v63 = vrot.slane %v7451_v39, 2 }
 0x46c   :  { %v18280_v46 = vpop.f32.mrf.mxu0  ;;  %18591 = vmatmul.mubr.msk.f32.gmra.mxu0 %vm86_vm0, %v22723_v1  ;;  %v23110_v51 = vadd.f32 %v8547_v35, %v8193_v29  ;;  %v8208_v5 = vadd.f32 %v18228_v61, %v25941_v38  ;;  %18541 = vmatprep.mubr.msk.f32.mxu1 %vm86_vm0, %v10276_v10  ;;  %v10279_v10 = vld [vmem:[#allocation2 + $0x261] sm:$0xff]  ;;  %v10280_v61 = vld [vmem:[#allocation2 + $0x271] sm:$0xff] }
 0x46d   :  { %18593 = vmatprep.mubr.msk.f32.mxu0 %vm86_vm0, %v22727_v56  ;;  %v8202_v3 = vpop.f32.mrf.mxu1  ;;  %v7453_v36 = vadd.f32 %v7452_v63, %v7451_v39  ;;  %v25942_v56 = vld [vmem:[#allocation65_spill] sm:$0xff]  ;;  %v11207_v39 = vld [vmem:[#allocation10 + $0x18] sm:$0xff] }
 0x46e   :  { %v8557_v58 = vpop.f32.mrf.mxu0  ;;  %v23116_v16 = vadd.f32 %v18280_v46, %v8208_v5  ;;  %v8203_v48 = vadd.f32 %v8202_v3, %v22725_v8  ;;  %18629 = vmatprep.subr.mxu1 %v11207_v39  ;;  %v7457_v38 = vld [vmem:[%s25385_s5] sm:$0xf] }
 0x46f   :  { %v18231_v1 = vpop.f32.mrf.mxu1  ;;  %18542 = vmatmul.mubr.msk.f32.gmra.mxu1 %vm86_vm0, %v10277_v6  ;;  %v7454_v20 = vrot.slane %v7453_v36, 1 }
 0x470   :  { %v18283_v55 = vpop.f32.mrf.mxu0  ;;  %18594 = vmatmul.mubr.msk.f32.gmra.mxu0 %vm86_vm0, %v22751_v24  ;;  %v23122_v4 = vadd.f32 %v8557_v58, %v8203_v48  ;;  %v8218_v35 = vadd.f32 %v18231_v1, %v25942_v56  ;;  %18544 = vmatprep.mubr.msk.f32.mxu1 %vm86_vm0, %v10278_v32  ;;  %v25943_v58 = vld [vmem:[#allocation67_spill] sm:$0xff] }
 0x471   :  { %18596 = vmatprep.mubr.msk.f32.mxu0 %vm86_vm0, %v22755_v11  ;;  %v8212_v8 = vpop.f32.mrf.mxu1  ;;  %v7455_v46 = vadd.f32 %v7454_v20, %v7453_v36  ;;  %18630 = vmatpush3.msra.mxu1 %v11207_v39  ;;  %v25944_v39 = vld [vmem:[#allocation33_spill] sm:$0xff] }
 0x472   :  { %v8567_v29 = vpop.f32.mrf.mxu0  ;;  %v23128_v63 = vadd.f32 %v18283_v55, %v8218_v35  ;;  %v8213_v24 = vadd.f32 %v8212_v8, %v22753_v34  ;;  %v10281_v34 = vld [vmem:[#allocation2 + $0x279] sm:$0xff]  ;;  %v10282_v55 = vld [vmem:[#allocation2 + $0x289] sm:$0xff] }
 0x473   :  { %v18234_v5 = vpop.f32.mrf.mxu1  ;;  %18545 = vmatmul.mubr.msk.f32.gmra.mxu1 %vm86_vm0, %v10279_v10  ;;  %v7456_v11 = vmul.f32 0.00390625, %v7455_v46 }
 0x474   :  { %v18286_v6 = vpop.f32.mrf.mxu0  ;;  %18597 = vmatmul.mubr.msk.f32.gmra.mxu0 %vm86_vm0, %v22779_v0  ;;  %v23137_v3 = vadd.f32 %v8567_v29, %v8213_v24  ;;  %v8228_v32 = vadd.f32 %v18234_v5, %v25943_v58  ;;  %18547 = vmatprep.mubr.msk.f32.mxu1 %vm86_vm0, %v10280_v61  ;;  %v10283_v29 = vld [vmem:[#allocation2 + $0x291] sm:$0xff] }
 0x475   :  { %18599 = vmatprep.mubr.msk.f32.mxu0 %vm86_vm0, %v22783_v60  ;;  %v8222_v36 = vpop.f32.mrf.mxu1  ;;  %v7458_v1 = vmul.f32 %v7457_v38, %v7456_v11  ;;  %v25945_v11 = vld [vmem:[#allocation68_spill] sm:$0xff] }
 0x476   :  { %v8577_v48 = vpop.f32.mrf.mxu0  ;;  %v23143_v20 = vadd.f32 %v18286_v6, %v8228_v32  ;;  %v8223_v0 = vadd.f32 %v8222_v36, %v22781_v41  ;;  %v10284_v41 = vld [vmem:[#allocation2 + $0x2a1] sm:$0xff] }
 0x477   :  { %v18237_v56 = vpop.f32.mrf.mxu1  ;;  %18548 = vmatmul.mubr.msk.f32.gmra.mxu1 %vm86_vm0, %v10281_v34  ;;  %v7460_v10 = vsel %vm7459_vm3, %v7458_v1, 0.0 }
 0x478   :  { %v18289_v35 = vpop.f32.mrf.mxu0  ;;  %18600 = vmatmul.mubr.msk.f32.gmra.mxu0 %vm86_vm0, %v22807_v47  ;;  %v23150_v60 = vadd.f32 %v8577_v48, %v8223_v0  ;;  %v8238_v8 = vadd.f32 %v18237_v56, %v25944_v39  ;;  %7461 = vadd.xlane.f32.xlu0 %v7460_v10  ;;  %v25947_v0 = vld [vmem:[#allocation74_spill] sm:$0xff] }
 0x479   :  { %18550 = vmatprep.mubr.msk.f32.mxu1 %vm86_vm0, %v10282_v55  ;;  %v8232_v61 = vpop.f32.mrf.mxu1  ;;  %18602 = vmatprep.mubr.msk.f32.mxu0 %vm86_vm0, %v22811_v44  ;;  %v10285_v44 = vld [vmem:[#allocation2 + $0x2a9] sm:$0xff] }
 0x47a   :  { %v8587_v46 = vpop.f32.mrf.mxu0  ;;  %v23156_v24 = vadd.f32 %v18289_v35, %v8238_v8  ;;  %v8233_v47 = vadd.f32 %v8232_v61, %v22809_v54  ;;  %v10286_v54 = vld [vmem:[#allocation2 + $0x2b9] sm:$0xff] }
 0x47b   :  { %v18240_v38 = vpop.f32.mrf.mxu1  ;;  %18551 = vmatmul.mubr.msk.f32.gmra.mxu1 %vm86_vm0, %v10283_v29 }
 0x47c   :  { %v18292_v5 = vpop.f32.mrf.mxu0  ;;  %18603 = vmatmul.mubr.msk.f32.gmra.mxu0 %vm86_vm0, %v22835_v30  ;;  %v23162_v6 = vadd.f32 %v8587_v46, %v8233_v47  ;;  %v8248_v58 = vadd.f32 %v18240_v38, %v25945_v11  ;;  %18553 = vmatprep.mubr.msk.f32.mxu1 %vm86_vm0, %v10284_v41  ;;  %v25949_v46 = vld [vmem:[#allocation36_spill] sm:$0xff]  ;;  %v10290_v38 = vld [vmem:[#allocation2 + $0x2e9] sm:$0xff]  ;;  %v19255_v11 = vmov 0  }
 0x47d   :  { %18605 = vmatprep.mubr.msk.f32.mxu0 %vm86_vm0, %v22839_v33  ;;  %v8242_v32 = vpop.f32.mrf.mxu1  ;;  %v10287_v33 = vld [vmem:[#allocation2 + $0x2c1] sm:$0xff]  ;;  %19106 = vset.pattern.permute.xlu1 %v19255_v11 }
 0x47e   :  { %v8597_v34 = vpop.f32.mrf.mxu0  ;;  %v23168_v36 = vadd.f32 %v18292_v5, %v8248_v58  ;;  %v8243_v48 = vadd.f32 %v8242_v32, %v22837_v43  ;;  %v10288_v43 = vld [vmem:[#allocation2 + $0x2d1] sm:$0xff]  ;;  %19107 = vset.pattern.permute.xlu0 %v19255_v11 }
 0x47f   :  { %v18243_v1 = vpop.f32.mrf.mxu1  ;;  %18554 = vmatmul.mubr.msk.f32.gmra.mxu1 %vm86_vm0, %v10285_v44  ;;  %v10291_v44 = vld [vmem:[#allocation2 + $0x2f1] sm:$0xff] }
 0x480   :  { %v18295_v55 = vpop.f32.mrf.mxu0  ;;  %18606 = vmatmul.mubr.msk.f32.gmra.mxu0 %vm86_vm0, %v22863_v9  ;;  %v23174_v30 = vadd.f32 %v8597_v34, %v8243_v48  ;;  %v8258_v56 = vadd.f32 %v18243_v1, %v25947_v0  ;;  %18556 = vmatprep.mubr.msk.f32.mxu1 %vm86_vm0, %v10286_v54  ;;  %v10292_v54 = vld [vmem:[#allocation2 + $0x301] sm:$0xff]  ;;  %v10685_v11 = vld [vmem:[#allocation2 + $0x34a] sm:$0xff] }
 0x481   :  { %18608 = vmatprep.mubr.msk.f32.mxu0 %vm86_vm0, %v22867_v59  ;;  %v8252_v35 = vpop.f32.mrf.mxu1  ;;  %v10289_v59 = vld [vmem:[#allocation2 + $0x2d9] sm:$0xff] }
 0x482   :  { %25946 = vst [vmem:[#allocation87_spill] sm:$0xff] %v23174_v30  ;;  %v8607_v10 = vpop.f32.mrf.mxu0  ;;  %v23180_v39 = vadd.f32 %v18295_v55, %v8258_v56  ;;  %v8253_v8 = vadd.f32 %v8252_v35, %v22865_v21  ;;  %v10294_v56 = vld [vmem:[#allocation2 + $0x319] sm:$0xff] }
 0x483   :  { %v18246_v29 = vpop.f32.mrf.mxu1  ;;  %18557 = vmatmul.mubr.msk.f32.gmra.mxu1 %vm86_vm0, %v10287_v33 }
 0x484   :  { %v18298_v61 = vpop.f32.mrf.mxu0  ;;  %18609 = vmatmul.mubr.msk.f32.gmra.mxu0 %vm86_vm0, %v22891_v40  ;;  %v23186_v9 = vadd.f32 %v8607_v10, %v8253_v8  ;;  %v8268_v41 = vadd.f32 %v18246_v29, %v25949_v46  ;;  %18559 = vmatprep.mubr.msk.f32.mxu1 %vm86_vm0, %v10288_v43  ;;  %v10296_v29 = vld [vmem:[#allocation2 + $0x331] sm:$0xff] }
 0x485   :  { %18611 = vmatprep.mubr.msk.f32.mxu0 %vm86_vm0, %v22895_v19  ;;  %v23192_v47 = vpop.f32.mrf.mxu1 }
 0x486   :  { %25948 = vst [vmem:[#allocation88_spill] sm:$0xff] %v23186_v9  ;;  %v23194_v21 = vpop.f32.mrf.mxu0  ;;  %v23196_v5 = vadd.f32 %v18298_v61, %v8268_v41 }
 0x487   :  { %v18249_v40 = vpop.f32.mrf.mxu1  ;;  %18560 = vmatmul.mubr.msk.f32.gmra.mxu1 %vm86_vm0, %v10289_v59 }
 0x488   :  { %v18301_v58 = vpop.f32.mrf.mxu0  ;;  %18612 = vmatmul.mubr.msk.f32.gmra.mxu0 %vm86_vm0, %v22919_v42  ;;  %v8278_v19 = vadd.f32 %v18249_v40, %v22902_v49  ;;  %18562 = vmatprep.mubr.msk.f32.mxu1 %vm86_vm0, %v10290_v38  ;;  %v10293_v42 = vld [vmem:[#allocation2 + $0x309] sm:$0xff] }
 0x489   :  { %18614 = vmatprep.mubr.msk.f32.mxu0 %vm86_vm0, %v22923_v22  ;;  %v23205_v32 = vpop.f32.mrf.mxu1  ;;  %v10298_v38 = vld [vmem:[#allocation2 + $0x349] sm:$0xff] }
 0x48a   :  { %v23207_v34 = vpop.f32.mrf.mxu0  ;;  %v23209_v48 = vadd.f32 %v18301_v58, %v8278_v19 }
 0x48b   :  { %25950 = vst [vmem:[#allocation90_spill] sm:$0xff] %v23207_v34  ;;  %v18252_v1 = vpop.f32.mrf.mxu1  ;;  %18563 = vmatmul.mubr.msk.f32.gmra.mxu1 %vm86_vm0, %v10291_v44 }
 0x48c   :  { %v18304_v55 = vpop.f32.mrf.mxu0  ;;  %18615 = vmatmul.mubr.msk.f32.gmra.mxu0 %vm86_vm0, %v22947_v50  ;;  %v8288_v49 = vadd.f32 %v18252_v1, %v22930_v25  ;;  %18565 = vmatprep.mubr.msk.f32.mxu1 %vm86_vm0, %v10292_v54  ;;  %v10295_v50 = vld [vmem:[#allocation2 + $0x321] sm:$0xff] }
 0x48d   :  { %18617 = vmatprep.mubr.msk.f32.mxu0 %vm86_vm0, %v22951_v52  ;;  %v23218_v22 = vpop.f32.mrf.mxu1  ;;  %v11206_v52 = vld [vmem:[#allocation10 + $0x10] sm:$0xff] }
 0x48e   :  { %v23220_v0 = vpop.f32.mrf.mxu0  ;;  %v23222_v33 = vadd.f32 %v18304_v55, %v8288_v49  ;;  %18631 = vmatprep.subr.mxu1 %v11206_v52 }
 0x48f   :  { %25951 = vst [vmem:[#allocation40_spill] sm:$0xff] %v23220_v0  ;;  %v18255_v35 = vpop.f32.mrf.mxu1  ;;  %18566 = vmatmul.mubr.msk.f32.gmra.mxu1 %vm86_vm0, %v10293_v42 }
 0x490   :  { %v18307_v10 = vpop.f32.mrf.mxu0  ;;  %18618 = vmatmul.mubr.msk.f32.gmra.mxu0 %vm86_vm0, %v22975_v57  ;;  %v8298_v25 = vadd.f32 %v18255_v35, %v22958_v23  ;;  %18568 = vmatprep.mubr.msk.f32.mxu1 %vm86_vm0, %v10294_v56 }
 0x491   :  { %18620 = vmatprep.mubr.msk.f32.mxu0 %vm86_vm0, %v22979_v13  ;;  %v23231_v43 = vpop.f32.mrf.mxu1  ;;  %18632 = vmatpush3.msra.mxu1 %v11206_v52  ;;  %v10297_v13 = vld [vmem:[#allocation2 + $0x339] sm:$0xff] }
 0x492   :  { %25952 = vst [vmem:[#allocation93_spill] sm:$0xff] %v23231_v43  ;;  %v23233_v8 = vpop.f32.mrf.mxu0  ;;  %v23235_v61 = vadd.f32 %v18307_v10, %v8298_v25 }
 0x493   :  { %25953 = vst [vmem:[#allocation21_spill] sm:$0xff] %v23233_v8  ;;  %v18258_v46 = vpop.f32.mrf.mxu1  ;;  %18569 = vmatmul.mubr.msk.f32.gmra.mxu1 %vm86_vm0, %v10295_v50 }
 0x494   :  { %v18310_v57 = vpop.f32.mrf.mxu0  ;;  %18621 = vmatmul.mubr.msk.f32.gmra.mxu0 %vm86_vm0, %v23004_v12  ;;  %v8308_v23 = vadd.f32 %v18258_v46, %v22986_v37  ;;  %18571 = vmatprep.mubr.msk.f32.mxu1 %vm86_vm0, %v10296_v29  ;;  %v10299_v12 = vld [vmem:[#allocation2 + $0x351] sm:$0xff] }
 0x495   :  { %18623 = vmatprep.mubr.msk.f32.mxu0 %vm86_vm0, %v23008_v14  ;;  %v23244_v41 = vpop.f32.mrf.mxu1  ;;  %v10686_v14 = vld [vmem:[#allocation2 + $0x352] sm:$0xff] }
 0x496   :  { %25954 = vst [vmem:[#allocation19_spill] sm:$0xff] %v23244_v41  ;;  %v23246_v59 = vpop.f32.mrf.mxu0  ;;  %v23248_v40 = vadd.f32 %v18310_v57, %v8308_v23 }
 0x497   :  { %25955 = vst [vmem:[#allocation49_spill] sm:$0xff] %v23246_v59  ;;  %v18261_v58 = vpop.f32.mrf.mxu1  ;;  %18572 = vmatmul.mubr.msk.f32.gmra.mxu1 %vm86_vm0, %v10297_v13 }
 0x498   :  { %v18313_v19 = vpop.f32.mrf.mxu0  ;;  %18624 = vmatmul.mubr.msk.f32.gmra.mxu0 %vm86_vm0, %v23033_v26  ;;  %v8318_v37 = vadd.f32 %v18261_v58, %v23015_v31  ;;  %18574 = vmatprep.mubr.msk.f32.mxu1 %vm86_vm0, %v10298_v38 }
 0x499   :  { %18626 = vmatprep.mubr.msk.f32.mxu0 %vm86_vm0, %v10685_v11  ;;  %v23256_v44 = vpop.f32.mrf.mxu1 }
 0x49a   :  { %25956 = vst [vmem:[#allocation46_spill] sm:$0xff] %v23256_v44  ;;  %v23258_v54 = vpop.f32.mrf.mxu0  ;;  %v23260_v1 = vadd.f32 %v18313_v19, %v8318_v37 }
 0x49b   :  { %25957 = vst [vmem:[#allocation89_spill] sm:$0xff] %v23258_v54  ;;  %v18264_v55 = vpop.f32.mrf.mxu1  ;;  %18575 = vmatmul.mubr.msk.f32.gmra.mxu1 %vm86_vm0, %v10299_v12  ;;  %v11173_v12 = vld [vmem:[#allocation10 + $0x8] sm:$0xff] }
 0x49c   :  { %v18316_v49 = vpop.f32.mrf.mxu0  ;;  %18627 = vmatmul.mubr.msk.f32.gmra.mxu0 %vm86_vm0, %v10686_v14  ;;  %v8328_v31 = vadd.f32 %v18264_v55, %v23040_v45  ;;  %18681 = vmatprep.subr.mxu0 %v11173_v12 }
 0x49d   :  { %v23265_v26 = vpop.f32.mrf.mxu1  ;;  %18682 = vmatpush3.msra.mxu0 %v11173_v12 }
 0x49e   :  { %25958 = vst [vmem:[#allocation41_spill] sm:$0xff] %v23265_v26  ;;  %v23267_v42 = vpop.f32.mrf.mxu0  ;;  %v23269_v56 = vadd.f32 %v18316_v49, %v8328_v31  ;;  %v11172_v49 = vld [vmem:[#allocation10] sm:$0xff] }
 0x49f   :  { %25959 = vst [vmem:[#allocation43_spill] sm:$0xff] %v23267_v42  ;;  %v18323_v35 = vpop.f32.mrf.mxu1  ;;  %18683 = vmatprep.subr.mxu0 %v11172_v49  ;;  %v11883_v42 = vld [vmem:[#allocation10 + $0x28] sm:$0xff] }
 0x4a0   :  { %v18375_v10 = vpop.f32.mrf.mxu0  ;;  %v9075_v25 = vadd.f32 %v18323_v35, %v23078_v28  ;;  %v11174_v35 = vld [vmem:[#allocation3 + $0x1b1] sm:$0xff]  ;;  %18684 = vmatpush3.msra.mxu0 %v11172_v49  ;;  %18733 = vmatprep.subr.mxu1 %v11883_v42 }
 0x4a1   :  { %v23272_v50 = vpop.f32.mrf.mxu1  ;;  %18633 = vmatprep.mubr.msk.f32.mxu1 %vm86_vm0, %v11174_v35 }
 0x4a2   :  { %v23274_v52 = vpop.f32.mrf.mxu0  ;;  %v23276_v29 = vadd.f32 %v18375_v10, %v9075_v25  ;;  %v11140_v10 = vld [vmem:[#allocation3 + $0x1b0] sm:$0xff] }
 0x4a3   :  { %v18326_v46 = vpop.f32.mrf.mxu1  ;;  %18685 = vmatprep.mubr.msk.f32.mxu0 %vm86_vm0, %v11140_v10 }
 0x4a4   :  { %v18378_v57 = vpop.f32.mrf.mxu0  ;;  %v9077_v45 = vadd.f32 %v18326_v46, %v23092_v18  ;;  %v11175_v46 = vld [vmem:[#allocation3 + $0x1b9] sm:$0xff] }
 0x4a5   :  { %v23279_v23 = vpop.f32.mrf.mxu1  ;;  %18634 = vmatmul.mubr.msk.f32.vlgmr.msra.gmra.mxu1 %vm86_vm0, %v11175_v46 }
 0x4a6   :  { %v23281_v13 = vpop.f32.mrf.mxu0  ;;  %v23283_v38 = vadd.f32 %v18378_v57, %v9077_v45  ;;  %v11141_v57 = vld [vmem:[#allocation3 + $0x1b8] sm:$0xff]  ;;  %18734 = vmatpush3.msra.mxu1 %v11883_v42 }
 0x4a7   :  { %v18329_v11 = vpop.f32.mrf.mxu1  ;;  %18686 = vmatmul.mubr.msk.f32.vlgmr.msra.gmra.mxu0 %vm86_vm0, %v11141_v57 }
 0x4a8   :  { %v18381_v58 = vpop.f32.mrf.mxu0  ;;  %v9079_v28 = vadd.f32 %v18329_v11, %v23104_v27 }
 0x4a9   :  { %v23286_v19 = vpop.f32.mrf.mxu1 }
 0x4aa   :  { %v23288_v37 = vpop.f32.mrf.mxu0  ;;  %v23290_v14 = vadd.f32 %v18381_v58, %v9079_v28 }
 0x4ab   :  { %v18332_v55 = vpop.f32.mrf.mxu1 }
 0x4ac   :  { %v18384_v18 = vpop.f32.mrf.mxu0  ;;  %v9081_v31 = vadd.f32 %v18332_v55, %v23116_v16 }
 0x4ad   :  { %v23293_v25 = vpop.f32.mrf.mxu1 }
 0x4ae   :  { %v23295_v27 = vpop.f32.mrf.mxu0  ;;  %v23298_v45 = vadd.f32 %v18384_v18, %v9081_v31 }
 0x4af   :  { %v18335_v11 = vpop.f32.mrf.mxu1 }
 0x4b0   :  { %v18387_v16 = vpop.f32.mrf.mxu0  ;;  %v9083_v58 = vadd.f32 %v18335_v11, %v23128_v63 }
 0x4b1   :  { %v23304_v28 = vpop.f32.mrf.mxu1 }
 0x4b2   :  { %v23306_v12 = vpop.f32.mrf.mxu0  ;;  %v23308_v55 = vadd.f32 %v18387_v16, %v9083_v58 }
 0x4b3   :  { %v18338_v49 = vpop.f32.mrf.mxu1 }
 0x4b4   :  { %v18390_v35 = vpop.f32.mrf.mxu0  ;;  %v9085_v18 = vadd.f32 %v18338_v49, %v23143_v20 }
 0x4b5   :  { %v23311_v31 = vpop.f32.mrf.mxu1 }
 0x4b6   :  { %v23313_v10 = vpop.f32.mrf.mxu0  ;;  %v23315_v46 = vadd.f32 %v18390_v35, %v9085_v18 }
 0x4b7   :  { %v18341_v57 = vpop.f32.mrf.mxu1 }
 0x4b8   :  { %v18393_v26 = vpop.f32.mrf.mxu0  ;;  %v9087_v63 = vadd.f32 %v18341_v57, %v23156_v24 }
 0x4b9   :  { %v23318_v11 = vpop.f32.mrf.mxu1 }
 0x4ba   :  { %v23320_v16 = vpop.f32.mrf.mxu0  ;;  %v23322_v58 = vadd.f32 %v18393_v26, %v9087_v63 }
 0x4bb   :  { %25960 = vst [vmem:[#allocation20_spill] sm:$0xff] %v23320_v16  ;;  %v18344_v20 = vpop.f32.mrf.mxu1 }
 0x4bc   :  { %25961 = vst [vmem:[#allocation45_spill] sm:$0xff] %v23322_v58  ;;  %v18396_v49 = vpop.f32.mrf.mxu0  ;;  %v9089_v62 = vadd.f32 %v18344_v20, %v23168_v36 }
 0x4bd   :  { %v23325_v54 = vpop.f32.mrf.mxu1 }
 0x4be   :  { %25962 = vst [vmem:[#allocation42_spill] sm:$0xff] %v23325_v54  ;;  %v23327_v35 = vpop.f32.mrf.mxu0  ;;  %v23329_v18 = vadd.f32 %v18396_v49, %v9089_v62 }
 0x4bf   :  { %25963 = vst [vmem:[#allocation91_spill] sm:$0xff] %v23327_v35  ;;  %v18347_v44 = vpop.f32.mrf.mxu1 }
 0x4c0   :  { %25964 = vst [vmem:[#allocation96_spill] sm:$0xff] %v23329_v18  ;;  %v18399_v59 = vpop.f32.mrf.mxu0  ;;  %v9091_v24 = vadd.f32 %v18347_v44, %v23180_v39 }
 0x4c1   :  { %v23332_v42 = vpop.f32.mrf.mxu1 }
 0x4c2   :  { %25965 = vst [vmem:[#allocation44_spill] sm:$0xff] %v23332_v42  ;;  %v23334_v57 = vpop.f32.mrf.mxu0  ;;  %v23336_v26 = vadd.f32 %v18399_v59, %v9091_v24 }
 0x4c3   :  { %25966 = vst [vmem:[#allocation17_spill] sm:$0xff] %v23334_v57  ;;  %v18350_v63 = vpop.f32.mrf.mxu1 }
 0x4c4   :  { %25967 = vst [vmem:[#allocation47_spill] sm:$0xff] %v23336_v26  ;;  %v18402_v41 = vpop.f32.mrf.mxu0  ;;  %v9093_v36 = vadd.f32 %v18350_v63, %v23196_v5 }
 0x4c5   :  { %v23339_v20 = vpop.f32.mrf.mxu1 }
 0x4c6   :  { %25968 = vst [vmem:[#allocation50_spill] sm:$0xff] %v23339_v20  ;;  %v23341_v53 = vpop.f32.mrf.mxu0  ;;  %v23343_v62 = vadd.f32 %v18402_v41, %v9093_v36 }
 0x4c7   :  { %25969 = vst [vmem:[#allocation99_spill] sm:$0xff] %v23341_v53  ;;  %v18353_v49 = vpop.f32.mrf.mxu1 }
 0x4c8   :  { %25970 = vst [vmem:[#allocation92_spill] sm:$0xff] %v23343_v62  ;;  %v18405_v8 = vpop.f32.mrf.mxu0  ;;  %v9095_v39 = vadd.f32 %v18353_v49, %v23209_v48 }
 0x4c9   :  { %v23346_v44 = vpop.f32.mrf.mxu1 }
 0x4ca   :  { %25971 = vst [vmem:[#allocation18_spill] sm:$0xff] %v23346_v44  ;;  %v23348_v18 = vpop.f32.mrf.mxu0  ;;  %v23350_v59 = vadd.f32 %v18405_v8, %v9095_v39 }
 0x4cb   :  { %25972 = vst [vmem:[#allocation23_spill] sm:$0xff] %v23348_v18  ;;  %v18356_v24 = vpop.f32.mrf.mxu1 }
 0x4cc   :  { %25973 = vst [vmem:[#allocation22_spill] sm:$0xff] %v23350_v59  ;;  %v18408_v26 = vpop.f32.mrf.mxu0  ;;  %v9097_v5 = vadd.f32 %v18356_v24, %v23222_v33 }
 0x4cd   :  { %v23353_v63 = vpop.f32.mrf.mxu1 }
 0x4ce   :  { %25974 = vst [vmem:[#allocation102_spill] sm:$0xff] %v23353_v63  ;;  %v23355_v20 = vpop.f32.mrf.mxu0  ;;  %v23357_v41 = vadd.f32 %v18408_v26, %v9097_v5  ;;  %v11882_v5 = vld [vmem:[#allocation10 + $0x20] sm:$0xff] }
 0x4cf   :  { %25975 = vst [vmem:[#allocation94_spill] sm:$0xff] %v23355_v20  ;;  %v18359_v36 = vpop.f32.mrf.mxu1  ;;  %18735 = vmatprep.subr.mxu1 %v11882_v5 }
 0x4d0   :  { %25976 = vst [vmem:[#allocation48_spill] sm:$0xff] %v23357_v41  ;;  %v18411_v62 = vpop.f32.mrf.mxu0  ;;  %v9099_v48 = vadd.f32 %v18359_v36, %v23235_v61  ;;  %18736 = vmatpush3.msra.mxu1 %v11882_v5 }
 0x4d1   :  { %v23360_v49 = vpop.f32.mrf.mxu1 }
 0x4d2   :  { %25977 = vst [vmem:[#allocation27_spill] sm:$0xff] %v23360_v49  ;;  %v23362_v44 = vpop.f32.mrf.mxu0  ;;  %v23364_v8 = vadd.f32 %v18411_v62, %v9099_v48 }
 0x4d3   :  { %25978 = vst [vmem:[#allocation51_spill] sm:$0xff] %v23362_v44  ;;  %v18362_v39 = vpop.f32.mrf.mxu1 }
 0x4d4   :  { %25979 = vst [vmem:[#allocation54_spill] sm:$0xff] %v23364_v8  ;;  %v18414_v59 = vpop.f32.mrf.mxu0  ;;  %v9101_v33 = vadd.f32 %v18362_v39, %v23248_v40 }
 0x4d5   :  { %v23367_v24 = vpop.f32.mrf.mxu1 }
 0x4d6   :  { %25980 = vst [vmem:[#allocation95_spill] sm:$0xff] %v23367_v24  ;;  %v23369_v63 = vpop.f32.mrf.mxu0  ;;  %v23371_v26 = vadd.f32 %v18414_v59, %v9101_v33  ;;  %v12657_v24 = vld [vmem:[#allocation10 + $0x48] sm:$0xff] }
 0x4d7   :  { %25981 = vst [vmem:[#allocation105_spill] sm:$0xff] %v23369_v63  ;;  %v18365_v41 = vpop.f32.mrf.mxu1  ;;  %18837 = vmatprep.subr.mxu1 %v12657_v24 }
 0x4d8   :  { %25982 = vst [vmem:[#allocation25_spill] sm:$0xff] %v23371_v26  ;;  %v18417_v20 = vpop.f32.mrf.mxu0  ;;  %v9103_v61 = vadd.f32 %v18365_v41, %v23260_v1 }
 0x4d9   :  { %v23374_v36 = vpop.f32.mrf.mxu1 }
 0x4da   :  { %25983 = vst [vmem:[#allocation24_spill] sm:$0xff] %v23374_v36  ;;  %v23376_v62 = vpop.f32.mrf.mxu0  ;;  %v23378_v48 = vadd.f32 %v18417_v20, %v9103_v61  ;;  %v12269_v36 = vld [vmem:[#allocation10 + $0x30] sm:$0xff] }
 0x4db   :  { %25984 = vst [vmem:[#allocation26_spill] sm:$0xff] %v23376_v62  ;;  %v18368_v40 = vpop.f32.mrf.mxu1  ;;  %v12270_v62 = vld [vmem:[#allocation10 + $0x38] sm:$0xff] }
 0x4dc   :  { %25985 = vst [vmem:[#allocation53_spill] sm:$0xff] %v23378_v48  ;;  %v18420_v39 = vpop.f32.mrf.mxu0  ;;  %v9105_v8 = vadd.f32 %v18368_v40, %v23269_v56  ;;  %18785 = vmatprep.subr.mxu0 %v12270_v62 }
 0x4dd   :  { %v23381_v63 = vpop.f32.mrf.mxu1  ;;  %18786 = vmatpush3.msra.mxu0 %v12270_v62 }
 0x4de   :  { %25986 = vst [vmem:[#allocation52_spill] sm:$0xff] %v23381_v63  ;;  %v23383_v59 = vpop.f32.mrf.mxu0  ;;  %v23385_v33 = vadd.f32 %v18420_v39, %v9105_v8  ;;  %18787 = vmatprep.subr.mxu0 %v12269_v36 }
 0x4df   :  { %25987 = vst [vmem:[#allocation97_spill] sm:$0xff] %v23383_v59  ;;  %v23387_v26 = vpop.f32.mrf.mxu1  ;;  %18788 = vmatpush3.msra.mxu0 %v12269_v36 }
 0x4e0   :  { %25988 = vst [vmem:[#allocation55_spill] sm:$0xff] %v23385_v33  ;;  %v23389_v1 = vpop.f32.mrf.mxu0 }
 0x4e1   :  { %v23391_v41 = vpop.f32.mrf.mxu1 }
 0x4e2   :  { %v23393_v5 = vpop.f32.mrf.mxu0 }
 0x4e3   :  { %v23395_v20 = vpop.f32.mrf.mxu1 }
 0x4e4   :  { %v23397_v61 = vpop.f32.mrf.mxu0 }
 0x4e5   :  { %v23399_v48 = vpop.f32.mrf.mxu1 }
 0x4e6   :  { %v23401_v56 = vpop.f32.mrf.mxu0 }
 0x4e7   :  { %v23403_v40 = vpop.f32.mrf.mxu1 }
 0x4e8   :  { %v23405_v8 = vpop.f32.mrf.mxu0 }
 0x4e9   :  { %v23407_v39 = vpop.f32.mrf.mxu1 }
 0x4ea   :  { %v23409_v33 = vpop.f32.mrf.mxu0 }
 0x4eb   :  { %v23411_v59 = vpop.f32.mrf.mxu1 }
 0x4ec   :  { %v23413_v63 = vpop.f32.mrf.mxu0 }
 0x4ed   :  { %v23415_v44 = vpop.f32.mrf.mxu1 }
 0x4ee   :  { %v23417_v49 = vpop.f32.mrf.mxu0 }
 0x4ef   :  { %v23419_v18 = vpop.f32.mrf.mxu1 }
 0x4f0   :  { %v23421_v53 = vpop.f32.mrf.mxu0 }
 0x4f1   :  { %v23423_v57 = vpop.f32.mrf.mxu1 }
 0x4f2   :  { %v23425_v42 = vpop.f32.mrf.mxu0 }
 0x4f3   :  { %25989 = vst [vmem:[#allocation58_spill] sm:$0xff] %v23425_v42  ;;  %v23427_v9 = vpop.f32.mrf.mxu1 }
 0x4f4   :  { %v23429_v35 = vpop.f32.mrf.mxu0 }
 0x4f5   :  { %25990 = vst [vmem:[#allocation110_spill] sm:$0xff] %v23429_v35  ;;  %v23431_v43 = vpop.f32.mrf.mxu1 }
 0x4f6   :  { %25991 = vst [vmem:[#allocation98_spill] sm:$0xff] %v23431_v43  ;;  %v23433_v7 = vpop.f32.mrf.mxu0 }
 0x4f7   :  { %25992 = vst [vmem:[#allocation28_spill] sm:$0xff] %v23433_v7  ;;  %v23435_v62 = vpop.f32.mrf.mxu1 }
 0x4f8   :  { %25993 = vst [vmem:[#allocation57_spill] sm:$0xff] %v23435_v62  ;;  %v23437_v24 = vpop.f32.mrf.mxu0 }
 0x4f9   :  { %25994 = vst [vmem:[#allocation56_spill] sm:$0xff] %v23437_v24  ;;  %v23439_v58 = vpop.f32.mrf.mxu1  ;;  %v7463_v24 = vld [vmem:[%s25386_s6] sm:$0xf] }
 0x4fa   :  { %25995 = vst [vmem:[#allocation100_spill] sm:$0xff] %v23439_v58  ;;  %v23441_v54 = vpop.f32.mrf.mxu0 }
 0x4fb   :  { %25996 = vst [vmem:[#allocation59_spill] sm:$0xff] %v23441_v54  ;;  %v23443_v36 = vpop.f32.mrf.mxu1 }
 0x4fc   :  { %25997 = vst [vmem:[#allocation101_spill] sm:$0xff] %v23443_v36  ;;  %v23445_v30 = vpop.f32.mrf.mxu0 }
 0x4fd   :  { %25998 = vst [vmem:[#allocation62_spill] sm:$0xff] %v23445_v30  ;;  %v23447_v16 = vpop.f32.mrf.mxu1 }
 0x4fe   :  { %25999 = vst [vmem:[#allocation115_spill] sm:$0xff] %v23447_v16  ;;  %v23449_v42 = vpop.f32.mrf.mxu0 }
 0x4ff   :  { %26000 = vst [vmem:[#allocation60_spill] sm:$0xff] %v23449_v42  ;;  %v23451_v35 = vpop.f32.mrf.mxu1 }
 0x500   :  { %26001 = vst [vmem:[#allocation61_spill] sm:$0xff] %v23451_v35  ;;  %v23453_v43 = vpop.f32.mrf.mxu0 }
 0x501   :  { %26002 = vst [vmem:[#allocation103_spill] sm:$0xff] %v23453_v43  ;;  %v23458_v7 = vpop.f32.mrf.mxu1  ;;  %v7462_v54 = vpop.xlane.xlu0 %7461 }
 0x502   :  { %26003 = vst [vmem:[#allocation104_spill] sm:$0xff] %v23458_v7  ;;  %v23460_v58 = vpop.f32.mrf.mxu0  ;;  %v7464_v36 = vadd.f32 %v7463_v24, %v7462_v54 }
 0x503   :  { %26004 = vst [vmem:[#allocation65_spill] sm:$0xff] %v23460_v58  ;;  %v23462_v62 = vpop.f32.mrf.mxu1 }
 0x504   :  { %v23464_v30 = vpop.f32.mrf.mxu0  ;;  %v7465_v16 = vmax.f32 %v7464_v36, 0.0 }
 0x505   :  { %26005 = vst [vmem:[#allocation67_spill] sm:$0xff] %v23464_v30  ;;  %v23466_v42 = vpop.f32.mrf.mxu1 }
 0x506   :  { %v23468_v35 = vpop.f32.mrf.mxu0  ;;  %7469 = vperm.xlu1 %19106, %v7465_v16  }
 0x507   :  { %26006 = vst [vmem:[#allocation33_spill] sm:$0xff] %v23468_v35  ;;  %v23470_v43 = vpop.f32.mrf.mxu1 }
 0x508   :  { %26007 = vst [vmem:[#allocation68_spill] sm:$0xff] %v23470_v43  ;;  %v23472_v0 = vpop.f32.mrf.mxu0 }
 0x509   :  { %26008 = vst [vmem:[#allocation74_spill] sm:$0xff] %v23472_v0  ;;  %v23474_v34 = vpop.f32.mrf.mxu1 }
 0x50a   :  { %26009 = vst [vmem:[#allocation36_spill] sm:$0xff] %v23474_v34  ;;  %v23476_v7 = vpop.f32.mrf.mxu0 }
 0x50b   :  { %26010 = vst [vmem:[#allocation117_spill] sm:$0xff] %v23476_v7  ;;  %v23478_v58 = vpop.f32.mrf.mxu1 }
 0x50c   :  { %26011 = vst [vmem:[#allocation118_spill] sm:$0xff] %v23478_v58  ;;  %v23480_v54 = vpop.f32.mrf.mxu0 }
 0x50d   :  { %26012 = vst [vmem:[#allocation119_spill] sm:$0xff] %v23480_v54  ;;  %v23482_v24 = vpop.f32.mrf.mxu1  ;;  %v9074_v54 = vadd.f32 %v23272_v50, %v23086_v2  ;;  %v9078_v50 = vadd.f32 %v23286_v19, %v23110_v51  ;;  %v9080_v19 = vadd.f32 %v23293_v25, %v23122_v4 }
 0x50e   :  { %v23484_v36 = vpop.f32.mrf.mxu0 }
 0x50f   :  { %26013 = vst [vmem:[#allocation120_spill] sm:$0xff] %v23484_v36  ;;  %v23486_v30 = vpop.f32.mrf.mxu1  ;;  %v9465_v51 = vadd.f32 %v23288_v37, %v9078_v50  ;;  %v23544_v50 = vld [vmem:[#allocation9] ss:$0 sm:$0xff] }
 0x510   :  { %26014 = vst [vmem:[#allocation121_spill] sm:$0xff] %v23486_v30  ;;  %v23488_v35 = vpop.f32.mrf.mxu0 }
 0x511   :  { %26015 = vst [vmem:[#allocation122_spill] sm:$0xff] %v23488_v35  ;;  %v23490_v16 = vpop.f32.mrf.mxu1 }
 0x512   :  { %26016 = vst [vmem:[#allocation123_spill] sm:$0xff] %v23490_v16  ;;  %v23492_v43 = vpop.f32.mrf.mxu0 }
 0x513   :  { %26017 = vst [vmem:[#allocation124_spill] sm:$0xff] %v23492_v43  ;;  %v23494_v0 = vpop.f32.mrf.mxu1  ;;  %v9461_v43 = vadd.f32 %v23274_v52, %v9074_v54 }
 0x514   :  { %26018 = vst [vmem:[#allocation125_spill] sm:$0xff] %v23494_v0  ;;  %v23496_v34 = vpop.f32.mrf.mxu0 }
 0x515   :  { %26019 = vst [vmem:[#allocation126_spill] sm:$0xff] %v23496_v34  ;;  %v23498_v7 = vpop.f32.mrf.mxu1  ;;  %v9076_v34 = vadd.f32 %v23279_v23, %v23098_v15  ;;  %v9848_v2 = vadd.f32 %v23391_v41, %v9461_v43 }
 0x516   :  { %26020 = vst [vmem:[#allocation127_spill] sm:$0xff] %v23498_v7  ;;  %v23500_v58 = vpop.f32.mrf.mxu0  ;;  %v9849_v7 = vadd.f32 %v23387_v26, %v23276_v29  ;;  %v9851_v29 = vadd.f32 %v23395_v20, %v23283_v38 }
 0x517   :  { %26021 = vst [vmem:[#allocation128_spill] sm:$0xff] %v23500_v58  ;;  %v23504_v36 = vpop.f32.mrf.mxu1  ;;  %v9463_v52 = vadd.f32 %v23281_v13, %v9076_v34  ;;  %v10236_v54 = vadd.f32 %v23393_v5, %v9848_v2  ;;  %v9853_v34 = vadd.f32 %v23403_v40, %v23290_v14  ;;  %v9467_v40 = vadd.f32 %v23295_v27, %v9080_v19 }
 0x518   :  { %v23506_v30 = vpop.f32.mrf.mxu0  ;;  %v10237_v15 = vadd.f32 %v23389_v1, %v9849_v7  ;;  %v10239_v1 = vadd.f32 %v23397_v61, %v9851_v29  ;;  %v9082_v61 = vadd.f32 %v23304_v28, %v23137_v3  ;;  %v9084_v19 = vadd.f32 %v23311_v31, %v23150_v60 }
 0x519   :  { %26022 = vst [vmem:[#allocation129_spill] sm:$0xff] %v23506_v30  ;;  %v23508_v35 = vpop.f32.mrf.mxu1  ;;  %v9850_v43 = vadd.f32 %v23399_v48, %v9463_v52  ;;  %v9852_v48 = vadd.f32 %v23407_v39, %v9465_v51  ;;  %v8283_v60 = vadd.f32 %v23218_v22, %v22949_v17  ;;  %v9859_v22 = vadd.f32 %v23427_v9, %v23315_v46 }
 0x51a   :  { %v23510_v16 = vpop.f32.mrf.mxu0  ;;  %v9469_v51 = vadd.f32 %v23306_v12, %v9082_v61  ;;  %v26027_v61 = vld [vmem:[#allocation90_spill] sm:$0xff] }
 0x51b   :  { %26023 = vst [vmem:[#allocation130_spill] sm:$0xff] %v23510_v16  ;;  %v23517_v58 = vpop.f32.mrf.mxu1  ;;  %v10238_v37 = vadd.f32 %v23401_v56, %v9850_v43  ;;  %v10240_v27 = vadd.f32 %v23409_v33, %v9852_v48  ;;  %v9854_v43 = vadd.f32 %v23415_v44, %v9467_v40  ;;  %v9857_v33 = vadd.f32 %v23419_v18, %v23308_v55 }
 0x51c   :  { %v23519_v0 = vpop.f32.mrf.mxu0 }
 0x51d   :  { %v23524_v30 = vpop.f32.mrf.mxu1  ;;  %v10242_v31 = vadd.f32 %v23417_v49, %v9854_v43  ;;  %v10245_v17 = vadd.f32 %v23421_v53, %v9857_v33  ;;  %v26032_v43 = vld [vmem:[#allocation87_spill] sm:$0xff] }
 0x51e   :  { %v23526_v16 = vpop.f32.mrf.mxu0 }
 0x51f   :  { %26024 = vst [vmem:[#allocation131_spill] sm:$0xff] %v23526_v16  ;;  %v18531_v23 = vpop.f32.mrf.mxu1  ;;  %v26025_v16 = vld [vmem:[#allocation111_spill] sm:$0xff] }
 0x520   :  { %v18583_v26 = vpop.f32.mrf.mxu0  ;;  %v10624_v41 = vadd.f32 %v18531_v23, %v10237_v15  ;;  %v8263_v5 = vadd.f32 %v23192_v47, %v26025_v16  ;;  %v10241_v15 = vadd.f32 %v23405_v8, %v9853_v34  ;;  %v9855_v47 = vadd.f32 %v23411_v59, %v23298_v45 }
 0x521   :  { %v10464_v13 = vpop.f32.mrf.mxu1 }
 0x522   :  { %v10851_v7 = vpop.f32.mrf.mxu0  ;;  %v11011_v38 = vadd.f32 %v18583_v26, %v10624_v41  ;;  %v10623_v20 = vadd.f32 %v10464_v13, %v10236_v54  ;;  %v23555_v54 = vadd.f32 %v23194_v21, %v8263_v5  ;;  %v10243_v21 = vadd.f32 %v23413_v63, %v9855_v47 }
 0x523   :  { %v18534_v2 = vpop.f32.mrf.mxu1  ;;  %v9856_v63 = vadd.f32 %v23423_v57, %v9469_v51 }
 0x524   :  { %v18586_v52 = vpop.f32.mrf.mxu0  ;;  %v11043_v4 = vadd.f32 %v23544_v50, %v11011_v38  ;;  %v11010_v14 = vadd.f32 %v10851_v7, %v10623_v20  ;;  %v10626_v25 = vadd.f32 %v18534_v2, %v10239_v1  ;;  %v26026_v20 = vld [vmem:[#allocation112_spill] sm:$0xff] }
 0x525   :  { %v10474_v39 = vpop.f32.mrf.mxu1  ;;  %v8273_v12 = vadd.f32 %v23205_v32, %v26026_v20  ;;  %v9086_v32 = vadd.f32 %v23318_v11, %v23162_v6  ;;  %v26029_v6 = vld [vmem:[#allocation58_spill] sm:$0xff] }
 0x526   :  { %v10861_v16 = vpop.f32.mrf.mxu0  ;;  %v11075_v29 = vmax.f32 %v11043_v4, 0.0  ;;  %v11042_v56 = vadd.f32 %v23544_v50, %v11010_v14  ;;  %v11013_v23 = vadd.f32 %v18586_v52, %v10626_v25  ;;  %v10625_v26 = vadd.f32 %v10474_v39, %v10238_v37  ;;  %v26030_v11 = vld [vmem:[#allocation98_spill] sm:$0xff] }
 0x527   :  { %v18537_v3 = vpop.f32.mrf.mxu1  ;;  %v9471_v37 = vadd.f32 %v23313_v10, %v9084_v19  ;;  %v26028_v10 = vld [vmem:[#allocation40_spill] sm:$0xff]  ;;  %v10244_v53 = vadd.f32 %v26029_v6, %v9856_v63 }
 0x528   :  { %v18589_v28 = vpop.f32.mrf.mxu0  ;;  %11108 = vst.msk [vmem:[#allocation3 + $0x1d1] sm:$0xff] %vm86_vm0, %v11075_v29  ;;  %v11074_v8 = vmax.f32 %v11042_v56, 0.0  ;;  %v11045_v45 = vadd.f32 %v23544_v50, %v11013_v23  ;;  %v11012_v59 = vadd.f32 %v10861_v16, %v10625_v26  ;;  %v10628_v41 = vadd.f32 %v18537_v3, %v10241_v15  ;;  %v26031_v26 = vld [vmem:[#allocation20_spill] sm:$0xff]  ;;  %v26033_v3 = vld [vmem:[#allocation42_spill] sm:$0xff] }
 0x529   :  { %v10484_v44 = vpop.f32.mrf.mxu1  ;;  %v23586_v15 = vadd.f32 %v26027_v61, %v8273_v12  ;;  %v23589_v47 = vadd.f32 %v26028_v10, %v8283_v60  ;;  %v9858_v39 = vadd.f32 %v26030_v11, %v9471_v37  ;;  %v26037_v12 = vld [vmem:[#allocation113_spill] sm:$0xff]  ;;  %v26039_v63 = vld [vmem:[#allocation28_spill] sm:$0xff] }
 0x52a   :  { %v10871_v34 = vpop.f32.mrf.mxu0  ;;  %11107 = vst.msk [vmem:[#allocation3 + $0x1c9] sm:$0xff] %vm86_vm0, %v11074_v8  ;;  %v11077_v13 = vmax.f32 %v11045_v45, 0.0  ;;  %v11044_v7 = vadd.f32 %v23544_v50, %v11012_v59  ;;  %v11015_v1 = vadd.f32 %v18589_v28, %v10628_v41  ;;  %v10627_v38 = vadd.f32 %v10484_v44, %v10240_v27  ;;  %v26034_v8 = vld [vmem:[#allocation110_spill] sm:$0xff]  ;;  %v26035_v59 = vld [vmem:[#allocation45_spill] sm:$0xff]  ;;  %v26045_v61 = vld [vmem:[#allocation96_spill] sm:$0xff] }
 0x52b   :  { %v18540_v55 = vpop.f32.mrf.mxu1  ;;  %v9473_v27 = vadd.f32 %v26031_v26, %v9086_v32  ;;  %v9088_v28 = vadd.f32 %v26033_v3, %v26032_v43  ;;  %v10247_v45 = vadd.f32 %v26034_v8, %v9859_v22  ;;  %v26036_v41 = vld [vmem:[#allocation57_spill] sm:$0xff]  ;;  %v26041_v22 = vld [vmem:[#allocation91_spill] sm:$0xff] }
 0x52c   :  { %v18592_v18 = vpop.f32.mrf.mxu0  ;;  %11110 = vst.msk [vmem:[#allocation3 + $0x1e9] sm:$0xff] %vm86_vm0, %v11077_v13  ;;  %v11076_v5 = vmax.f32 %v11044_v7, 0.0  ;;  %v11047_v48 = vadd.f32 %v23544_v50, %v11015_v1  ;;  %v11014_v2 = vadd.f32 %v10871_v34, %v10627_v38  ;;  %v10630_v52 = vadd.f32 %v18540_v55, %v10243_v21  ;;  %v26038_v60 = vld [vmem:[#allocation93_spill] sm:$0xff]  ;;  %v26048_v3 = vld [vmem:[#allocation59_spill] sm:$0xff] }
 0x52d   :  { %v10494_v57 = vpop.f32.mrf.mxu1  ;;  %v9861_v51 = vadd.f32 %v26036_v41, %v26035_v59  ;;  %v10246_v55 = vadd.f32 %v26039_v63, %v9858_v39  ;;  %v26046_v10 = vld [vmem:[#allocation101_spill] sm:$0xff]  ;;  %v26049_v8 = vld [vmem:[#allocation115_spill] sm:$0xff] }
 0x52e   :  { %v10881_v49 = vpop.f32.mrf.mxu0  ;;  %11109 = vst.msk [vmem:[#allocation3 + $0x1e1] sm:$0xff] %vm86_vm0, %v11076_v5  ;;  %v11079_v4 = vmax.f32 %v11047_v48, 0.0  ;;  %v11046_v14 = vadd.f32 %v23544_v50, %v11014_v2  ;;  %v11017_v25 = vadd.f32 %v18592_v18, %v10630_v52  ;;  %v10629_v40 = vadd.f32 %v10494_v57, %v10242_v31  ;;  %v26040_v18 = vld [vmem:[#allocation100_spill] sm:$0xff]  ;;  %v26054_v63 = vld [vmem:[#allocation61_spill] sm:$0xff] }
 0x52f   :  { %v18543_v9 = vpop.f32.mrf.mxu1  ;;  %v11177_v20 = vld [vmem:[#allocation3 + $0x1d1] sm:$0xff]  ;;  %v8293_v31 = vadd.f32 %v26038_v60, %v26037_v12  ;;  %v9860_v5 = vadd.f32 %v26040_v18, %v9473_v27  ;;  %v9475_v57 = vadd.f32 %v26041_v22, %v9088_v28  ;;  %v9863_v6 = vadd.f32 %v26046_v10, %v26045_v61  ;;  %v26047_v27 = vld [vmem:[#allocation21_spill] sm:$0xff] }
 0x530   :  { %v18595_v46 = vpop.f32.mrf.mxu0  ;;  %11112 = vst.msk [vmem:[#allocation3 + $0x201] sm:$0xff] %vm86_vm0, %v11079_v4  ;;  %v11078_v16 = vmax.f32 %v11046_v14, 0.0  ;;  %v11049_v29 = vadd.f32 %v23544_v50, %v11017_v25  ;;  %v11016_v56 = vadd.f32 %v10881_v49, %v10629_v40  ;;  %v10632_v23 = vadd.f32 %v18543_v9, %v10245_v17  ;;  %v26042_v49 = vld [vmem:[#allocation88_spill] sm:$0xff]  ;;  %v26052_v12 = vld [vmem:[#allocation62_spill] sm:$0xff] }
 0x531   :  { %v10504_v19 = vpop.f32.mrf.mxu1  ;;  %v11176_v33 = vld [vmem:[#allocation3 + $0x1c9] sm:$0xff]  ;;  %v26043_v4 = vld [vmem:[#allocation44_spill] sm:$0xff]  ;;  %v23635_v43 = vadd.f32 %v26047_v27, %v8293_v31  ;;  %v10248_v28 = vadd.f32 %v26048_v3, %v9860_v5  ;;  %v10251_v60 = vadd.f32 %v26052_v12, %v9863_v6  ;;  %v26053_v31 = vld [vmem:[#allocation47_spill] sm:$0xff] }
 0x532   :  { %v10891_v21 = vpop.f32.mrf.mxu0  ;;  %v23601_v44 = vld [vmem:[#allocation3 + $0x1c8] sm:$0xff]  ;;  %v23603_v34 = vld [vmem:[#allocation3 + $0x1d0] sm:$0xff]  ;;  %11111 = vst.msk [vmem:[#allocation3 + $0x1f9] sm:$0xff] %vm86_vm0, %v11078_v16  ;;  %v11081_v13 = vmax.f32 %v11049_v29, 0.0  ;;  %v11048_v7 = vadd.f32 %v23544_v50, %v11016_v56  ;;  %v11019_v1 = vadd.f32 %v18595_v46, %v10632_v23  ;;  %v10631_v38 = vadd.f32 %v10504_v19, %v10244_v53  ;;  %18636 = vmatprep.mubr.msk.f32.mxu1 %vm86_vm0, %v11176_v33  ;;  %v26044_v25 = vld [vmem:[#allocation56_spill] sm:$0xff] }
 0x533   :  { %18688 = vmatprep.mubr.msk.f32.mxu0 %vm86_vm0, %v23601_v44  ;;  %v18546_v48 = vpop.f32.mrf.mxu1  ;;  %18637 = vmatmul.mubr.msk.f32.gmra.mxu1 %vm86_vm0, %v11177_v20  ;;  %v9090_v14 = vadd.f32 %v26043_v4, %v26042_v49  ;;  %v10249_v40 = vadd.f32 %v26044_v25, %v9861_v51  ;;  %v11179_v26 = vld [vmem:[#allocation3 + $0x1e9] sm:$0xff]  ;;  %v26056_v49 = vld [vmem:[#allocation19_spill] sm:$0xff] }
 0x534   :  { %v18598_v2 = vpop.f32.mrf.mxu0  ;;  %18689 = vmatmul.mubr.msk.f32.gmra.mxu0 %vm86_vm0, %v23603_v34  ;;  %11114 = vst.msk [vmem:[#allocation3 + $0x219] sm:$0xff] %vm86_vm0, %v11081_v13  ;;  %v11080_v52 = vmax.f32 %v11048_v7, 0.0  ;;  %v11051_v37 = vadd.f32 %v23544_v50, %v11019_v1  ;;  %v11018_v32 = vadd.f32 %v10891_v21, %v10631_v38  ;;  %v10634_v17 = vadd.f32 %v18546_v48, %v10247_v45  ;;  %v23644_v13 = vld [vmem:[#allocation10 + $0x58] sm:$0xff]  ;;  %v26050_v7 = vld [vmem:[#allocation17_spill] sm:$0xff]  ;;  %v26061_v27 = vld [vmem:[#allocation103_spill] sm:$0xff] }
 0x535   :  { %v10514_v53 = vpop.f32.mrf.mxu1  ;;  %v11178_v39 = vld [vmem:[#allocation3 + $0x1e1] sm:$0xff]  ;;  %v9862_v45 = vadd.f32 %v26049_v8, %v9475_v57  ;;  %v9477_v1 = vadd.f32 %v26050_v7, %v9090_v14  ;;  %v26051_v38 = vld [vmem:[#allocation50_spill] sm:$0xff]  ;;  %18889 = vmatprep.subr.mxu0 %v23644_v13 }
 0x536   :  { %v10901_v11 = vpop.f32.mrf.mxu0  ;;  %v23625_v9 = vld [vmem:[#allocation3 + $0x1e0] sm:$0xff]  ;;  %v23627_v46 = vld [vmem:[#allocation3 + $0x1e8] sm:$0xff]  ;;  %11113 = vst.msk [vmem:[#allocation3 + $0x211] sm:$0xff] %vm86_vm0, %v11080_v52  ;;  %v11083_v16 = vmax.f32 %v11051_v37, 0.0  ;;  %v11050_v29 = vadd.f32 %v23544_v50, %v11018_v32  ;;  %v11021_v56 = vadd.f32 %v18598_v2, %v10634_v17  ;;  %v10633_v23 = vadd.f32 %v10514_v53, %v10246_v55  ;;  %18639 = vmatprep.mubr.msk.f32.mxu1 %vm86_vm0, %v11178_v39 }
 0x537   :  { %18691 = vmatprep.mubr.msk.f32.mxu0 %vm86_vm0, %v23625_v9  ;;  %v18549_v59 = vpop.f32.mrf.mxu1  ;;  %18640 = vmatmul.mubr.msk.f32.gmra.mxu1 %vm86_vm0, %v11179_v26  ;;  %v9092_v20 = vadd.f32 %v26051_v38, %v23555_v54  ;;  %v9865_v55 = vadd.f32 %v26054_v63, %v26053_v31  ;;  %v23662_v22 = vld [vmem:[#allocation3 + $0x201] sm:$0xff]  ;;  %v26055_v57 = vld [vmem:[#allocation114_spill] sm:$0xff] }
 0x538   :  { %v18601_v41 = vpop.f32.mrf.mxu0  ;;  %18692 = vmatmul.mubr.msk.f32.gmra.mxu0 %vm86_vm0, %v23627_v46  ;;  %11116 = vst.msk [vmem:[#allocation3 + $0x231] sm:$0xff] %vm86_vm0, %v11083_v16  ;;  %v11082_v51 = vmax.f32 %v11050_v29, 0.0  ;;  %v11053_v19 = vadd.f32 %v23544_v50, %v11021_v56  ;;  %v11020_v21 = vadd.f32 %v10901_v11, %v10633_v23  ;;  %v10636_v33 = vadd.f32 %v18549_v59, %v10249_v40  ;;  %v26057_v14 = vld [vmem:[#allocation60_spill] sm:$0xff]  ;;  %v26059_v29 = vld [vmem:[#allocation99_spill] sm:$0xff]  ;;  %v26060_v23 = vld [vmem:[#allocation18_spill] sm:$0xff] }
 0x539   :  { %v10524_v18 = vpop.f32.mrf.mxu1  ;;  %v11180_v48 = vld [vmem:[#allocation3 + $0x1f9] sm:$0xff]  ;;  %v8303_v4 = vadd.f32 %v26056_v49, %v26055_v57  ;;  %v10250_v25 = vadd.f32 %v26057_v14, %v9862_v45  ;;  %v9479_v56 = vadd.f32 %v26059_v29, %v9092_v20  ;;  %v9094_v26 = vadd.f32 %v26060_v23, %v23586_v15  ;;  %v26064_v20 = vld [vmem:[#allocation65_spill] sm:$0xff]  ;;  %v26068_v49 = vld [vmem:[#allocation22_spill] sm:$0xff] }
 0x53a   :  { %v10911_v5 = vpop.f32.mrf.mxu0  ;;  %v23652_v2 = vld [vmem:[#allocation3 + $0x1f8] sm:$0xff]  ;;  %v23654_v52 = vld [vmem:[#allocation3 + $0x200] sm:$0xff]  ;;  %11115 = vst.msk [vmem:[#allocation3 + $0x229] sm:$0xff] %vm86_vm0, %v11082_v51  ;;  %v11085_v37 = vmax.f32 %v11053_v19, 0.0  ;;  %v11052_v32 = vadd.f32 %v23544_v50, %v11020_v21  ;;  %v11023_v54 = vadd.f32 %v18601_v41, %v10636_v33  ;;  %v10635_v17 = vadd.f32 %v10524_v18, %v10248_v28  ;;  %18642 = vmatprep.mubr.msk.f32.mxu1 %vm86_vm0, %v11180_v48 }
 0x53b   :  { %18694 = vmatprep.mubr.msk.f32.mxu0 %vm86_vm0, %v23652_v2  ;;  %v26058_v40 = vld [vmem:[#allocation104_spill] sm:$0xff]  ;;  %v18552_v10 = vpop.f32.mrf.mxu1  ;;  %18643 = vmatmul.mubr.msk.f32.gmra.mxu1 %vm86_vm0, %v23662_v22  ;;  %v10253_v3 = vadd.f32 %v26061_v27, %v9865_v55 }
 0x53c   :  { %v9864_v61 = vadd.f32 %v26058_v40, %v9477_v1  ;;  %v18604_v6 = vpop.f32.mrf.mxu0  ;;  %18695 = vmatmul.mubr.msk.f32.gmra.mxu0 %vm86_vm0, %v23654_v52  ;;  %11118 = vst.msk [vmem:[#allocation3 + $0x249] sm:$0xff] %vm86_vm0, %v11085_v37  ;;  %v11084_v53 = vmax.f32 %v11052_v32, 0.0  ;;  %v11055_v11 = vadd.f32 %v23544_v50, %v11023_v54  ;;  %v11022_v39 = vadd.f32 %v10911_v5, %v10635_v17  ;;  %v26062_v28 = vld [vmem:[#allocation92_spill] sm:$0xff]  ;;  %v26063_v1 = vld [vmem:[#allocation49_spill] sm:$0xff]  ;;  %v26065_v37 = vld [vmem:[#allocation23_spill] sm:$0xff] }
 0x53d   :  { %v10638_v16 = vadd.f32 %v18552_v10, %v10251_v60  ;;  %v9867_v8 = vadd.f32 %v23462_v62, %v26062_v28  ;;  %v10534_v45 = vpop.f32.mrf.mxu1  ;;  %v23680_v41 = vld [vmem:[#allocation3 + $0x211] sm:$0xff]  ;;  %v23692_v62 = vld [vmem:[#allocation3 + $0x219] sm:$0xff]  ;;  %v23695_v38 = vadd.f32 %v26063_v1, %v8303_v4  ;;  %v9866_v60 = vadd.f32 %v23466_v42, %v9479_v56 }
 0x53e   :  { %v10921_v59 = vpop.f32.mrf.mxu0  ;;  %v23682_v51 = vld [vmem:[#allocation3 + $0x210] sm:$0xff]  ;;  %v23684_v19 = vld [vmem:[#allocation3 + $0x218] sm:$0xff]  ;;  %11117 = vst.msk [vmem:[#allocation3 + $0x241] sm:$0xff] %vm86_vm0, %v11084_v53  ;;  %v11087_v21 = vmax.f32 %v11055_v11, 0.0  ;;  %v11054_v33 = vadd.f32 %v23544_v50, %v11022_v39  ;;  %v10637_v15 = vadd.f32 %v10534_v45, %v10250_v25  ;;  %18645 = vmatprep.mubr.msk.f32.mxu1 %vm86_vm0, %v23680_v41  ;;  %v10252_v12 = vadd.f32 %v26064_v20, %v9864_v61 }
 0x53f   :  { %v11025_v7 = vadd.f32 %v18604_v6, %v10638_v16  ;;  %18697 = vmatprep.mubr.msk.f32.mxu0 %vm86_vm0, %v23682_v51  ;;  %v18555_v31 = vpop.f32.mrf.mxu1  ;;  %18646 = vmatmul.mubr.msk.f32.gmra.mxu1 %vm86_vm0, %v23692_v62  ;;  %v9481_v32 = vadd.f32 %v26065_v37, %v9094_v26  ;;  %v26066_v54 = vld [vmem:[#allocation102_spill] sm:$0xff]  ;;  %v26067_v17 = vld [vmem:[#allocation67_spill] sm:$0xff]  ;;  %v26069_v4 = vld [vmem:[#allocation68_spill] sm:$0xff] }
 0x540   :  { %v18607_v63 = vpop.f32.mrf.mxu0  ;;  %18698 = vmatmul.mubr.msk.f32.gmra.mxu0 %vm86_vm0, %v23684_v19  ;;  %11120 = vst.msk [vmem:[#allocation3 + $0x261] sm:$0xff] %vm86_vm0, %v11087_v21  ;;  %v11086_v55 = vmax.f32 %v11054_v33, 0.0  ;;  %v11024_v5 = vadd.f32 %v10921_v59, %v10637_v15  ;;  %v10640_v48 = vadd.f32 %v18555_v31, %v10253_v3  ;;  %v9096_v42 = vadd.f32 %v26066_v54, %v23589_v47  ;;  %v23723_v16 = vld [vmem:[#allocation3 + $0x231] sm:$0xff]  ;;  %v26070_v29 = vld [vmem:[#allocation80_spill] sm:$0xff]  ;;  %v26072_v26 = vld [vmem:[#allocation33_spill] sm:$0xff] }
 0x541   :  { %v11057_v18 = vadd.f32 %v23544_v50, %v11025_v7  ;;  %v10255_v57 = vadd.f32 %v26067_v17, %v9867_v8  ;;  %v9869_v14 = vadd.f32 %v26069_v4, %v26068_v49  ;;  %v10544_v25 = vpop.f32.mrf.mxu1  ;;  %v23711_v61 = vld [vmem:[#allocation3 + $0x229] sm:$0xff]  ;;  %v10254_v27 = vadd.f32 %v26072_v26, %v9866_v60  ;;  %v26073_v3 = vld [vmem:[#allocation36_spill] sm:$0xff]  ;;  %v26075_v20 = vld [vmem:[#allocation27_spill] sm:$0xff] }
 0x542   :  { %v10931_v40 = vpop.f32.mrf.mxu0  ;;  %v23713_v10 = vld [vmem:[#allocation3 + $0x228] sm:$0xff]  ;;  %v23715_v6 = vld [vmem:[#allocation3 + $0x230] sm:$0xff]  ;;  %11119 = vst.msk [vmem:[#allocation3 + $0x259] sm:$0xff] %vm86_vm0, %v11086_v55  ;;  %v11056_v11 = vadd.f32 %v23544_v50, %v11024_v5  ;;  %v11027_v39 = vadd.f32 %v18607_v63, %v10640_v48  ;;  %v10639_v47 = vadd.f32 %v10544_v25, %v10252_v12  ;;  %18648 = vmatprep.mubr.msk.f32.mxu1 %vm86_vm0, %v23711_v61  ;;  %v26077_v63 = vld [vmem:[#allocation48_spill] sm:$0xff] }
 0x543   :  { %v11089_v53 = vmax.f32 %v11057_v18, 0.0  ;;  %18700 = vmatprep.mubr.msk.f32.mxu0 %vm86_vm0, %v23713_v10  ;;  %v26071_v56 = vld [vmem:[#allocation46_spill] sm:$0xff]  ;;  %v9868_v28 = vadd.f32 %v26073_v3, %v9481_v32  ;;  %v18558_v8 = vpop.f32.mrf.mxu1  ;;  %18649 = vmatmul.mubr.msk.f32.gmra.mxu1 %vm86_vm0, %v23723_v16  ;;  %v9098_v12 = vadd.f32 %v26075_v20, %v23635_v43  ;;  %v26079_v4 = vld [vmem:[#allocation89_spill] sm:$0xff]  ;;  %v26082_v3 = vld [vmem:[#allocation95_spill] sm:$0xff] }
 0x544   :  { %v8313_v23 = vadd.f32 %v26071_v56, %v26070_v29  ;;  %v18610_v45 = vpop.f32.mrf.mxu0  ;;  %18701 = vmatmul.mubr.msk.f32.gmra.mxu0 %vm86_vm0, %v23715_v6  ;;  %v11088_v59 = vmax.f32 %v11056_v11, 0.0  ;;  %v11059_v21 = vadd.f32 %v23544_v50, %v11027_v39  ;;  %v11026_v33 = vadd.f32 %v10931_v40, %v10639_v47  ;;  %v26074_v15 = vld [vmem:[#allocation94_spill] sm:$0xff]  ;;  %v26080_v25 = vld [vmem:[#allocation117_spill] sm:$0xff] }
 0x545   :  { %11122 = vst.msk [vmem:[#allocation3 + $0x279] sm:$0xff] %vm86_vm0, %v11089_v53  ;;  %v10642_v7 = vadd.f32 %v18558_v8, %v10255_v57  ;;  %v9483_v1 = vadd.f32 %v26074_v15, %v9096_v42  ;;  %v26076_v60 = vld [vmem:[#allocation74_spill] sm:$0xff]  ;;  %v10554_v5 = vpop.f32.mrf.mxu1  ;;  %v23741_v37 = vld [vmem:[#allocation3 + $0x241] sm:$0xff]  ;;  %v10256_v40 = vadd.f32 %v26080_v25, %v9868_v28  ;;  %v26083_v28 = vld [vmem:[#allocation119_spill] sm:$0xff] }
 0x546   :  { %v10257_v31 = vadd.f32 %v26076_v60, %v9869_v14  ;;  %v26078_v55 = vld [vmem:[#allocation118_spill] sm:$0xff]  ;;  %v10941_v48 = vpop.f32.mrf.mxu0  ;;  %v23743_v32 = vld [vmem:[#allocation3 + $0x240] sm:$0xff]  ;;  %11121 = vst.msk [vmem:[#allocation3 + $0x271] sm:$0xff] %vm86_vm0, %v11088_v59  ;;  %v11091_v17 = vmax.f32 %v11059_v21, 0.0  ;;  %v11058_v42 = vadd.f32 %v23544_v50, %v11026_v33  ;;  %v10641_v43 = vadd.f32 %v10554_v5, %v10254_v27  ;;  %18651 = vmatprep.mubr.msk.f32.mxu1 %vm86_vm0, %v23741_v37 }
 0x547   :  { %v9871_v18 = vadd.f32 %v26078_v55, %v26077_v63  ;;  %v23745_v54 = vld [vmem:[#allocation3 + $0x248] sm:$0xff]  ;;  %v11029_v57 = vadd.f32 %v18610_v45, %v10642_v7  ;;  %18703 = vmatprep.mubr.msk.f32.mxu0 %vm86_vm0, %v23743_v32  ;;  %v8714_v14 = vadd.f32 %v26079_v4, %v8313_v23  ;;  %v9870_v53 = vadd.f32 %v23482_v24, %v9483_v1  ;;  %v18561_v11 = vpop.f32.mrf.mxu1  ;;  %v26081_v23 = vld [vmem:[#allocation51_spill] sm:$0xff]  ;;  %v26088_v55 = vld [vmem:[#allocation116_spill] sm:$0xff] }
 0x548   :  { %v23753_v49 = vld [vmem:[#allocation3 + $0x249] sm:$0xff]  ;;  %v18613_v39 = vpop.f32.mrf.mxu0  ;;  %18704 = vmatmul.mubr.msk.f32.gmra.mxu0 %vm86_vm0, %v23745_v54  ;;  %11124 = vst.msk [vmem:[#allocation3 + $0x291] sm:$0xff] %vm86_vm0, %v11091_v17  ;;  %v11090_v47 = vmax.f32 %v11058_v42, 0.0  ;;  %v11028_v56 = vadd.f32 %v10941_v48, %v10641_v43  ;;  %v10644_v26 = vadd.f32 %v18561_v11, %v10257_v31  ;;  %v9485_v27 = vadd.f32 %v26081_v23, %v9098_v12  ;;  %v23782_v63 = vld [vmem:[#allocation3 + $0x261] sm:$0xff]  ;;  %v26091_v42 = vld [vmem:[#allocation123_spill] sm:$0xff] }
 0x549   :  { %18652 = vmatmul.mubr.msk.f32.gmra.mxu1 %vm86_vm0, %v23753_v49  ;;  %v11061_v29 = vadd.f32 %v23544_v50, %v11029_v57  ;;  %v9100_v24 = vadd.f32 %v26082_v3, %v23695_v38  ;;  %v10259_v8 = vadd.f32 %v26083_v28, %v9871_v18  ;;  %v26084_v45 = vld [vmem:[#allocation54_spill] sm:$0xff]  ;;  %v26085_v59 = vld [vmem:[#allocation121_spill] sm:$0xff]  ;;  %v10564_v33 = vpop.f32.mrf.mxu1  ;;  %v23770_v15 = vld [vmem:[#allocation3 + $0x259] sm:$0xff]  ;;  %26087 = vst [vmem:[#allocation112_spill] sm:$0xff] %v23782_v63 }
 0x54a   :  { %v9873_v21 = vadd.f32 %v26085_v59, %v26084_v45  ;;  %v10951_v7 = vpop.f32.mrf.mxu0  ;;  %26086 = vst [vmem:[#allocation111_spill] sm:$0xff] %v23770_v15  ;;  %v23772_v1 = vld [vmem:[#allocation3 + $0x258] sm:$0xff]  ;;  %v23774_v20 = vld [vmem:[#allocation3 + $0x260] sm:$0xff]  ;;  %11123 = vst.msk [vmem:[#allocation3 + $0x289] sm:$0xff] %vm86_vm0, %v11090_v47  ;;  %v11060_v12 = vadd.f32 %v23544_v50, %v11028_v56  ;;  %v11031_v31 = vadd.f32 %v18613_v39, %v10644_v26  ;;  %18654 = vmatprep.mubr.msk.f32.mxu1 %vm86_vm0, %v23770_v15 }
 0x54b   :  { %v11093_v60 = vmax.f32 %v11061_v29, 0.0  ;;  %v10643_v38 = vadd.f32 %v10564_v33, %v10256_v40  ;;  %18706 = vmatprep.mubr.msk.f32.mxu0 %vm86_vm0, %v23772_v1  ;;  %v26089_v18 = vld [vmem:[#allocation41_spill] sm:$0xff]  ;;  %v26090_v48 = vld [vmem:[#allocation120_spill] sm:$0xff]  ;;  %v9872_v57 = vadd.f32 %v26091_v42, %v9485_v27  ;;  %v18564_v43 = vpop.f32.mrf.mxu1  ;;  %v26094_v26 = vld [vmem:[#allocation122_spill] sm:$0xff] }
 0x54c   :  { %v8323_v5 = vadd.f32 %v26089_v18, %v26088_v55  ;;  %v10258_v17 = vadd.f32 %v26090_v48, %v9870_v53  ;;  %v18616_v4 = vpop.f32.mrf.mxu0  ;;  %18707 = vmatmul.mubr.msk.f32.gmra.mxu0 %vm86_vm0, %v23774_v20  ;;  %v11092_v25 = vmax.f32 %v11060_v12, 0.0  ;;  %v11063_v40 = vadd.f32 %v23544_v50, %v11031_v31  ;;  %v26092_v47 = vld [vmem:[#allocation105_spill] sm:$0xff]  ;;  %v26093_v53 = vld [vmem:[#allocation24_spill] sm:$0xff]  ;;  %v26099_v12 = vld [vmem:[#allocation43_spill] sm:$0xff] }
 0x54d   :  { %18655 = vmatmul.mubr.msk.f32.gmra.mxu1 %vm86_vm0, %v23782_v63  ;;  %11126 = vst.msk [vmem:[#allocation3 + $0x2a9] sm:$0xff] %vm86_vm0, %v11093_v60  ;;  %v11030_v11 = vadd.f32 %v10951_v7, %v10643_v38  ;;  %v10646_v39 = vadd.f32 %v18564_v43, %v10259_v8  ;;  %v9487_v29 = vadd.f32 %v26092_v47, %v9100_v24  ;;  %v26095_v27 = vld [vmem:[#allocation25_spill] sm:$0xff]  ;;  %v10574_v45 = vpop.f32.mrf.mxu1  ;;  %v23799_v33 = vld [vmem:[#allocation3 + $0x271] sm:$0xff]  ;;  %v26100_v38 = vld [vmem:[#allocation124_spill] sm:$0xff] }
 0x54e   :  { %v9102_v56 = vadd.f32 %v26093_v53, %v8714_v14  ;;  %v10261_v23 = vadd.f32 %v26094_v26, %v9873_v21  ;;  %v26096_v3 = vld [vmem:[#allocation125_spill] sm:$0xff]  ;;  %v10961_v59 = vpop.f32.mrf.mxu0  ;;  %26097 = vst [vmem:[#allocation90_spill] sm:$0xff] %v23799_v33  ;;  %v23801_v55 = vld [vmem:[#allocation3 + $0x270] sm:$0xff]  ;;  %v23803_v60 = vld [vmem:[#allocation3 + $0x278] sm:$0xff]  ;;  %v11095_v8 = vmax.f32 %v11063_v40, 0.0  ;;  %v10645_v14 = vadd.f32 %v10574_v45, %v10258_v17  ;;  %18657 = vmatprep.mubr.msk.f32.mxu1 %vm86_vm0, %v23799_v33 }
 0x54f   :  { %v9875_v28 = vadd.f32 %v26096_v3, %v26095_v27  ;;  %11125 = vst.msk [vmem:[#allocation3 + $0x2a1] sm:$0xff] %vm86_vm0, %v11092_v25  ;;  %v11062_v24 = vadd.f32 %v23544_v50, %v11030_v11  ;;  %v11033_v7 = vadd.f32 %v18616_v4, %v10646_v39  ;;  %18709 = vmatprep.mubr.msk.f32.mxu0 %vm86_vm0, %v23801_v55  ;;  %v23811_v21 = vld [vmem:[#allocation3 + $0x279] sm:$0xff]  ;;  %v18567_v43 = vpop.f32.mrf.mxu1  ;;  %v26105_v26 = vld [vmem:[#allocation53_spill] sm:$0xff]  ;;  %v26184_v33 = vld [vmem:[#allocation86_spill] sm:$0xff] }
 0x550   :  { %26098 = vst [vmem:[#allocation40_spill] sm:$0xff] %v23811_v21  ;;  %v8716_v31 = vadd.f32 %v26099_v12, %v8323_v5  ;;  %v10260_v18 = vadd.f32 %v26100_v38, %v9872_v57  ;;  %v26101_v48 = vld [vmem:[#allocation127_spill] sm:$0xff]  ;;  %v18619_v25 = vpop.f32.mrf.mxu0  ;;  %18710 = vmatmul.mubr.msk.f32.gmra.mxu0 %vm86_vm0, %v23803_v60  ;;  %11128 = vst.msk [vmem:[#allocation3 + $0x2c1] sm:$0xff] %vm86_vm0, %v11095_v8  ;;  %v11032_v40 = vadd.f32 %v10961_v59, %v10645_v14  ;;  %v26102_v5 = vld [vmem:[#allocation26_spill] sm:$0xff] }
 0x551   :  { %v9874_v42 = vadd.f32 %v26101_v48, %v9487_v29  ;;  %18658 = vmatmul.mubr.msk.f32.gmra.mxu1 %vm86_vm0, %v23811_v21  ;;  %v11094_v17 = vmax.f32 %v11062_v24, 0.0  ;;  %v11065_v4 = vadd.f32 %v23544_v50, %v11033_v7  ;;  %v10648_v11 = vadd.f32 %v18567_v43, %v10261_v23  ;;  %v26103_v57 = vld [vmem:[#allocation52_spill] sm:$0xff]  ;;  %v26104_v29 = vld [vmem:[#allocation126_spill] sm:$0xff]  ;;  %v10584_v3 = vpop.f32.mrf.mxu1 }
 0x552   :  { %v9489_v39 = vadd.f32 %v26102_v5, %v9102_v56  ;;  %v9104_v47 = vadd.f32 %v26103_v57, %v8716_v31  ;;  %v10263_v53 = vadd.f32 %v26104_v29, %v9875_v28  ;;  %v9877_v27 = vadd.f32 %v23504_v36, %v26105_v26  ;;  %v10971_v45 = vpop.f32.mrf.mxu0  ;;  %v23827_v12 = vld [vmem:[#allocation3 + $0x289] sm:$0xff]  ;;  %v23839_v36 = vld [vmem:[#allocation3 + $0x291] sm:$0xff]  ;;  %v26108_v28 = vld [vmem:[#allocation128_spill] sm:$0xff] }
 0x553   :  { %26106 = vst [vmem:[#allocation58_spill] sm:$0xff] %v23827_v12  ;;  %v23829_v38 = vld [vmem:[#allocation3 + $0x288] sm:$0xff]  ;;  %v23831_v8 = vld [vmem:[#allocation3 + $0x290] sm:$0xff]  ;;  %11127 = vst.msk [vmem:[#allocation3 + $0x2b9] sm:$0xff] %vm86_vm0, %v11094_v17  ;;  %v11097_v23 = vmax.f32 %v11065_v4, 0.0  ;;  %v11064_v56 = vadd.f32 %v23544_v50, %v11032_v40  ;;  %v11035_v59 = vadd.f32 %v18619_v25, %v10648_v11  ;;  %v10647_v24 = vadd.f32 %v10584_v3, %v10260_v18  ;;  %v18570_v31 = vpop.f32.mrf.mxu1 }
 0x554   :  { %18660 = vmatprep.mubr.msk.f32.mxu1 %vm86_vm0, %v23827_v12  ;;  %18712 = vmatprep.mubr.msk.f32.mxu0 %vm86_vm0, %v23829_v38  ;;  %26107 = vst [vmem:[#allocation98_spill] sm:$0xff] %v23839_v36  ;;  %v10262_v7 = vadd.f32 %v26108_v28, %v9874_v42  ;;  %v9876_v14 = vadd.f32 %v23508_v35, %v9489_v39  ;;  %v18622_v48 = vpop.f32.mrf.mxu0  ;;  %v26109_v4 = vld [vmem:[#allocation97_spill] sm:$0xff]  ;;  %v26111_v35 = vld [vmem:[#allocation55_spill] sm:$0xff] }
 0x555   :  { %18661 = vmatmul.mubr.msk.f32.gmra.mxu1 %vm86_vm0, %v23839_v36  ;;  %18713 = vmatmul.mubr.msk.f32.gmra.mxu0 %vm86_vm0, %v23831_v8  ;;  %11130 = vst.msk [vmem:[#allocation3 + $0x2d9] sm:$0xff] %vm86_vm0, %v11097_v23  ;;  %v11096_v18 = vmax.f32 %v11064_v56, 0.0  ;;  %v11067_v43 = vadd.f32 %v23544_v50, %v11035_v59  ;;  %v11034_v25 = vadd.f32 %v10971_v45, %v10647_v24  ;;  %v26110_v42 = vld [vmem:[#allocation129_spill] sm:$0xff]  ;;  %v10594_v39 = vpop.f32.mrf.mxu1  ;;  %v26177_v36 = vld [vmem:[#allocation82_spill] sm:$0xff] }
 0x556   :  { %v10650_v17 = vadd.f32 %v18570_v31, %v10263_v53  ;;  %v9491_v40 = vadd.f32 %v26109_v4, %v9104_v47  ;;  %v10265_v11 = vadd.f32 %v26110_v42, %v9877_v27  ;;  %v9879_v5 = vadd.f32 %v23517_v58, %v26111_v35  ;;  %v10981_v57 = vpop.f32.mrf.mxu0  ;;  %v23853_v29 = vld [vmem:[#allocation3 + $0x2a1] sm:$0xff]  ;;  %v23865_v58 = vld [vmem:[#allocation3 + $0x2a9] sm:$0xff] }
 0x557   :  { %26112 = vst [vmem:[#allocation20_spill] sm:$0xff] %v23853_v29  ;;  %v23855_v26 = vld [vmem:[#allocation3 + $0x2a0] sm:$0xff]  ;;  %v23857_v3 = vld [vmem:[#allocation3 + $0x2a8] sm:$0xff]  ;;  %11129 = vst.msk [vmem:[#allocation3 + $0x2d1] sm:$0xff] %vm86_vm0, %v11096_v18  ;;  %v11099_v23 = vmax.f32 %v11067_v43, 0.0  ;;  %v11066_v53 = vadd.f32 %v23544_v50, %v11034_v25  ;;  %v10649_v47 = vadd.f32 %v10594_v39, %v10262_v7  ;;  %18663 = vmatprep.mubr.msk.f32.mxu1 %vm86_vm0, %v23853_v29  ;;  %v18573_v24 = vpop.f32.mrf.mxu1 }
 0x558   :  { %v11037_v45 = vadd.f32 %v18622_v48, %v10650_v17  ;;  %18715 = vmatprep.mubr.msk.f32.mxu0 %vm86_vm0, %v23855_v26  ;;  %26113 = vst [vmem:[#allocation87_spill] sm:$0xff] %v23865_v58  ;;  %v26114_v27 = vld [vmem:[#allocation130_spill] sm:$0xff]  ;;  %v9878_v59 = vadd.f32 %v23524_v30, %v9491_v40  ;;  %v18625_v28 = vpop.f32.mrf.mxu0  ;;  %v10652_v18 = vadd.f32 %v18573_v24, %v10265_v11  ;;  %v26117_v11 = vld [vmem:[#allocation131_spill] sm:$0xff] }
 0x559   :  { %v10264_v56 = vadd.f32 %v26114_v27, %v9876_v14  ;;  %18664 = vmatmul.mubr.msk.f32.gmra.mxu1 %vm86_vm0, %v23865_v58  ;;  %18716 = vmatmul.mubr.msk.f32.gmra.mxu0 %vm86_vm0, %v23857_v3  ;;  %11132 = vst.msk [vmem:[#allocation3 + $0x2f1] sm:$0xff] %vm86_vm0, %v11099_v23  ;;  %v11098_v7 = vmax.f32 %v11066_v53, 0.0  ;;  %v11036_v48 = vadd.f32 %v10981_v57, %v10649_v47  ;;  %v10604_v14 = vpop.f32.mrf.mxu1 }
 0x55a   :  { %v11069_v31 = vadd.f32 %v23544_v50, %v11037_v45  ;;  %v10267_v43 = vadd.f32 %v23519_v0, %v9879_v5  ;;  %v10991_v25 = vpop.f32.mrf.mxu0  ;;  %v23876_v30 = vld [vmem:[#allocation3 + $0x2b9] sm:$0xff]  ;;  %v11039_v35 = vadd.f32 %v18625_v28, %v10652_v18  ;;  %v23888_v0 = vld [vmem:[#allocation3 + $0x2c1] sm:$0xff]  ;;  %v10266_v5 = vadd.f32 %v26117_v11, %v9878_v59 }
 0x55b   :  { %26115 = vst [vmem:[#allocation42_spill] sm:$0xff] %v23876_v30  ;;  %v23878_v17 = vld [vmem:[#allocation3 + $0x2b8] sm:$0xff]  ;;  %v23880_v4 = vld [vmem:[#allocation3 + $0x2c0] sm:$0xff]  ;;  %11131 = vst.msk [vmem:[#allocation3 + $0x2e9] sm:$0xff] %vm86_vm0, %v11098_v7  ;;  %v11068_v42 = vadd.f32 %v23544_v50, %v11036_v48  ;;  %v10651_v39 = vadd.f32 %v10604_v14, %v10264_v56  ;;  %18666 = vmatprep.mubr.msk.f32.mxu1 %vm86_vm0, %v23876_v30  ;;  %v18576_v57 = vpop.f32.mrf.mxu1 }
 0x55c   :  { %v11101_v40 = vmax.f32 %v11069_v31, 0.0  ;;  %18718 = vmatprep.mubr.msk.f32.mxu0 %vm86_vm0, %v23878_v17  ;;  %26116 = vst [vmem:[#allocation110_spill] sm:$0xff] %v23888_v0  ;;  %v18628_v23 = vpop.f32.mrf.mxu0  ;;  %v11071_v45 = vadd.f32 %v23544_v50, %v11039_v35  ;;  %v10654_v27 = vadd.f32 %v18576_v57, %v10267_v43  ;;  %v23909_v43 = vld [vmem:[#allocation3 + $0x2d9] sm:$0xff]  ;;  %v26173_v30 = vld [vmem:[#allocation38_spill] sm:$0xff] }
 0x55d   :  { %18667 = vmatmul.mubr.msk.f32.gmra.mxu1 %vm86_vm0, %v23888_v0  ;;  %18719 = vmatmul.mubr.msk.f32.gmra.mxu0 %vm86_vm0, %v23880_v4  ;;  %v11100_v53 = vmax.f32 %v11068_v42, 0.0  ;;  %v11038_v47 = vadd.f32 %v10991_v25, %v10651_v39  ;;  %v10614_v56 = vpop.f32.mrf.mxu1  ;;  %26119 = vst [vmem:[#allocation57_spill] sm:$0xff] %v23909_v43 }
 0x55e   :  { %11134 = vst.msk [vmem:[#allocation3 + $0x309] sm:$0xff] %vm86_vm0, %v11101_v40  ;;  %v23897_v24 = vld [vmem:[#allocation3 + $0x2d1] sm:$0xff]  ;;  %v11001_v59 = vpop.f32.mrf.mxu0  ;;  %v11103_v31 = vmax.f32 %v11071_v45, 0.0  ;;  %v10653_v18 = vadd.f32 %v10614_v56, %v10266_v5  ;;  %v11041_v14 = vadd.f32 %v18628_v23, %v10654_v27 }
 0x55f   :  { %26118 = vst [vmem:[#allocation45_spill] sm:$0xff] %v23897_v24  ;;  %v23899_v28 = vld [vmem:[#allocation3 + $0x2d0] sm:$0xff]  ;;  %v23901_v7 = vld [vmem:[#allocation3 + $0x2d8] sm:$0xff]  ;;  %11133 = vst.msk [vmem:[#allocation3 + $0x301] sm:$0xff] %vm86_vm0, %v11100_v53  ;;  %v11070_v48 = vadd.f32 %v23544_v50, %v11038_v47  ;;  %18669 = vmatprep.mubr.msk.f32.mxu1 %vm86_vm0, %v23897_v24 }
 0x560   :  { %18721 = vmatprep.mubr.msk.f32.mxu0 %vm86_vm0, %v23899_v28  ;;  %11136 = vst.msk [vmem:[#allocation3 + $0x321] sm:$0xff] %vm86_vm0, %v11103_v31  ;;  %v11073_v40 = vadd.f32 %v23544_v50, %v11041_v14  ;;  %v11040_v42 = vadd.f32 %v11001_v59, %v10653_v18  ;;  %v23929_v23 = vld [vmem:[#allocation3 + $0x2f1] sm:$0xff]  ;;  %v11851_v14 = vld [vmem:[#allocation3 + $0x1ba] sm:$0xff] }
 0x561   :  { %18670 = vmatmul.mubr.msk.f32.gmra.mxu1 %vm86_vm0, %v23909_v43  ;;  %18722 = vmatmul.mubr.msk.f32.gmra.mxu0 %vm86_vm0, %v23901_v7  ;;  %v11102_v25 = vmax.f32 %v11070_v48, 0.0  ;;  %26121 = vst [vmem:[#allocation93_spill] sm:$0xff] %v23929_v23  ;;  %v11850_v56 = vld [vmem:[#allocation3 + $0x1b2] sm:$0xff]  ;;  %v26169_v43 = vld [vmem:[#allocation72_spill] sm:$0xff] }
 0x562   :  { %v23917_v35 = vld [vmem:[#allocation3 + $0x2e9] sm:$0xff]  ;;  %v11105_v5 = vmax.f32 %v11073_v40, 0.0  ;;  %v11072_v57 = vadd.f32 %v23544_v50, %v11040_v42 }
 0x563   :  { %26120 = vst [vmem:[#allocation113_spill] sm:$0xff] %v23917_v35  ;;  %v23919_v39 = vld [vmem:[#allocation3 + $0x2e8] sm:$0xff]  ;;  %v23921_v11 = vld [vmem:[#allocation3 + $0x2f0] sm:$0xff]  ;;  %11135 = vst.msk [vmem:[#allocation3 + $0x319] sm:$0xff] %vm86_vm0, %v11102_v25  ;;  %18672 = vmatprep.mubr.msk.f32.mxu1 %vm86_vm0, %v23917_v35 }
 0x564   :  { %18724 = vmatprep.mubr.msk.f32.mxu0 %vm86_vm0, %v23919_v39  ;;  %11138 = vst.msk [vmem:[#allocation3 + $0x339] sm:$0xff] %vm86_vm0, %v11105_v5  ;;  %v11104_v53 = vmax.f32 %v11072_v57, 0.0  ;;  %v12656_v25 = vld [vmem:[#allocation10 + $0x40] sm:$0xff]  ;;  %v23975_v40 = vld [vmem:[#allocation3 + $0x1ca] sm:$0xff]  ;;  %v19133_v57 = vld [vmem:[#allocation10 + $0x48] sm:$0xff] }
 0x565   :  { %18673 = vmatmul.mubr.msk.f32.gmra.mxu1 %vm86_vm0, %v23929_v23  ;;  %18725 = vmatmul.mubr.msk.f32.gmra.mxu0 %vm86_vm0, %v23921_v11  ;;  %v23947_v27 = vld [vmem:[#allocation3 + $0x309] sm:$0xff]  ;;  %v18635_v42 = vpop.f32.mrf.mxu1  ;;  %v7531_v35 = vld [vmem:[#allocation4 + $0x38] sm:$0xff] }
 0x566   :  { %v23936_v45 = vld [vmem:[#allocation3 + $0x301] sm:$0xff]  ;;  %11137 = vst.msk [vmem:[#allocation3 + $0x331] sm:$0xff] %vm86_vm0, %v11104_v53  ;;  %26123 = vst [vmem:[#allocation100_spill] sm:$0xff] %v23947_v27 }
 0x567   :  { %26122 = vst [vmem:[#allocation28_spill] sm:$0xff] %v23936_v45  ;;  %v23938_v50 = vld [vmem:[#allocation3 + $0x300] sm:$0xff]  ;;  %v23940_v47 = vld [vmem:[#allocation3 + $0x308] sm:$0xff]  ;;  %18675 = vmatprep.mubr.msk.f32.mxu1 %vm86_vm0, %v23936_v45  ;;  %v18687_v5 = vpop.f32.mrf.mxu0 }
 0x568   :  { %18727 = vmatprep.mubr.msk.f32.mxu0 %vm86_vm0, %v23938_v50  ;;  %v23963_v18 = vld [vmem:[#allocation3 + $0x321] sm:$0xff]  ;;  %v23979_v53 = vadd.f32 %v18687_v5, %v18635_v42  ;;  %v24041_v42 = vld [vmem:[#allocation3 + $0x232] sm:$0xff] }
 0x569   :  { %18676 = vmatmul.mubr.msk.f32.gmra.mxu1 %vm86_vm0, %v23947_v27  ;;  %18728 = vmatmul.mubr.msk.f32.gmra.mxu0 %vm86_vm0, %v23940_v47  ;;  %26125 = vst [vmem:[#allocation88_spill] sm:$0xff] %v23963_v18  ;;  %v7527_v27 = vld [vmem:[#allocation4 + $0x18] sm:$0xff] }
 0x56a   :  { %v23953_v59 = vld [vmem:[#allocation3 + $0x319] sm:$0xff]  ;;  %26126 = vst [vmem:[#allocation44_spill] sm:$0xff] %v23979_v53  ;;  %v24099_v53 = vld [vmem:[#allocation3 + $0x2a2] sm:$0xff] }
 0x56b   :  { %26124 = vst [vmem:[#allocation91_spill] sm:$0xff] %v23953_v59  ;;  %v23955_v31 = vld [vmem:[#allocation3 + $0x318] sm:$0xff]  ;;  %v23957_v48 = vld [vmem:[#allocation3 + $0x320] sm:$0xff]  ;;  %18678 = vmatprep.mubr.msk.f32.mxu1 %vm86_vm0, %v23953_v59  ;;  %26134 = vst [vmem:[#allocation50_spill] sm:$0xff] %v24099_v53 }
 0x56c   :  { %18730 = vmatprep.mubr.msk.f32.mxu0 %vm86_vm0, %v23955_v31  ;;  %v26160_v59 = vld [vmem:[#allocation64_spill] sm:$0xff] }
 0x56d   :  { %18679 = vmatmul.mubr.msk.f32.gmra.mxu1 %vm86_vm0, %v23963_v18  ;;  %18731 = vmatmul.mubr.msk.f32.gmra.mxu0 %vm86_vm0, %v23957_v48 }
 0x56e   :  { %18789 = vmatprep.mubr.msk.f32.mxu0 %vm86_vm0, %v23601_v44  ;;  %18737 = vmatprep.mubr.msk.f32.mxu1 %vm86_vm0, %v11850_v56  ;;  %v23983_v44 = vld [vmem:[#allocation3 + $0x1d2] sm:$0xff]  ;;  %v23986_v56 = vld [vmem:[#allocation10 + $0x68] sm:$0xff] }
 0x571   :  { %18738 = vmatmul.mubr.msk.f32.vlgmr.msra.gmra.mxu1 %vm86_vm0, %v11851_v14  ;;  %18790 = vmatmul.mubr.msk.f32.vlgmr.msra.gmra.mxu0 %vm86_vm0, %v23603_v34  ;;  %v13043_v34 = vld [vmem:[#allocation10 + $0x50] sm:$0xff] }
 0x572   :  { %18838 = vmatpush3.msra.mxu1 %v19133_v57  ;;  %18740 = vmatprep.mubr.msk.f32.mxu1 %vm86_vm0, %v23975_v40  ;;  %v23992_v14 = vld [vmem:[#allocation3 + $0x1e2] sm:$0xff] }
 0x573   :  { %18792 = vmatprep.mubr.msk.f32.mxu0 %vm86_vm0, %v23625_v9  ;;  %18839 = vmatprep.subr.mxu1 %v12656_v25  ;;  %v23999_v9 = vld [vmem:[#allocation3 + $0x1ea] sm:$0xff] }
 0x574   :  { %18840 = vmatpush3.msra.mxu1 %v12656_v25  ;;  %18890 = vmatpush3.msra.mxu0 %v23644_v13  ;;  %v24001_v13 = vld [vmem:[#allocation10 + $0x78] sm:$0xff]  ;;  %v24020_v25 = vld [vmem:[#allocation3 + $0x212] sm:$0xff] }
 0x575   :  { %18741 = vmatmul.mubr.msk.f32.gmra.mxu1 %vm86_vm0, %v23983_v44  ;;  %18793 = vmatmul.mubr.msk.f32.gmra.mxu0 %vm86_vm0, %v23627_v46  ;;  %v24007_v46 = vld [vmem:[#allocation3 + $0x1fa] sm:$0xff] }
 0x576   :  { %18743 = vmatprep.mubr.msk.f32.mxu1 %vm86_vm0, %v23992_v14  ;;  %18795 = vmatprep.mubr.msk.f32.mxu0 %vm86_vm0, %v23652_v2  ;;  %v24014_v2 = vld [vmem:[#allocation3 + $0x202] sm:$0xff] }
 0x577   :  { %18891 = vmatprep.subr.mxu0 %v13043_v34  ;;  %18941 = vmatprep.subr.mxu1 %v23986_v56 }
 0x578   :  { %18892 = vmatpush3.msra.mxu0 %v13043_v34  ;;  %v24054_v34 = vld [vmem:[#allocation3 + $0x24a] sm:$0xff] }
 0x579   :  { %18744 = vmatmul.mubr.msk.f32.gmra.mxu1 %vm86_vm0, %v23999_v9  ;;  %18796 = vmatmul.mubr.msk.f32.gmra.mxu0 %vm86_vm0, %v23654_v52  ;;  %v24026_v52 = vld [vmem:[#allocation3 + $0x21a] sm:$0xff]  ;;  %26127 = vst [vmem:[#allocation56_spill] sm:$0xff] %v24054_v34 }
 0x57a   :  { %18746 = vmatprep.mubr.msk.f32.mxu1 %vm86_vm0, %v24007_v46  ;;  %18798 = vmatprep.mubr.msk.f32.mxu0 %vm86_vm0, %v23682_v51  ;;  %v24032_v51 = vld [vmem:[#allocation3 + $0x22a] sm:$0xff] }
 0x57b   :  { %18993 = vmatprep.subr.mxu0 %v24001_v13 }
 0x57d   :  { %18747 = vmatmul.mubr.msk.f32.gmra.mxu1 %vm86_vm0, %v24014_v2  ;;  %18799 = vmatmul.mubr.msk.f32.gmra.mxu0 %vm86_vm0, %v23684_v19  ;;  %v7466_v19 = vld [vmem:[%s25387_s7] sm:$0xf] }
 0x57e   :  { %18749 = vmatprep.mubr.msk.f32.mxu1 %vm86_vm0, %v24020_v25  ;;  %18801 = vmatprep.mubr.msk.f32.mxu0 %vm86_vm0, %v23713_v10 }
 0x581   :  { %18750 = vmatmul.mubr.msk.f32.gmra.mxu1 %vm86_vm0, %v24026_v52  ;;  %18802 = vmatmul.mubr.msk.f32.gmra.mxu0 %vm86_vm0, %v23715_v6  ;;  %v7470_v10 = vpop.permute.xlu1 %7469  ;;  %v24047_v6 = vld [vmem:[#allocation3 + $0x242] sm:$0xff] }
 0x582   :  { %18752 = vmatprep.mubr.msk.f32.mxu1 %vm86_vm0, %v24032_v51  ;;  %18804 = vmatprep.mubr.msk.f32.mxu0 %vm86_vm0, %v23743_v32  ;;  %v7472_v5 = vmul.f32 %v7470_v10, %v7466_v19  ;;  %v24066_v10 = vld [vmem:[#allocation3 + $0x262] sm:$0xff] }
 0x583   :  { %26129 = vst [vmem:[#allocation101_spill] sm:$0xff] %v24066_v10 }
 0x584   :  { %v7473_v32 = vsel %vm7459_vm3, %v7472_v5, 0.0  ;;  %v24072_v5 = vld [vmem:[#allocation3 + $0x272] sm:$0xff] }
 0x585   :  { %18753 = vmatmul.mubr.msk.f32.gmra.mxu1 %vm86_vm0, %v24041_v42  ;;  %18805 = vmatmul.mubr.msk.f32.gmra.mxu0 %vm86_vm0, %v23745_v54  ;;  %v7474_v57 = vrot.slane %v7473_v32, 4  ;;  %v24060_v54 = vld [vmem:[#allocation3 + $0x25a] sm:$0xff]  ;;  %26130 = vst [vmem:[#allocation21_spill] sm:$0xff] %v24072_v5 }
 0x586   :  { %18755 = vmatprep.mubr.msk.f32.mxu1 %vm86_vm0, %v24047_v6  ;;  %18807 = vmatprep.mubr.msk.f32.mxu0 %vm86_vm0, %v23772_v1  ;;  %26128 = vst [vmem:[#allocation96_spill] sm:$0xff] %v24060_v54 }
 0x587   :  { %v7475_v19 = vadd.f32 %v7474_v57, %v7473_v32  ;;  %v7480_v57 = vld [vmem:[%s25388_s8] sm:$0x1] }
 0x589   :  { %18756 = vmatmul.mubr.msk.f32.gmra.mxu1 %vm86_vm0, %v24054_v34  ;;  %18808 = vmatmul.mubr.msk.f32.gmra.mxu0 %vm86_vm0, %v23774_v20  ;;  %v7476_v1 = vrot.slane %v7475_v19, 2  ;;  %v7542_v34 = vld [vmem:[#allocation4 + $0x90] sm:$0xff] }
 0x58a   :  { %18758 = vmatprep.mubr.msk.f32.mxu1 %vm86_vm0, %v24060_v54  ;;  %18810 = vmatprep.mubr.msk.f32.mxu0 %vm86_vm0, %v23801_v55  ;;  %v24078_v55 = vld [vmem:[#allocation3 + $0x27a] sm:$0xff] }
 0x58b   :  { %v7477_v20 = vadd.f32 %v7476_v1, %v7475_v19  ;;  %26131 = vst [vmem:[#allocation59_spill] sm:$0xff] %v24078_v55  ;;  %v24093_v1 = vld [vmem:[#allocation3 + $0x292] sm:$0xff] }
 0x58c   :  { %26133 = vst [vmem:[#allocation17_spill] sm:$0xff] %v24093_v1 }
 0x58d   :  { %18759 = vmatmul.mubr.msk.f32.gmra.mxu1 %vm86_vm0, %v24066_v10  ;;  %18811 = vmatmul.mubr.msk.f32.gmra.mxu0 %vm86_vm0, %v23803_v60  ;;  %v7478_v32 = vrot.slane %v7477_v20, 1  ;;  %v24087_v60 = vld [vmem:[#allocation3 + $0x28a] sm:$0xff] }
 0x58e   :  { %18761 = vmatprep.mubr.msk.f32.mxu1 %vm86_vm0, %v24072_v5  ;;  %18813 = vmatprep.mubr.msk.f32.mxu0 %vm86_vm0, %v23829_v38  ;;  %26132 = vst [vmem:[#allocation115_spill] sm:$0xff] %v24087_v60  ;;  %v7541_v5 = vld [vmem:[#allocation4 + $0x88] sm:$0xff] }
 0x58f   :  { %v7479_v19 = vadd.f32 %v7478_v32, %v7477_v20  ;;  %v24111_v20 = vld [vmem:[#allocation3 + $0x2ba] sm:$0xff] }
 0x590   :  { %26136 = vst [vmem:[#allocation47_spill] sm:$0xff] %v24111_v20 }
 0x591   :  { %18762 = vmatmul.mubr.msk.f32.gmra.mxu1 %vm86_vm0, %v24078_v55  ;;  %18814 = vmatmul.mubr.msk.f32.gmra.mxu0 %vm86_vm0, %v23831_v8  ;;  %v7481_v38 = vadd.f32 %v7480_v57, %v7479_v19  ;;  %v24159_v57 = vld [vmem:[#allocation3 + $0x31a] sm:$0xff]  ;;  %v7488_v19 = vlaneseq }
 0x592   :  { %18764 = vmatprep.mubr.msk.f32.mxu1 %vm86_vm0, %v24087_v60  ;;  %18816 = vmatprep.mubr.msk.f32.mxu0 %vm86_vm0, %v23855_v26  ;;  %v24105_v26 = vld [vmem:[#allocation3 + $0x2aa] sm:$0xff]  ;;  %26144 = vst [vmem:[#allocation103_spill] sm:$0xff] %v24159_v57 }
 0x593   :  { %v15423_v8 = vmul.f32 -1.442695, %v7481_v38  ;;  %26135 = vst [vmem:[#allocation62_spill] sm:$0xff] %v24105_v26  ;;  %v24169_v38 = vld [vmem:[#allocation3 + $0x338] sm:$0xff] }
 0x594   :  { %26147 = vst [vmem:[#allocation65_spill] sm:$0xff] %v24169_v38 }
 0x595   :  { %18765 = vmatmul.mubr.msk.f32.gmra.mxu1 %vm86_vm0, %v24093_v1  ;;  %18817 = vmatmul.mubr.msk.f32.gmra.mxu0 %vm86_vm0, %v23857_v3  ;;  %19108 = vpow2.f32 %v15423_v8  ;;  %v24117_v3 = vld [vmem:[#allocation3 + $0x2c2] sm:$0xff]  ;;  %v24175_v8 = vshrl.u32 %v7488_v19, 7 }
 0x596   :  { %18767 = vmatprep.mubr.msk.f32.mxu1 %vm86_vm0, %v24099_v53  ;;  %18819 = vmatprep.mubr.msk.f32.mxu0 %vm86_vm0, %v23878_v17  ;;  %26137 = vst [vmem:[#allocation61_spill] sm:$0xff] %v24117_v3  ;;  %v24123_v17 = vld [vmem:[#allocation3 + $0x2d2] sm:$0xff]  ;;  %v13818_v19 = vld [vmem:[#allocation10 + $0x70] sm:$0xff] }
 0x597   :  { %26138 = vst [vmem:[#allocation114_spill] sm:$0xff] %v24123_v17  ;;  %26148 = vst [vmem:[#allocation23_spill] sm:$0xff] %v24175_v8  ;;  %v7536_v1 = vld [vmem:[#allocation4 + $0x60] sm:$0xff] }
 0x599   :  { %18768 = vmatmul.mubr.msk.f32.gmra.mxu1 %vm86_vm0, %v24105_v26  ;;  %18820 = vmatmul.mubr.msk.f32.gmra.mxu0 %vm86_vm0, %v23880_v4  ;;  %v24129_v4 = vld [vmem:[#allocation3 + $0x2da] sm:$0xff] }
 0x59a   :  { %18770 = vmatprep.mubr.msk.f32.mxu1 %vm86_vm0, %v24111_v20  ;;  %18822 = vmatprep.mubr.msk.f32.mxu0 %vm86_vm0, %v23899_v28  ;;  %26139 = vst [vmem:[#allocation19_spill] sm:$0xff] %v24129_v4  ;;  %v24135_v28 = vld [vmem:[#allocation3 + $0x2ea] sm:$0xff]  ;;  %v7535_v20 = vld [vmem:[#allocation4 + $0x58] sm:$0xff] }
 0x59b   :  { %26140 = vst [vmem:[#allocation60_spill] sm:$0xff] %v24135_v28 }
 0x59d   :  { %18771 = vmatmul.mubr.msk.f32.gmra.mxu1 %vm86_vm0, %v24117_v3  ;;  %18823 = vmatmul.mubr.msk.f32.gmra.mxu0 %vm86_vm0, %v23901_v7  ;;  %v24141_v7 = vld [vmem:[#allocation3 + $0x2f2] sm:$0xff] }
 0x59e   :  { %18773 = vmatprep.mubr.msk.f32.mxu1 %vm86_vm0, %v24123_v17  ;;  %18825 = vmatprep.mubr.msk.f32.mxu0 %vm86_vm0, %v23919_v39  ;;  %26141 = vst [vmem:[#allocation104_spill] sm:$0xff] %v24141_v7  ;;  %v24147_v39 = vld [vmem:[#allocation3 + $0x302] sm:$0xff] }
 0x59f   :  { %26142 = vst [vmem:[#allocation99_spill] sm:$0xff] %v24147_v39 }
 0x5a1   :  { %18774 = vmatmul.mubr.msk.f32.gmra.mxu1 %vm86_vm0, %v24129_v4  ;;  %18826 = vmatmul.mubr.msk.f32.gmra.mxu0 %vm86_vm0, %v23921_v11  ;;  %v7530_v4 = vld [vmem:[#allocation4 + $0x30] sm:$0xff] }
 0x5a2   :  { %18776 = vmatprep.mubr.msk.f32.mxu1 %vm86_vm0, %v24135_v28  ;;  %18828 = vmatprep.mubr.msk.f32.mxu0 %vm86_vm0, %v23938_v50  ;;  %v19109_v32 = vpop.eup %19108  ;;  %v24153_v50 = vld [vmem:[#allocation3 + $0x30a] sm:$0xff] }
 0x5a3   :  { %v7485_v11 = vadd.f32 1.0, %v19109_v32  ;;  %26143 = vst [vmem:[#allocation18_spill] sm:$0xff] %v24153_v50  ;;  %v12625_v32 = vld [vmem:[#allocation3 + $0x1d1] sm:$0xff] }
 0x5a5   :  { %18777 = vmatmul.mubr.msk.f32.gmra.mxu1 %vm86_vm0, %v24141_v7  ;;  %18829 = vmatmul.mubr.msk.f32.gmra.mxu0 %vm86_vm0, %v23940_v47  ;;  %19110 = vrcp.f32 %v7485_v11  ;;  %v24161_v47 = vld [vmem:[#allocation3 + $0x330] sm:$0xff] }
 0x5a6   :  { %18779 = vmatprep.mubr.msk.f32.mxu1 %vm86_vm0, %v24147_v39  ;;  %18831 = vmatprep.mubr.msk.f32.mxu0 %vm86_vm0, %v23955_v31  ;;  %26145 = vst [vmem:[#allocation92_spill] sm:$0xff] %v24161_v47  ;;  %v24167_v31 = vld [vmem:[#allocation3 + $0x322] sm:$0xff]  ;;  %v13431_v11 = vld [vmem:[#allocation10 + $0x60] sm:$0xff] }
 0x5a7   :  { %26146 = vst [vmem:[#allocation49_spill] sm:$0xff] %v24167_v31  ;;  %v7526_v39 = vld [vmem:[#allocation4 + $0x10] sm:$0xff] }
 0x5a9   :  { %18780 = vmatmul.mubr.msk.f32.gmra.mxu1 %vm86_vm0, %v24153_v50  ;;  %18832 = vmatmul.mubr.msk.f32.gmra.mxu0 %vm86_vm0, %v23957_v48  ;;  %v12624_v48 = vld [vmem:[#allocation3 + $0x1c9] sm:$0xff] }
 0x5aa   :  { %18782 = vmatprep.mubr.msk.f32.mxu1 %vm86_vm0, %v24159_v57  ;;  %18834 = vmatprep.mubr.msk.f32.mxu0 %vm86_vm0, %v24161_v47  ;;  %v24183_v47 = vld [vmem:[#allocation3 + $0x1e1] sm:$0xff]  ;;  %v26159_v57 = vld [vmem:[#allocation106_spill] sm:$0xff] }
 0x5ab   :  { %26149 = vst [vmem:[#allocation102_spill] sm:$0xff] %v24183_v47 }
 0x5ad   :  { %18783 = vmatmul.mubr.msk.f32.gmra.mxu1 %vm86_vm0, %v24167_v31  ;;  %18835 = vmatmul.mubr.msk.f32.gmra.mxu0 %vm86_vm0, %v24169_v38  ;;  %v25496_v31 = vsub.s32 0, %v24175_v8  ;;  %v26157_v8 = vld [vmem:[#allocation32_spill] sm:$0xff] }
 0x5ae   :  { %18841 = vmatprep.mubr.msk.f32.mxu1 %vm86_vm0, %v12624_v48  ;;  %18893 = vmatprep.mubr.msk.f32.mxu0 %vm86_vm0, %v23975_v40  ;;  %v24191_v40 = vld [vmem:[#allocation3 + $0x1e9] sm:$0xff] }
 0x5af   :  { %26150 = vst [vmem:[#allocation67_spill] sm:$0xff] %v24191_v40 }
 0x5b1   :  { %18842 = vmatmul.mubr.msk.f32.vlgmr.msra.gmra.mxu1 %vm86_vm0, %v12625_v32  ;;  %18894 = vmatmul.mubr.msk.f32.vlgmr.msra.gmra.mxu0 %vm86_vm0, %v23983_v44  ;;  %v24194_v44 = vld [vmem:[#allocation10 + $0x88] sm:$0xff] }
 0x5b2   :  { %18942 = vmatpush3.msra.mxu1 %v23986_v56  ;;  %18844 = vmatprep.mubr.msk.f32.mxu1 %vm86_vm0, %v24183_v47  ;;  %26151 = vst [vmem:[#allocation22_spill] sm:$0xff] %v24194_v44  ;;  %v19111_v48 = vpop.eup %19110  ;;  %v24200_v56 = vld [vmem:[#allocation3 + $0x1f9] sm:$0xff] }
 0x5b3   :  { %18896 = vmatprep.mubr.msk.f32.mxu0 %vm86_vm0, %v23992_v14  ;;  %18943 = vmatprep.subr.mxu1 %v13431_v11  ;;  %26152 = vst [vmem:[#allocation68_spill] sm:$0xff] %v24200_v56  ;;  %v7491_v14 = vrot.slane %v19111_v48, %v25496_v31  ;;  %v26156_v47 = vld [vmem:[#allocation63_spill] sm:$0xff] }
 0x5b4   :  { %18944 = vmatpush3.msra.mxu1 %v13431_v11  ;;  %18994 = vmatpush3.msra.mxu0 %v24001_v13  ;;  %v26153_v13 = vld [vmem:[#allocation30_spill] sm:$0xff]  ;;  %v26154_v11 = vld [vmem:[#allocation29_spill] sm:$0xff]  ;;  %v26158_v31 = vld [vmem:[#allocation31_spill] sm:$0xff] }
 0x5b5   :  { %18845 = vmatmul.mubr.msk.f32.gmra.mxu1 %vm86_vm0, %v24191_v40  ;;  %18897 = vmatmul.mubr.msk.f32.gmra.mxu0 %vm86_vm0, %v23999_v9  ;;  %v7492_v32 = vmul.f32 %v7491_v14, %v26153_v13  ;;  %v7493_v38 = vmul.f32 %v7491_v14, %v26154_v11  ;;  %v26155_v40 = vld [vmem:[#allocation66_spill] sm:$0xff]  ;;  %v7495_v18 = vmul.f32 %v7491_v14, %v26156_v47  ;;  %v26161_v13 = vld [vmem:[#allocation107_spill] sm:$0xff] }
 0x5b6   :  { %18847 = vmatprep.mubr.msk.f32.mxu1 %vm86_vm0, %v24200_v56  ;;  %18899 = vmatprep.mubr.msk.f32.mxu0 %vm86_vm0, %v24007_v46  ;;  %v7494_v9 = vmul.f32 %v7491_v14, %v26155_v40  ;;  %v24214_v48 = vmul.f32 %v7491_v14, %v26157_v8  ;;  %v24217_v56 = vmul.f32 %v7491_v14, %v26158_v31  ;;  %v26162_v47 = vld [vmem:[#allocation70_spill] sm:$0xff]  ;;  %v26163_v8 = vld [vmem:[#allocation69_spill] sm:$0xff] }
 0x5b7   :  { %18995 = vmatprep.subr.mxu0 %v13818_v19  ;;  %19045 = vmatprep.subr.mxu1 %v24194_v44  ;;  %v24220_v46 = vmul.f32 %v7491_v14, %v26159_v57  ;;  %v24223_v44 = vmul.f32 %v7491_v14, %v26160_v59  ;;  %v24228_v40 = vmul.f32 %v7491_v14, %v26161_v13  ;;  %v26164_v31 = vld [vmem:[#allocation34_spill] sm:$0xff]  ;;  %v7524_v57 = vld [vmem:[#allocation4] sm:$0xff] }
 0x5b8   :  { %18996 = vmatpush3.msra.mxu0 %v13818_v19  ;;  %v24231_v19 = vmul.f32 %v7491_v14, %v26162_v47  ;;  %v24234_v11 = vmul.f32 %v7491_v14, %v26163_v8  ;;  %v24237_v50 = vmul.f32 %v7491_v14, %v26164_v31  ;;  %v7525_v59 = vld [vmem:[#allocation4 + $0x8] sm:$0xff]  ;;  %v26166_v13 = vld [vmem:[#allocation108_spill] sm:$0xff]  ;;  %v26167_v47 = vld [vmem:[#allocation35_spill] sm:$0xff]  ;;  %v24256_v17 = vmul.f32 %v7491_v14, %v26169_v43 }
 0x5b9   :  { %18848 = vmatmul.mubr.msk.f32.gmra.mxu1 %vm86_vm0, %v23662_v22  ;;  %18900 = vmatmul.mubr.msk.f32.gmra.mxu0 %vm86_vm0, %v24014_v2  ;;  %v26165_v22 = vld [vmem:[#allocation71_spill] sm:$0xff]  ;;  %v24245_v7 = vmul.f32 %v7491_v14, %v26166_v13  ;;  %v24248_v23 = vmul.f32 %v7491_v14, %v26167_v47  ;;  %v26168_v8 = vld [vmem:[#allocation109_spill] sm:$0xff]  ;;  %v26171_v13 = vld [vmem:[#allocation78_spill] sm:$0xff]  ;;  %v24270_v26 = vmul.f32 %v7491_v14, %v26173_v30 }
 0x5ba   :  { %v24242_v45 = vmul.f32 %v7491_v14, %v26165_v22  ;;  %v24251_v28 = vmul.f32 %v7491_v14, %v26168_v8  ;;  %18850 = vmatprep.mubr.msk.f32.mxu1 %vm86_vm0, %v23680_v41  ;;  %v7529_v2 = vld [vmem:[#allocation4 + $0x28] sm:$0xff]  ;;  %v7528_v31 = vld [vmem:[#allocation4 + $0x20] sm:$0xff]  ;;  %v24262_v3 = vmul.f32 %v7491_v14, %v26171_v13  ;;  %v26172_v47 = vld [vmem:[#allocation75_spill] sm:$0xff]  ;;  %18902 = vmatprep.mubr.msk.f32.mxu0 %vm86_vm0, %v24020_v25 }
 0x5bb   :  { %v26170_v22 = vld [vmem:[#allocation73_spill] sm:$0xff]  ;;  %v24265_v0 = vmul.f32 %v7491_v14, %v26172_v47  ;;  %v7534_v47 = vld [vmem:[#allocation4 + $0x50] sm:$0xff]  ;;  %v24284_v60 = vmul.f32 %v7491_v14, %v26177_v36  ;;  %v24298_v10 = vmul.f32 %v7491_v14, %v26184_v33  ;;  %v7559_v33 = vadd.f32 %v7527_v27, %v7495_v18 }
 0x5bc   :  { %v24259_v24 = vmul.f32 %v7491_v14, %v26170_v22  ;;  %v7533_v41 = vld [vmem:[#allocation4 + $0x48] sm:$0xff]  ;;  %v7532_v8 = vld [vmem:[#allocation4 + $0x40] sm:$0xff]  ;;  %v26178_v30 = vld [vmem:[#allocation79_spill] sm:$0xff] }
 0x5bd   :  { %v26174_v43 = vld [vmem:[#allocation37_spill] sm:$0xff]  ;;  %v26175_v22 = vld [vmem:[#allocation76_spill] sm:$0xff]  ;;  %18851 = vmatmul.mubr.msk.f32.gmra.mxu1 %vm86_vm0, %v23692_v62  ;;  %v24287_v12 = vmul.f32 %v7491_v14, %v26178_v30  ;;  %18903 = vmatmul.mubr.msk.f32.gmra.mxu0 %vm86_vm0, %v24026_v52  ;;  %v7538_v62 = vld [vmem:[#allocation4 + $0x70] sm:$0xff]  ;;  %v7564_v18 = vadd.f32 %v7532_v8, %v24228_v40  ;;  %7591 = vst.msk [vmem:[#allocation12 + $0x18] sm:$0xff] %vm86_vm0, %v7559_v33 }
 0x5be   :  { %v24273_v58 = vmul.f32 %v7491_v14, %v26174_v43  ;;  %v24276_v53 = vmul.f32 %v7491_v14, %v26175_v22  ;;  %v26176_v13 = vld [vmem:[#allocation77_spill] sm:$0xff]  ;;  %v26182_v22 = vld [vmem:[#allocation39_spill] sm:$0xff]  ;;  %v26187_v30 = vld [vmem:[#allocation84_spill] sm:$0xff]  ;;  %18853 = vmatprep.mubr.msk.f32.mxu1 %vm86_vm0, %v23711_v61  ;;  %18905 = vmatprep.mubr.msk.f32.mxu0 %vm86_vm0, %v24032_v51  ;;  %v7563_v61 = vadd.f32 %v7531_v35, %v24223_v44 }
 0x5bf   :  { %v24279_v29 = vmul.f32 %v7491_v14, %v26176_v13  ;;  %v7537_v25 = vld [vmem:[#allocation4 + $0x68] sm:$0xff]  ;;  %26179 = vst [vmem:[#allocation80_spill] sm:$0xff] %v24287_v12  ;;  %v24293_v21 = vmul.f32 %v7491_v14, %v26182_v22  ;;  %v7539_v13 = vld [vmem:[#allocation4 + $0x78] sm:$0xff]  ;;  %v24304_v54 = vmul.f32 %v7491_v14, %v26187_v30  ;;  %v7540_v22 = vld [vmem:[#allocation4 + $0x80] sm:$0xff]  ;;  %v7558_v12 = vadd.f32 %v7526_v39, %v7494_v9 }
 0x5c0   :  { %v26180_v43 = vld [vmem:[#allocation81_spill] sm:$0xff]  ;;  %v26185_v36 = vld [vmem:[#allocation83_spill] sm:$0xff]  ;;  %v7565_v51 = vadd.f32 %v7533_v41, %v24231_v19  ;;  %v7567_v9 = vadd.f32 %v7535_v20, %v24237_v50  ;;  %v7568_v44 = vadd.f32 %v7536_v1, %v24242_v45  ;;  %v7570_v20 = vadd.f32 %v7538_v62, %v24248_v23  ;;  %7595 = vst.msk [vmem:[#allocation12 + $0x38] sm:$0xff] %vm86_vm0, %v7563_v61  ;;  %v26200_v40 = vld [vmem:[#allocation90_spill] sm:$0xff] }
 0x5c1   :  { %v24290_v55 = vmul.f32 %v7491_v14, %v26180_v43  ;;  %26183 = vst [vmem:[#allocation33_spill] sm:$0xff] %v24293_v21  ;;  %v24301_v63 = vmul.f32 %v7491_v14, %v26185_v36  ;;  %26188 = vst [vmem:[#allocation94_spill] sm:$0xff] %v24304_v54  ;;  %v26189_v43 = vld [vmem:[#allocation85_spill] sm:$0xff]  ;;  %v7543_v52 = vld [vmem:[#allocation4 + $0x98] sm:$0xff]  ;;  %v7556_v21 = vadd.f32 %v7524_v57, %v7492_v32  ;;  %18854 = vmatmul.mubr.msk.f32.gmra.mxu1 %vm86_vm0, %v23723_v16 }
 0x5c2   :  { %v24307_v15 = vmul.f32 %v7491_v14, %v26189_v43  ;;  %v7545_v36 = vld [vmem:[#allocation4 + $0xa8] sm:$0xff]  ;;  %v7547_v30 = vld [vmem:[#allocation4 + $0xb8] sm:$0xff]  ;;  %v7560_v54 = vadd.f32 %v7528_v31, %v24214_v48  ;;  %v7561_v14 = vadd.f32 %v7529_v2, %v24217_v56  ;;  %v7562_v43 = vadd.f32 %v7530_v4, %v24220_v46  ;;  %v7548_v27 = vld [vmem:[#allocation4 + $0xc0] sm:$0xff]  ;;  %7590 = vst.msk [vmem:[#allocation12 + $0x10] sm:$0xff] %vm86_vm0, %v7558_v12 }
 0x5c3   :  { %26181 = vst [vmem:[#allocation46_spill] sm:$0xff] %v24290_v55  ;;  %26186 = vst [vmem:[#allocation36_spill] sm:$0xff] %v24301_v63  ;;  %v7557_v55 = vadd.f32 %v7525_v59, %v7493_v38  ;;  %v7544_v63 = vld [vmem:[#allocation4 + $0xa0] sm:$0xff]  ;;  %v7546_v38 = vld [vmem:[#allocation4 + $0xb0] sm:$0xff]  ;;  %v7566_v32 = vadd.f32 %v7534_v47, %v24234_v11  ;;  %18906 = vmatmul.mubr.msk.f32.gmra.mxu0 %vm86_vm0, %v24041_v42  ;;  %v7569_v56 = vadd.f32 %v7537_v25, %v24245_v7 }
 0x5c4   :  { %v7549_v39 = vld [vmem:[#allocation4 + $0xc8] sm:$0xff]  ;;  %7588 = vst.msk [vmem:[#allocation12] sm:$0xff] %vm86_vm0, %v7556_v21  ;;  %v7551_v16 = vld [vmem:[#allocation4 + $0xd8] sm:$0xff]  ;;  %v7550_v35 = vld [vmem:[#allocation4 + $0xd0] sm:$0xff]  ;;  %v7571_v21 = vadd.f32 %v7539_v13, %v24251_v28  ;;  %18856 = vmatprep.mubr.msk.f32.mxu1 %vm86_vm0, %v23741_v37  ;;  %v7573_v23 = vadd.f32 %v7541_v5, %v24259_v24  ;;  %v7574_v1 = vadd.f32 %v7542_v34, %v24262_v3 }
 0x5c5   :  { %7589 = vst.msk [vmem:[#allocation12 + $0x8] sm:$0xff] %vm86_vm0, %v7557_v55  ;;  %v7553_v4 = vld [vmem:[#allocation4 + $0xe8] sm:$0xff]  ;;  %7592 = vst.msk [vmem:[#allocation12 + $0x20] sm:$0xff] %vm86_vm0, %v7560_v54  ;;  %v7552_v12 = vld [vmem:[#allocation4 + $0xe0] sm:$0xff]  ;;  %v7572_v55 = vadd.f32 %v7540_v22, %v24256_v17  ;;  %v7575_v54 = vadd.f32 %v7543_v52, %v24265_v0  ;;  %18908 = vmatprep.mubr.msk.f32.mxu0 %vm86_vm0, %v24047_v6  ;;  %v7576_v37 = vadd.f32 %v7544_v63, %v24270_v26 }
 0x5c6   :  { %7593 = vst.msk [vmem:[#allocation12 + $0x28] sm:$0xff] %vm86_vm0, %v7561_v14  ;;  %7594 = vst.msk [vmem:[#allocation12 + $0x30] sm:$0xff] %vm86_vm0, %v7562_v43  ;;  %v7555_v42 = vld [vmem:[#allocation4 + $0xf8] sm:$0xff]  ;;  %v7554_v45 = vld [vmem:[#allocation4 + $0xf0] sm:$0xff]  ;;  %v7577_v17 = vadd.f32 %v7545_v36, %v24273_v58  ;;  %v7578_v24 = vadd.f32 %v7546_v38, %v24276_v53  ;;  %v7579_v34 = vadd.f32 %v7547_v30, %v24279_v29  ;;  %18857 = vmatmul.mubr.msk.f32.gmra.mxu1 %vm86_vm0, %v23753_v49 }
 0x5c7   :  { %7596 = vst.msk [vmem:[#allocation12 + $0x40] sm:$0xff] %vm86_vm0, %v7564_v18  ;;  %7597 = vst.msk [vmem:[#allocation12 + $0x48] sm:$0xff] %vm86_vm0, %v7565_v51  ;;  %v7580_v0 = vadd.f32 %v7548_v27, %v24284_v60  ;;  %v26190_v63 = vld [vmem:[#allocation80_spill] sm:$0xff]  ;;  %v7584_v49 = vadd.f32 %v7552_v12, %v24298_v10  ;;  %v7587_v50 = vadd.f32 %v7555_v42, %v24307_v15  ;;  %v26196_v48 = vld [vmem:[#allocation111_spill] sm:$0xff] }
 0x5c8   :  { %7598 = vst.msk [vmem:[#allocation12 + $0x50] sm:$0xff] %vm86_vm0, %v7566_v32  ;;  %7599 = vst.msk [vmem:[#allocation12 + $0x58] sm:$0xff] %vm86_vm0, %v7567_v9  ;;  %v7581_v6 = vadd.f32 %v7549_v39, %v26190_v63  ;;  %v26192_v53 = vld [vmem:[#allocation33_spill] sm:$0xff]  ;;  %v26193_v29 = vld [vmem:[#allocation56_spill] sm:$0xff]  ;;  %18859 = vmatprep.mubr.msk.f32.mxu1 %vm86_vm0, %v26196_v48 }
 0x5c9   :  { %7600 = vst.msk [vmem:[#allocation12 + $0x60] sm:$0xff] %vm86_vm0, %v7568_v44  ;;  %7601 = vst.msk [vmem:[#allocation12 + $0x68] sm:$0xff] %vm86_vm0, %v7569_v56  ;;  %v7583_v26 = vadd.f32 %v7551_v16, %v26192_v53  ;;  %18909 = vmatmul.mubr.msk.f32.gmra.mxu0 %vm86_vm0, %v26193_v29  ;;  %v26195_v28 = vld [vmem:[#allocation94_spill] sm:$0xff]  ;;  %v26197_v15 = vld [vmem:[#allocation96_spill] sm:$0xff] }
 0x5ca   :  { %7602 = vst.msk [vmem:[#allocation12 + $0x70] sm:$0xff] %vm86_vm0, %v7570_v20  ;;  %7603 = vst.msk [vmem:[#allocation12 + $0x78] sm:$0xff] %vm86_vm0, %v7571_v21  ;;  %v26191_v58 = vld [vmem:[#allocation46_spill] sm:$0xff]  ;;  %v26194_v60 = vld [vmem:[#allocation36_spill] sm:$0xff]  ;;  %v7586_v7 = vadd.f32 %v7554_v45, %v26195_v28  ;;  %18911 = vmatprep.mubr.msk.f32.mxu0 %vm86_vm0, %v26197_v15 }
 0x5cb   :  { %v7582_v5 = vadd.f32 %v7550_v35, %v26191_v58  ;;  %7604 = vst.msk [vmem:[#allocation12 + $0x80] sm:$0xff] %vm86_vm0, %v7572_v55  ;;  %7605 = vst.msk [vmem:[#allocation12 + $0x88] sm:$0xff] %vm86_vm0, %v7573_v23  ;;  %v7585_v3 = vadd.f32 %v7553_v4, %v26194_v60  ;;  %v26198_v10 = vld [vmem:[#allocation112_spill] sm:$0xff]  ;;  %v26199_v46 = vld [vmem:[#allocation101_spill] sm:$0xff] }
 0x5cc   :  { %7606 = vst.msk [vmem:[#allocation12 + $0x90] sm:$0xff] %vm86_vm0, %v7574_v1  ;;  %7607 = vst.msk [vmem:[#allocation12 + $0x98] sm:$0xff] %vm86_vm0, %v7575_v54  ;;  %18860 = vmatmul.mubr.msk.f32.gmra.mxu1 %vm86_vm0, %v26198_v10  ;;  %v26201_v19 = vld [vmem:[#allocation21_spill] sm:$0xff]  ;;  %v26202_v11 = vld [vmem:[#allocation40_spill] sm:$0xff] }
 0x5cd   :  { %7608 = vst.msk [vmem:[#allocation12 + $0xa0] sm:$0xff] %vm86_vm0, %v7576_v37  ;;  %7609 = vst.msk [vmem:[#allocation12 + $0xa8] sm:$0xff] %vm86_vm0, %v7577_v17  ;;  %18912 = vmatmul.mubr.msk.f32.gmra.mxu0 %vm86_vm0, %v26199_v46  ;;  %18862 = vmatprep.mubr.msk.f32.mxu1 %vm86_vm0, %v26200_v40  ;;  %v26203_v59 = vld [vmem:[#allocation59_spill] sm:$0xff]  ;;  %v26204_v57 = vld [vmem:[#allocation58_spill] sm:$0xff]  ;;  %v24480_v17 = vpop.f32.mrf.mxu1 }
 0x5ce   :  { %7610 = vst.msk [vmem:[#allocation12 + $0xb0] sm:$0xff] %vm86_vm0, %v7578_v24  ;;  %7611 = vst.msk [vmem:[#allocation12 + $0xb8] sm:$0xff] %vm86_vm0, %v7579_v34  ;;  %18914 = vmatprep.mubr.msk.f32.mxu0 %vm86_vm0, %v26201_v19  ;;  %v26205_v2 = vld [vmem:[#allocation115_spill] sm:$0xff]  ;;  %v26206_v31 = vld [vmem:[#allocation98_spill] sm:$0xff]  ;;  %v24482_v24 = vpop.f32.mrf.mxu0 }
 0x5cf   :  { %7612 = vst.msk [vmem:[#allocation12 + $0xc0] sm:$0xff] %vm86_vm0, %v7580_v0  ;;  %7613 = vst.msk [vmem:[#allocation12 + $0xc8] sm:$0xff] %vm86_vm0, %v7581_v6  ;;  %v26207_v41 = vld [vmem:[#allocation17_spill] sm:$0xff]  ;;  %v26208_v8 = vld [vmem:[#allocation20_spill] sm:$0xff] }
 0x5d0   :  { %7614 = vst.msk [vmem:[#allocation12 + $0xd0] sm:$0xff] %vm86_vm0, %v7582_v5  ;;  %7615 = vst.msk [vmem:[#allocation12 + $0xd8] sm:$0xff] %vm86_vm0, %v7583_v26  ;;  %18863 = vmatmul.mubr.msk.f32.gmra.mxu1 %vm86_vm0, %v26202_v11  ;;  %v26209_v47 = vld [vmem:[#allocation50_spill] sm:$0xff]  ;;  %v26210_v25 = vld [vmem:[#allocation87_spill] sm:$0xff] }
 0x5d1   :  { %7616 = vst.msk [vmem:[#allocation12 + $0xe0] sm:$0xff] %vm86_vm0, %v7584_v49  ;;  %7617 = vst.msk [vmem:[#allocation12 + $0xe8] sm:$0xff] %vm86_vm0, %v7585_v3  ;;  %18915 = vmatmul.mubr.msk.f32.gmra.mxu0 %vm86_vm0, %v26203_v59  ;;  %18865 = vmatprep.mubr.msk.f32.mxu1 %vm86_vm0, %v26204_v57  ;;  %v26211_v13 = vld [vmem:[#allocation62_spill] sm:$0xff]  ;;  %v26213_v22 = vld [vmem:[#allocation47_spill] sm:$0xff] }
 0x5d2   :  { %7618 = vst.msk [vmem:[#allocation12 + $0xf0] sm:$0xff] %vm86_vm0, %v7586_v7  ;;  %7619 = vst.msk [vmem:[#allocation12 + $0xf8] sm:$0xff] %vm86_vm0, %v7587_v50  ;;  %18917 = vmatprep.mubr.msk.f32.mxu0 %vm86_vm0, %v26205_v2  ;;  %v26212_v62 = vld [vmem:[#allocation42_spill] sm:$0xff]  ;;  %v26215_v33 = vld [vmem:[#allocation61_spill] sm:$0xff] }
 0x5d3   :  { %v26214_v52 = vld [vmem:[#allocation110_spill] sm:$0xff]  ;;  %v26216_v36 = vld [vmem:[#allocation45_spill] sm:$0xff]  ;;  %v26219_v43 = vld [vmem:[#allocation19_spill] sm:$0xff] }
 0x5d4   :  { %18866 = vmatmul.mubr.msk.f32.gmra.mxu1 %vm86_vm0, %v26206_v31  ;;  %v26217_v30 = vld [vmem:[#allocation114_spill] sm:$0xff]  ;;  %v26218_v14 = vld [vmem:[#allocation57_spill] sm:$0xff]  ;;  %v26221_v38 = vld [vmem:[#allocation60_spill] sm:$0xff] }
 0x5d5   :  { %18918 = vmatmul.mubr.msk.f32.gmra.mxu0 %vm86_vm0, %v26207_v41  ;;  %18868 = vmatprep.mubr.msk.f32.mxu1 %vm86_vm0, %v26208_v8  ;;  %v26220_v61 = vld [vmem:[#allocation113_spill] sm:$0xff]  ;;  %v26223_v27 = vld [vmem:[#allocation104_spill] sm:$0xff]  ;;  %v26225_v51 = vld [vmem:[#allocation99_spill] sm:$0xff] }
 0x5d6   :  { %18920 = vmatprep.mubr.msk.f32.mxu0 %vm86_vm0, %v26209_v47  ;;  %v26222_v39 = vld [vmem:[#allocation93_spill] sm:$0xff]  ;;  %v26224_v18 = vld [vmem:[#allocation28_spill] sm:$0xff]  ;;  %v26227_v9 = vld [vmem:[#allocation18_spill] sm:$0xff] }
 0x5d7   :  { %v26226_v32 = vld [vmem:[#allocation100_spill] sm:$0xff]  ;;  %v26228_v16 = vld [vmem:[#allocation91_spill] sm:$0xff]  ;;  %v26231_v56 = vld [vmem:[#allocation49_spill] sm:$0xff] }
 0x5d8   :  { %18869 = vmatmul.mubr.msk.f32.gmra.mxu1 %vm86_vm0, %v26210_v25  ;;  %v26229_v35 = vld [vmem:[#allocation103_spill] sm:$0xff]  ;;  %v26230_v4 = vld [vmem:[#allocation88_spill] sm:$0xff]  ;;  %v26232_v45 = vld [vmem:[#allocation102_spill] sm:$0xff] }
 0x5d9   :  { %18921 = vmatmul.mubr.msk.f32.gmra.mxu0 %vm86_vm0, %v26211_v13  ;;  %18871 = vmatprep.mubr.msk.f32.mxu1 %vm86_vm0, %v26212_v62  ;;  %v24455_v44 = vld [vmem:[#allocation3 + $0x331] sm:$0xff]  ;;  %v24465_v21 = vld [vmem:[#allocation3 + $0x339] sm:$0xff]  ;;  %v13400_v55 = vld [vmem:[#allocation3 + $0x1e8] sm:$0xff] }
 0x5da   :  { %18923 = vmatprep.mubr.msk.f32.mxu0 %vm86_vm0, %v26213_v22  ;;  %v24461_v20 = vld [vmem:[#allocation3 + $0x332] sm:$0xff]  ;;  %v24469_v12 = vld [vmem:[#allocation3 + $0x33a] sm:$0xff]  ;;  %v26234_v54 = vld [vmem:[#allocation22_spill] sm:$0xff] }
 0x5db   :  { %v13399_v42 = vld [vmem:[#allocation3 + $0x1e0] sm:$0xff]  ;;  %v14205_v23 = vld [vmem:[#allocation10 + $0x80] sm:$0xff]  ;;  %v13405_v48 = vld [vmem:[#allocation3 + $0x228] sm:$0xff] }
 0x5dc   :  { %18872 = vmatmul.mubr.msk.f32.gmra.mxu1 %vm86_vm0, %v26214_v52  ;;  %v26233_v1 = vld [vmem:[#allocation67_spill] sm:$0xff]  ;;  %v26235_v34 = vld [vmem:[#allocation68_spill] sm:$0xff]  ;;  %v13792_v10 = vld [vmem:[#allocation3 + $0x229] sm:$0xff] }
 0x5dd   :  { %18924 = vmatmul.mubr.msk.f32.gmra.mxu0 %vm86_vm0, %v26215_v33  ;;  %18874 = vmatprep.mubr.msk.f32.mxu1 %vm86_vm0, %v26216_v36  ;;  %v13401_v37 = vld [vmem:[#allocation3 + $0x1f8] sm:$0xff]  ;;  %v13402_v0 = vld [vmem:[#allocation3 + $0x200] sm:$0xff]  ;;  %v13403_v5 = vld [vmem:[#allocation3 + $0x210] sm:$0xff] }
 0x5de   :  { %18926 = vmatprep.mubr.msk.f32.mxu0 %vm86_vm0, %v26217_v30  ;;  %v13789_v58 = vld [vmem:[#allocation3 + $0x201] sm:$0xff]  ;;  %v13790_v26 = vld [vmem:[#allocation3 + $0x211] sm:$0xff]  ;;  %v13791_v50 = vld [vmem:[#allocation3 + $0x219] sm:$0xff] }
 0x5df   :  { %v13404_v3 = vld [vmem:[#allocation3 + $0x218] sm:$0xff]  ;;  %v13406_v11 = vld [vmem:[#allocation3 + $0x230] sm:$0xff]  ;;  %v13407_v31 = vld [vmem:[#allocation3 + $0x240] sm:$0xff] }
 0x5e0   :  { %18875 = vmatmul.mubr.msk.f32.gmra.mxu1 %vm86_vm0, %v26218_v14  ;;  %v13793_v2 = vld [vmem:[#allocation3 + $0x231] sm:$0xff]  ;;  %v13794_v8 = vld [vmem:[#allocation3 + $0x241] sm:$0xff]  ;;  %v13795_v33 = vld [vmem:[#allocation3 + $0x249] sm:$0xff] }
 0x5e1   :  { %18927 = vmatmul.mubr.msk.f32.gmra.mxu0 %vm86_vm0, %v26219_v43  ;;  %18877 = vmatprep.mubr.msk.f32.mxu1 %vm86_vm0, %v26220_v61  ;;  %v13408_v62 = vld [vmem:[#allocation3 + $0x248] sm:$0xff]  ;;  %v13409_v36 = vld [vmem:[#allocation3 + $0x258] sm:$0xff] }
 0x5e2   :  { %18929 = vmatprep.mubr.msk.f32.mxu0 %vm86_vm0, %v26221_v38  ;;  %v13796_v14 = vld [vmem:[#allocation3 + $0x259] sm:$0xff] }
 0x5e4   :  { %18878 = vmatmul.mubr.msk.f32.gmra.mxu1 %vm86_vm0, %v26222_v39  ;;  %v13410_v39 = vld [vmem:[#allocation3 + $0x260] sm:$0xff] }
 0x5e5   :  { %18930 = vmatmul.mubr.msk.f32.gmra.mxu0 %vm86_vm0, %v26223_v27  ;;  %18880 = vmatprep.mubr.msk.f32.mxu1 %vm86_vm0, %v26224_v18 }
 0x5e6   :  { %18932 = vmatprep.mubr.msk.f32.mxu0 %vm86_vm0, %v26225_v51  ;;  %v13797_v51 = vld [vmem:[#allocation3 + $0x261] sm:$0xff] }
 0x5e8   :  { %18881 = vmatmul.mubr.msk.f32.gmra.mxu1 %vm86_vm0, %v26226_v32  ;;  %v13411_v32 = vld [vmem:[#allocation3 + $0x270] sm:$0xff] }
 0x5e9   :  { %18933 = vmatmul.mubr.msk.f32.gmra.mxu0 %vm86_vm0, %v26227_v9  ;;  %18883 = vmatprep.mubr.msk.f32.mxu1 %vm86_vm0, %v26228_v16  ;;  %v13798_v16 = vld [vmem:[#allocation3 + $0x271] sm:$0xff] }
 0x5ea   :  { %18935 = vmatprep.mubr.msk.f32.mxu0 %vm86_vm0, %v26229_v35 }
 0x5ec   :  { %18884 = vmatmul.mubr.msk.f32.gmra.mxu1 %vm86_vm0, %v26230_v4 }
 0x5ed   :  { %18936 = vmatmul.mubr.msk.f32.gmra.mxu0 %vm86_vm0, %v26231_v56  ;;  %18886 = vmatprep.mubr.msk.f32.mxu1 %vm86_vm0, %v24455_v44 }
 0x5ee   :  { %18938 = vmatprep.mubr.msk.f32.mxu0 %vm86_vm0, %v24461_v20 }
 0x5f0   :  { %18887 = vmatmul.mubr.msk.f32.gmra.mxu1 %vm86_vm0, %v24465_v21 }
 0x5f1   :  { %18939 = vmatmul.mubr.msk.f32.gmra.mxu0 %vm86_vm0, %v24469_v12  ;;  %18945 = vmatprep.mubr.msk.f32.mxu1 %vm86_vm0, %v13399_v42  ;;  %v13412_v42 = vld [vmem:[#allocation3 + $0x278] sm:$0xff] }
 0x5f2   :  { %18997 = vmatprep.mubr.msk.f32.mxu0 %vm86_vm0, %v26232_v45 }
 0x5f3   :  { %v18638_v63 = vpop.f32.mrf.mxu1 }
 0x5f4   :  { %18946 = vmatmul.mubr.msk.f32.vlgmr.msra.gmra.mxu1 %vm86_vm0, %v13400_v55  ;;  %v18690_v6 = vpop.f32.mrf.mxu0 }
 0x5f5   :  { %18998 = vmatmul.mubr.msk.f32.vlgmr.msra.gmra.mxu0 %vm86_vm0, %v26233_v1  ;;  %19046 = vmatpush3.msra.mxu1 %v26234_v54  ;;  %v24488_v53 = vadd.f32 %v18690_v6, %v18638_v63  ;;  %v11380_v29 = vpop.f32.mrf.mxu1  ;;  %v13413_v1 = vld [vmem:[#allocation3 + $0x288] sm:$0xff]  ;;  %v13414_v6 = vld [vmem:[#allocation3 + $0x290] sm:$0xff] }
 0x5f6   :  { %18948 = vmatprep.mubr.msk.f32.mxu1 %vm86_vm0, %v13401_v37  ;;  %19000 = vmatprep.mubr.msk.f32.mxu0 %vm86_vm0, %v26235_v34  ;;  %v11701_v49 = vpop.f32.mrf.mxu0  ;;  %v13800_v37 = vld [vmem:[#allocation3 + $0x289] sm:$0xff] }
 0x5f7   :  { %19047 = vmatprep.subr.mxu1 %v14205_v23  ;;  %v24493_v60 = vadd.f32 %v11701_v49, %v11380_v29  ;;  %v18641_v28 = vpop.f32.mrf.mxu1  ;;  %v13415_v29 = vld [vmem:[#allocation3 + $0x2a0] sm:$0xff] }
 0x5f8   :  { %18949 = vmatmul.mubr.msk.f32.gmra.mxu1 %vm86_vm0, %v13402_v0  ;;  %v18693_v7 = vpop.f32.mrf.mxu0 }
 0x5f9   :  { %19001 = vmatmul.mubr.msk.f32.gmra.mxu0 %vm86_vm0, %v13789_v58  ;;  %18951 = vmatprep.mubr.msk.f32.mxu1 %vm86_vm0, %v13403_v5  ;;  %v24496_v15 = vadd.f32 %v18693_v7, %v18641_v28  ;;  %v11390_v46 = vpop.f32.mrf.mxu1 }
 0x5fa   :  { %19003 = vmatprep.mubr.msk.f32.mxu0 %vm86_vm0, %v13790_v26  ;;  %19048 = vmatpush3.msra.mxu1 %v14205_v23  ;;  %v11711_v40 = vpop.f32.mrf.mxu0  ;;  %v13799_v23 = vld [vmem:[#allocation3 + $0x279] sm:$0xff]  ;;  %v13801_v26 = vld [vmem:[#allocation3 + $0x291] sm:$0xff] }
 0x5fb   :  { %v24501_v19 = vadd.f32 %v11711_v40, %v11390_v46  ;;  %v18644_v59 = vpop.f32.mrf.mxu1  ;;  %v13803_v40 = vld [vmem:[#allocation3 + $0x2a9] sm:$0xff] }
 0x5fc   :  { %18952 = vmatmul.mubr.msk.f32.gmra.mxu1 %vm86_vm0, %v13404_v3  ;;  %v18696_v57 = vpop.f32.mrf.mxu0  ;;  %v13802_v3 = vld [vmem:[#allocation3 + $0x2a1] sm:$0xff] }
 0x5fd   :  { %19004 = vmatmul.mubr.msk.f32.gmra.mxu0 %vm86_vm0, %v13791_v50  ;;  %18954 = vmatprep.mubr.msk.f32.mxu1 %vm86_vm0, %v13405_v48  ;;  %v24504_v41 = vadd.f32 %v18696_v57, %v18644_v59  ;;  %v11400_v47 = vpop.f32.mrf.mxu1  ;;  %v13416_v48 = vld [vmem:[#allocation3 + $0x2a8] sm:$0xff]  ;;  %v13804_v57 = vld [vmem:[#allocation3 + $0x2b9] sm:$0xff] }
 0x5fe   :  { %19006 = vmatprep.mubr.msk.f32.mxu0 %vm86_vm0, %v13792_v10  ;;  %v11721_v25 = vpop.f32.mrf.mxu0 }
 0x5ff   :  { %v24509_v13 = vadd.f32 %v11721_v25, %v11400_v47  ;;  %v18647_v22 = vpop.f32.mrf.mxu1  ;;  %v13418_v47 = vld [vmem:[#allocation3 + $0x2c0] sm:$0xff] }
 0x600   :  { %18955 = vmatmul.mubr.msk.f32.gmra.mxu1 %vm86_vm0, %v13406_v11  ;;  %v18699_v52 = vpop.f32.mrf.mxu0  ;;  %v13417_v11 = vld [vmem:[#allocation3 + $0x2b8] sm:$0xff] }
 0x601   :  { %19007 = vmatmul.mubr.msk.f32.gmra.mxu0 %vm86_vm0, %v13793_v2  ;;  %18957 = vmatprep.mubr.msk.f32.mxu1 %vm86_vm0, %v13407_v31  ;;  %v24512_v30 = vadd.f32 %v18699_v52, %v18647_v22  ;;  %v11410_v43 = vpop.f32.mrf.mxu1  ;;  %v13805_v22 = vld [vmem:[#allocation3 + $0x2c1] sm:$0xff]  ;;  %v13419_v52 = vld [vmem:[#allocation3 + $0x2d0] sm:$0xff] }
 0x602   :  { %19009 = vmatprep.mubr.msk.f32.mxu0 %vm86_vm0, %v13794_v8  ;;  %v11731_v61 = vpop.f32.mrf.mxu0 }
 0x603   :  { %v24517_v38 = vadd.f32 %v11731_v61, %v11410_v43  ;;  %v18650_v27 = vpop.f32.mrf.mxu1 }
 0x604   :  { %18958 = vmatmul.mubr.msk.f32.gmra.mxu1 %vm86_vm0, %v13408_v62  ;;  %v18702_v18 = vpop.f32.mrf.mxu0 }
 0x605   :  { %19010 = vmatmul.mubr.msk.f32.gmra.mxu0 %vm86_vm0, %v13795_v33  ;;  %18960 = vmatprep.mubr.msk.f32.mxu1 %vm86_vm0, %v13409_v36  ;;  %v24520_v9 = vadd.f32 %v18702_v18, %v18650_v27  ;;  %v11420_v35 = vpop.f32.mrf.mxu1  ;;  %v13806_v36 = vld [vmem:[#allocation3 + $0x2d1] sm:$0xff] }
 0x606   :  { %19012 = vmatprep.mubr.msk.f32.mxu0 %vm86_vm0, %v13796_v14  ;;  %v11741_v4 = vpop.f32.mrf.mxu0 }
 0x607   :  { %v24525_v56 = vadd.f32 %v11741_v4, %v11420_v35  ;;  %v13808_v35 = vld [vmem:[#allocation3 + $0x2e9] sm:$0xff] }
 0x608   :  { %18961 = vmatmul.mubr.msk.f32.gmra.mxu1 %vm86_vm0, %v13410_v39  ;;  %v18705_v55 = vpop.f32.mrf.mxu0  ;;  %v13420_v39 = vld [vmem:[#allocation3 + $0x2d8] sm:$0xff] }
 0x609   :  { %19013 = vmatmul.mubr.msk.f32.gmra.mxu0 %vm86_vm0, %v13797_v51  ;;  %18963 = vmatprep.mubr.msk.f32.mxu1 %vm86_vm0, %v13411_v32  ;;  %v18653_v45 = vpop.f32.mrf.mxu1  ;;  %v13807_v51 = vld [vmem:[#allocation3 + $0x2d9] sm:$0xff]  ;;  %v13421_v32 = vld [vmem:[#allocation3 + $0x2e8] sm:$0xff] }
 0x60a   :  { %19015 = vmatprep.mubr.msk.f32.mxu0 %vm86_vm0, %v13798_v16  ;;  %v24528_v54 = vadd.f32 %v18705_v55, %v18653_v45  ;;  %v11751_v0 = vpop.f32.mrf.mxu0  ;;  %v13422_v55 = vld [vmem:[#allocation3 + $0x2f0] sm:$0xff] }
 0x60b   :  { %v11430_v34 = vpop.f32.mrf.mxu1 }
 0x60c   :  { %18964 = vmatmul.mubr.msk.f32.gmra.mxu1 %vm86_vm0, %v13412_v42  ;;  %v24533_v63 = vadd.f32 %v11751_v0, %v11430_v34  ;;  %v18708_v5 = vpop.f32.mrf.mxu0  ;;  %v13423_v34 = vld [vmem:[#allocation3 + $0x300] sm:$0xff] }
 0x60d   :  { %19016 = vmatmul.mubr.msk.f32.gmra.mxu0 %vm86_vm0, %v13799_v23  ;;  %18966 = vmatprep.mubr.msk.f32.mxu1 %vm86_vm0, %v13413_v1  ;;  %v18656_v58 = vpop.f32.mrf.mxu1 }
 0x60e   :  { %19018 = vmatprep.mubr.msk.f32.mxu0 %vm86_vm0, %v13800_v37  ;;  %v24536_v49 = vadd.f32 %v18708_v5, %v18656_v58  ;;  %v11761_v7 = vpop.f32.mrf.mxu0  ;;  %v13809_v37 = vld [vmem:[#allocation3 + $0x2f1] sm:$0xff] }
 0x60f   :  { %v11440_v28 = vpop.f32.mrf.mxu1 }
 0x610   :  { %18967 = vmatmul.mubr.msk.f32.gmra.mxu1 %vm86_vm0, %v13414_v6  ;;  %v24541_v50 = vadd.f32 %v11761_v7, %v11440_v28  ;;  %v18711_v46 = vpop.f32.mrf.mxu0  ;;  %v13810_v6 = vld [vmem:[#allocation3 + $0x301] sm:$0xff]  ;;  %v13811_v7 = vld [vmem:[#allocation3 + $0x309] sm:$0xff] }
 0x611   :  { %19019 = vmatmul.mubr.msk.f32.gmra.mxu0 %vm86_vm0, %v13801_v26  ;;  %18969 = vmatprep.mubr.msk.f32.mxu1 %vm86_vm0, %v13415_v29  ;;  %v18659_v10 = vpop.f32.mrf.mxu1  ;;  %v13424_v29 = vld [vmem:[#allocation3 + $0x308] sm:$0xff] }
 0x612   :  { %19021 = vmatprep.mubr.msk.f32.mxu0 %vm86_vm0, %v13802_v3  ;;  %v24544_v59 = vadd.f32 %v18711_v46, %v18659_v10  ;;  %v11771_v31 = vpop.f32.mrf.mxu0  ;;  %v13812_v46 = vld [vmem:[#allocation3 + $0x319] sm:$0xff] }
 0x613   :  { %v11450_v2 = vpop.f32.mrf.mxu1 }
 0x614   :  { %18970 = vmatmul.mubr.msk.f32.gmra.mxu1 %vm86_vm0, %v13416_v48  ;;  %v24549_v8 = vadd.f32 %v11771_v31, %v11450_v2  ;;  %v13425_v48 = vld [vmem:[#allocation3 + $0x318] sm:$0xff]  ;;  %v13426_v2 = vld [vmem:[#allocation3 + $0x320] sm:$0xff] }
 0x615   :  { %19022 = vmatmul.mubr.msk.f32.gmra.mxu0 %vm86_vm0, %v13803_v40  ;;  %18972 = vmatprep.mubr.msk.f32.mxu1 %vm86_vm0, %v13417_v11  ;;  %v18662_v25 = vpop.f32.mrf.mxu1  ;;  %v18714_v62 = vpop.f32.mrf.mxu0 }
 0x616   :  { %19024 = vmatprep.mubr.msk.f32.mxu0 %vm86_vm0, %v13804_v57  ;;  %v24552_v33 = vadd.f32 %v18714_v62, %v18662_v25  ;;  %v13813_v25 = vld [vmem:[#allocation3 + $0x321] sm:$0xff] }
 0x617   :  { %v11460_v14 = vpop.f32.mrf.mxu1  ;;  %v11781_v43 = vpop.f32.mrf.mxu0 }
 0x618   :  { %18973 = vmatmul.mubr.msk.f32.gmra.mxu1 %vm86_vm0, %v13418_v47  ;;  %v24557_v61 = vadd.f32 %v11781_v43, %v11460_v14  ;;  %v13429_v14 = vld [vmem:[#allocation3 + $0x348] sm:$0xff] }
 0x619   :  { %19025 = vmatmul.mubr.msk.f32.gmra.mxu0 %vm86_vm0, %v13805_v22  ;;  %18975 = vmatprep.mubr.msk.f32.mxu1 %vm86_vm0, %v13419_v52  ;;  %v18665_v27 = vpop.f32.mrf.mxu1  ;;  %v18717_v18 = vpop.f32.mrf.mxu0  ;;  %v26236_v22 = vld [vmem:[#allocation92_spill] sm:$0xff] }
 0x61a   :  { %19027 = vmatprep.mubr.msk.f32.mxu0 %vm86_vm0, %v13806_v36  ;;  %v24560_v16 = vadd.f32 %v18717_v18, %v18665_v27 }
 0x61b   :  { %v11470_v4 = vpop.f32.mrf.mxu1  ;;  %v11791_v42 = vpop.f32.mrf.mxu0 }
 0x61c   :  { %18976 = vmatmul.mubr.msk.f32.gmra.mxu1 %vm86_vm0, %v13420_v39  ;;  %v24565_v45 = vadd.f32 %v11791_v42, %v11470_v4  ;;  %v13816_v39 = vld [vmem:[#allocation3 + $0x349] sm:$0xff]  ;;  %v13817_v42 = vld [vmem:[#allocation3 + $0x351] sm:$0xff] }
 0x61d   :  { %19028 = vmatmul.mubr.msk.f32.gmra.mxu0 %vm86_vm0, %v13807_v51  ;;  %18978 = vmatprep.mubr.msk.f32.mxu1 %vm86_vm0, %v13421_v32  ;;  %v18668_v23 = vpop.f32.mrf.mxu1  ;;  %v18720_v1 = vpop.f32.mrf.mxu0  ;;  %v26237_v51 = vld [vmem:[#allocation65_spill] sm:$0xff] }
 0x61e   :  { %19030 = vmatprep.mubr.msk.f32.mxu0 %vm86_vm0, %v13808_v35  ;;  %v24568_v0 = vadd.f32 %v18720_v1, %v18668_v23  ;;  %v13430_v35 = vld [vmem:[#allocation3 + $0x350] sm:$0xff] }
 0x61f   :  { %v11480_v58 = vpop.f32.mrf.mxu1  ;;  %v11801_v5 = vpop.f32.mrf.mxu0 }
 0x620   :  { %18979 = vmatmul.mubr.msk.f32.gmra.mxu1 %vm86_vm0, %v13422_v55  ;;  %v24573_v26 = vadd.f32 %v11801_v5, %v11480_v58  ;;  %v14174_v5 = vld [vmem:[#allocation3 + $0x1ea] sm:$0xff] }
 0x621   :  { %19031 = vmatmul.mubr.msk.f32.gmra.mxu0 %vm86_vm0, %v13809_v37  ;;  %18981 = vmatprep.mubr.msk.f32.mxu1 %vm86_vm0, %v13423_v34  ;;  %v18671_v3 = vpop.f32.mrf.mxu1  ;;  %v18723_v28 = vpop.f32.mrf.mxu0  ;;  %v14173_v37 = vld [vmem:[#allocation3 + $0x1e2] sm:$0xff] }
 0x622   :  { %19033 = vmatprep.mubr.msk.f32.mxu0 %vm86_vm0, %v13810_v6  ;;  %v24576_v10 = vadd.f32 %v18723_v28, %v18671_v3  ;;  %v14175_v28 = vld [vmem:[#allocation3 + $0x1fa] sm:$0xff] }
 0x623   :  { %v11490_v40 = vpop.f32.mrf.mxu1  ;;  %v11811_v11 = vpop.f32.mrf.mxu0 }
 0x624   :  { %18982 = vmatmul.mubr.msk.f32.gmra.mxu1 %vm86_vm0, %v13424_v29  ;;  %v24581_v57 = vadd.f32 %v11811_v11, %v11490_v40 }
 0x625   :  { %19034 = vmatmul.mubr.msk.f32.gmra.mxu0 %vm86_vm0, %v13811_v7  ;;  %18984 = vmatprep.mubr.msk.f32.mxu1 %vm86_vm0, %v13425_v48  ;;  %v18674_v31 = vpop.f32.mrf.mxu1  ;;  %v18726_v47 = vpop.f32.mrf.mxu0  ;;  %v11692_v7 = vadd.f32 %v24482_v24, %v24480_v17  ;;  %v26238_v48 = vld [vmem:[#allocation44_spill] sm:$0xff] }
 0x626   :  { %19036 = vmatprep.mubr.msk.f32.mxu0 %vm86_vm0, %v13812_v46  ;;  %v24584_v62 = vadd.f32 %v18726_v47, %v18674_v31  ;;  %v14176_v47 = vld [vmem:[#allocation3 + $0x202] sm:$0xff] }
 0x627   :  { %v11500_v52 = vpop.f32.mrf.mxu1  ;;  %v11821_v36 = vpop.f32.mrf.mxu0 }
 0x628   :  { %18985 = vmatmul.mubr.msk.f32.gmra.mxu1 %vm86_vm0, %v13426_v2  ;;  %v24591_v43 = vadd.f32 %v11821_v36, %v11500_v52  ;;  %v14177_v52 = vld [vmem:[#allocation3 + $0x212] sm:$0xff] }
 0x629   :  { %19037 = vmatmul.mubr.msk.f32.gmra.mxu0 %vm86_vm0, %v13813_v25  ;;  %18987 = vmatprep.mubr.msk.f32.mxu1 %vm86_vm0, %v26236_v22  ;;  %v18677_v27 = vpop.f32.mrf.mxu1  ;;  %v18729_v18 = vpop.f32.mrf.mxu0 }
 0x62a   :  { %19039 = vmatprep.mubr.msk.f32.mxu0 %vm86_vm0, %v24455_v44  ;;  %v24595_v32 = vadd.f32 %v18729_v18, %v18677_v27  ;;  %v14178_v18 = vld [vmem:[#allocation3 + $0x21a] sm:$0xff] }
 0x62b   :  { %v11510_v44 = vpop.f32.mrf.mxu1  ;;  %v11831_v4 = vpop.f32.mrf.mxu0 }
 0x62c   :  { %18988 = vmatmul.mubr.msk.f32.gmra.mxu1 %vm86_vm0, %v26237_v51  ;;  %v24601_v55 = vadd.f32 %v11831_v4, %v11510_v44  ;;  %v14179_v44 = vld [vmem:[#allocation3 + $0x22a] sm:$0xff] }
 0x62d   :  { %19040 = vmatmul.mubr.msk.f32.gmra.mxu0 %vm86_vm0, %v24465_v21  ;;  %18990 = vmatprep.mubr.msk.f32.mxu1 %vm86_vm0, %v13429_v14  ;;  %v18680_v23 = vpop.f32.mrf.mxu1  ;;  %v18732_v1 = vpop.f32.mrf.mxu0 }
 0x62e   :  { %19042 = vmatprep.mubr.msk.f32.mxu0 %vm86_vm0, %v13816_v39  ;;  %v24604_v34 = vadd.f32 %v18732_v1, %v18680_v23 }
 0x62f   :  { %v11520_v21 = vpop.f32.mrf.mxu1  ;;  %v11841_v6 = vpop.f32.mrf.mxu0 }
 0x630   :  { %18991 = vmatmul.mubr.msk.f32.gmra.mxu1 %vm86_vm0, %v13430_v35  ;;  %v24608_v58 = vadd.f32 %v11841_v6, %v11520_v21  ;;  %v14180_v21 = vld [vmem:[#allocation3 + $0x232] sm:$0xff] }
 0x631   :  { %19049 = vmatprep.mubr.msk.f32.mxu1 %vm86_vm0, %v14173_v37  ;;  %19043 = vmatmul.mubr.msk.f32.gmra.mxu0 %vm86_vm0, %v13817_v42  ;;  %v18739_v29 = vpop.f32.mrf.mxu1  ;;  %v18791_v3 = vpop.f32.mrf.mxu0 }
 0x632   :  { %v12206_v46 = vadd.f32 %v18739_v29, %v26238_v48 }
 0x633   :  { %v12046_v40 = vpop.f32.mrf.mxu1  ;;  %v12433_v11 = vpop.f32.mrf.mxu0 }
 0x634   :  { %19050 = vmatmul.mubr.msk.f32.vlgmr.msra.gmra.mxu1 %vm86_vm0, %v14174_v5  ;;  %v24615_v2 = vadd.f32 %v18791_v3, %v12206_v46  ;;  %v12205_v31 = vadd.f32 %v12046_v40, %v11692_v7  ;;  %v19134_v3 = vld [vmem:[#allocation3 + $0x242] sm:$0xff]  ;;  %v19135_v40 = vld [vmem:[#allocation3 + $0x24a] sm:$0xff] }
 0x635   :  { %19052 = vmatprep.mubr.msk.f32.mxu1 %vm86_vm0, %v14175_v28  ;;  %v18742_v25 = vpop.f32.mrf.mxu1  ;;  %v18794_v22 = vpop.f32.mrf.mxu0 }
 0x636   :  { %v24618_v36 = vadd.f32 %v12433_v11, %v12205_v31  ;;  %v12208_v14 = vadd.f32 %v18742_v25, %v24488_v53 }
 0x637   :  { %v12056_v17 = vpop.f32.mrf.mxu1  ;;  %v12443_v24 = vpop.f32.mrf.mxu0 }
 0x638   :  { %19053 = vmatmul.mubr.msk.f32.gmra.mxu1 %vm86_vm0, %v14176_v47  ;;  %v24622_v39 = vadd.f32 %v18794_v22, %v12208_v14  ;;  %v12207_v27 = vadd.f32 %v12056_v17, %v24493_v60  ;;  %v19136_v47 = vld [vmem:[#allocation3 + $0x25a] sm:$0xff]  ;;  %v14184_v14 = vld [vmem:[#allocation3 + $0x262] sm:$0xff] }
 0x639   :  { %19055 = vmatprep.mubr.msk.f32.mxu1 %vm86_vm0, %v14177_v52  ;;  %v18745_v51 = vpop.f32.mrf.mxu1  ;;  %v18797_v35 = vpop.f32.mrf.mxu0 }
 0x63a   :  { %v24626_v4 = vadd.f32 %v12443_v24, %v12207_v27  ;;  %v12210_v42 = vadd.f32 %v18745_v51, %v24496_v15 }
 0x63b   :  { %v12066_v53 = vpop.f32.mrf.mxu1  ;;  %v12453_v23 = vpop.f32.mrf.mxu0 }
 0x63c   :  { %19056 = vmatmul.mubr.msk.f32.gmra.mxu1 %vm86_vm0, %v14178_v18  ;;  %v24630_v1 = vadd.f32 %v18797_v35, %v12210_v42  ;;  %v12209_v37 = vadd.f32 %v12066_v53, %v24501_v19  ;;  %v19137_v18 = vld [vmem:[#allocation3 + $0x272] sm:$0xff]  ;;  %v14186_v42 = vld [vmem:[#allocation3 + $0x27a] sm:$0xff] }
 0x63d   :  { %19058 = vmatprep.mubr.msk.f32.mxu1 %vm86_vm0, %v14179_v44  ;;  %v18748_v60 = vpop.f32.mrf.mxu1  ;;  %v18800_v6 = vpop.f32.mrf.mxu0 }
 0x63e   :  { %v24634_v5 = vadd.f32 %v12453_v23, %v12209_v37  ;;  %v12212_v29 = vadd.f32 %v18748_v60, %v24504_v41 }
 0x63f   :  { %v12076_v15 = vpop.f32.mrf.mxu1  ;;  %v12463_v28 = vpop.f32.mrf.mxu0 }
 0x640   :  { %19059 = vmatmul.mubr.msk.f32.gmra.mxu1 %vm86_vm0, %v14180_v21  ;;  %v24638_v7 = vadd.f32 %v18800_v6, %v12212_v29  ;;  %v12211_v48 = vadd.f32 %v12076_v15, %v24509_v13  ;;  %v19138_v21 = vld [vmem:[#allocation3 + $0x28a] sm:$0xff] }
 0x641   :  { %19061 = vmatprep.mubr.msk.f32.mxu1 %vm86_vm0, %v19134_v3  ;;  %v18751_v46 = vpop.f32.mrf.mxu1  ;;  %v18803_v19 = vpop.f32.mrf.mxu0  ;;  %v14188_v3 = vld [vmem:[#allocation3 + $0x292] sm:$0xff] }
 0x642   :  { %v24642_v11 = vadd.f32 %v12463_v28, %v12211_v48  ;;  %v12214_v31 = vadd.f32 %v18751_v46, %v24512_v30  ;;  %v14189_v28 = vld [vmem:[#allocation3 + $0x2a2] sm:$0xff] }
 0x643   :  { %v12086_v41 = vpop.f32.mrf.mxu1  ;;  %v12473_v25 = vpop.f32.mrf.mxu0 }
 0x644   :  { %19062 = vmatmul.mubr.msk.f32.gmra.mxu1 %vm86_vm0, %v19135_v40  ;;  %v24646_v22 = vadd.f32 %v18803_v19, %v12214_v31  ;;  %v12213_v52 = vadd.f32 %v12086_v41, %v24517_v38 }
 0x645   :  { %19064 = vmatprep.mubr.msk.f32.mxu1 %vm86_vm0, %v19136_v47  ;;  %v18754_v13 = vpop.f32.mrf.mxu1  ;;  %v18806_v17 = vpop.f32.mrf.mxu0  ;;  %v14190_v47 = vld [vmem:[#allocation3 + $0x2aa] sm:$0xff] }
 0x646   :  { %v24650_v24 = vadd.f32 %v12473_v25, %v12213_v52  ;;  %v12216_v27 = vadd.f32 %v18754_v13, %v24520_v9  ;;  %v14191_v25 = vld [vmem:[#allocation3 + $0x2ba] sm:$0xff] }
 0x647   :  { %v12096_v30 = vpop.f32.mrf.mxu1  ;;  %v12483_v51 = vpop.f32.mrf.mxu0 }
 0x648   :  { %19065 = vmatmul.mubr.msk.f32.gmra.mxu1 %vm86_vm0, %v14184_v14  ;;  %v24654_v35 = vadd.f32 %v18806_v17, %v12216_v27  ;;  %v12215_v44 = vadd.f32 %v12096_v30, %v24525_v56 }
 0x649   :  { %19067 = vmatprep.mubr.msk.f32.mxu1 %vm86_vm0, %v19137_v18  ;;  %v18757_v38 = vpop.f32.mrf.mxu1  ;;  %v18809_v53 = vpop.f32.mrf.mxu0  ;;  %v14192_v18 = vld [vmem:[#allocation3 + $0x2c2] sm:$0xff] }
 0x64a   :  { %v24658_v23 = vadd.f32 %v12483_v51, %v12215_v44  ;;  %v12218_v37 = vadd.f32 %v18757_v38, %v24528_v54  ;;  %v14193_v51 = vld [vmem:[#allocation3 + $0x2d2] sm:$0xff] }
 0x64b   :  { %v12106_v9 = vpop.f32.mrf.mxu1  ;;  %v12493_v60 = vpop.f32.mrf.mxu0 }
 0x64c   :  { %19068 = vmatmul.mubr.msk.f32.gmra.mxu1 %vm86_vm0, %v14186_v42  ;;  %v24662_v6 = vadd.f32 %v18809_v53, %v12218_v37  ;;  %v12217_v29 = vadd.f32 %v12106_v9, %v24533_v63 }
 0x64d   :  { %19070 = vmatprep.mubr.msk.f32.mxu1 %vm86_vm0, %v19138_v21  ;;  %v18760_v56 = vpop.f32.mrf.mxu1  ;;  %v18812_v15 = vpop.f32.mrf.mxu0  ;;  %v14194_v21 = vld [vmem:[#allocation3 + $0x2da] sm:$0xff] }
 0x64e   :  { %v24666_v48 = vadd.f32 %v12493_v60, %v12217_v29  ;;  %v12220_v46 = vadd.f32 %v18760_v56, %v24536_v49  ;;  %v14195_v60 = vld [vmem:[#allocation3 + $0x2ea] sm:$0xff] }
 0x64f   :  { %v12116_v54 = vpop.f32.mrf.mxu1  ;;  %v12503_v19 = vpop.f32.mrf.mxu0 }
 0x650   :  { %19071 = vmatmul.mubr.msk.f32.gmra.mxu1 %vm86_vm0, %v14188_v3  ;;  %v24670_v40 = vadd.f32 %v18812_v15, %v12220_v46  ;;  %v12219_v31 = vadd.f32 %v12116_v54, %v24541_v50  ;;  %v14196_v46 = vld [vmem:[#allocation3 + $0x2f2] sm:$0xff] }
 0x651   :  { %19073 = vmatprep.mubr.msk.f32.mxu1 %vm86_vm0, %v14189_v28  ;;  %v18763_v63 = vpop.f32.mrf.mxu1  ;;  %v18815_v41 = vpop.f32.mrf.mxu0 }
 0x652   :  { %v24674_v52 = vadd.f32 %v12503_v19, %v12219_v31  ;;  %v12222_v14 = vadd.f32 %v18763_v63, %v24544_v59  ;;  %v14197_v19 = vld [vmem:[#allocation3 + $0x302] sm:$0xff] }
 0x653   :  { %v12126_v49 = vpop.f32.mrf.mxu1  ;;  %v12513_v13 = vpop.f32.mrf.mxu0 }
 0x654   :  { %19074 = vmatmul.mubr.msk.f32.gmra.mxu1 %vm86_vm0, %v14190_v47  ;;  %v24678_v17 = vadd.f32 %v18815_v41, %v12222_v14  ;;  %v12221_v27 = vadd.f32 %v12126_v49, %v24549_v8  ;;  %v14198_v14 = vld [vmem:[#allocation3 + $0x30a] sm:$0xff] }
 0x655   :  { %19076 = vmatprep.mubr.msk.f32.mxu1 %vm86_vm0, %v14191_v25  ;;  %v18766_v50 = vpop.f32.mrf.mxu1  ;;  %v18818_v30 = vpop.f32.mrf.mxu0 }
 0x656   :  { %v24682_v44 = vadd.f32 %v12513_v13, %v12221_v27  ;;  %v12224_v42 = vadd.f32 %v18766_v50, %v24552_v33  ;;  %v14199_v13 = vld [vmem:[#allocation3 + $0x31a] sm:$0xff] }
 0x657   :  { %v12136_v59 = vpop.f32.mrf.mxu1  ;;  %v12523_v38 = vpop.f32.mrf.mxu0 }
 0x658   :  { %19077 = vmatmul.mubr.msk.f32.gmra.mxu1 %vm86_vm0, %v14192_v18  ;;  %v24686_v53 = vadd.f32 %v18818_v30, %v12224_v42  ;;  %v12223_v37 = vadd.f32 %v12136_v59, %v24557_v61  ;;  %v14200_v42 = vld [vmem:[#allocation3 + $0x322] sm:$0xff] }
 0x659   :  { %19079 = vmatprep.mubr.msk.f32.mxu1 %vm86_vm0, %v14193_v51  ;;  %v18769_v8 = vpop.f32.mrf.mxu1  ;;  %v18821_v9 = vpop.f32.mrf.mxu0 }
 0x65a   :  { %v24690_v29 = vadd.f32 %v12523_v38, %v12223_v37  ;;  %v12226_v3 = vadd.f32 %v18769_v8, %v24560_v16  ;;  %v14203_v8 = vld [vmem:[#allocation3 + $0x34a] sm:$0xff] }
 0x65b   :  { %v12146_v33 = vpop.f32.mrf.mxu1  ;;  %v12533_v56 = vpop.f32.mrf.mxu0 }
 0x65c   :  { %19080 = vmatmul.mubr.msk.f32.gmra.mxu1 %vm86_vm0, %v14194_v21  ;;  %v24694_v15 = vadd.f32 %v18821_v9, %v12226_v3  ;;  %v12225_v28 = vadd.f32 %v12146_v33, %v24565_v45 }
 0x65d   :  { %19082 = vmatprep.mubr.msk.f32.mxu1 %vm86_vm0, %v14195_v60  ;;  %v18772_v61 = vpop.f32.mrf.mxu1  ;;  %v18824_v54 = vpop.f32.mrf.mxu0 }
 0x65e   :  { %v24698_v31 = vadd.f32 %v12533_v56, %v12225_v28  ;;  %v12228_v47 = vadd.f32 %v18772_v61, %v24568_v0 }
 0x65f   :  { %v12156_v16 = vpop.f32.mrf.mxu1  ;;  %v12543_v63 = vpop.f32.mrf.mxu0 }
 0x660   :  { %19083 = vmatmul.mubr.msk.f32.gmra.mxu1 %vm86_vm0, %v14196_v46  ;;  %v24702_v41 = vadd.f32 %v18824_v54, %v12228_v47  ;;  %v12227_v25 = vadd.f32 %v12156_v16, %v24573_v26 }
 0x661   :  { %19085 = vmatprep.mubr.msk.f32.mxu1 %vm86_vm0, %v14197_v19  ;;  %v18775_v45 = vpop.f32.mrf.mxu1  ;;  %v18827_v49 = vpop.f32.mrf.mxu0 }
 0x662   :  { %v24706_v27 = vadd.f32 %v12543_v63, %v12227_v25  ;;  %v12230_v18 = vadd.f32 %v18775_v45, %v24576_v10 }
 0x663   :  { %v12166_v0 = vpop.f32.mrf.mxu1  ;;  %v12553_v50 = vpop.f32.mrf.mxu0 }
 0x664   :  { %19086 = vmatmul.mubr.msk.f32.gmra.mxu1 %vm86_vm0, %v14198_v14  ;;  %v24710_v30 = vadd.f32 %v18827_v49, %v12230_v18  ;;  %v12229_v51 = vadd.f32 %v12166_v0, %v24581_v57 }
 0x665   :  { %19088 = vmatprep.mubr.msk.f32.mxu1 %vm86_vm0, %v14199_v13  ;;  %v18778_v26 = vpop.f32.mrf.mxu1  ;;  %v18830_v59 = vpop.f32.mrf.mxu0 }
 0x666   :  { %v24714_v38 = vadd.f32 %v12553_v50, %v12229_v51  ;;  %v12232_v37 = vadd.f32 %v18778_v26, %v24584_v62  ;;  %v14204_v62 = vld [vmem:[#allocation3 + $0x352] sm:$0xff] }
 0x667   :  { %v12176_v10 = vpop.f32.mrf.mxu1  ;;  %v12563_v21 = vpop.f32.mrf.mxu0 }
 0x668   :  { %19089 = vmatmul.mubr.msk.f32.gmra.mxu1 %vm86_vm0, %v14200_v42  ;;  %v24719_v9 = vadd.f32 %v18830_v59, %v12232_v37  ;;  %v12231_v60 = vadd.f32 %v12176_v10, %v24591_v43 }
 0x669   :  { %19091 = vmatprep.mubr.msk.f32.mxu1 %vm86_vm0, %v24461_v20  ;;  %v18781_v57 = vpop.f32.mrf.mxu1  ;;  %v18833_v3 = vpop.f32.mrf.mxu0 }
 0x66a   :  { %v24724_v33 = vadd.f32 %v12563_v21, %v12231_v60  ;;  %v12234_v56 = vadd.f32 %v18781_v57, %v24595_v32 }
 0x66b   :  { %v12186_v20 = vpop.f32.mrf.mxu1  ;;  %v12573_v28 = vpop.f32.mrf.mxu0 }
 0x66c   :  { %19092 = vmatmul.mubr.msk.f32.gmra.mxu1 %vm86_vm0, %v24469_v12  ;;  %v24728_v46 = vadd.f32 %v18833_v3, %v12234_v56  ;;  %v12233_v61 = vadd.f32 %v12186_v20, %v24601_v55 }
 0x66d   :  { %19094 = vmatprep.mubr.msk.f32.mxu1 %vm86_vm0, %v14203_v8  ;;  %v18784_v54 = vpop.f32.mrf.mxu1  ;;  %v18836_v43 = vpop.f32.mrf.mxu0 }
 0x66e   :  { %v24732_v19 = vadd.f32 %v12573_v28, %v12233_v61  ;;  %v12236_v12 = vadd.f32 %v18784_v54, %v24604_v34 }
 0x66f   :  { %v12196_v47 = vpop.f32.mrf.mxu1  ;;  %v12583_v16 = vpop.f32.mrf.mxu0 }
 0x670   :  { %19095 = vmatmul.mubr.msk.f32.gmra.mxu1 %vm86_vm0, %v14204_v62  ;;  %v24735_v32 = vadd.f32 %v18836_v43, %v12236_v12  ;;  %v12235_v63 = vadd.f32 %v12196_v47, %v24608_v58 }
 0x671   :  { %v18843_v25 = vpop.f32.mrf.mxu1  ;;  %v18895_v14 = vpop.f32.mrf.mxu0 }
 0x672   :  { %v24738_v45 = vadd.f32 %v12583_v16, %v12235_v63  ;;  %v12980_v55 = vadd.f32 %v18843_v25, %v24615_v2 }
 0x673   :  { %v12820_v49 = vpop.f32.mrf.mxu1  ;;  %v24741_v13 = vpop.f32.mrf.mxu0 }
 0x674   :  { %v24743_v18 = vadd.f32 %v18895_v14, %v12980_v55  ;;  %v24746_v0 = vadd.f32 %v12820_v49, %v24618_v36 }
 0x675   :  { %v18846_v34 = vpop.f32.mrf.mxu1  ;;  %v18898_v50 = vpop.f32.mrf.mxu0 }
 0x676   :  { %v12982_v51 = vadd.f32 %v18846_v34, %v24622_v39 }
 0x677   :  { %v12830_v42 = vpop.f32.mrf.mxu1  ;;  %v24749_v58 = vpop.f32.mrf.mxu0 }
 0x678   :  { %v24751_v26 = vadd.f32 %v18898_v50, %v12982_v51  ;;  %v24754_v59 = vadd.f32 %v12830_v42, %v24626_v4 }
 0x679   :  { %v18849_v2 = vpop.f32.mrf.mxu1  ;;  %v18901_v10 = vpop.f32.mrf.mxu0 }
 0x67a   :  { %v12984_v37 = vadd.f32 %v18849_v2, %v24630_v1 }
 0x67b   :  { %v12840_v21 = vpop.f32.mrf.mxu1  ;;  %v24762_v60 = vpop.f32.mrf.mxu0 }
 0x67c   :  { %v24757_v8 = vadd.f32 %v18901_v10, %v12984_v37  ;;  %v24760_v36 = vadd.f32 %v12840_v21, %v24634_v5 }
 0x67d   :  { %v18852_v39 = vpop.f32.mrf.mxu1  ;;  %v18904_v3 = vpop.f32.mrf.mxu0 }
 0x67e   :  { %v12986_v57 = vadd.f32 %v18852_v39, %v24638_v7 }
 0x67f   :  { %v12850_v56 = vpop.f32.mrf.mxu1  ;;  %v24770_v1 = vpop.f32.mrf.mxu0 }
 0x680   :  { %v24765_v62 = vadd.f32 %v18904_v3, %v12986_v57  ;;  %v24768_v4 = vadd.f32 %v12850_v56, %v24642_v11 }
 0x681   :  { %v18855_v20 = vpop.f32.mrf.mxu1 }
 0x682   :  { %v12988_v28 = vadd.f32 %v18855_v20, %v24646_v22 }
 0x683   :  { %v18907_v61 = vpop.f32.mrf.mxu0  ;;  %v12860_v5 = vpop.f32.mrf.mxu1 }
 0x684   :  { %v24773_v54 = vadd.f32 %v18907_v61, %v12988_v28  ;;  %v24776_v43 = vadd.f32 %v12860_v5, %v24650_v24 }
 0x685   :  { %v24778_v7 = vpop.f32.mrf.mxu0 }
 0x686   :  { %v18858_v12 = vpop.f32.mrf.mxu1 }
 0x687   :  { %v12990_v47 = vadd.f32 %v18858_v12, %v24654_v35 }
 0x688   :  { %v12870_v11 = vpop.f32.mrf.mxu1 }
 0x689   :  { %v18910_v16 = vpop.f32.mrf.mxu0  ;;  %v24784_v25 = vadd.f32 %v12870_v11, %v24658_v23 }
 0x68a   :  { %v24781_v63 = vadd.f32 %v18910_v16, %v12990_v47 }
 0x68b   :  { %v24786_v22 = vpop.f32.mrf.mxu0 }
 0x68c   :  { %v18861_v14 = vpop.f32.mrf.mxu1 }
 0x68d   :  { %v12992_v55 = vadd.f32 %v18861_v14, %v24662_v6  ;;  %v18913_v49 = vpop.f32.mrf.mxu0 }
 0x68e   :  { %v12880_v24 = vpop.f32.mrf.mxu1 }
 0x68f   :  { %v24789_v34 = vadd.f32 %v18913_v49, %v12992_v55  ;;  %v24792_v50 = vadd.f32 %v12880_v24, %v24666_v48  ;;  %v24794_v35 = vpop.f32.mrf.mxu0 }
 0x690   :  { %v18864_v51 = vpop.f32.mrf.mxu1 }
 0x691   :  { %v12994_v42 = vadd.f32 %v18864_v51, %v24670_v40  ;;  %v18916_v2 = vpop.f32.mrf.mxu0 }
 0x692   :  { %v12890_v23 = vpop.f32.mrf.mxu1 }
 0x693   :  { %v24797_v37 = vadd.f32 %v18916_v2, %v12994_v42  ;;  %v24800_v10 = vadd.f32 %v12890_v23, %v24674_v52  ;;  %v24802_v6 = vpop.f32.mrf.mxu0 }
 0x694   :  { %v18867_v21 = vpop.f32.mrf.mxu1 }
 0x695   :  { %v12996_v39 = vadd.f32 %v18867_v21, %v24678_v17  ;;  %v18919_v57 = vpop.f32.mrf.mxu0 }
 0x696   :  { %v12900_v48 = vpop.f32.mrf.mxu1 }
 0x697   :  { %v24805_v3 = vadd.f32 %v18919_v57, %v12996_v39  ;;  %v24808_v56 = vadd.f32 %v12900_v48, %v24682_v44  ;;  %v24810_v40 = vpop.f32.mrf.mxu0 }
 0x698   :  { %v18870_v20 = vpop.f32.mrf.mxu1 }
 0x699   :  { %v12998_v28 = vadd.f32 %v18870_v20, %v24686_v53  ;;  %v18922_v61 = vpop.f32.mrf.mxu0 }
 0x69a   :  { %v12910_v52 = vpop.f32.mrf.mxu1 }
 0x69b   :  { %v24813_v5 = vadd.f32 %v18922_v61, %v12998_v28  ;;  %v24816_v12 = vadd.f32 %v12910_v52, %v24690_v29  ;;  %v24818_v17 = vpop.f32.mrf.mxu0 }
 0x69c   :  { %26239 = vst [vmem:[#allocation27_spill] sm:$0xff] %v24818_v17  ;;  %v18873_v47 = vpop.f32.mrf.mxu1 }
 0x69d   :  { %v13000_v16 = vadd.f32 %v18873_v47, %v24694_v15  ;;  %v18925_v11 = vpop.f32.mrf.mxu0 }
 0x69e   :  { %v12920_v44 = vpop.f32.mrf.mxu1 }
 0x69f   :  { %v24821_v14 = vadd.f32 %v18925_v11, %v13000_v16  ;;  %v24824_v55 = vadd.f32 %v12920_v44, %v24698_v31  ;;  %v24826_v53 = vpop.f32.mrf.mxu0 }
 0x6a0   :  { %26241 = vst [vmem:[#allocation48_spill] sm:$0xff] %v24826_v53  ;;  %v18876_v49 = vpop.f32.mrf.mxu1 }
 0x6a1   :  { %26240 = vst [vmem:[#allocation74_spill] sm:$0xff] %v24824_v55  ;;  %v13002_v24 = vadd.f32 %v18876_v49, %v24702_v41  ;;  %v18928_v51 = vpop.f32.mrf.mxu0 }
 0x6a2   :  { %v12930_v29 = vpop.f32.mrf.mxu1 }
 0x6a3   :  { %v24829_v42 = vadd.f32 %v18928_v51, %v13002_v24  ;;  %v24832_v2 = vadd.f32 %v12930_v29, %v24706_v27  ;;  %v24834_v15 = vpop.f32.mrf.mxu0 }
 0x6a4   :  { %26243 = vst [vmem:[#allocation89_spill] sm:$0xff] %v24834_v15  ;;  %v18879_v23 = vpop.f32.mrf.mxu1 }
 0x6a5   :  { %26242 = vst [vmem:[#allocation118_spill] sm:$0xff] %v24832_v2  ;;  %v13004_v21 = vadd.f32 %v18879_v23, %v24710_v30  ;;  %v18931_v39 = vpop.f32.mrf.mxu0 }
 0x6a6   :  { %v12940_v31 = vpop.f32.mrf.mxu1 }
 0x6a7   :  { %v24837_v57 = vadd.f32 %v18931_v39, %v13004_v21  ;;  %v24840_v48 = vadd.f32 %v12940_v31, %v24714_v38  ;;  %v24842_v41 = vpop.f32.mrf.mxu0 }
 0x6a8   :  { %26245 = vst [vmem:[#allocation51_spill] sm:$0xff] %v24842_v41  ;;  %v18882_v20 = vpop.f32.mrf.mxu1 }
 0x6a9   :  { %26244 = vst [vmem:[#allocation117_spill] sm:$0xff] %v24840_v48  ;;  %v13006_v28 = vadd.f32 %v18882_v20, %v24719_v9  ;;  %v18934_v61 = vpop.f32.mrf.mxu0 }
 0x6aa   :  { %v12950_v27 = vpop.f32.mrf.mxu1 }
 0x6ab   :  { %v24845_v52 = vadd.f32 %v18934_v61, %v13006_v28  ;;  %v24848_v47 = vadd.f32 %v12950_v27, %v24724_v33  ;;  %v24850_v30 = vpop.f32.mrf.mxu0 }
 0x6ac   :  { %26247 = vst [vmem:[#allocation119_spill] sm:$0xff] %v24850_v30  ;;  %v18885_v16 = vpop.f32.mrf.mxu1 }
 0x6ad   :  { %26246 = vst [vmem:[#allocation95_spill] sm:$0xff] %v24848_v47  ;;  %v13008_v11 = vadd.f32 %v18885_v16, %v24728_v46  ;;  %v18937_v44 = vpop.f32.mrf.mxu0 }
 0x6ae   :  { %v12960_v38 = vpop.f32.mrf.mxu1 }
 0x6af   :  { %v24853_v49 = vadd.f32 %v18937_v44, %v13008_v11  ;;  %v24856_v24 = vadd.f32 %v12960_v38, %v24732_v19  ;;  %v24858_v9 = vpop.f32.mrf.mxu0 }
 0x6b0   :  { %26249 = vst [vmem:[#allocation121_spill] sm:$0xff] %v24858_v9  ;;  %v18888_v51 = vpop.f32.mrf.mxu1 }
 0x6b1   :  { %26248 = vst [vmem:[#allocation54_spill] sm:$0xff] %v24856_v24  ;;  %v13010_v29 = vadd.f32 %v18888_v51, %v24735_v32  ;;  %v18940_v23 = vpop.f32.mrf.mxu0 }
 0x6b2   :  { %v12970_v33 = vpop.f32.mrf.mxu1 }
 0x6b3   :  { %v24861_v21 = vadd.f32 %v18940_v23, %v13010_v29  ;;  %v24864_v39 = vadd.f32 %v12970_v33, %v24738_v45  ;;  %v24866_v46 = vpop.f32.mrf.mxu0 }
 0x6b4   :  { %26251 = vst [vmem:[#allocation41_spill] sm:$0xff] %v24866_v46  ;;  %v18947_v31 = vpop.f32.mrf.mxu1 }
 0x6b5   :  { %26250 = vst [vmem:[#allocation116_spill] sm:$0xff] %v24864_v39  ;;  %v24869_v20 = vadd.f32 %v18947_v31, %v24743_v18  ;;  %v24871_v19 = vpop.f32.mrf.mxu0 }
 0x6b6   :  { %v13595_v28 = vpop.f32.mrf.mxu1 }
 0x6b7   :  { %v24873_v61 = vpop.f32.mrf.mxu0 }
 0x6b8   :  { %v18950_v27 = vpop.f32.mrf.mxu1 }
 0x6b9   :  { %v24876_v32 = vadd.f32 %v18950_v27, %v24751_v26  ;;  %v24880_v11 = vpop.f32.mrf.mxu0 }
 0x6ba   :  { %v24878_v16 = vpop.f32.mrf.mxu1 }
 0x6bb   :  { %v24887_v18 = vpop.f32.mrf.mxu0 }
 0x6bc   :  { %v18953_v45 = vpop.f32.mrf.mxu1 }
 0x6bd   :  { %v24883_v44 = vadd.f32 %v18953_v45, %v24757_v8  ;;  %v24894_v26 = vpop.f32.mrf.mxu0 }
 0x6be   :  { %v24885_v38 = vpop.f32.mrf.mxu1 }
 0x6bf   :  { %v24901_v8 = vpop.f32.mrf.mxu0 }
 0x6c0   :  { %v18956_v51 = vpop.f32.mrf.mxu1 }
 0x6c1   :  { %v24890_v29 = vadd.f32 %v18956_v51, %v24765_v62  ;;  %v24908_v62 = vpop.f32.mrf.mxu0 }
 0x6c2   :  { %v24892_v23 = vpop.f32.mrf.mxu1 }
 0x6c4   :  { %v18959_v33 = vpop.f32.mrf.mxu1 }
 0x6c5   :  { %v24897_v31 = vadd.f32 %v18959_v33, %v24773_v54  ;;  %v24915_v54 = vpop.f32.mrf.mxu0 }
 0x6c6   :  { %v24899_v27 = vpop.f32.mrf.mxu1 }
 0x6c8   :  { %v18962_v45 = vpop.f32.mrf.mxu1 }
 0x6c9   :  { %v24904_v46 = vadd.f32 %v18962_v45, %v24781_v63  ;;  %v24922_v63 = vpop.f32.mrf.mxu0 }
 0x6ca   :  { %v24906_v39 = vpop.f32.mrf.mxu1 }
 0x6cc   :  { %v18965_v51 = vpop.f32.mrf.mxu1 }
 0x6cd   :  { %v24911_v9 = vadd.f32 %v18965_v51, %v24789_v34  ;;  %v24929_v34 = vpop.f32.mrf.mxu0 }
 0x6ce   :  { %v24913_v24 = vpop.f32.mrf.mxu1 }
 0x6d0   :  { %v18968_v33 = vpop.f32.mrf.mxu1 }
 0x6d1   :  { %v24918_v30 = vadd.f32 %v18968_v33, %v24797_v37  ;;  %v24936_v37 = vpop.f32.mrf.mxu0 }
 0x6d2   :  { %v24920_v47 = vpop.f32.mrf.mxu1 }
 0x6d4   :  { %v18971_v45 = vpop.f32.mrf.mxu1 }
 0x6d5   :  { %v24925_v41 = vadd.f32 %v18971_v45, %v24805_v3  ;;  %v24943_v3 = vpop.f32.mrf.mxu0 }
 0x6d6   :  { %v24927_v48 = vpop.f32.mrf.mxu1 }
 0x6d7   :  { %26252 = vst [vmem:[#allocation120_spill] sm:$0xff] %v24925_v41 }
 0x6d8   :  { %v18974_v51 = vpop.f32.mrf.mxu1 }
 0x6d9   :  { %v24932_v15 = vadd.f32 %v18974_v51, %v24813_v5  ;;  %v24950_v5 = vpop.f32.mrf.mxu0 }
 0x6da   :  { %v24934_v2 = vpop.f32.mrf.mxu1 }
 0x6db   :  { %26253 = vst [vmem:[#allocation123_spill] sm:$0xff] %v24932_v15  ;;  %26254 = vst [vmem:[#allocation105_spill] sm:$0xff] %v24934_v2 }
 0x6dc   :  { %v18977_v33 = vpop.f32.mrf.mxu1 }
 0x6dd   :  { %v24939_v53 = vadd.f32 %v18977_v33, %v24821_v14  ;;  %v24957_v14 = vpop.f32.mrf.mxu0 }
 0x6de   :  { %v24941_v55 = vpop.f32.mrf.mxu1 }
 0x6df   :  { %26255 = vst [vmem:[#allocation24_spill] sm:$0xff] %v24939_v53  ;;  %26256 = vst [vmem:[#allocation122_spill] sm:$0xff] %v24941_v55 }
 0x6e0   :  { %v18980_v45 = vpop.f32.mrf.mxu1 }
 0x6e1   :  { %v24946_v41 = vadd.f32 %v18980_v45, %v24829_v42  ;;  %v24964_v42 = vpop.f32.mrf.mxu0 }
 0x6e2   :  { %v24948_v17 = vpop.f32.mrf.mxu1 }
 0x6e3   :  { %26257 = vst [vmem:[#allocation25_spill] sm:$0xff] %v24946_v41  ;;  %26258 = vst [vmem:[#allocation125_spill] sm:$0xff] %v24948_v17 }
 0x6e4   :  { %v18983_v51 = vpop.f32.mrf.mxu1 }
 0x6e5   :  { %v24953_v15 = vadd.f32 %v18983_v51, %v24837_v57  ;;  %v13366_v57 = vadd.f32 %v24741_v13, %v24746_v0  ;;  %v24973_v51 = vpop.f32.mrf.mxu0 }
 0x6e6   :  { %v24955_v2 = vpop.f32.mrf.mxu1 }
 0x6e7   :  { %26259 = vst [vmem:[#allocation43_spill] sm:$0xff] %v24953_v15  ;;  %26260 = vst [vmem:[#allocation124_spill] sm:$0xff] %v24955_v2  ;;  %v13754_v2 = vadd.f32 %v13595_v28, %v13366_v57  ;;  %v14144_v28 = vadd.f32 %v24880_v11, %v24876_v32  ;;  %v14146_v32 = vadd.f32 %v24894_v26, %v24883_v44 }
 0x6e8   :  { %v18986_v33 = vpop.f32.mrf.mxu1  ;;  %v13374_v26 = vadd.f32 %v24778_v7, %v24776_v43 }
 0x6e9   :  { %v24960_v53 = vadd.f32 %v18986_v33, %v24845_v52  ;;  %v14141_v13 = vadd.f32 %v24873_v61, %v13754_v2 }
 0x6ea   :  { %v24962_v55 = vpop.f32.mrf.mxu1 }
 0x6eb   :  { %26261 = vst [vmem:[#allocation127_spill] sm:$0xff] %v24960_v53  ;;  %v13368_v53 = vadd.f32 %v24749_v58, %v24754_v59 }
 0x6ec   :  { %v18989_v45 = vpop.f32.mrf.mxu1 }
 0x6ed   :  { %v24967_v41 = vadd.f32 %v18989_v45, %v24853_v49  ;;  %v14142_v49 = vadd.f32 %v24871_v19, %v24869_v20  ;;  %v24984_v45 = vpop.f32.mrf.mxu0  ;;  %v13756_v0 = vadd.f32 %v24878_v16, %v13368_v53  ;;  %v24999_v53 = vld [vmem:[%s25384_s4] ss:$0 sm:$0xff] }
 0x6ee   :  { %v24969_v17 = vpop.f32.mrf.mxu1 }
 0x6ef   :  { %26262 = vst [vmem:[#allocation26_spill] sm:$0xff] %v24967_v41  ;;  %26263 = vst [vmem:[#allocation52_spill] sm:$0xff] %v24969_v17  ;;  %v24992_v57 = vpop.f32.mrf.mxu0  ;;  %v14143_v19 = vadd.f32 %v24887_v18, %v13756_v0 }
 0x6f0   :  { %v18992_v15 = vpop.f32.mrf.mxu1 }
 0x6f1   :  { %v24976_v52 = vadd.f32 %v18992_v15, %v24861_v21  ;;  %v13370_v15 = vadd.f32 %v24762_v60, %v24760_v36  ;;  %v25011_v16 = vpop.f32.mrf.mxu0 }
 0x6f2   :  { %v24978_v33 = vpop.f32.mrf.mxu1 }
 0x6f3   :  { %v13758_v59 = vadd.f32 %v24885_v38, %v13370_v15 }
 0x6f4   :  { %v19051_v41 = vpop.f32.mrf.mxu1 }
 0x6f5   :  { %v14529_v17 = vadd.f32 %v19051_v41, %v14142_v49  ;;  %v13372_v41 = vadd.f32 %v24770_v1, %v24768_v4 }
 0x6f6   :  { %v14369_v21 = vpop.f32.mrf.mxu1 }
 0x6f7   :  { %v14528_v58 = vadd.f32 %v14369_v21, %v14141_v13  ;;  %v25002_v2 = vadd.f32 %v24999_v53, %v14529_v17  ;;  %v14145_v17 = vadd.f32 %v24901_v8, %v13758_v59  ;;  %v13760_v18 = vadd.f32 %v24892_v23, %v13372_v41  ;;  %v25029_v23 = vpop.f32.mrf.mxu0 }
 0x6f8   :  { %v19054_v20 = vpop.f32.mrf.mxu1  ;;  %v14148_v8 = vadd.f32 %v24908_v62, %v24890_v29  ;;  %v13762_v59 = vadd.f32 %v24899_v27, %v13374_v26  ;;  %v14150_v27 = vadd.f32 %v24922_v63, %v24897_v31 }
 0x6f9   :  { %v25005_v36 = vadd.f32 %v24999_v53, %v14528_v58  ;;  %v14531_v60 = vadd.f32 %v19054_v20, %v14144_v28  ;;  %v14593_v13 = vsel %vm86_vm0, %v25002_v2, 0.0  ;;  %v14147_v58 = vadd.f32 %v24915_v54, %v13760_v18  ;;  %v25047_v54 = vpop.f32.mrf.mxu0 }
 0x6fa   :  { %v14379_v61 = vpop.f32.mrf.mxu1 }
 0x6fb   :  { %v14592_v11 = vsel %vm86_vm0, %v25005_v36, 0.0  ;;  %v14530_v38 = vadd.f32 %v14379_v61, %v14143_v19  ;;  %v25020_v4 = vadd.f32 %v24999_v53, %v14531_v60  ;;  %v13376_v60 = vadd.f32 %v24786_v22, %v24784_v25 }
 0x6fc   :  { %v19057_v49 = vpop.f32.mrf.mxu1  ;;  %v14594_v0 = vadd.f32 %v14593_v13, %v14592_v11  ;;  %v13378_v13 = vadd.f32 %v24794_v35, %v24792_v50 }
 0x6fd   :  { %v25023_v1 = vadd.f32 %v24999_v53, %v14530_v38  ;;  %v14533_v44 = vadd.f32 %v19057_v49, %v14146_v32  ;;  %v14597_v43 = vsel %vm86_vm0, %v25020_v4, 0.0  ;;  %v14149_v38 = vadd.f32 %v24929_v34, %v13762_v59  ;;  %v25065_v34 = vpop.f32.mrf.mxu0 }
 0x6fe   :  { %v14389_v15 = vpop.f32.mrf.mxu1  ;;  %v13380_v59 = vadd.f32 %v24802_v6, %v24800_v10 }
 0x6ff   :  { %v14595_v21 = vsel %vm86_vm0, %v25023_v1, 0.0  ;;  %v14532_v28 = vadd.f32 %v14389_v15, %v14145_v17  ;;  %v25038_v7 = vadd.f32 %v24999_v53, %v14533_v44  ;;  %v13764_v17 = vadd.f32 %v24906_v39, %v13376_v60 }
 0x700   :  { %v14596_v20 = vadd.f32 %v14595_v21, %v14594_v0  ;;  %v19060_v19 = vpop.f32.mrf.mxu1  ;;  %v14152_v39 = vadd.f32 %v24936_v37, %v24904_v46  ;;  %v13766_v21 = vadd.f32 %v24913_v24, %v13378_v13  ;;  %v14154_v24 = vadd.f32 %v24950_v5, %v24911_v9 }
 0x701   :  { %v25041_v29 = vadd.f32 %v24999_v53, %v14532_v28  ;;  %v14535_v62 = vadd.f32 %v19060_v19, %v14148_v8  ;;  %v14601_v25 = vsel %vm86_vm0, %v25038_v7, 0.0  ;;  %v14151_v8 = vadd.f32 %v24943_v3, %v13764_v17  ;;  %v25083_v3 = vpop.f32.mrf.mxu0 }
 0x702   :  { %v14598_v41 = vadd.f32 %v14597_v43, %v14596_v20  ;;  %v14399_v61 = vpop.f32.mrf.mxu1  ;;  %v14153_v60 = vadd.f32 %v24957_v14, %v13766_v21 }
 0x703   :  { %v14599_v32 = vsel %vm86_vm0, %v25041_v29, 0.0  ;;  %v14534_v11 = vadd.f32 %v14399_v61, %v14147_v58  ;;  %v25056_v22 = vadd.f32 %v24999_v53, %v14535_v62  ;;  %v25101_v14 = vpop.f32.mrf.mxu0 }
 0x704   :  { %v14600_v18 = vadd.f32 %v14599_v32, %v14598_v41  ;;  %v19063_v49 = vpop.f32.mrf.mxu1  ;;  %v13768_v41 = vadd.f32 %v24920_v47, %v13380_v59  ;;  %v13382_v32 = vadd.f32 %v24810_v40, %v24808_v56  ;;  %v14156_v47 = vadd.f32 %v24964_v42, %v24918_v30 }
 0x705   :  { %v25059_v31 = vadd.f32 %v24999_v53, %v14534_v11  ;;  %v14537_v63 = vadd.f32 %v19063_v49, %v14150_v27  ;;  %v14605_v50 = vsel %vm86_vm0, %v25056_v22, 0.0 }
 0x706   :  { %v14602_v44 = vadd.f32 %v14601_v25, %v14600_v18  ;;  %v14409_v26 = vpop.f32.mrf.mxu1  ;;  %v14155_v49 = vadd.f32 %v24973_v51, %v13768_v41  ;;  %v13770_v25 = vadd.f32 %v24927_v48, %v13382_v32  ;;  %v26265_v51 = vld [vmem:[#allocation120_spill] sm:$0xff] }
 0x707   :  { %v14603_v0 = vsel %vm86_vm0, %v25059_v31, 0.0  ;;  %v14536_v15 = vadd.f32 %v14409_v26, %v14149_v38  ;;  %v25074_v35 = vadd.f32 %v24999_v53, %v14537_v63  ;;  %v14158_v48 = vadd.f32 %v24984_v45, %v26265_v51 }
 0x708   :  { %v14604_v28 = vadd.f32 %v14603_v0, %v14602_v44  ;;  %v19066_v58 = vpop.f32.mrf.mxu1  ;;  %v26264_v44 = vld [vmem:[#allocation27_spill] sm:$0xff] }
 0x709   :  { %v25077_v46 = vadd.f32 %v24999_v53, %v14536_v15  ;;  %v14539_v37 = vadd.f32 %v19066_v58, %v14152_v39  ;;  %v14609_v10 = vsel %vm86_vm0, %v25074_v35, 0.0  ;;  %v13384_v26 = vadd.f32 %v26264_v44, %v24816_v12  ;;  %v19035_v15 = vpop.f32.mrf.mxu0  ;;  %v26266_v58 = vld [vmem:[#allocation105_spill] sm:$0xff] }
 0x70a   :  { %v14606_v20 = vadd.f32 %v14605_v50, %v14604_v28  ;;  %v14419_v19 = vpop.f32.mrf.mxu1  ;;  %v14157_v28 = vadd.f32 %v24992_v57, %v13770_v25  ;;  %v26269_v57 = vld [vmem:[#allocation123_spill] sm:$0xff] }
 0x70b   :  { %v14607_v43 = vsel %vm86_vm0, %v25077_v46, 0.0  ;;  %v14538_v62 = vadd.f32 %v14419_v19, %v14151_v8  ;;  %v25092_v6 = vadd.f32 %v24999_v53, %v14539_v37  ;;  %v13772_v50 = vadd.f32 %v26266_v58, %v13384_v26 }
 0x70c   :  { %v14608_v61 = vadd.f32 %v14607_v43, %v14606_v20  ;;  %v19069_v27 = vpop.f32.mrf.mxu1  ;;  %v26268_v43 = vld [vmem:[#allocation48_spill] sm:$0xff] }
 0x70d   :  { %v25095_v9 = vadd.f32 %v24999_v53, %v14538_v62  ;;  %v14541_v5 = vadd.f32 %v19069_v27, %v14154_v24  ;;  %v14613_v56 = vsel %vm86_vm0, %v25092_v6, 0.0  ;;  %v26267_v24 = vld [vmem:[#allocation74_spill] sm:$0xff]  ;;  %v14102_v27 = vpop.f32.mrf.mxu0  ;;  %v14159_v32 = vadd.f32 %v25029_v23, %v13772_v50  ;;  %v26273_v23 = vld [vmem:[#allocation24_spill] sm:$0xff] }
 0x70e   :  { %v14610_v11 = vadd.f32 %v14609_v10, %v14608_v61  ;;  %v14429_v38 = vpop.f32.mrf.mxu1  ;;  %v13386_v62 = vadd.f32 %v26268_v43, %v26267_v24  ;;  %v14160_v61 = vadd.f32 %v25011_v16, %v26269_v57  ;;  %v14162_v26 = vadd.f32 %v25047_v54, %v26273_v23 }
 0x70f   :  { %v14611_v17 = vsel %vm86_vm0, %v25095_v9, 0.0  ;;  %v14540_v18 = vadd.f32 %v14429_v38, %v14153_v60  ;;  %v25110_v40 = vadd.f32 %v24999_v53, %v14541_v5 }
 0x710   :  { %v14612_v63 = vadd.f32 %v14611_v17, %v14610_v11  ;;  %v19072_v13 = vpop.f32.mrf.mxu1  ;;  %v26270_v11 = vld [vmem:[#allocation122_spill] sm:$0xff] }
 0x711   :  { %v25113_v30 = vadd.f32 %v24999_v53, %v14540_v18  ;;  %v14543_v42 = vadd.f32 %v19072_v13, %v14156_v47  ;;  %v14617_v20 = vsel %vm86_vm0, %v25110_v40, 0.0  ;;  %v13774_v38 = vadd.f32 %v26270_v11, %v13386_v62  ;;  %v26272_v13 = vld [vmem:[#allocation89_spill] sm:$0xff] }
 0x712   :  { %v14614_v39 = vadd.f32 %v14613_v56, %v14612_v63  ;;  %v14439_v0 = vpop.f32.mrf.mxu1  ;;  %v26271_v63 = vld [vmem:[#allocation118_spill] sm:$0xff] }
 0x713   :  { %v14615_v8 = vsel %vm86_vm0, %v25113_v30, 0.0  ;;  %v14542_v21 = vadd.f32 %v14439_v0, %v14155_v49  ;;  %v25126_v12 = vadd.f32 %v24999_v53, %v14543_v42  ;;  %v13388_v56 = vadd.f32 %v26272_v13, %v26271_v63  ;;  %v26280_v63 = vld [vmem:[#allocation119_spill] sm:$0xff] }
 0x714   :  { %v14616_v37 = vadd.f32 %v14615_v8, %v14614_v39  ;;  %v19075_v59 = vpop.f32.mrf.mxu1  ;;  %v19038_v39 = vpop.f32.mrf.mxu0  ;;  %v26274_v8 = vld [vmem:[#allocation125_spill] sm:$0xff] }
 0x715   :  { %v25129_v19 = vadd.f32 %v24999_v53, %v14542_v21  ;;  %v14545_v45 = vadd.f32 %v19075_v59, %v14158_v48  ;;  %v14621_v18 = vsel %vm86_vm0, %v25126_v12, 0.0  ;;  %v14161_v48 = vadd.f32 %v25065_v34, %v13774_v38  ;;  %v26277_v34 = vld [vmem:[#allocation25_spill] sm:$0xff] }
 0x716   :  { %v14618_v60 = vadd.f32 %v14617_v20, %v14616_v37  ;;  %v14449_v41 = vpop.f32.mrf.mxu1  ;;  %v13776_v21 = vadd.f32 %v26274_v8, %v13388_v56  ;;  %v26275_v20 = vld [vmem:[#allocation117_spill] sm:$0xff] }
 0x717   :  { %v14619_v10 = vsel %vm86_vm0, %v25129_v19, 0.0  ;;  %v14544_v5 = vadd.f32 %v14449_v41, %v14157_v28  ;;  %v25142_v49 = vadd.f32 %v24999_v53, %v14545_v45  ;;  %v26276_v45 = vld [vmem:[#allocation51_spill] sm:$0xff]  ;;  %v14112_v41 = vpop.f32.mrf.mxu0 }
 0x718   :  { %v14620_v47 = vadd.f32 %v14619_v10, %v14618_v60  ;;  %v19078_v17 = vpop.f32.mrf.mxu1  ;;  %v13390_v24 = vadd.f32 %v26276_v45, %v26275_v20  ;;  %v14164_v60 = vadd.f32 %v25083_v3, %v26277_v34  ;;  %v14163_v10 = vadd.f32 %v25101_v14, %v13776_v21  ;;  %v26281_v14 = vld [vmem:[#allocation43_spill] sm:$0xff]  ;;  %v26283_v20 = vld [vmem:[#allocation121_spill] sm:$0xff] }
 0x719   :  { %v25145_v25 = vadd.f32 %v24999_v53, %v14544_v5  ;;  %v14547_v16 = vadd.f32 %v19078_v17, %v14160_v61  ;;  %v14625_v50 = vsel %vm86_vm0, %v25142_v49, 0.0  ;;  %v26278_v5 = vld [vmem:[#allocation124_spill] sm:$0xff]  ;;  %v19041_v23 = vpop.f32.mrf.mxu0 }
 0x71a   :  { %v14622_v42 = vadd.f32 %v14621_v18, %v14620_v47  ;;  %v14459_v44 = vpop.f32.mrf.mxu1 }
 0x71b   :  { %v14623_v0 = vsel %vm86_vm0, %v25145_v25, 0.0  ;;  %v14546_v51 = vadd.f32 %v14459_v44, %v14159_v32  ;;  %v25158_v37 = vadd.f32 %v24999_v53, %v14547_v16  ;;  %v13778_v32 = vadd.f32 %v26278_v5, %v13390_v24  ;;  %v26279_v16 = vld [vmem:[#allocation95_spill] sm:$0xff] }
 0x71c   :  { %v14624_v28 = vadd.f32 %v14623_v0, %v14622_v42  ;;  %v19081_v58 = vpop.f32.mrf.mxu1  ;;  %v13392_v13 = vadd.f32 %v26280_v63, %v26279_v16  ;;  %v14166_v44 = vadd.f32 %v19035_v15, %v26281_v14  ;;  %v26286_v16 = vld [vmem:[#allocation116_spill] sm:$0xff]  ;;  %v26287_v63 = vld [vmem:[#allocation41_spill] sm:$0xff] }
 0x71d   :  { %v25161_v59 = vadd.f32 %v24999_v53, %v14546_v51  ;;  %v14549_v54 = vadd.f32 %v19081_v58, %v14162_v26  ;;  %v14629_v47 = vsel %vm86_vm0, %v25158_v37, 0.0  ;;  %v14165_v51 = vadd.f32 %v14102_v27, %v13778_v32  ;;  %v26284_v27 = vld [vmem:[#allocation127_spill] sm:$0xff] }
 0x71e   :  { %v14626_v43 = vadd.f32 %v14625_v50, %v14624_v28  ;;  %v14469_v62 = vpop.f32.mrf.mxu1 }
 0x71f   :  { %v14627_v57 = vsel %vm86_vm0, %v25161_v59, 0.0  ;;  %v14548_v61 = vadd.f32 %v14469_v62, %v14161_v48  ;;  %v25174_v17 = vadd.f32 %v24999_v53, %v14549_v54  ;;  %v13780_v48 = vadd.f32 %v24962_v55, %v13392_v13  ;;  %v26282_v54 = vld [vmem:[#allocation54_spill] sm:$0xff]  ;;  %v14122_v55 = vpop.f32.mrf.mxu0 }
 0x720   :  { %v14628_v11 = vadd.f32 %v14627_v57, %v14626_v43  ;;  %v19084_v38 = vpop.f32.mrf.mxu1  ;;  %v13394_v45 = vadd.f32 %v26283_v20, %v26282_v54  ;;  %v14168_v62 = vadd.f32 %v19038_v39, %v26284_v27  ;;  %v13396_v13 = vadd.f32 %v26287_v63, %v26286_v16 }
 0x721   :  { %v25177_v18 = vadd.f32 %v24999_v53, %v14548_v61  ;;  %v14551_v3 = vadd.f32 %v19084_v38, %v14164_v60  ;;  %v14633_v28 = vsel %vm86_vm0, %v25174_v17, 0.0  ;;  %v14167_v57 = vadd.f32 %v14112_v41, %v13780_v48  ;;  %v26285_v61 = vld [vmem:[#allocation52_spill] sm:$0xff] }
 0x722   :  { %v14630_v56 = vadd.f32 %v14629_v47, %v14628_v11  ;;  %v14479_v42 = vpop.f32.mrf.mxu1  ;;  %v19044_v11 = vpop.f32.mrf.mxu0 }
 0x723   :  { %v14631_v26 = vsel %vm86_vm0, %v25177_v18, 0.0  ;;  %v14550_v0 = vadd.f32 %v14479_v42, %v14163_v10  ;;  %v25188_v58 = vadd.f32 %v24999_v53, %v14551_v3  ;;  %v13782_v10 = vadd.f32 %v26285_v61, %v13394_v45  ;;  %v26288_v42 = vld [vmem:[#allocation26_spill] sm:$0xff] }
 0x724   :  { %v14632_v8 = vadd.f32 %v14631_v26, %v14630_v56  ;;  %v19087_v21 = vpop.f32.mrf.mxu1  ;;  %v14170_v14 = vadd.f32 %v19041_v23, %v26288_v42 }
 0x725   :  { %v25191_v50 = vadd.f32 %v24999_v53, %v14550_v0  ;;  %v14553_v15 = vadd.f32 %v19087_v21, %v14166_v44  ;;  %v14637_v38 = vsel %vm86_vm0, %v25188_v58, 0.0  ;;  %v14169_v0 = vadd.f32 %v14122_v55, %v13782_v10  ;;  %v14132_v21 = vpop.f32.mrf.mxu0 }
 0x726   :  { %v14634_v24 = vadd.f32 %v14633_v28, %v14632_v8  ;;  %v14489_v43 = vpop.f32.mrf.mxu1 }
 0x727   :  { %v14635_v34 = vsel %vm86_vm0, %v25191_v50, 0.0  ;;  %v14552_v60 = vadd.f32 %v14489_v43, %v14165_v51  ;;  %v25202_v47 = vadd.f32 %v24999_v53, %v14553_v15  ;;  %v13784_v51 = vadd.f32 %v24978_v33, %v13396_v13 }
 0x728   :  { %v14636_v5 = vadd.f32 %v14635_v34, %v14634_v24  ;;  %v19090_v32 = vpop.f32.mrf.mxu1  ;;  %v14172_v24 = vadd.f32 %v19044_v11, %v24976_v52 }
 0x729   :  { %v25205_v3 = vadd.f32 %v24999_v53, %v14552_v60  ;;  %v14555_v39 = vadd.f32 %v19090_v32, %v14168_v62  ;;  %v14641_v28 = vsel %vm86_vm0, %v25202_v47, 0.0  ;;  %v14171_v27 = vadd.f32 %v14132_v21, %v13784_v51 }
 0x72a   :  { %v14638_v56 = vadd.f32 %v14637_v38, %v14636_v5  ;;  %v14499_v41 = vpop.f32.mrf.mxu1 }
 0x72b   :  { %v14639_v44 = vsel %vm86_vm0, %v25205_v3, 0.0  ;;  %v14554_v26 = vadd.f32 %v14499_v41, %v14167_v57  ;;  %v25216_v15 = vadd.f32 %v24999_v53, %v14555_v39 }
 0x72c   :  { %v14640_v48 = vadd.f32 %v14639_v44, %v14638_v56  ;;  %v19093_v8 = vpop.f32.mrf.mxu1 }
 0x72d   :  { %v25219_v54 = vadd.f32 %v24999_v53, %v14554_v26  ;;  %v14557_v23 = vadd.f32 %v19093_v8, %v14170_v14  ;;  %v14645_v34 = vsel %vm86_vm0, %v25216_v15, 0.0 }
 0x72e   :  { %v14642_v20 = vadd.f32 %v14641_v28, %v14640_v48  ;;  %v14509_v45 = vpop.f32.mrf.mxu1 }
 0x72f   :  { %v14643_v33 = vsel %vm86_vm0, %v25219_v54, 0.0  ;;  %v14556_v43 = vadd.f32 %v14509_v45, %v14169_v0  ;;  %v25227_v60 = vadd.f32 %v24999_v53, %v14557_v23  ;;  %v14667_v23 = vld [vmem:[%s25386_s6] sm:$0xf]  ;;  %s19256_s6 = smov [#allocation12]  }
 0x730   :  { %v14644_v62 = vadd.f32 %v14643_v33, %v14642_v20  ;;  %v19096_v55 = vpop.f32.mrf.mxu1  ;;  %v14670_v33 = vld [vmem:[%s25387_s7] sm:$0xf]  ;;  %s14831_s7 = sshll.u32 %s19256_s6, 4  ;;  %s14832_s7 = int_to_ptr.vmem [resolvable:$true] %s14831_s7 }
 0x731   :  { %v25230_v57 = vadd.f32 %v24999_v53, %v14556_v43  ;;  %v14559_v61 = vadd.f32 %v19096_v55, %v14172_v24  ;;  %v14649_v38 = vsel %vm86_vm0, %v25227_v60, 0.0  ;;  %p19225_p7 = scmp.lt.s32.totalorder %s14832_s7, %s14832_s7 }
 0x732   :  { %v14646_v10 = vadd.f32 %v14645_v34, %v14644_v62  ;;  %v14519_v5 = vpop.f32.mrf.mxu1 }
 0x733   :  { %v14647_v52 = vsel %vm86_vm0, %v25230_v57, 0.0  ;;  %v14558_v32 = vadd.f32 %v14519_v5, %v14171_v27  ;;  %v25237_v39 = vadd.f32 %v24999_v53, %v14559_v61 }
 0x734   :  { %v14648_v11 = vadd.f32 %v14647_v52, %v14646_v10  ;;  %v14684_v52 = vld [vmem:[%s25388_s8] sm:$0x1]  ;;  %s19220_s8 = scalar_lea.vmem %s14832_s7, 8192 }
 0x735   :  { %v25240_v16 = vadd.f32 %v24999_v53, %v14558_v32  ;;  %v14653_v41 = vsel %vm86_vm0, %v25237_v39, 0.0  ;;  %v14662_v53 = vld [vmem:[%s25385_s5] sm:$0xf]  ;;  %p19221_p6 = scmp.ne.s32.totalorder %s14832_s7, %s19220_s8  ;;  %p19226_p8 = scmp.lt.s32.totalorder %s19220_s8, %s19220_s8 }
 0x736   :  { %v14650_v63 = vadd.f32 %v14649_v38, %v14648_v11 }
 0x737   :  { %v14651_v13 = vsel %vm86_vm0, %v25240_v16, 0.0  ;;  %p19227_p9 = por %p19226_p8, %p19225_p7 }
 0x738   :  { %v14652_v56 = vadd.f32 %v14651_v13, %v14650_v63 }
 0x739   :  { %p19228_p10 = pnand %p19227_p9, %p19221_p6 }
 0x73a   :  { %v14654_v42 = vadd.f32 %v14653_v41, %v14652_v56  ;;  %v26289_v41 = vld [vmem:[#allocation23_spill] sm:$0xff] }
 0x73c   :  { %v14655_v14 = vrot.slane %v14654_v42, 4 }
 0x73e   :  { %v14656_v44 = vadd.f32 %v14655_v14, %v14654_v42  ;;  %v26290_v42 = vsub.s32 0, %v26289_v41  ;;  %v14749_v41 = vld [vmem:[#allocation4 + $0x1a0] sm:$0xff] }
 0x740   :  { %v14657_v26 = vrot.slane %v14656_v44, 2 }
 0x742   :  { %v14658_v0 = vadd.f32 %v14657_v26, %v14656_v44 }
 0x744   :  { %v14659_v51 = vrot.slane %v14658_v0, 1 }
 0x746   :  { %v14660_v48 = vadd.f32 %v14659_v51, %v14658_v0 }
 0x748   :  { %v14661_v8 = vmul.f32 0.00390625, %v14660_v48 }
 0x74a   :  { %v14663_v21 = vmul.f32 %v14662_v53, %v14661_v8 }
 0x74c   :  { %v14664_v28 = vsel %vm7459_vm3, %v14663_v21, 0.0 }
 0x74d   :  { %14665 = vadd.xlane.f32.xlu0 %v14664_v28 }
 0x7d6   :  { %v14666_v20 = vpop.xlane.xlu0 %14665 }
 0x7d7   :  { %v14668_v45 = vadd.f32 %v14667_v23, %v14666_v20  ;;  %v14730_v20 = vld [vmem:[#allocation4 + $0x108] sm:$0xff] }
 0x7d9   :  { %v14669_v24 = vmax.f32 %v14668_v45, 0.0  ;;  %v14732_v45 = vld [vmem:[#allocation4 + $0x118] sm:$0xff] }
 0x7db   :  { %14673 = vperm.xlu1 %19106, %v14669_v24   ;;  %v14734_v24 = vld [vmem:[#allocation4 + $0x128] sm:$0xff] }
 0x856   :  { %v14674_v43 = vpop.permute.xlu1 %14673 }
 0x857   :  { %v14676_v27 = vmul.f32 %v14674_v43, %v14670_v33  ;;  %v14736_v33 = vld [vmem:[#allocation4 + $0x138] sm:$0xff] }
 0x859   :  { %v14677_v62 = vsel %vm7459_vm3, %v14676_v27, 0.0  ;;  %v14740_v27 = vld [vmem:[#allocation4 + $0x158] sm:$0xff] }
 0x85a   :  { %v14678_v55 = vrot.slane %v14677_v62, 4 }
 0x85c   :  { %v14679_v34 = vadd.f32 %v14678_v55, %v14677_v62  ;;  %v14742_v55 = vld [vmem:[#allocation4 + $0x168] sm:$0xff] }
 0x85e   :  { %v14680_v61 = vrot.slane %v14679_v34, 2 }
 0x860   :  { %v14681_v10 = vadd.f32 %v14680_v61, %v14679_v34  ;;  %v14741_v34 = vld [vmem:[#allocation4 + $0x160] sm:$0xff] }
 0x862   :  { %v14682_v5 = vrot.slane %v14681_v10, 1 }
 0x864   :  { %v14683_v32 = vadd.f32 %v14682_v5, %v14681_v10  ;;  %v14743_v10 = vld [vmem:[#allocation4 + $0x170] sm:$0xff]  ;;  %v14746_v5 = vld [vmem:[#allocation4 + $0x188] sm:$0xff] }
 0x866   :  { %v14685_v11 = vadd.f32 %v14684_v52, %v14683_v32  ;;  %v14748_v32 = vld [vmem:[#allocation4 + $0x198] sm:$0xff] }
 0x868   :  { %v16000_v38 = vmul.f32 -1.442695, %v14685_v11  ;;  %v14747_v11 = vld [vmem:[#allocation4 + $0x190] sm:$0xff] }
 0x86a   :  { %19112 = vpow2.f32 %v16000_v38 }
 0x877   :  { %v19113_v63 = vpop.eup %19112 }
 0x878   :  { %v14689_v13 = vadd.f32 1.0, %v19113_v63 }
 0x87a   :  { %19114 = vrcp.f32 %v14689_v13 }
 0x887   :  { %v19115_v56 = vpop.eup %19114 }
 0x888   :  { %v14695_v14 = vrot.slane %v19115_v56, %v26290_v42  ;;  %v14750_v56 = vld [vmem:[#allocation4 + $0x1a8] sm:$0xff] }
 0x88a   :  { %v14696_v44 = vmul.f32 %v14695_v14, %v25005_v36  ;;  %v14697_v26 = vmul.f32 %v14695_v14, %v25002_v2  ;;  %v14698_v0 = vmul.f32 %v14695_v14, %v25023_v1  ;;  %v14699_v51 = vmul.f32 %v14695_v14, %v25020_v4  ;;  %v14729_v1 = vld [vmem:[#allocation4 + $0x100] sm:$0xff]  ;;  %v14731_v4 = vld [vmem:[#allocation4 + $0x110] sm:$0xff] }
 0x88b   :  { %v14700_v48 = vmul.f32 %v14695_v14, %v25041_v29  ;;  %v14701_v53 = vmul.f32 %v14695_v14, %v25038_v7  ;;  %v14702_v8 = vmul.f32 %v14695_v14, %v25059_v31  ;;  %v14703_v21 = vmul.f32 %v14695_v14, %v25056_v22 }
 0x88c   :  { %v14704_v28 = vmul.f32 %v14695_v14, %v25077_v46  ;;  %v14705_v23 = vmul.f32 %v14695_v14, %v25074_v35  ;;  %v14706_v36 = vmul.f32 %v14695_v14, %v25095_v9  ;;  %v14707_v2 = vmul.f32 %v14695_v14, %v25092_v6  ;;  %v14733_v46 = vld [vmem:[#allocation4 + $0x120] sm:$0xff]  ;;  %v14735_v35 = vld [vmem:[#allocation4 + $0x130] sm:$0xff] }
 0x88d   :  { %v14708_v29 = vmul.f32 %v14695_v14, %v25113_v30  ;;  %v14709_v7 = vmul.f32 %v14695_v14, %v25110_v40  ;;  %v14710_v31 = vmul.f32 %v14695_v14, %v25129_v19  ;;  %v14711_v22 = vmul.f32 %v14695_v14, %v25126_v12  ;;  %v14738_v40 = vld [vmem:[#allocation4 + $0x148] sm:$0xff]  ;;  %v14737_v19 = vld [vmem:[#allocation4 + $0x140] sm:$0xff] }
 0x88e   :  { %v25279_v9 = vmul.f32 %v14695_v14, %v25145_v25  ;;  %v25282_v6 = vmul.f32 %v14695_v14, %v25142_v49  ;;  %v25285_v43 = vmul.f32 %v14695_v14, %v25161_v59  ;;  %v25288_v30 = vmul.f32 %v14695_v14, %v25158_v37  ;;  %v14739_v59 = vld [vmem:[#allocation4 + $0x150] sm:$0xff] }
 0x88f   :  { %v25291_v12 = vmul.f32 %v14695_v14, %v25177_v18  ;;  %v25294_v62 = vmul.f32 %v14695_v14, %v25174_v17  ;;  %v25297_v25 = vmul.f32 %v14695_v14, %v25191_v50  ;;  %v25300_v49 = vmul.f32 %v14695_v14, %v25188_v58  ;;  %v14744_v50 = vld [vmem:[#allocation4 + $0x178] sm:$0xff] }
 0x890   :  { %v25303_v37 = vmul.f32 %v14695_v14, %v25205_v3  ;;  %v25306_v61 = vmul.f32 %v14695_v14, %v25202_v47  ;;  %v25309_v18 = vmul.f32 %v14695_v14, %v25219_v54  ;;  %v25312_v17 = vmul.f32 %v14695_v14, %v25216_v15  ;;  %v14745_v54 = vld [vmem:[#allocation4 + $0x180] sm:$0xff] }
 0x891   :  { %v25315_v58 = vmul.f32 %v14695_v14, %v25230_v57  ;;  %v25318_v52 = vmul.f32 %v14695_v14, %v25227_v60  ;;  %v25321_v3 = vmul.f32 %v14695_v14, %v25240_v16  ;;  %v25324_v47 = vmul.f32 %v14695_v14, %v25237_v39  ;;  %v14752_v57 = vld [vmem:[#allocation4 + $0x1b8] sm:$0xff]  ;;  %v14754_v16 = vld [vmem:[#allocation4 + $0x1c8] sm:$0xff] }
 0x892   :  { %26291 = vst [vmem:[#allocation126_spill] sm:$0xff] %v25309_v18  ;;  %26292 = vst [vmem:[#allocation53_spill] sm:$0xff] %v25312_v17  ;;  %v14761_v15 = vadd.f32 %v14729_v1, %v14696_v44  ;;  %v14762_v38 = vadd.f32 %v14730_v20, %v14697_v26  ;;  %v14763_v63 = vadd.f32 %v14731_v4, %v14698_v0  ;;  %v14751_v17 = vld [vmem:[#allocation4 + $0x1b0] sm:$0xff]  ;;  %v14756_v44 = vld [vmem:[#allocation4 + $0x1d8] sm:$0xff] }
 0x893   :  { %26293 = vst [vmem:[#allocation128_spill] sm:$0xff] %v25315_v58  ;;  %26294 = vst [vmem:[#allocation97_spill] sm:$0xff] %v25318_v52  ;;  %v14764_v13 = vadd.f32 %v14732_v45, %v14699_v51  ;;  %v14765_v42 = vadd.f32 %v14733_v46, %v14700_v48  ;;  %v14766_v58 = vadd.f32 %v14734_v24, %v14701_v53  ;;  %v14755_v26 = vld [vmem:[#allocation4 + $0x1d0] sm:$0xff]  ;;  %v14758_v0 = vld [vmem:[#allocation4 + $0x1e8] sm:$0xff] }
 0x894   :  { %26295 = vst [vmem:[#allocation129_spill] sm:$0xff] %v25321_v3  ;;  %26296 = vst [vmem:[#allocation55_spill] sm:$0xff] %v25324_v47  ;;  %v14767_v60 = vadd.f32 %v14735_v35, %v14702_v8  ;;  %v14768_v52 = vadd.f32 %v14736_v33, %v14703_v21  ;;  %v14753_v3 = vld [vmem:[#allocation4 + $0x1c0] sm:$0xff]  ;;  %v14769_v18 = vadd.f32 %v14737_v19, %v14704_v28  ;;  %v14760_v28 = vld [vmem:[#allocation4 + $0x1f8] sm:$0xff] }
 0x895   :  { %v14770_v39 = vadd.f32 %v14738_v40, %v14705_v23  ;;  %v14771_v14 = vadd.f32 %v14739_v59, %v14706_v36  ;;  %v14772_v47 = vadd.f32 %v14740_v27, %v14707_v2  ;;  %14794 = vst.msk [vmem:[#allocation12 + $0x100] sm:$0xff] %vm86_vm0, %v14761_v15  ;;  %14795 = vst.msk [vmem:[#allocation12 + $0x108] sm:$0xff] %vm86_vm0, %v14762_v38  ;;  %v14757_v21 = vld [vmem:[#allocation4 + $0x1e0] sm:$0xff]  ;;  %v14759_v23 = vld [vmem:[#allocation4 + $0x1f0] sm:$0xff] }
 0x896   :  { %14796 = vst.msk [vmem:[#allocation12 + $0x110] sm:$0xff] %vm86_vm0, %v14763_v63  ;;  %14797 = vst.msk [vmem:[#allocation12 + $0x118] sm:$0xff] %vm86_vm0, %v14764_v13  ;;  %v14773_v51 = vadd.f32 %v14741_v34, %v14708_v29  ;;  %v14774_v48 = vadd.f32 %v14742_v55, %v14709_v7  ;;  %v14775_v53 = vadd.f32 %v14743_v10, %v14710_v31 }
 0x897   :  { %v14776_v8 = vadd.f32 %v14744_v50, %v14711_v22  ;;  %14798 = vst.msk [vmem:[#allocation12 + $0x120] sm:$0xff] %vm86_vm0, %v14765_v42  ;;  %14799 = vst.msk [vmem:[#allocation12 + $0x128] sm:$0xff] %vm86_vm0, %v14766_v58  ;;  %v14777_v36 = vadd.f32 %v14745_v54, %v25279_v9  ;;  %v14778_v2 = vadd.f32 %v14746_v5, %v25282_v6 }
 0x898   :  { %14800 = vst.msk [vmem:[#allocation12 + $0x130] sm:$0xff] %vm86_vm0, %v14767_v60  ;;  %14801 = vst.msk [vmem:[#allocation12 + $0x138] sm:$0xff] %vm86_vm0, %v14768_v52  ;;  %v14779_v20 = vadd.f32 %v14747_v11, %v25285_v43  ;;  %v14780_v1 = vadd.f32 %v14748_v32, %v25288_v30  ;;  %v14781_v45 = vadd.f32 %v14749_v41, %v25291_v12 }
 0x899   :  { %14802 = vst.msk [vmem:[#allocation12 + $0x140] sm:$0xff] %vm86_vm0, %v14769_v18  ;;  %14803 = vst.msk [vmem:[#allocation12 + $0x148] sm:$0xff] %vm86_vm0, %v14770_v39  ;;  %v14782_v4 = vadd.f32 %v14750_v56, %v25294_v62  ;;  %v14783_v29 = vadd.f32 %v14751_v17, %v25297_v25  ;;  %v14784_v7 = vadd.f32 %v14752_v57, %v25300_v49  ;;  %v26297_v24 = vld [vmem:[#allocation126_spill] sm:$0xff]  ;;  %v26298_v33 = vld [vmem:[#allocation53_spill] sm:$0xff] }
 0x89a   :  { %14804 = vst.msk [vmem:[#allocation12 + $0x150] sm:$0xff] %vm86_vm0, %v14771_v14  ;;  %14805 = vst.msk [vmem:[#allocation12 + $0x158] sm:$0xff] %vm86_vm0, %v14772_v47  ;;  %v14785_v31 = vadd.f32 %v14753_v3, %v25303_v37  ;;  %v14786_v22 = vadd.f32 %v14754_v16, %v25306_v61  ;;  %v14787_v46 = vadd.f32 %v14755_v26, %v26297_v24  ;;  %v26299_v9 = vld [vmem:[#allocation128_spill] sm:$0xff]  ;;  %v26300_v43 = vld [vmem:[#allocation97_spill] sm:$0xff] }
 0x89b   :  { %14806 = vst.msk [vmem:[#allocation12 + $0x160] sm:$0xff] %vm86_vm0, %v14773_v51  ;;  %14807 = vst.msk [vmem:[#allocation12 + $0x168] sm:$0xff] %vm86_vm0, %v14774_v48  ;;  %v14788_v35 = vadd.f32 %v14756_v44, %v26298_v33  ;;  %v14789_v6 = vadd.f32 %v14757_v21, %v26299_v9  ;;  %v14790_v30 = vadd.f32 %v14758_v0, %v26300_v43  ;;  %v26301_v40 = vld [vmem:[#allocation129_spill] sm:$0xff]  ;;  %v26302_v27 = vld [vmem:[#allocation55_spill] sm:$0xff] }
 0x89c   :  { %14808 = vst.msk [vmem:[#allocation12 + $0x170] sm:$0xff] %vm86_vm0, %v14775_v53  ;;  %14809 = vst.msk [vmem:[#allocation12 + $0x178] sm:$0xff] %vm86_vm0, %v14776_v8  ;;  %v14791_v19 = vadd.f32 %v14759_v23, %v26301_v40  ;;  %v14792_v12 = vadd.f32 %v14760_v28, %v26302_v27 }
 0x89d   :  { %14810 = vst.msk [vmem:[#allocation12 + $0x180] sm:$0xff] %vm86_vm0, %v14777_v36  ;;  %14811 = vst.msk [vmem:[#allocation12 + $0x188] sm:$0xff] %vm86_vm0, %v14778_v2 }
 0x89e   :  { %14812 = vst.msk [vmem:[#allocation12 + $0x190] sm:$0xff] %vm86_vm0, %v14779_v20  ;;  %14813 = vst.msk [vmem:[#allocation12 + $0x198] sm:$0xff] %vm86_vm0, %v14780_v1 }
 0x89f   :  { %14814 = vst.msk [vmem:[#allocation12 + $0x1a0] sm:$0xff] %vm86_vm0, %v14781_v45  ;;  %14815 = vst.msk [vmem:[#allocation12 + $0x1a8] sm:$0xff] %vm86_vm0, %v14782_v4 }
 0x8a0   :  { %14816 = vst.msk [vmem:[#allocation12 + $0x1b0] sm:$0xff] %vm86_vm0, %v14783_v29  ;;  %14817 = vst.msk [vmem:[#allocation12 + $0x1b8] sm:$0xff] %vm86_vm0, %v14784_v7 }
 0x8a1   :  { %14818 = vst.msk [vmem:[#allocation12 + $0x1c0] sm:$0xff] %vm86_vm0, %v14785_v31  ;;  %14819 = vst.msk [vmem:[#allocation12 + $0x1c8] sm:$0xff] %vm86_vm0, %v14786_v22 }
 0x8a2   :  { %14820 = vst.msk [vmem:[#allocation12 + $0x1d0] sm:$0xff] %vm86_vm0, %v14787_v46  ;;  %14821 = vst.msk [vmem:[#allocation12 + $0x1d8] sm:$0xff] %vm86_vm0, %v14788_v35 }
 0x8a3   :  { %14822 = vst.msk [vmem:[#allocation12 + $0x1e0] sm:$0xff] %vm86_vm0, %v14789_v6  ;;  %14823 = vst.msk [vmem:[#allocation12 + $0x1e8] sm:$0xff] %vm86_vm0, %v14790_v30 }
 0x8a4   :  { %14824 = vst.msk [vmem:[#allocation12 + $0x1f0] sm:$0xff] %vm86_vm0, %v14791_v19  ;;  %14825 = vst.msk [vmem:[#allocation12 + $0x1f8] sm:$0xff] %vm86_vm0, %v14792_v12 }
 0x8a5   :  { %19231 = shalt.err (!%p19228_p10)
}
 0x8a6   :  { %14837 = dma.vmem_to_hbm [thread:$0]  %s14832_s7, 8192, %s25389_s9, [#allocation6], %s19250_s14, %s19250_s14, %s19251_s15  }
 0x8a7   :  { %19246 = dma.done.wait [#allocation6], 8192  }
 0x8a8   :  { %19247 = vsyncadd [#allocation6], 4294959104 }
 0x8a9   :  { %14841 = vsyncpa [#allocation5], 1 }
 0x8aa   :  { %14842 = vsyncpa [#allocation8], 1 }
 0x8ab   :  { %14843 = vsyncpa [#allocation11], 1 }
 0x8ac   :  { %14844 = vsyncpa [#allocation6], 1 }

</bundles_post_ra>
